<compile_context>
chip_gen: v7x
topology: tpu7x:2x2x1
jax: 0.10.0
libtpu: 0.0.40
codegen_flags: <defaults>
</compile_context>

<pallas_src>
import numpy as np
import jax
import jax.numpy as jnp
from jax.experimental import pallas as pl
from jax.experimental.pallas import tpu as pltpu


# -----------------------------------------------------------------------------
# Pallas kernel
# -----------------------------------------------------------------------------
def darnn_kernel(x_ref, w_attn_ref, w_misc_ref, w_elstm_ref, w_dlstm_ref,
                 vecs_ref, out_ref):
    x = x_ref[...]                      # (Bt, W, F)
    Bt, W, F = x.shape
    w_attn = w_attn_ref[...]            # (2, 2H, F)   [enc h|s proj, dec d|c proj]
    w_misc = w_misc_ref[...]            # (H+W, F)     [d_w1H ; e_w1x]
    w_el = w_elstm_ref[...]             # (F+H, 4H)    fused enc LSTM (g-cols x2)
    w_dl = w_dlstm_ref[...]             # (1+H, 4H)    fused dec LSTM (g-cols x2)
    vecs = vecs_ref[...]                # (10, 4H)     biases / vectors / scalars

    H4 = w_el.shape[1]
    H = H4 // 4
    H2, H3 = 2 * H, 3 * H

    w_ehs = w_attn[0]                   # (2H, F)
    w_ddc = w_attn[1]                   # (2H, F)
    d_w1H = w_misc[:H]                  # (H, F)  decoder attn enc_out projection
    e_w1x = w_misc[H:]                  # (W, F)  encoder attn X projection

    e_b = vecs[0:1, :]                  # (1, 4H)
    d_b = vecs[1:2, :]
    fc_wc = vecs[2:3, :H]
    ff_wd = vecs[3:4, :H]
    ff_wc = vecs[4:5, :H]
    e_b1 = vecs[5:6, :F]
    e_w2 = vecs[6:7, :F]
    d_b1 = vecs[7:8, :F]
    d_w2 = vecs[8:9, :F]
    e_b2 = vecs[9:10, 0:1]
    d_b2 = vecs[9:10, 1:2]
    fc_wy = vecs[9:10, 2:3]
    fc_b = vecs[9:10, 3:4]
    ff_b = vecs[9:10, 4:5]

    def softmax_last(v):
        # Logits are tanh-bounded (|v| <= sum|w2| + |b2|), so exp cannot
        # overflow and the max-subtraction is skipped on purpose.
        ev = jnp.exp(v)
        return ev * pl.reciprocal(jnp.sum(ev, axis=-1, keepdims=True), approx=True)

    def lstm_step(x_in, h, c, w, b):
        # Single fused (Bt, in+H) @ (in+H, 4H) MXU matmul; PyTorch gate order
        # i, f, g, o.  g-gate columns/bias were pre-scaled by 2 in the wrapper
        # so tanh(g) = 2*sigmoid(2g) - 1 comes from the one full-width sigmoid.
        gates = jnp.dot(jnp.concatenate([x_in, h], axis=1), w,
                        preferred_element_type=jnp.float32) + b
        sg = jax.nn.sigmoid(gates)          # one EUP pass over the full (Bt, 4H)
        g = 2.0 * sg[:, H2:H3] - 1.0        # == tanh(g_orig)
        c_new = sg[:, H:H2] * c + sg[:, :H] * g
        h_new = sg[:, H3:] * jnp.tanh(c_new)
        return h_new, c_new

    # Loop-invariant encoder input-attention term:
    #   x_att[b, i, :] = sum_w x[b, w, i] * e_w1x[w, :]      -> (Bt, F, F)
    x_att = x[:, 0, :][:, :, None] * e_w1x[None, 0:1, :]
    for t in range(1, W):
        x_att = x_att + x[:, t, :][:, :, None] * e_w1x[None, t:t + 1, :]

    # ---------------- Encoder (fully unrolled, enc_out stays in vregs) -------
    h = jnp.zeros((Bt, H), jnp.float32)
    s = jnp.zeros((Bt, H), jnp.float32)
    h_steps = []
    for t in range(W):
        hs = jnp.dot(jnp.concatenate([h, s], axis=1), w_ehs,
                     preferred_element_type=jnp.float32) + e_b1      # (Bt, F)
        a = jnp.tanh(hs[:, None, :] + x_att)                         # (Bt, F, F)
        score = jnp.sum(a * e_w2[None, :, :], axis=-1) + e_b2        # (Bt, F)
        alpha = softmax_last(score)                                  # over features
        x_tilde = alpha * x[:, t, :]                                 # (Bt, F)
        h, s = lstm_step(x_tilde, h, s, w_el, e_b)
        h_steps.append(h[:, None, :])
    enc_out = jnp.concatenate(h_steps, axis=1)                       # (Bt, W, H)

    # Loop-invariant temporal-attention term: one flat 2D MXU matmul.
    enc_att = jnp.dot(enc_out.reshape(Bt * W, H), d_w1H,
                      preferred_element_type=jnp.float32).reshape(Bt, W, F)

    # ---------------- Decoder (fully unrolled) --------------------------------
    d = jnp.zeros((Bt, H), jnp.float32)
    c = jnp.zeros((Bt, H), jnp.float32)
    ctx = jnp.zeros((Bt, H), jnp.float32)
    for t in range(W):
        dc = jnp.dot(jnp.concatenate([d, c], axis=1), w_ddc,
                     preferred_element_type=jnp.float32) + d_b1      # (Bt, F)
        a = jnp.tanh(dc[:, None, :] + enc_att)                       # (Bt, W, F)
        score = jnp.sum(a * d_w2[None, :, :], axis=-1) + d_b2        # (Bt, W)
        beta = softmax_last(score)                                   # over time
        ctx = jnp.sum(beta[:, :, None] * enc_out, axis=1)            # (Bt, H)
        y_t = x[:, t, 1:2]                                           # (Bt, 1)
        y_tilde = (jnp.sum(ctx * fc_wc, axis=1, keepdims=True)
                   + y_t * fc_wy + fc_b)                             # (Bt, 1)
        d, c = lstm_step(y_tilde, d, c, w_dl, d_b)

    out_ref[...] = (jnp.sum(d * ff_wd, axis=1, keepdims=True)
                    + jnp.sum(ctx * ff_wc, axis=1, keepdims=True)
                    + ff_b)


# -----------------------------------------------------------------------------
# Parameter init (deterministic, PyTorch-default-style uniform)
# -----------------------------------------------------------------------------
def init_params(key, input_dim, hidden_dim, window_size):
    F, H, W = input_dim, hidden_dim, window_size
    keys = jax.random.split(key, 24)

    def unif(k, shape, fan_in):
        b = 1.0 / np.sqrt(fan_in)
        return jax.random.uniform(k, shape, jnp.float32, -b, b)

    p = {}
    # encoder LSTM (input_size=F, hidden=H)
    p['e_wih'] = unif(keys[0], (4 * H, F), H)
    p['e_whh'] = unif(keys[1], (4 * H, H), H)
    p['e_bih'] = unif(keys[2], (4 * H,), H)
    p['e_bhh'] = unif(keys[3], (4 * H,), H)
    # encoder attn: Linear(2H+W, F) -> Tanh -> Linear(F, 1)
    p['e_a1_w'] = unif(keys[4], (F, 2 * H + W), 2 * H + W)
    p['e_a1_b'] = unif(keys[5], (F,), 2 * H + W)
    p['e_a2_w'] = unif(keys[6], (1, F), F)
    p['e_a2_b'] = unif(keys[7], (1,), F)
    # decoder attn: Linear(3H, F) -> Tanh -> Linear(F, 1)
    p['d_a1_w'] = unif(keys[8], (F, 3 * H), 3 * H)
    p['d_a1_b'] = unif(keys[9], (F,), 3 * H)
    p['d_a2_w'] = unif(keys[10], (1, F), F)
    p['d_a2_b'] = unif(keys[11], (1,), F)
    # decoder LSTM (input_size=1, hidden=H)
    p['d_wih'] = unif(keys[12], (4 * H, 1), H)
    p['d_whh'] = unif(keys[13], (4 * H, H), H)
    p['d_bih'] = unif(keys[14], (4 * H,), H)
    p['d_bhh'] = unif(keys[15], (4 * H,), H)
    # fc (H+1 -> 1), fc_final (2H -> 1)
    p['fc_w'] = unif(keys[16], (1, H + 1), H + 1)
    p['fc_b'] = unif(keys[17], (1,), H + 1)
    p['ff_w'] = unif(keys[18], (1, 2 * H), 2 * H)
    p['ff_b'] = unif(keys[19], (1,), 2 * H)
    return p


# -----------------------------------------------------------------------------
# One-time parameter packing (hoisted out of the per-call path)
# -----------------------------------------------------------------------------
def prepare_inputs(p, input_dim, hidden_dim, window_size):
    F, H, W = input_dim, hidden_dim, window_size
    H4 = 4 * H
    assert H4 >= max(F, 8), "scalar/vector packing assumes 4H lanes are wide enough"

    # Scale the g-gate (third 4H-chunk) columns/bias by 2 so the kernel can
    # recover tanh(g) from the full-width sigmoid: tanh(g) = 2*sigmoid(2g) - 1.
    gscale = jnp.ones((H4,), jnp.float32).at[2 * H:3 * H].set(2.0)

    e_w1t = p['e_a1_w'].T                     # (2H+W, F)
    d_w1t = p['d_a1_w'].T                     # (3H,   F)

    w_attn = jnp.stack([e_w1t[:2 * H], d_w1t[:2 * H]], axis=0)         # (2, 2H, F)
    w_misc = jnp.concatenate([d_w1t[2 * H:], e_w1t[2 * H:]], axis=0)   # (H+W, F)

    w_elstm = jnp.concatenate([p['e_wih'].T, p['e_whh'].T], axis=0) * gscale[None, :]
    w_dlstm = jnp.concatenate([p['d_wih'].T, p['d_whh'].T], axis=0) * gscale[None, :]
    e_b = (p['e_bih'] + p['e_bhh']) * gscale
    d_b = (p['d_bih'] + p['d_bhh']) * gscale

    def row(v):
        v = jnp.asarray(v, jnp.float32).reshape(-1)
        return jnp.pad(v, (0, H4 - v.shape[0]))

    scalars = jnp.stack([p['e_a2_b'][0], p['d_a2_b'][0],
                         p['fc_w'][0, H], p['fc_b'][0], p['ff_b'][0]])
    vecs = jnp.stack([
        row(e_b),                 # 0: enc LSTM bias (g-chunk x2)
        row(d_b),                 # 1: dec LSTM bias (g-chunk x2)
        row(p['fc_w'][0, :H]),    # 2: fc weight, context part
        row(p['ff_w'][0, :H]),    # 3: fc_final weight, d part
        row(p['ff_w'][0, H:]),    # 4: fc_final weight, ctx part
        row(p['e_a1_b']),         # 5: enc attn bias1
        row(p['e_a2_w'][0]),      # 6: enc attn w2
        row(p['d_a1_b']),         # 7: dec attn bias1
        row(p['d_a2_w'][0]),      # 8: dec attn w2
        row(scalars),             # 9: [e_b2, d_b2, fc_wy, fc_b, ff_b, 0...]
    ], axis=0)                                                         # (10, 4H)

    return (jnp.asarray(w_attn, jnp.float32), jnp.asarray(w_misc, jnp.float32),
            jnp.asarray(w_elstm, jnp.float32), jnp.asarray(w_dlstm, jnp.float32),
            jnp.asarray(vecs, jnp.float32))


# -----------------------------------------------------------------------------
# Per-call wrapper: just the pallas_call
# -----------------------------------------------------------------------------
def darnn_forward_pallas(seq, packed, *, b_tile=8):
    w_attn, w_misc, w_elstm, w_dlstm, vecs = packed
    B, W, F = seq.shape
    assert B % b_tile == 0, "batch must be a multiple of the batch tile"
    n_tiles = B // b_tile

    def full(a):
        nd = a.ndim
        return pl.BlockSpec(a.shape, lambda i, _nd=nd: (0,) * _nd)

    return pl.pallas_call(
        darnn_kernel,
        out_shape=jax.ShapeDtypeStruct((B, 1), jnp.float32),
        grid=(n_tiles,),
        in_specs=[pl.BlockSpec((b_tile, W, F), lambda i: (i, 0, 0)),
                  full(w_attn), full(w_misc), full(w_elstm), full(w_dlstm),
                  full(vecs)],
        out_specs=pl.BlockSpec((b_tile, 1), lambda i: (i, 0)),
        compiler_params=pltpu.CompilerParams(
            dimension_semantics=("parallel",)),   # shards batch tiles on v7x's 2 TCs
    )(seq, w_attn, w_misc, w_elstm, w_dlstm, vecs)


# -----------------------------------------------------------------------------
# Pure-JAX reference (mirrors the PyTorch forward) for a sanity check
# -----------------------------------------------------------------------------
def ref_forward(seq, p, hidden_dim):
    B, W, F = seq.shape
    H = hidden_dim
    h = jnp.zeros((B, H)); s = jnp.zeros((B, H))
    enc_out = jnp.zeros((B, W, H))
    Xp = jnp.transpose(seq, (0, 2, 1))

    def lstm(x_in, h, c, wih, whh, bih, bhh):
        gates = x_in @ wih.T + h @ whh.T + bih + bhh
        i, f, g, o = jnp.split(gates, 4, axis=1)
        c_new = jax.nn.sigmoid(f) * c + jax.nn.sigmoid(i) * jnp.tanh(g)
        h_new = jax.nn.sigmoid(o) * jnp.tanh(c_new)
        return h_new, c_new

    for t in range(W):
        xin = jnp.concatenate([jnp.broadcast_to(h[:, None, :], (B, F, H)),
                               jnp.broadcast_to(s[:, None, :], (B, F, H)),
                               Xp], axis=-1)
        a = jnp.tanh(xin @ p['e_a1_w'].T + p['e_a1_b'])
        e = a @ p['e_a2_w'].T + p['e_a2_b']
        alpha = jax.nn.softmax(e[..., 0], axis=1)
        x_tilde = alpha * seq[:, t, :]
        h, s = lstm(x_tilde, h, s, p['e_wih'], p['e_whh'], p['e_bih'], p['e_bhh'])
        enc_out = enc_out.at[:, t, :].set(h)

    Y = seq[:, :, 1]
    d = jnp.zeros((B, H)); c = jnp.zeros((B, H)); ctx = jnp.zeros((B, H))
    for t in range(W):
        xin = jnp.concatenate([jnp.broadcast_to(d[:, None, :], (B, W, H)),
                               jnp.broadcast_to(c[:, None, :], (B, W, H)),
                               enc_out], axis=-1)
        a = jnp.tanh(xin @ p['d_a1_w'].T + p['d_a1_b'])
        e = a @ p['d_a2_w'].T + p['d_a2_b']
        beta = jax.nn.softmax(e[..., 0], axis=1)
        ctx = jnp.einsum('bw,bwh->bh', beta, enc_out)
        y_tilde = jnp.concatenate([ctx, Y[:, t:t + 1]], axis=1) @ p['fc_w'].T + p['fc_b']
        d, c = lstm(y_tilde, d, c, p['d_wih'], p['d_whh'], p['d_bih'], p['d_bhh'])

    return jnp.concatenate([d, ctx], axis=1) @ p['ff_w'].T + p['ff_b']


# -----------------------------------------------------------------------------
if __name__ == "__main__":
    # B=16 (two 8-row sublane-full tiles -> v7x gets one tile per TensorCore),
    # F=4 input features, H=32 hidden, W=8 window (== padded sequence length).
    B, INPUT_DIM, HID_DIM, WINDOW = 16, 4, 32, 8

    key = jax.random.PRNGKey(0)
    pkey, xkey = jax.random.split(key)
    params = init_params(pkey, INPUT_DIM, HID_DIM, WINDOW)
    # Dense, fully padded sequence (stand-in for pad_packed_sequence output).
    seq = jax.random.normal(xkey, (B, WINDOW, INPUT_DIM), jnp.float32)

    packed = prepare_inputs(params, INPUT_DIM, HID_DIM, WINDOW)   # one-time prep
    out = darnn_forward_pallas(seq, packed, b_tile=8)
    out = jax.block_until_ready(out)

    with jax.default_matmul_precision("highest"):
        ref = jax.block_until_ready(ref_forward(seq, params, HID_DIM))

    assert out.shape == (B, 1)
    assert bool(jnp.all(jnp.isfinite(out)))
    err = float(jnp.max(jnp.abs(out - ref)))
    if err > 5e-3:
        raise AssertionError(f"Pallas kernel mismatch vs reference: max abs err {err}")
    print("KERNEL_OK")
</pallas_src>

<mosaic_0001>
module attributes {stable_mosaic.version = 11 : i64} {
  func.func @darnn_kernel(%arg0: i32, %arg1: memref<8x8x4xf32, #tpu.memory_space<vmem>>, %arg2: memref<2x64x4xf32, #tpu.memory_space<vmem>>, %arg3: memref<40x4xf32, #tpu.memory_space<vmem>>, %arg4: memref<36x128xf32, #tpu.memory_space<vmem>>, %arg5: memref<33x128xf32, #tpu.memory_space<vmem>>, %arg6: memref<10x128xf32, #tpu.memory_space<vmem>>, %arg7: memref<8x1xf32, #tpu.memory_space<vmem>>) attributes {dimension_semantics = [#tpu.dimension_semantics<parallel>], iteration_bounds = array<i64: 2>, scalar_prefetch = 0 : i64, scratch_operands = 0 : i64, tpu.core_type = #tpu.core_type<tc>, window_params = [{transform_indices = @transform_0, window_bounds = array<i64: 8, 8, 4>}, {pipeline_mode = #tpu.pipeline_mode<synchronous>, transform_indices = @transform_1, window_bounds = array<i64: 2, 64, 4>}, {pipeline_mode = #tpu.pipeline_mode<synchronous>, transform_indices = @transform_2, window_bounds = array<i64: 40, 4>}, {pipeline_mode = #tpu.pipeline_mode<synchronous>, transform_indices = @transform_3, window_bounds = array<i64: 36, 128>}, {pipeline_mode = #tpu.pipeline_mode<synchronous>, transform_indices = @transform_4, window_bounds = array<i64: 33, 128>}, {pipeline_mode = #tpu.pipeline_mode<synchronous>, transform_indices = @transform_5, window_bounds = array<i64: 10, 128>}, {transform_indices = @transform_6, window_bounds = array<i64: 8, 1>}]} {
    %c0 = arith.constant 0 : index
    %c0_0 = arith.constant 0 : index
    %c0_1 = arith.constant 0 : index
    %0 = vector.load %arg1[%c0, %c0_0, %c0_1] : memref<8x8x4xf32, #tpu.memory_space<vmem>>, vector<8x8x4xf32>
    %c0_2 = arith.constant 0 : index
    %c0_3 = arith.constant 0 : index
    %c0_4 = arith.constant 0 : index
    %1 = vector.load %arg2[%c0_2, %c0_3, %c0_4] : memref<2x64x4xf32, #tpu.memory_space<vmem>>, vector<2x64x4xf32>
    %c0_5 = arith.constant 0 : index
    %c0_6 = arith.constant 0 : index
    %2 = vector.load %arg3[%c0_5, %c0_6] : memref<40x4xf32, #tpu.memory_space<vmem>>, vector<40x4xf32>
    %c0_7 = arith.constant 0 : index
    %c0_8 = arith.constant 0 : index
    %3 = vector.load %arg4[%c0_7, %c0_8] : memref<36x128xf32, #tpu.memory_space<vmem>>, vector<36x128xf32>
    %c0_9 = arith.constant 0 : index
    %c0_10 = arith.constant 0 : index
    %4 = vector.load %arg5[%c0_9, %c0_10] : memref<33x128xf32, #tpu.memory_space<vmem>>, vector<33x128xf32>
    %c0_11 = arith.constant 0 : index
    %c0_12 = arith.constant 0 : index
    %5 = vector.load %arg6[%c0_11, %c0_12] : memref<10x128xf32, #tpu.memory_space<vmem>>, vector<10x128xf32>
    %6 = vector.extract_strided_slice %1 {offsets = [0, 0, 0], sizes = [1, 64, 4], strides = [1, 1, 1]} : vector<2x64x4xf32> to vector<1x64x4xf32>
    %7 = vector.shape_cast %6 : vector<1x64x4xf32> to vector<64x4xf32>
    %8 = vector.extract_strided_slice %1 {offsets = [1, 0, 0], sizes = [1, 64, 4], strides = [1, 1, 1]} : vector<2x64x4xf32> to vector<1x64x4xf32>
    %9 = vector.shape_cast %8 : vector<1x64x4xf32> to vector<64x4xf32>
    %10 = vector.extract_strided_slice %2 {offsets = [0, 0], sizes = [32, 4], strides = [1, 1]} : vector<40x4xf32> to vector<32x4xf32>
    %11 = vector.extract_strided_slice %2 {offsets = [32, 0], sizes = [8, 4], strides = [1, 1]} : vector<40x4xf32> to vector<8x4xf32>
    %12 = vector.extract_strided_slice %5 {offsets = [0, 0], sizes = [1, 128], strides = [1, 1]} : vector<10x128xf32> to vector<1x128xf32>
    %13 = vector.extract_strided_slice %5 {offsets = [1, 0], sizes = [1, 128], strides = [1, 1]} : vector<10x128xf32> to vector<1x128xf32>
    %14 = vector.extract_strided_slice %5 {offsets = [2, 0], sizes = [1, 32], strides = [1, 1]} : vector<10x128xf32> to vector<1x32xf32>
    %15 = vector.extract_strided_slice %5 {offsets = [3, 0], sizes = [1, 32], strides = [1, 1]} : vector<10x128xf32> to vector<1x32xf32>
    %16 = vector.extract_strided_slice %5 {offsets = [4, 0], sizes = [1, 32], strides = [1, 1]} : vector<10x128xf32> to vector<1x32xf32>
    %17 = vector.extract_strided_slice %5 {offsets = [5, 0], sizes = [1, 4], strides = [1, 1]} : vector<10x128xf32> to vector<1x4xf32>
    %18 = vector.extract_strided_slice %5 {offsets = [6, 0], sizes = [1, 4], strides = [1, 1]} : vector<10x128xf32> to vector<1x4xf32>
    %19 = vector.extract_strided_slice %5 {offsets = [7, 0], sizes = [1, 4], strides = [1, 1]} : vector<10x128xf32> to vector<1x4xf32>
    %20 = vector.extract_strided_slice %5 {offsets = [8, 0], sizes = [1, 4], strides = [1, 1]} : vector<10x128xf32> to vector<1x4xf32>
    %21 = vector.extract_strided_slice %5 {offsets = [9, 0], sizes = [1, 1], strides = [1, 1]} : vector<10x128xf32> to vector<1x1xf32>
    %22 = vector.extract_strided_slice %5 {offsets = [9, 1], sizes = [1, 1], strides = [1, 1]} : vector<10x128xf32> to vector<1x1xf32>
    %23 = vector.extract_strided_slice %5 {offsets = [9, 2], sizes = [1, 1], strides = [1, 1]} : vector<10x128xf32> to vector<1x1xf32>
    %24 = vector.extract_strided_slice %5 {offsets = [9, 3], sizes = [1, 1], strides = [1, 1]} : vector<10x128xf32> to vector<1x1xf32>
    %25 = vector.extract_strided_slice %5 {offsets = [9, 4], sizes = [1, 1], strides = [1, 1]} : vector<10x128xf32> to vector<1x1xf32>
    %26 = vector.extract_strided_slice %0 {offsets = [0, 0, 0], sizes = [8, 1, 4], strides = [1, 1, 1]} : vector<8x8x4xf32> to vector<8x1x4xf32>
    %27 = vector.shape_cast %26 : vector<8x1x4xf32> to vector<8x4xf32>
    %28 = vector.shape_cast %27 : vector<8x4xf32> to vector<8x4x1xf32>
    %29 = vector.extract_strided_slice %11 {offsets = [0, 0], sizes = [1, 4], strides = [1, 1]} : vector<8x4xf32> to vector<1x4xf32>
    %30 = vector.shape_cast %29 : vector<1x4xf32> to vector<1x1x4xf32>
    %31 = vector.broadcast %28 : vector<8x4x1xf32> to vector<8x4x4xf32>
    %32 = vector.broadcast %30 : vector<1x1x4xf32> to vector<8x4x4xf32>
    %33 = arith.mulf %31, %32 : vector<8x4x4xf32>
    %34 = vector.extract_strided_slice %0 {offsets = [0, 1, 0], sizes = [8, 1, 4], strides = [1, 1, 1]} : vector<8x8x4xf32> to vector<8x1x4xf32>
    %35 = vector.shape_cast %34 : vector<8x1x4xf32> to vector<8x4xf32>
    %36 = vector.shape_cast %35 : vector<8x4xf32> to vector<8x4x1xf32>
    %37 = vector.extract_strided_slice %11 {offsets = [1, 0], sizes = [1, 4], strides = [1, 1]} : vector<8x4xf32> to vector<1x4xf32>
    %38 = vector.shape_cast %37 : vector<1x4xf32> to vector<1x1x4xf32>
    %39 = vector.broadcast %36 : vector<8x4x1xf32> to vector<8x4x4xf32>
    %40 = vector.broadcast %38 : vector<1x1x4xf32> to vector<8x4x4xf32>
    %41 = arith.mulf %39, %40 : vector<8x4x4xf32>
    %42 = arith.addf %33, %41 : vector<8x4x4xf32>
    %43 = vector.extract_strided_slice %0 {offsets = [0, 2, 0], sizes = [8, 1, 4], strides = [1, 1, 1]} : vector<8x8x4xf32> to vector<8x1x4xf32>
    %44 = vector.shape_cast %43 : vector<8x1x4xf32> to vector<8x4xf32>
    %45 = vector.shape_cast %44 : vector<8x4xf32> to vector<8x4x1xf32>
    %46 = vector.extract_strided_slice %11 {offsets = [2, 0], sizes = [1, 4], strides = [1, 1]} : vector<8x4xf32> to vector<1x4xf32>
    %47 = vector.shape_cast %46 : vector<1x4xf32> to vector<1x1x4xf32>
    %48 = vector.broadcast %45 : vector<8x4x1xf32> to vector<8x4x4xf32>
    %49 = vector.broadcast %47 : vector<1x1x4xf32> to vector<8x4x4xf32>
    %50 = arith.mulf %48, %49 : vector<8x4x4xf32>
    %51 = arith.addf %42, %50 : vector<8x4x4xf32>
    %52 = vector.extract_strided_slice %0 {offsets = [0, 3, 0], sizes = [8, 1, 4], strides = [1, 1, 1]} : vector<8x8x4xf32> to vector<8x1x4xf32>
    %53 = vector.shape_cast %52 : vector<8x1x4xf32> to vector<8x4xf32>
    %54 = vector.shape_cast %53 : vector<8x4xf32> to vector<8x4x1xf32>
    %55 = vector.extract_strided_slice %11 {offsets = [3, 0], sizes = [1, 4], strides = [1, 1]} : vector<8x4xf32> to vector<1x4xf32>
    %56 = vector.shape_cast %55 : vector<1x4xf32> to vector<1x1x4xf32>
    %57 = vector.broadcast %54 : vector<8x4x1xf32> to vector<8x4x4xf32>
    %58 = vector.broadcast %56 : vector<1x1x4xf32> to vector<8x4x4xf32>
    %59 = arith.mulf %57, %58 : vector<8x4x4xf32>
    %60 = arith.addf %51, %59 : vector<8x4x4xf32>
    %61 = vector.extract_strided_slice %0 {offsets = [0, 4, 0], sizes = [8, 1, 4], strides = [1, 1, 1]} : vector<8x8x4xf32> to vector<8x1x4xf32>
    %62 = vector.shape_cast %61 : vector<8x1x4xf32> to vector<8x4xf32>
    %63 = vector.shape_cast %62 : vector<8x4xf32> to vector<8x4x1xf32>
    %64 = vector.extract_strided_slice %11 {offsets = [4, 0], sizes = [1, 4], strides = [1, 1]} : vector<8x4xf32> to vector<1x4xf32>
    %65 = vector.shape_cast %64 : vector<1x4xf32> to vector<1x1x4xf32>
    %66 = vector.broadcast %63 : vector<8x4x1xf32> to vector<8x4x4xf32>
    %67 = vector.broadcast %65 : vector<1x1x4xf32> to vector<8x4x4xf32>
    %68 = arith.mulf %66, %67 : vector<8x4x4xf32>
    %69 = arith.addf %60, %68 : vector<8x4x4xf32>
    %70 = vector.extract_strided_slice %0 {offsets = [0, 5, 0], sizes = [8, 1, 4], strides = [1, 1, 1]} : vector<8x8x4xf32> to vector<8x1x4xf32>
    %71 = vector.shape_cast %70 : vector<8x1x4xf32> to vector<8x4xf32>
    %72 = vector.shape_cast %71 : vector<8x4xf32> to vector<8x4x1xf32>
    %73 = vector.extract_strided_slice %11 {offsets = [5, 0], sizes = [1, 4], strides = [1, 1]} : vector<8x4xf32> to vector<1x4xf32>
    %74 = vector.shape_cast %73 : vector<1x4xf32> to vector<1x1x4xf32>
    %75 = vector.broadcast %72 : vector<8x4x1xf32> to vector<8x4x4xf32>
    %76 = vector.broadcast %74 : vector<1x1x4xf32> to vector<8x4x4xf32>
    %77 = arith.mulf %75, %76 : vector<8x4x4xf32>
    %78 = arith.addf %69, %77 : vector<8x4x4xf32>
    %79 = vector.extract_strided_slice %0 {offsets = [0, 6, 0], sizes = [8, 1, 4], strides = [1, 1, 1]} : vector<8x8x4xf32> to vector<8x1x4xf32>
    %80 = vector.shape_cast %79 : vector<8x1x4xf32> to vector<8x4xf32>
    %81 = vector.shape_cast %80 : vector<8x4xf32> to vector<8x4x1xf32>
    %82 = vector.extract_strided_slice %11 {offsets = [6, 0], sizes = [1, 4], strides = [1, 1]} : vector<8x4xf32> to vector<1x4xf32>
    %83 = vector.shape_cast %82 : vector<1x4xf32> to vector<1x1x4xf32>
    %84 = vector.broadcast %81 : vector<8x4x1xf32> to vector<8x4x4xf32>
    %85 = vector.broadcast %83 : vector<1x1x4xf32> to vector<8x4x4xf32>
    %86 = arith.mulf %84, %85 : vector<8x4x4xf32>
    %87 = arith.addf %78, %86 : vector<8x4x4xf32>
    %88 = vector.extract_strided_slice %0 {offsets = [0, 7, 0], sizes = [8, 1, 4], strides = [1, 1, 1]} : vector<8x8x4xf32> to vector<8x1x4xf32>
    %89 = vector.shape_cast %88 : vector<8x1x4xf32> to vector<8x4xf32>
    %90 = vector.shape_cast %89 : vector<8x4xf32> to vector<8x4x1xf32>
    %91 = vector.extract_strided_slice %11 {offsets = [7, 0], sizes = [1, 4], strides = [1, 1]} : vector<8x4xf32> to vector<1x4xf32>
    %92 = vector.shape_cast %91 : vector<1x4xf32> to vector<1x1x4xf32>
    %93 = vector.broadcast %90 : vector<8x4x1xf32> to vector<8x4x4xf32>
    %94 = vector.broadcast %92 : vector<1x1x4xf32> to vector<8x4x4xf32>
    %95 = arith.mulf %93, %94 : vector<8x4x4xf32>
    %96 = arith.addf %87, %95 : vector<8x4x4xf32>
    %cst = arith.constant 0.000000e+00 : f32
    %97 = vector.broadcast %cst : f32 to vector<8x32xf32>
    %cst_13 = arith.constant 0.000000e+00 : f32
    %98 = vector.broadcast %cst_13 : f32 to vector<8x32xf32>
    %99 = tpu.concatenate %97, %98 in 1 : vector<8x32xf32>, vector<8x32xf32> -> vector<8x64xf32>
    %cst_14 = arith.constant dense<0.000000e+00> : vector<8x4xf32>
    %100 = tpu.matmul %99, %7, %cst_14 {dimension_numbers = #tpu.dot_dimension_numbers<[1], [0], [0], [1], [0, 0, 1, 1], [], []>} : vector<8x64xf32>, vector<64x4xf32>, vector<8x4xf32> -> vector<8x4xf32>
    %101 = vector.broadcast %17 : vector<1x4xf32> to vector<8x4xf32>
    %102 = arith.addf %100, %101 : vector<8x4xf32>
    %103 = vector.shape_cast %102 : vector<8x4xf32> to vector<8x1x4xf32>
    %104 = vector.broadcast %103 : vector<8x1x4xf32> to vector<8x4x4xf32>
    %105 = arith.addf %104, %96 : vector<8x4x4xf32>
    %106 = math.tanh %105 : vector<8x4x4xf32>
    %107 = vector.shape_cast %18 : vector<1x4xf32> to vector<1x1x4xf32>
    %108 = vector.broadcast %107 : vector<1x1x4xf32> to vector<8x4x4xf32>
    %109 = arith.mulf %106, %108 : vector<8x4x4xf32>
    %cst_15 = arith.constant dense<0.000000e+00> : vector<8x4xf32>
    %110 = vector.multi_reduction <add>, %109, %cst_15 [2] : vector<8x4x4xf32> to vector<8x4xf32>
    %111 = vector.broadcast %21 : vector<1x1xf32> to vector<8x4xf32>
    %112 = arith.addf %110, %111 : vector<8x4xf32>
    %113 = math.exp %112 : vector<8x4xf32>
    %cst_16 = arith.constant dense<0.000000e+00> : vector<8xf32>
    %114 = vector.multi_reduction <add>, %113, %cst_16 [1] : vector<8x4xf32> to vector<8xf32>
    %115 = vector.shape_cast %114 : vector<8xf32> to vector<8x1xf32>
    %116 = tpu.reciprocal %115 {approx = true} : vector<8x1xf32> -> vector<8x1xf32>
    %117 = vector.broadcast %116 : vector<8x1xf32> to vector<8x4xf32>
    %118 = arith.mulf %113, %117 : vector<8x4xf32>
    %119 = vector.extract_strided_slice %0 {offsets = [0, 0, 0], sizes = [8, 1, 4], strides = [1, 1, 1]} : vector<8x8x4xf32> to vector<8x1x4xf32>
    %120 = vector.shape_cast %119 : vector<8x1x4xf32> to vector<8x4xf32>
    %121 = arith.mulf %118, %120 : vector<8x4xf32>
    %122 = tpu.concatenate %121, %97 in 1 : vector<8x4xf32>, vector<8x32xf32> -> vector<8x36xf32>
    %cst_17 = arith.constant dense<0.000000e+00> : vector<8x128xf32>
    %123 = tpu.matmul %122, %3, %cst_17 {dimension_numbers = #tpu.dot_dimension_numbers<[1], [0], [0], [1], [0, 0, 1, 1], [], []>} : vector<8x36xf32>, vector<36x128xf32>, vector<8x128xf32> -> vector<8x128xf32>
    %124 = vector.broadcast %12 : vector<1x128xf32> to vector<8x128xf32>
    %125 = arith.addf %123, %124 : vector<8x128xf32>
    %126 = arith.negf %125 : vector<8x128xf32>
    %127 = math.exp %126 : vector<8x128xf32>
    %cst_18 = arith.constant 1.000000e+00 : f32
    %128 = vector.broadcast %cst_18 : f32 to vector<8x128xf32>
    %129 = arith.addf %128, %127 : vector<8x128xf32>
    %130 = arith.divf %128, %129 : vector<8x128xf32>
    %131 = vector.extract_strided_slice %130 {offsets = [0, 64], sizes = [8, 32], strides = [1, 1]} : vector<8x128xf32> to vector<8x32xf32>
    %cst_19 = arith.constant 2.000000e+00 : f32
    %132 = vector.broadcast %cst_19 : f32 to vector<8x32xf32>
    %133 = arith.mulf %132, %131 : vector<8x32xf32>
    %cst_20 = arith.constant 1.000000e+00 : f32
    %134 = vector.broadcast %cst_20 : f32 to vector<8x32xf32>
    %135 = arith.subf %133, %134 : vector<8x32xf32>
    %136 = vector.extract_strided_slice %130 {offsets = [0, 32], sizes = [8, 32], strides = [1, 1]} : vector<8x128xf32> to vector<8x32xf32>
    %137 = arith.mulf %136, %98 : vector<8x32xf32>
    %138 = vector.extract_strided_slice %130 {offsets = [0, 0], sizes = [8, 32], strides = [1, 1]} : vector<8x128xf32> to vector<8x32xf32>
    %139 = arith.mulf %138, %135 : vector<8x32xf32>
    %140 = arith.addf %137, %139 : vector<8x32xf32>
    %141 = vector.extract_strided_slice %130 {offsets = [0, 96], sizes = [8, 32], strides = [1, 1]} : vector<8x128xf32> to vector<8x32xf32>
    %142 = math.tanh %140 : vector<8x32xf32>
    %143 = arith.mulf %141, %142 : vector<8x32xf32>
    %144 = vector.shape_cast %143 : vector<8x32xf32> to vector<8x1x32xf32>
    %145 = tpu.concatenate %143, %140 in 1 : vector<8x32xf32>, vector<8x32xf32> -> vector<8x64xf32>
    %cst_21 = arith.constant dense<0.000000e+00> : vector<8x4xf32>
    %146 = tpu.matmul %145, %7, %cst_21 {dimension_numbers = #tpu.dot_dimension_numbers<[1], [0], [0], [1], [0, 0, 1, 1], [], []>} : vector<8x64xf32>, vector<64x4xf32>, vector<8x4xf32> -> vector<8x4xf32>
    %147 = vector.broadcast %17 : vector<1x4xf32> to vector<8x4xf32>
    %148 = arith.addf %146, %147 : vector<8x4xf32>
    %149 = vector.shape_cast %148 : vector<8x4xf32> to vector<8x1x4xf32>
    %150 = vector.broadcast %149 : vector<8x1x4xf32> to vector<8x4x4xf32>
    %151 = arith.addf %150, %96 : vector<8x4x4xf32>
    %152 = math.tanh %151 : vector<8x4x4xf32>
    %153 = vector.shape_cast %18 : vector<1x4xf32> to vector<1x1x4xf32>
    %154 = vector.broadcast %153 : vector<1x1x4xf32> to vector<8x4x4xf32>
    %155 = arith.mulf %152, %154 : vector<8x4x4xf32>
    %cst_22 = arith.constant dense<0.000000e+00> : vector<8x4xf32>
    %156 = vector.multi_reduction <add>, %155, %cst_22 [2] : vector<8x4x4xf32> to vector<8x4xf32>
    %157 = vector.broadcast %21 : vector<1x1xf32> to vector<8x4xf32>
    %158 = arith.addf %156, %157 : vector<8x4xf32>
    %159 = math.exp %158 : vector<8x4xf32>
    %cst_23 = arith.constant dense<0.000000e+00> : vector<8xf32>
    %160 = vector.multi_reduction <add>, %159, %cst_23 [1] : vector<8x4xf32> to vector<8xf32>
    %161 = vector.shape_cast %160 : vector<8xf32> to vector<8x1xf32>
    %162 = tpu.reciprocal %161 {approx = true} : vector<8x1xf32> -> vector<8x1xf32>
    %163 = vector.broadcast %162 : vector<8x1xf32> to vector<8x4xf32>
    %164 = arith.mulf %159, %163 : vector<8x4xf32>
    %165 = vector.extract_strided_slice %0 {offsets = [0, 1, 0], sizes = [8, 1, 4], strides = [1, 1, 1]} : vector<8x8x4xf32> to vector<8x1x4xf32>
    %166 = vector.shape_cast %165 : vector<8x1x4xf32> to vector<8x4xf32>
    %167 = arith.mulf %164, %166 : vector<8x4xf32>
    %168 = tpu.concatenate %167, %143 in 1 : vector<8x4xf32>, vector<8x32xf32> -> vector<8x36xf32>
    %cst_24 = arith.constant dense<0.000000e+00> : vector<8x128xf32>
    %169 = tpu.matmul %168, %3, %cst_24 {dimension_numbers = #tpu.dot_dimension_numbers<[1], [0], [0], [1], [0, 0, 1, 1], [], []>} : vector<8x36xf32>, vector<36x128xf32>, vector<8x128xf32> -> vector<8x128xf32>
    %170 = vector.broadcast %12 : vector<1x128xf32> to vector<8x128xf32>
    %171 = arith.addf %169, %170 : vector<8x128xf32>
    %172 = arith.negf %171 : vector<8x128xf32>
    %173 = math.exp %172 : vector<8x128xf32>
    %cst_25 = arith.constant 1.000000e+00 : f32
    %174 = vector.broadcast %cst_25 : f32 to vector<8x128xf32>
    %175 = arith.addf %174, %173 : vector<8x128xf32>
    %176 = arith.divf %174, %175 : vector<8x128xf32>
    %177 = vector.extract_strided_slice %176 {offsets = [0, 64], sizes = [8, 32], strides = [1, 1]} : vector<8x128xf32> to vector<8x32xf32>
    %cst_26 = arith.constant 2.000000e+00 : f32
    %178 = vector.broadcast %cst_26 : f32 to vector<8x32xf32>
    %179 = arith.mulf %178, %177 : vector<8x32xf32>
    %cst_27 = arith.constant 1.000000e+00 : f32
    %180 = vector.broadcast %cst_27 : f32 to vector<8x32xf32>
    %181 = arith.subf %179, %180 : vector<8x32xf32>
    %182 = vector.extract_strided_slice %176 {offsets = [0, 32], sizes = [8, 32], strides = [1, 1]} : vector<8x128xf32> to vector<8x32xf32>
    %183 = arith.mulf %182, %140 : vector<8x32xf32>
    %184 = vector.extract_strided_slice %176 {offsets = [0, 0], sizes = [8, 32], strides = [1, 1]} : vector<8x128xf32> to vector<8x32xf32>
    %185 = arith.mulf %184, %181 : vector<8x32xf32>
    %186 = arith.addf %183, %185 : vector<8x32xf32>
    %187 = vector.extract_strided_slice %176 {offsets = [0, 96], sizes = [8, 32], strides = [1, 1]} : vector<8x128xf32> to vector<8x32xf32>
    %188 = math.tanh %186 : vector<8x32xf32>
    %189 = arith.mulf %187, %188 : vector<8x32xf32>
    %190 = vector.shape_cast %189 : vector<8x32xf32> to vector<8x1x32xf32>
    %191 = tpu.concatenate %189, %186 in 1 : vector<8x32xf32>, vector<8x32xf32> -> vector<8x64xf32>
    %cst_28 = arith.constant dense<0.000000e+00> : vector<8x4xf32>
    %192 = tpu.matmul %191, %7, %cst_28 {dimension_numbers = #tpu.dot_dimension_numbers<[1], [0], [0], [1], [0, 0, 1, 1], [], []>} : vector<8x64xf32>, vector<64x4xf32>, vector<8x4xf32> -> vector<8x4xf32>
    %193 = vector.broadcast %17 : vector<1x4xf32> to vector<8x4xf32>
    %194 = arith.addf %192, %193 : vector<8x4xf32>
    %195 = vector.shape_cast %194 : vector<8x4xf32> to vector<8x1x4xf32>
    %196 = vector.broadcast %195 : vector<8x1x4xf32> to vector<8x4x4xf32>
    %197 = arith.addf %196, %96 : vector<8x4x4xf32>
    %198 = math.tanh %197 : vector<8x4x4xf32>
    %199 = vector.shape_cast %18 : vector<1x4xf32> to vector<1x1x4xf32>
    %200 = vector.broadcast %199 : vector<1x1x4xf32> to vector<8x4x4xf32>
    %201 = arith.mulf %198, %200 : vector<8x4x4xf32>
    %cst_29 = arith.constant dense<0.000000e+00> : vector<8x4xf32>
    %202 = vector.multi_reduction <add>, %201, %cst_29 [2] : vector<8x4x4xf32> to vector<8x4xf32>
    %203 = vector.broadcast %21 : vector<1x1xf32> to vector<8x4xf32>
    %204 = arith.addf %202, %203 : vector<8x4xf32>
    %205 = math.exp %204 : vector<8x4xf32>
    %cst_30 = arith.constant dense<0.000000e+00> : vector<8xf32>
    %206 = vector.multi_reduction <add>, %205, %cst_30 [1] : vector<8x4xf32> to vector<8xf32>
    %207 = vector.shape_cast %206 : vector<8xf32> to vector<8x1xf32>
    %208 = tpu.reciprocal %207 {approx = true} : vector<8x1xf32> -> vector<8x1xf32>
    %209 = vector.broadcast %208 : vector<8x1xf32> to vector<8x4xf32>
    %210 = arith.mulf %205, %209 : vector<8x4xf32>
    %211 = vector.extract_strided_slice %0 {offsets = [0, 2, 0], sizes = [8, 1, 4], strides = [1, 1, 1]} : vector<8x8x4xf32> to vector<8x1x4xf32>
    %212 = vector.shape_cast %211 : vector<8x1x4xf32> to vector<8x4xf32>
    %213 = arith.mulf %210, %212 : vector<8x4xf32>
    %214 = tpu.concatenate %213, %189 in 1 : vector<8x4xf32>, vector<8x32xf32> -> vector<8x36xf32>
    %cst_31 = arith.constant dense<0.000000e+00> : vector<8x128xf32>
    %215 = tpu.matmul %214, %3, %cst_31 {dimension_numbers = #tpu.dot_dimension_numbers<[1], [0], [0], [1], [0, 0, 1, 1], [], []>} : vector<8x36xf32>, vector<36x128xf32>, vector<8x128xf32> -> vector<8x128xf32>
    %216 = vector.broadcast %12 : vector<1x128xf32> to vector<8x128xf32>
    %217 = arith.addf %215, %216 : vector<8x128xf32>
    %218 = arith.negf %217 : vector<8x128xf32>
    %219 = math.exp %218 : vector<8x128xf32>
    %cst_32 = arith.constant 1.000000e+00 : f32
    %220 = vector.broadcast %cst_32 : f32 to vector<8x128xf32>
    %221 = arith.addf %220, %219 : vector<8x128xf32>
    %222 = arith.divf %220, %221 : vector<8x128xf32>
    %223 = vector.extract_strided_slice %222 {offsets = [0, 64], sizes = [8, 32], strides = [1, 1]} : vector<8x128xf32> to vector<8x32xf32>
    %cst_33 = arith.constant 2.000000e+00 : f32
    %224 = vector.broadcast %cst_33 : f32 to vector<8x32xf32>
    %225 = arith.mulf %224, %223 : vector<8x32xf32>
    %cst_34 = arith.constant 1.000000e+00 : f32
    %226 = vector.broadcast %cst_34 : f32 to vector<8x32xf32>
    %227 = arith.subf %225, %226 : vector<8x32xf32>
    %228 = vector.extract_strided_slice %222 {offsets = [0, 32], sizes = [8, 32], strides = [1, 1]} : vector<8x128xf32> to vector<8x32xf32>
    %229 = arith.mulf %228, %186 : vector<8x32xf32>
    %230 = vector.extract_strided_slice %222 {offsets = [0, 0], sizes = [8, 32], strides = [1, 1]} : vector<8x128xf32> to vector<8x32xf32>
    %231 = arith.mulf %230, %227 : vector<8x32xf32>
    %232 = arith.addf %229, %231 : vector<8x32xf32>
    %233 = vector.extract_strided_slice %222 {offsets = [0, 96], sizes = [8, 32], strides = [1, 1]} : vector<8x128xf32> to vector<8x32xf32>
    %234 = math.tanh %232 : vector<8x32xf32>
    %235 = arith.mulf %233, %234 : vector<8x32xf32>
    %236 = vector.shape_cast %235 : vector<8x32xf32> to vector<8x1x32xf32>
    %237 = tpu.concatenate %235, %232 in 1 : vector<8x32xf32>, vector<8x32xf32> -> vector<8x64xf32>
    %cst_35 = arith.constant dense<0.000000e+00> : vector<8x4xf32>
    %238 = tpu.matmul %237, %7, %cst_35 {dimension_numbers = #tpu.dot_dimension_numbers<[1], [0], [0], [1], [0, 0, 1, 1], [], []>} : vector<8x64xf32>, vector<64x4xf32>, vector<8x4xf32> -> vector<8x4xf32>
    %239 = vector.broadcast %17 : vector<1x4xf32> to vector<8x4xf32>
    %240 = arith.addf %238, %239 : vector<8x4xf32>
    %241 = vector.shape_cast %240 : vector<8x4xf32> to vector<8x1x4xf32>
    %242 = vector.broadcast %241 : vector<8x1x4xf32> to vector<8x4x4xf32>
    %243 = arith.addf %242, %96 : vector<8x4x4xf32>
    %244 = math.tanh %243 : vector<8x4x4xf32>
    %245 = vector.shape_cast %18 : vector<1x4xf32> to vector<1x1x4xf32>
    %246 = vector.broadcast %245 : vector<1x1x4xf32> to vector<8x4x4xf32>
    %247 = arith.mulf %244, %246 : vector<8x4x4xf32>
    %cst_36 = arith.constant dense<0.000000e+00> : vector<8x4xf32>
    %248 = vector.multi_reduction <add>, %247, %cst_36 [2] : vector<8x4x4xf32> to vector<8x4xf32>
    %249 = vector.broadcast %21 : vector<1x1xf32> to vector<8x4xf32>
    %250 = arith.addf %248, %249 : vector<8x4xf32>
    %251 = math.exp %250 : vector<8x4xf32>
    %cst_37 = arith.constant dense<0.000000e+00> : vector<8xf32>
    %252 = vector.multi_reduction <add>, %251, %cst_37 [1] : vector<8x4xf32> to vector<8xf32>
    %253 = vector.shape_cast %252 : vector<8xf32> to vector<8x1xf32>
    %254 = tpu.reciprocal %253 {approx = true} : vector<8x1xf32> -> vector<8x1xf32>
    %255 = vector.broadcast %254 : vector<8x1xf32> to vector<8x4xf32>
    %256 = arith.mulf %251, %255 : vector<8x4xf32>
    %257 = vector.extract_strided_slice %0 {offsets = [0, 3, 0], sizes = [8, 1, 4], strides = [1, 1, 1]} : vector<8x8x4xf32> to vector<8x1x4xf32>
    %258 = vector.shape_cast %257 : vector<8x1x4xf32> to vector<8x4xf32>
    %259 = arith.mulf %256, %258 : vector<8x4xf32>
    %260 = tpu.concatenate %259, %235 in 1 : vector<8x4xf32>, vector<8x32xf32> -> vector<8x36xf32>
    %cst_38 = arith.constant dense<0.000000e+00> : vector<8x128xf32>
    %261 = tpu.matmul %260, %3, %cst_38 {dimension_numbers = #tpu.dot_dimension_numbers<[1], [0], [0], [1], [0, 0, 1, 1], [], []>} : vector<8x36xf32>, vector<36x128xf32>, vector<8x128xf32> -> vector<8x128xf32>
    %262 = vector.broadcast %12 : vector<1x128xf32> to vector<8x128xf32>
    %263 = arith.addf %261, %262 : vector<8x128xf32>
    %264 = arith.negf %263 : vector<8x128xf32>
    %265 = math.exp %264 : vector<8x128xf32>
    %cst_39 = arith.constant 1.000000e+00 : f32
    %266 = vector.broadcast %cst_39 : f32 to vector<8x128xf32>
    %267 = arith.addf %266, %265 : vector<8x128xf32>
    %268 = arith.divf %266, %267 : vector<8x128xf32>
    %269 = vector.extract_strided_slice %268 {offsets = [0, 64], sizes = [8, 32], strides = [1, 1]} : vector<8x128xf32> to vector<8x32xf32>
    %cst_40 = arith.constant 2.000000e+00 : f32
    %270 = vector.broadcast %cst_40 : f32 to vector<8x32xf32>
    %271 = arith.mulf %270, %269 : vector<8x32xf32>
    %cst_41 = arith.constant 1.000000e+00 : f32
    %272 = vector.broadcast %cst_41 : f32 to vector<8x32xf32>
    %273 = arith.subf %271, %272 : vector<8x32xf32>
    %274 = vector.extract_strided_slice %268 {offsets = [0, 32], sizes = [8, 32], strides = [1, 1]} : vector<8x128xf32> to vector<8x32xf32>
    %275 = arith.mulf %274, %232 : vector<8x32xf32>
    %276 = vector.extract_strided_slice %268 {offsets = [0, 0], sizes = [8, 32], strides = [1, 1]} : vector<8x128xf32> to vector<8x32xf32>
    %277 = arith.mulf %276, %273 : vector<8x32xf32>
    %278 = arith.addf %275, %277 : vector<8x32xf32>
    %279 = vector.extract_strided_slice %268 {offsets = [0, 96], sizes = [8, 32], strides = [1, 1]} : vector<8x128xf32> to vector<8x32xf32>
    %280 = math.tanh %278 : vector<8x32xf32>
    %281 = arith.mulf %279, %280 : vector<8x32xf32>
    %282 = vector.shape_cast %281 : vector<8x32xf32> to vector<8x1x32xf32>
    %283 = tpu.concatenate %281, %278 in 1 : vector<8x32xf32>, vector<8x32xf32> -> vector<8x64xf32>
    %cst_42 = arith.constant dense<0.000000e+00> : vector<8x4xf32>
    %284 = tpu.matmul %283, %7, %cst_42 {dimension_numbers = #tpu.dot_dimension_numbers<[1], [0], [0], [1], [0, 0, 1, 1], [], []>} : vector<8x64xf32>, vector<64x4xf32>, vector<8x4xf32> -> vector<8x4xf32>
    %285 = vector.broadcast %17 : vector<1x4xf32> to vector<8x4xf32>
    %286 = arith.addf %284, %285 : vector<8x4xf32>
    %287 = vector.shape_cast %286 : vector<8x4xf32> to vector<8x1x4xf32>
    %288 = vector.broadcast %287 : vector<8x1x4xf32> to vector<8x4x4xf32>
    %289 = arith.addf %288, %96 : vector<8x4x4xf32>
    %290 = math.tanh %289 : vector<8x4x4xf32>
    %291 = vector.shape_cast %18 : vector<1x4xf32> to vector<1x1x4xf32>
    %292 = vector.broadcast %291 : vector<1x1x4xf32> to vector<8x4x4xf32>
    %293 = arith.mulf %290, %292 : vector<8x4x4xf32>
    %cst_43 = arith.constant dense<0.000000e+00> : vector<8x4xf32>
    %294 = vector.multi_reduction <add>, %293, %cst_43 [2] : vector<8x4x4xf32> to vector<8x4xf32>
    %295 = vector.broadcast %21 : vector<1x1xf32> to vector<8x4xf32>
    %296 = arith.addf %294, %295 : vector<8x4xf32>
    %297 = math.exp %296 : vector<8x4xf32>
    %cst_44 = arith.constant dense<0.000000e+00> : vector<8xf32>
    %298 = vector.multi_reduction <add>, %297, %cst_44 [1] : vector<8x4xf32> to vector<8xf32>
    %299 = vector.shape_cast %298 : vector<8xf32> to vector<8x1xf32>
    %300 = tpu.reciprocal %299 {approx = true} : vector<8x1xf32> -> vector<8x1xf32>
    %301 = vector.broadcast %300 : vector<8x1xf32> to vector<8x4xf32>
    %302 = arith.mulf %297, %301 : vector<8x4xf32>
    %303 = vector.extract_strided_slice %0 {offsets = [0, 4, 0], sizes = [8, 1, 4], strides = [1, 1, 1]} : vector<8x8x4xf32> to vector<8x1x4xf32>
    %304 = vector.shape_cast %303 : vector<8x1x4xf32> to vector<8x4xf32>
    %305 = arith.mulf %302, %304 : vector<8x4xf32>
    %306 = tpu.concatenate %305, %281 in 1 : vector<8x4xf32>, vector<8x32xf32> -> vector<8x36xf32>
    %cst_45 = arith.constant dense<0.000000e+00> : vector<8x128xf32>
    %307 = tpu.matmul %306, %3, %cst_45 {dimension_numbers = #tpu.dot_dimension_numbers<[1], [0], [0], [1], [0, 0, 1, 1], [], []>} : vector<8x36xf32>, vector<36x128xf32>, vector<8x128xf32> -> vector<8x128xf32>
    %308 = vector.broadcast %12 : vector<1x128xf32> to vector<8x128xf32>
    %309 = arith.addf %307, %308 : vector<8x128xf32>
    %310 = arith.negf %309 : vector<8x128xf32>
    %311 = math.exp %310 : vector<8x128xf32>
    %cst_46 = arith.constant 1.000000e+00 : f32
    %312 = vector.broadcast %cst_46 : f32 to vector<8x128xf32>
    %313 = arith.addf %312, %311 : vector<8x128xf32>
    %314 = arith.divf %312, %313 : vector<8x128xf32>
    %315 = vector.extract_strided_slice %314 {offsets = [0, 64], sizes = [8, 32], strides = [1, 1]} : vector<8x128xf32> to vector<8x32xf32>
    %cst_47 = arith.constant 2.000000e+00 : f32
    %316 = vector.broadcast %cst_47 : f32 to vector<8x32xf32>
    %317 = arith.mulf %316, %315 : vector<8x32xf32>
    %cst_48 = arith.constant 1.000000e+00 : f32
    %318 = vector.broadcast %cst_48 : f32 to vector<8x32xf32>
    %319 = arith.subf %317, %318 : vector<8x32xf32>
    %320 = vector.extract_strided_slice %314 {offsets = [0, 32], sizes = [8, 32], strides = [1, 1]} : vector<8x128xf32> to vector<8x32xf32>
    %321 = arith.mulf %320, %278 : vector<8x32xf32>
    %322 = vector.extract_strided_slice %314 {offsets = [0, 0], sizes = [8, 32], strides = [1, 1]} : vector<8x128xf32> to vector<8x32xf32>
    %323 = arith.mulf %322, %319 : vector<8x32xf32>
    %324 = arith.addf %321, %323 : vector<8x32xf32>
    %325 = vector.extract_strided_slice %314 {offsets = [0, 96], sizes = [8, 32], strides = [1, 1]} : vector<8x128xf32> to vector<8x32xf32>
    %326 = math.tanh %324 : vector<8x32xf32>
    %327 = arith.mulf %325, %326 : vector<8x32xf32>
    %328 = vector.shape_cast %327 : vector<8x32xf32> to vector<8x1x32xf32>
    %329 = tpu.concatenate %327, %324 in 1 : vector<8x32xf32>, vector<8x32xf32> -> vector<8x64xf32>
    %cst_49 = arith.constant dense<0.000000e+00> : vector<8x4xf32>
    %330 = tpu.matmul %329, %7, %cst_49 {dimension_numbers = #tpu.dot_dimension_numbers<[1], [0], [0], [1], [0, 0, 1, 1], [], []>} : vector<8x64xf32>, vector<64x4xf32>, vector<8x4xf32> -> vector<8x4xf32>
    %331 = vector.broadcast %17 : vector<1x4xf32> to vector<8x4xf32>
    %332 = arith.addf %330, %331 : vector<8x4xf32>
    %333 = vector.shape_cast %332 : vector<8x4xf32> to vector<8x1x4xf32>
    %334 = vector.broadcast %333 : vector<8x1x4xf32> to vector<8x4x4xf32>
    %335 = arith.addf %334, %96 : vector<8x4x4xf32>
    %336 = math.tanh %335 : vector<8x4x4xf32>
    %337 = vector.shape_cast %18 : vector<1x4xf32> to vector<1x1x4xf32>
    %338 = vector.broadcast %337 : vector<1x1x4xf32> to vector<8x4x4xf32>
    %339 = arith.mulf %336, %338 : vector<8x4x4xf32>
    %cst_50 = arith.constant dense<0.000000e+00> : vector<8x4xf32>
    %340 = vector.multi_reduction <add>, %339, %cst_50 [2] : vector<8x4x4xf32> to vector<8x4xf32>
    %341 = vector.broadcast %21 : vector<1x1xf32> to vector<8x4xf32>
    %342 = arith.addf %340, %341 : vector<8x4xf32>
    %343 = math.exp %342 : vector<8x4xf32>
    %cst_51 = arith.constant dense<0.000000e+00> : vector<8xf32>
    %344 = vector.multi_reduction <add>, %343, %cst_51 [1] : vector<8x4xf32> to vector<8xf32>
    %345 = vector.shape_cast %344 : vector<8xf32> to vector<8x1xf32>
    %346 = tpu.reciprocal %345 {approx = true} : vector<8x1xf32> -> vector<8x1xf32>
    %347 = vector.broadcast %346 : vector<8x1xf32> to vector<8x4xf32>
    %348 = arith.mulf %343, %347 : vector<8x4xf32>
    %349 = vector.extract_strided_slice %0 {offsets = [0, 5, 0], sizes = [8, 1, 4], strides = [1, 1, 1]} : vector<8x8x4xf32> to vector<8x1x4xf32>
    %350 = vector.shape_cast %349 : vector<8x1x4xf32> to vector<8x4xf32>
    %351 = arith.mulf %348, %350 : vector<8x4xf32>
    %352 = tpu.concatenate %351, %327 in 1 : vector<8x4xf32>, vector<8x32xf32> -> vector<8x36xf32>
    %cst_52 = arith.constant dense<0.000000e+00> : vector<8x128xf32>
    %353 = tpu.matmul %352, %3, %cst_52 {dimension_numbers = #tpu.dot_dimension_numbers<[1], [0], [0], [1], [0, 0, 1, 1], [], []>} : vector<8x36xf32>, vector<36x128xf32>, vector<8x128xf32> -> vector<8x128xf32>
    %354 = vector.broadcast %12 : vector<1x128xf32> to vector<8x128xf32>
    %355 = arith.addf %353, %354 : vector<8x128xf32>
    %356 = arith.negf %355 : vector<8x128xf32>
    %357 = math.exp %356 : vector<8x128xf32>
    %cst_53 = arith.constant 1.000000e+00 : f32
    %358 = vector.broadcast %cst_53 : f32 to vector<8x128xf32>
    %359 = arith.addf %358, %357 : vector<8x128xf32>
    %360 = arith.divf %358, %359 : vector<8x128xf32>
    %361 = vector.extract_strided_slice %360 {offsets = [0, 64], sizes = [8, 32], strides = [1, 1]} : vector<8x128xf32> to vector<8x32xf32>
    %cst_54 = arith.constant 2.000000e+00 : f32
    %362 = vector.broadcast %cst_54 : f32 to vector<8x32xf32>
    %363 = arith.mulf %362, %361 : vector<8x32xf32>
    %cst_55 = arith.constant 1.000000e+00 : f32
    %364 = vector.broadcast %cst_55 : f32 to vector<8x32xf32>
    %365 = arith.subf %363, %364 : vector<8x32xf32>
    %366 = vector.extract_strided_slice %360 {offsets = [0, 32], sizes = [8, 32], strides = [1, 1]} : vector<8x128xf32> to vector<8x32xf32>
    %367 = arith.mulf %366, %324 : vector<8x32xf32>
    %368 = vector.extract_strided_slice %360 {offsets = [0, 0], sizes = [8, 32], strides = [1, 1]} : vector<8x128xf32> to vector<8x32xf32>
    %369 = arith.mulf %368, %365 : vector<8x32xf32>
    %370 = arith.addf %367, %369 : vector<8x32xf32>
    %371 = vector.extract_strided_slice %360 {offsets = [0, 96], sizes = [8, 32], strides = [1, 1]} : vector<8x128xf32> to vector<8x32xf32>
    %372 = math.tanh %370 : vector<8x32xf32>
    %373 = arith.mulf %371, %372 : vector<8x32xf32>
    %374 = vector.shape_cast %373 : vector<8x32xf32> to vector<8x1x32xf32>
    %375 = tpu.concatenate %373, %370 in 1 : vector<8x32xf32>, vector<8x32xf32> -> vector<8x64xf32>
    %cst_56 = arith.constant dense<0.000000e+00> : vector<8x4xf32>
    %376 = tpu.matmul %375, %7, %cst_56 {dimension_numbers = #tpu.dot_dimension_numbers<[1], [0], [0], [1], [0, 0, 1, 1], [], []>} : vector<8x64xf32>, vector<64x4xf32>, vector<8x4xf32> -> vector<8x4xf32>
    %377 = vector.broadcast %17 : vector<1x4xf32> to vector<8x4xf32>
    %378 = arith.addf %376, %377 : vector<8x4xf32>
    %379 = vector.shape_cast %378 : vector<8x4xf32> to vector<8x1x4xf32>
    %380 = vector.broadcast %379 : vector<8x1x4xf32> to vector<8x4x4xf32>
    %381 = arith.addf %380, %96 : vector<8x4x4xf32>
    %382 = math.tanh %381 : vector<8x4x4xf32>
    %383 = vector.shape_cast %18 : vector<1x4xf32> to vector<1x1x4xf32>
    %384 = vector.broadcast %383 : vector<1x1x4xf32> to vector<8x4x4xf32>
    %385 = arith.mulf %382, %384 : vector<8x4x4xf32>
    %cst_57 = arith.constant dense<0.000000e+00> : vector<8x4xf32>
    %386 = vector.multi_reduction <add>, %385, %cst_57 [2] : vector<8x4x4xf32> to vector<8x4xf32>
    %387 = vector.broadcast %21 : vector<1x1xf32> to vector<8x4xf32>
    %388 = arith.addf %386, %387 : vector<8x4xf32>
    %389 = math.exp %388 : vector<8x4xf32>
    %cst_58 = arith.constant dense<0.000000e+00> : vector<8xf32>
    %390 = vector.multi_reduction <add>, %389, %cst_58 [1] : vector<8x4xf32> to vector<8xf32>
    %391 = vector.shape_cast %390 : vector<8xf32> to vector<8x1xf32>
    %392 = tpu.reciprocal %391 {approx = true} : vector<8x1xf32> -> vector<8x1xf32>
    %393 = vector.broadcast %392 : vector<8x1xf32> to vector<8x4xf32>
    %394 = arith.mulf %389, %393 : vector<8x4xf32>
    %395 = vector.extract_strided_slice %0 {offsets = [0, 6, 0], sizes = [8, 1, 4], strides = [1, 1, 1]} : vector<8x8x4xf32> to vector<8x1x4xf32>
    %396 = vector.shape_cast %395 : vector<8x1x4xf32> to vector<8x4xf32>
    %397 = arith.mulf %394, %396 : vector<8x4xf32>
    %398 = tpu.concatenate %397, %373 in 1 : vector<8x4xf32>, vector<8x32xf32> -> vector<8x36xf32>
    %cst_59 = arith.constant dense<0.000000e+00> : vector<8x128xf32>
    %399 = tpu.matmul %398, %3, %cst_59 {dimension_numbers = #tpu.dot_dimension_numbers<[1], [0], [0], [1], [0, 0, 1, 1], [], []>} : vector<8x36xf32>, vector<36x128xf32>, vector<8x128xf32> -> vector<8x128xf32>
    %400 = vector.broadcast %12 : vector<1x128xf32> to vector<8x128xf32>
    %401 = arith.addf %399, %400 : vector<8x128xf32>
    %402 = arith.negf %401 : vector<8x128xf32>
    %403 = math.exp %402 : vector<8x128xf32>
    %cst_60 = arith.constant 1.000000e+00 : f32
    %404 = vector.broadcast %cst_60 : f32 to vector<8x128xf32>
    %405 = arith.addf %404, %403 : vector<8x128xf32>
    %406 = arith.divf %404, %405 : vector<8x128xf32>
    %407 = vector.extract_strided_slice %406 {offsets = [0, 64], sizes = [8, 32], strides = [1, 1]} : vector<8x128xf32> to vector<8x32xf32>
    %cst_61 = arith.constant 2.000000e+00 : f32
    %408 = vector.broadcast %cst_61 : f32 to vector<8x32xf32>
    %409 = arith.mulf %408, %407 : vector<8x32xf32>
    %cst_62 = arith.constant 1.000000e+00 : f32
    %410 = vector.broadcast %cst_62 : f32 to vector<8x32xf32>
    %411 = arith.subf %409, %410 : vector<8x32xf32>
    %412 = vector.extract_strided_slice %406 {offsets = [0, 32], sizes = [8, 32], strides = [1, 1]} : vector<8x128xf32> to vector<8x32xf32>
    %413 = arith.mulf %412, %370 : vector<8x32xf32>
    %414 = vector.extract_strided_slice %406 {offsets = [0, 0], sizes = [8, 32], strides = [1, 1]} : vector<8x128xf32> to vector<8x32xf32>
    %415 = arith.mulf %414, %411 : vector<8x32xf32>
    %416 = arith.addf %413, %415 : vector<8x32xf32>
    %417 = vector.extract_strided_slice %406 {offsets = [0, 96], sizes = [8, 32], strides = [1, 1]} : vector<8x128xf32> to vector<8x32xf32>
    %418 = math.tanh %416 : vector<8x32xf32>
    %419 = arith.mulf %417, %418 : vector<8x32xf32>
    %420 = vector.shape_cast %419 : vector<8x32xf32> to vector<8x1x32xf32>
    %421 = tpu.concatenate %419, %416 in 1 : vector<8x32xf32>, vector<8x32xf32> -> vector<8x64xf32>
    %cst_63 = arith.constant dense<0.000000e+00> : vector<8x4xf32>
    %422 = tpu.matmul %421, %7, %cst_63 {dimension_numbers = #tpu.dot_dimension_numbers<[1], [0], [0], [1], [0, 0, 1, 1], [], []>} : vector<8x64xf32>, vector<64x4xf32>, vector<8x4xf32> -> vector<8x4xf32>
    %423 = vector.broadcast %17 : vector<1x4xf32> to vector<8x4xf32>
    %424 = arith.addf %422, %423 : vector<8x4xf32>
    %425 = vector.shape_cast %424 : vector<8x4xf32> to vector<8x1x4xf32>
    %426 = vector.broadcast %425 : vector<8x1x4xf32> to vector<8x4x4xf32>
    %427 = arith.addf %426, %96 : vector<8x4x4xf32>
    %428 = math.tanh %427 : vector<8x4x4xf32>
    %429 = vector.shape_cast %18 : vector<1x4xf32> to vector<1x1x4xf32>
    %430 = vector.broadcast %429 : vector<1x1x4xf32> to vector<8x4x4xf32>
    %431 = arith.mulf %428, %430 : vector<8x4x4xf32>
    %cst_64 = arith.constant dense<0.000000e+00> : vector<8x4xf32>
    %432 = vector.multi_reduction <add>, %431, %cst_64 [2] : vector<8x4x4xf32> to vector<8x4xf32>
    %433 = vector.broadcast %21 : vector<1x1xf32> to vector<8x4xf32>
    %434 = arith.addf %432, %433 : vector<8x4xf32>
    %435 = math.exp %434 : vector<8x4xf32>
    %cst_65 = arith.constant dense<0.000000e+00> : vector<8xf32>
    %436 = vector.multi_reduction <add>, %435, %cst_65 [1] : vector<8x4xf32> to vector<8xf32>
    %437 = vector.shape_cast %436 : vector<8xf32> to vector<8x1xf32>
    %438 = tpu.reciprocal %437 {approx = true} : vector<8x1xf32> -> vector<8x1xf32>
    %439 = vector.broadcast %438 : vector<8x1xf32> to vector<8x4xf32>
    %440 = arith.mulf %435, %439 : vector<8x4xf32>
    %441 = vector.extract_strided_slice %0 {offsets = [0, 7, 0], sizes = [8, 1, 4], strides = [1, 1, 1]} : vector<8x8x4xf32> to vector<8x1x4xf32>
    %442 = vector.shape_cast %441 : vector<8x1x4xf32> to vector<8x4xf32>
    %443 = arith.mulf %440, %442 : vector<8x4xf32>
    %444 = tpu.concatenate %443, %419 in 1 : vector<8x4xf32>, vector<8x32xf32> -> vector<8x36xf32>
    %cst_66 = arith.constant dense<0.000000e+00> : vector<8x128xf32>
    %445 = tpu.matmul %444, %3, %cst_66 {dimension_numbers = #tpu.dot_dimension_numbers<[1], [0], [0], [1], [0, 0, 1, 1], [], []>} : vector<8x36xf32>, vector<36x128xf32>, vector<8x128xf32> -> vector<8x128xf32>
    %446 = vector.broadcast %12 : vector<1x128xf32> to vector<8x128xf32>
    %447 = arith.addf %445, %446 : vector<8x128xf32>
    %448 = arith.negf %447 : vector<8x128xf32>
    %449 = math.exp %448 : vector<8x128xf32>
    %cst_67 = arith.constant 1.000000e+00 : f32
    %450 = vector.broadcast %cst_67 : f32 to vector<8x128xf32>
    %451 = arith.addf %450, %449 : vector<8x128xf32>
    %452 = arith.divf %450, %451 : vector<8x128xf32>
    %453 = vector.extract_strided_slice %452 {offsets = [0, 64], sizes = [8, 32], strides = [1, 1]} : vector<8x128xf32> to vector<8x32xf32>
    %cst_68 = arith.constant 2.000000e+00 : f32
    %454 = vector.broadcast %cst_68 : f32 to vector<8x32xf32>
    %455 = arith.mulf %454, %453 : vector<8x32xf32>
    %cst_69 = arith.constant 1.000000e+00 : f32
    %456 = vector.broadcast %cst_69 : f32 to vector<8x32xf32>
    %457 = arith.subf %455, %456 : vector<8x32xf32>
    %458 = vector.extract_strided_slice %452 {offsets = [0, 32], sizes = [8, 32], strides = [1, 1]} : vector<8x128xf32> to vector<8x32xf32>
    %459 = arith.mulf %458, %416 : vector<8x32xf32>
    %460 = vector.extract_strided_slice %452 {offsets = [0, 0], sizes = [8, 32], strides = [1, 1]} : vector<8x128xf32> to vector<8x32xf32>
    %461 = arith.mulf %460, %457 : vector<8x32xf32>
    %462 = arith.addf %459, %461 : vector<8x32xf32>
    %463 = vector.extract_strided_slice %452 {offsets = [0, 96], sizes = [8, 32], strides = [1, 1]} : vector<8x128xf32> to vector<8x32xf32>
    %464 = math.tanh %462 : vector<8x32xf32>
    %465 = arith.mulf %463, %464 : vector<8x32xf32>
    %466 = vector.shape_cast %465 : vector<8x32xf32> to vector<8x1x32xf32>
    %467 = tpu.concatenate %144, %190, %236, %282, %328, %374, %420, %466 in 1 : vector<8x1x32xf32>, vector<8x1x32xf32>, vector<8x1x32xf32>, vector<8x1x32xf32>, vector<8x1x32xf32>, vector<8x1x32xf32>, vector<8x1x32xf32>, vector<8x1x32xf32> -> vector<8x8x32xf32>
    %468 = vector.shape_cast %467 : vector<8x8x32xf32> to vector<64x32xf32>
    %cst_70 = arith.constant dense<0.000000e+00> : vector<64x4xf32>
    %469 = tpu.matmul %468, %10, %cst_70 {dimension_numbers = #tpu.dot_dimension_numbers<[1], [0], [0], [1], [0, 0, 1, 1], [], []>} : vector<64x32xf32>, vector<32x4xf32>, vector<64x4xf32> -> vector<64x4xf32>
    %470 = vector.shape_cast %469 : vector<64x4xf32> to vector<8x8x4xf32>
    %cst_71 = arith.constant 0.000000e+00 : f32
    %471 = vector.broadcast %cst_71 : f32 to vector<8x32xf32>
    %cst_72 = arith.constant 0.000000e+00 : f32
    %472 = vector.broadcast %cst_72 : f32 to vector<8x32xf32>
    %473 = tpu.concatenate %471, %472 in 1 : vector<8x32xf32>, vector<8x32xf32> -> vector<8x64xf32>
    %cst_73 = arith.constant dense<0.000000e+00> : vector<8x4xf32>
    %474 = tpu.matmul %473, %9, %cst_73 {dimension_numbers = #tpu.dot_dimension_numbers<[1], [0], [0], [1], [0, 0, 1, 1], [], []>} : vector<8x64xf32>, vector<64x4xf32>, vector<8x4xf32> -> vector<8x4xf32>
    %475 = vector.broadcast %19 : vector<1x4xf32> to vector<8x4xf32>
    %476 = arith.addf %474, %475 : vector<8x4xf32>
    %477 = vector.shape_cast %476 : vector<8x4xf32> to vector<8x1x4xf32>
    %478 = vector.broadcast %477 : vector<8x1x4xf32> to vector<8x8x4xf32>
    %479 = arith.addf %478, %470 : vector<8x8x4xf32>
    %480 = math.tanh %479 : vector<8x8x4xf32>
    %481 = vector.shape_cast %20 : vector<1x4xf32> to vector<1x1x4xf32>
    %482 = vector.broadcast %481 : vector<1x1x4xf32> to vector<8x8x4xf32>
    %483 = arith.mulf %480, %482 : vector<8x8x4xf32>
    %cst_74 = arith.constant dense<0.000000e+00> : vector<8x8xf32>
    %484 = vector.multi_reduction <add>, %483, %cst_74 [2] : vector<8x8x4xf32> to vector<8x8xf32>
    %485 = vector.broadcast %22 : vector<1x1xf32> to vector<8x8xf32>
    %486 = arith.addf %484, %485 : vector<8x8xf32>
    %487 = math.exp %486 : vector<8x8xf32>
    %cst_75 = arith.constant dense<0.000000e+00> : vector<8xf32>
    %488 = vector.multi_reduction <add>, %487, %cst_75 [1] : vector<8x8xf32> to vector<8xf32>
    %489 = vector.shape_cast %488 : vector<8xf32> to vector<8x1xf32>
    %490 = tpu.reciprocal %489 {approx = true} : vector<8x1xf32> -> vector<8x1xf32>
    %491 = vector.broadcast %490 : vector<8x1xf32> to vector<8x8xf32>
    %492 = arith.mulf %487, %491 : vector<8x8xf32>
    %493 = vector.shape_cast %492 : vector<8x8xf32> to vector<8x8x1xf32>
    %494 = vector.broadcast %493 : vector<8x8x1xf32> to vector<8x8x32xf32>
    %495 = arith.mulf %494, %467 : vector<8x8x32xf32>
    %cst_76 = arith.constant dense<0.000000e+00> : vector<8x32xf32>
    %496 = vector.multi_reduction <add>, %495, %cst_76 [1] : vector<8x8x32xf32> to vector<8x32xf32>
    %497 = vector.extract_strided_slice %0 {offsets = [0, 0, 1], sizes = [8, 1, 1], strides = [1, 1, 1]} : vector<8x8x4xf32> to vector<8x1x1xf32>
    %498 = vector.shape_cast %497 : vector<8x1x1xf32> to vector<8x1xf32>
    %499 = vector.broadcast %14 : vector<1x32xf32> to vector<8x32xf32>
    %500 = arith.mulf %496, %499 : vector<8x32xf32>
    %cst_77 = arith.constant dense<0.000000e+00> : vector<8xf32>
    %501 = vector.multi_reduction <add>, %500, %cst_77 [1] : vector<8x32xf32> to vector<8xf32>
    %502 = vector.shape_cast %501 : vector<8xf32> to vector<8x1xf32>
    %503 = vector.broadcast %23 : vector<1x1xf32> to vector<8x1xf32>
    %504 = arith.mulf %498, %503 : vector<8x1xf32>
    %505 = arith.addf %502, %504 : vector<8x1xf32>
    %506 = vector.broadcast %24 : vector<1x1xf32> to vector<8x1xf32>
    %507 = arith.addf %505, %506 : vector<8x1xf32>
    %508 = tpu.concatenate %507, %471 in 1 : vector<8x1xf32>, vector<8x32xf32> -> vector<8x33xf32>
    %cst_78 = arith.constant dense<0.000000e+00> : vector<8x128xf32>
    %509 = tpu.matmul %508, %4, %cst_78 {dimension_numbers = #tpu.dot_dimension_numbers<[1], [0], [0], [1], [0, 0, 1, 1], [], []>} : vector<8x33xf32>, vector<33x128xf32>, vector<8x128xf32> -> vector<8x128xf32>
    %510 = vector.broadcast %13 : vector<1x128xf32> to vector<8x128xf32>
    %511 = arith.addf %509, %510 : vector<8x128xf32>
    %512 = arith.negf %511 : vector<8x128xf32>
    %513 = math.exp %512 : vector<8x128xf32>
    %cst_79 = arith.constant 1.000000e+00 : f32
    %514 = vector.broadcast %cst_79 : f32 to vector<8x128xf32>
    %515 = arith.addf %514, %513 : vector<8x128xf32>
    %516 = arith.divf %514, %515 : vector<8x128xf32>
    %517 = vector.extract_strided_slice %516 {offsets = [0, 64], sizes = [8, 32], strides = [1, 1]} : vector<8x128xf32> to vector<8x32xf32>
    %cst_80 = arith.constant 2.000000e+00 : f32
    %518 = vector.broadcast %cst_80 : f32 to vector<8x32xf32>
    %519 = arith.mulf %518, %517 : vector<8x32xf32>
    %cst_81 = arith.constant 1.000000e+00 : f32
    %520 = vector.broadcast %cst_81 : f32 to vector<8x32xf32>
    %521 = arith.subf %519, %520 : vector<8x32xf32>
    %522 = vector.extract_strided_slice %516 {offsets = [0, 32], sizes = [8, 32], strides = [1, 1]} : vector<8x128xf32> to vector<8x32xf32>
    %523 = arith.mulf %522, %472 : vector<8x32xf32>
    %524 = vector.extract_strided_slice %516 {offsets = [0, 0], sizes = [8, 32], strides = [1, 1]} : vector<8x128xf32> to vector<8x32xf32>
    %525 = arith.mulf %524, %521 : vector<8x32xf32>
    %526 = arith.addf %523, %525 : vector<8x32xf32>
    %527 = vector.extract_strided_slice %516 {offsets = [0, 96], sizes = [8, 32], strides = [1, 1]} : vector<8x128xf32> to vector<8x32xf32>
    %528 = math.tanh %526 : vector<8x32xf32>
    %529 = arith.mulf %527, %528 : vector<8x32xf32>
    %530 = tpu.concatenate %529, %526 in 1 : vector<8x32xf32>, vector<8x32xf32> -> vector<8x64xf32>
    %cst_82 = arith.constant dense<0.000000e+00> : vector<8x4xf32>
    %531 = tpu.matmul %530, %9, %cst_82 {dimension_numbers = #tpu.dot_dimension_numbers<[1], [0], [0], [1], [0, 0, 1, 1], [], []>} : vector<8x64xf32>, vector<64x4xf32>, vector<8x4xf32> -> vector<8x4xf32>
    %532 = vector.broadcast %19 : vector<1x4xf32> to vector<8x4xf32>
    %533 = arith.addf %531, %532 : vector<8x4xf32>
    %534 = vector.shape_cast %533 : vector<8x4xf32> to vector<8x1x4xf32>
    %535 = vector.broadcast %534 : vector<8x1x4xf32> to vector<8x8x4xf32>
    %536 = arith.addf %535, %470 : vector<8x8x4xf32>
    %537 = math.tanh %536 : vector<8x8x4xf32>
    %538 = vector.shape_cast %20 : vector<1x4xf32> to vector<1x1x4xf32>
    %539 = vector.broadcast %538 : vector<1x1x4xf32> to vector<8x8x4xf32>
    %540 = arith.mulf %537, %539 : vector<8x8x4xf32>
    %cst_83 = arith.constant dense<0.000000e+00> : vector<8x8xf32>
    %541 = vector.multi_reduction <add>, %540, %cst_83 [2] : vector<8x8x4xf32> to vector<8x8xf32>
    %542 = vector.broadcast %22 : vector<1x1xf32> to vector<8x8xf32>
    %543 = arith.addf %541, %542 : vector<8x8xf32>
    %544 = math.exp %543 : vector<8x8xf32>
    %cst_84 = arith.constant dense<0.000000e+00> : vector<8xf32>
    %545 = vector.multi_reduction <add>, %544, %cst_84 [1] : vector<8x8xf32> to vector<8xf32>
    %546 = vector.shape_cast %545 : vector<8xf32> to vector<8x1xf32>
    %547 = tpu.reciprocal %546 {approx = true} : vector<8x1xf32> -> vector<8x1xf32>
    %548 = vector.broadcast %547 : vector<8x1xf32> to vector<8x8xf32>
    %549 = arith.mulf %544, %548 : vector<8x8xf32>
    %550 = vector.shape_cast %549 : vector<8x8xf32> to vector<8x8x1xf32>
    %551 = vector.broadcast %550 : vector<8x8x1xf32> to vector<8x8x32xf32>
    %552 = arith.mulf %551, %467 : vector<8x8x32xf32>
    %cst_85 = arith.constant dense<0.000000e+00> : vector<8x32xf32>
    %553 = vector.multi_reduction <add>, %552, %cst_85 [1] : vector<8x8x32xf32> to vector<8x32xf32>
    %554 = vector.extract_strided_slice %0 {offsets = [0, 1, 1], sizes = [8, 1, 1], strides = [1, 1, 1]} : vector<8x8x4xf32> to vector<8x1x1xf32>
    %555 = vector.shape_cast %554 : vector<8x1x1xf32> to vector<8x1xf32>
    %556 = vector.broadcast %14 : vector<1x32xf32> to vector<8x32xf32>
    %557 = arith.mulf %553, %556 : vector<8x32xf32>
    %cst_86 = arith.constant dense<0.000000e+00> : vector<8xf32>
    %558 = vector.multi_reduction <add>, %557, %cst_86 [1] : vector<8x32xf32> to vector<8xf32>
    %559 = vector.shape_cast %558 : vector<8xf32> to vector<8x1xf32>
    %560 = vector.broadcast %23 : vector<1x1xf32> to vector<8x1xf32>
    %561 = arith.mulf %555, %560 : vector<8x1xf32>
    %562 = arith.addf %559, %561 : vector<8x1xf32>
    %563 = vector.broadcast %24 : vector<1x1xf32> to vector<8x1xf32>
    %564 = arith.addf %562, %563 : vector<8x1xf32>
    %565 = tpu.concatenate %564, %529 in 1 : vector<8x1xf32>, vector<8x32xf32> -> vector<8x33xf32>
    %cst_87 = arith.constant dense<0.000000e+00> : vector<8x128xf32>
    %566 = tpu.matmul %565, %4, %cst_87 {dimension_numbers = #tpu.dot_dimension_numbers<[1], [0], [0], [1], [0, 0, 1, 1], [], []>} : vector<8x33xf32>, vector<33x128xf32>, vector<8x128xf32> -> vector<8x128xf32>
    %567 = vector.broadcast %13 : vector<1x128xf32> to vector<8x128xf32>
    %568 = arith.addf %566, %567 : vector<8x128xf32>
    %569 = arith.negf %568 : vector<8x128xf32>
    %570 = math.exp %569 : vector<8x128xf32>
    %cst_88 = arith.constant 1.000000e+00 : f32
    %571 = vector.broadcast %cst_88 : f32 to vector<8x128xf32>
    %572 = arith.addf %571, %570 : vector<8x128xf32>
    %573 = arith.divf %571, %572 : vector<8x128xf32>
    %574 = vector.extract_strided_slice %573 {offsets = [0, 64], sizes = [8, 32], strides = [1, 1]} : vector<8x128xf32> to vector<8x32xf32>
    %cst_89 = arith.constant 2.000000e+00 : f32
    %575 = vector.broadcast %cst_89 : f32 to vector<8x32xf32>
    %576 = arith.mulf %575, %574 : vector<8x32xf32>
    %cst_90 = arith.constant 1.000000e+00 : f32
    %577 = vector.broadcast %cst_90 : f32 to vector<8x32xf32>
    %578 = arith.subf %576, %577 : vector<8x32xf32>
    %579 = vector.extract_strided_slice %573 {offsets = [0, 32], sizes = [8, 32], strides = [1, 1]} : vector<8x128xf32> to vector<8x32xf32>
    %580 = arith.mulf %579, %526 : vector<8x32xf32>
    %581 = vector.extract_strided_slice %573 {offsets = [0, 0], sizes = [8, 32], strides = [1, 1]} : vector<8x128xf32> to vector<8x32xf32>
    %582 = arith.mulf %581, %578 : vector<8x32xf32>
    %583 = arith.addf %580, %582 : vector<8x32xf32>
    %584 = vector.extract_strided_slice %573 {offsets = [0, 96], sizes = [8, 32], strides = [1, 1]} : vector<8x128xf32> to vector<8x32xf32>
    %585 = math.tanh %583 : vector<8x32xf32>
    %586 = arith.mulf %584, %585 : vector<8x32xf32>
    %587 = tpu.concatenate %586, %583 in 1 : vector<8x32xf32>, vector<8x32xf32> -> vector<8x64xf32>
    %cst_91 = arith.constant dense<0.000000e+00> : vector<8x4xf32>
    %588 = tpu.matmul %587, %9, %cst_91 {dimension_numbers = #tpu.dot_dimension_numbers<[1], [0], [0], [1], [0, 0, 1, 1], [], []>} : vector<8x64xf32>, vector<64x4xf32>, vector<8x4xf32> -> vector<8x4xf32>
    %589 = vector.broadcast %19 : vector<1x4xf32> to vector<8x4xf32>
    %590 = arith.addf %588, %589 : vector<8x4xf32>
    %591 = vector.shape_cast %590 : vector<8x4xf32> to vector<8x1x4xf32>
    %592 = vector.broadcast %591 : vector<8x1x4xf32> to vector<8x8x4xf32>
    %593 = arith.addf %592, %470 : vector<8x8x4xf32>
    %594 = math.tanh %593 : vector<8x8x4xf32>
    %595 = vector.shape_cast %20 : vector<1x4xf32> to vector<1x1x4xf32>
    %596 = vector.broadcast %595 : vector<1x1x4xf32> to vector<8x8x4xf32>
    %597 = arith.mulf %594, %596 : vector<8x8x4xf32>
    %cst_92 = arith.constant dense<0.000000e+00> : vector<8x8xf32>
    %598 = vector.multi_reduction <add>, %597, %cst_92 [2] : vector<8x8x4xf32> to vector<8x8xf32>
    %599 = vector.broadcast %22 : vector<1x1xf32> to vector<8x8xf32>
    %600 = arith.addf %598, %599 : vector<8x8xf32>
    %601 = math.exp %600 : vector<8x8xf32>
    %cst_93 = arith.constant dense<0.000000e+00> : vector<8xf32>
    %602 = vector.multi_reduction <add>, %601, %cst_93 [1] : vector<8x8xf32> to vector<8xf32>
    %603 = vector.shape_cast %602 : vector<8xf32> to vector<8x1xf32>
    %604 = tpu.reciprocal %603 {approx = true} : vector<8x1xf32> -> vector<8x1xf32>
    %605 = vector.broadcast %604 : vector<8x1xf32> to vector<8x8xf32>
    %606 = arith.mulf %601, %605 : vector<8x8xf32>
    %607 = vector.shape_cast %606 : vector<8x8xf32> to vector<8x8x1xf32>
    %608 = vector.broadcast %607 : vector<8x8x1xf32> to vector<8x8x32xf32>
    %609 = arith.mulf %608, %467 : vector<8x8x32xf32>
    %cst_94 = arith.constant dense<0.000000e+00> : vector<8x32xf32>
    %610 = vector.multi_reduction <add>, %609, %cst_94 [1] : vector<8x8x32xf32> to vector<8x32xf32>
    %611 = vector.extract_strided_slice %0 {offsets = [0, 2, 1], sizes = [8, 1, 1], strides = [1, 1, 1]} : vector<8x8x4xf32> to vector<8x1x1xf32>
    %612 = vector.shape_cast %611 : vector<8x1x1xf32> to vector<8x1xf32>
    %613 = vector.broadcast %14 : vector<1x32xf32> to vector<8x32xf32>
    %614 = arith.mulf %610, %613 : vector<8x32xf32>
    %cst_95 = arith.constant dense<0.000000e+00> : vector<8xf32>
    %615 = vector.multi_reduction <add>, %614, %cst_95 [1] : vector<8x32xf32> to vector<8xf32>
    %616 = vector.shape_cast %615 : vector<8xf32> to vector<8x1xf32>
    %617 = vector.broadcast %23 : vector<1x1xf32> to vector<8x1xf32>
    %618 = arith.mulf %612, %617 : vector<8x1xf32>
    %619 = arith.addf %616, %618 : vector<8x1xf32>
    %620 = vector.broadcast %24 : vector<1x1xf32> to vector<8x1xf32>
    %621 = arith.addf %619, %620 : vector<8x1xf32>
    %622 = tpu.concatenate %621, %586 in 1 : vector<8x1xf32>, vector<8x32xf32> -> vector<8x33xf32>
    %cst_96 = arith.constant dense<0.000000e+00> : vector<8x128xf32>
    %623 = tpu.matmul %622, %4, %cst_96 {dimension_numbers = #tpu.dot_dimension_numbers<[1], [0], [0], [1], [0, 0, 1, 1], [], []>} : vector<8x33xf32>, vector<33x128xf32>, vector<8x128xf32> -> vector<8x128xf32>
    %624 = vector.broadcast %13 : vector<1x128xf32> to vector<8x128xf32>
    %625 = arith.addf %623, %624 : vector<8x128xf32>
    %626 = arith.negf %625 : vector<8x128xf32>
    %627 = math.exp %626 : vector<8x128xf32>
    %cst_97 = arith.constant 1.000000e+00 : f32
    %628 = vector.broadcast %cst_97 : f32 to vector<8x128xf32>
    %629 = arith.addf %628, %627 : vector<8x128xf32>
    %630 = arith.divf %628, %629 : vector<8x128xf32>
    %631 = vector.extract_strided_slice %630 {offsets = [0, 64], sizes = [8, 32], strides = [1, 1]} : vector<8x128xf32> to vector<8x32xf32>
    %cst_98 = arith.constant 2.000000e+00 : f32
    %632 = vector.broadcast %cst_98 : f32 to vector<8x32xf32>
    %633 = arith.mulf %632, %631 : vector<8x32xf32>
    %cst_99 = arith.constant 1.000000e+00 : f32
    %634 = vector.broadcast %cst_99 : f32 to vector<8x32xf32>
    %635 = arith.subf %633, %634 : vector<8x32xf32>
    %636 = vector.extract_strided_slice %630 {offsets = [0, 32], sizes = [8, 32], strides = [1, 1]} : vector<8x128xf32> to vector<8x32xf32>
    %637 = arith.mulf %636, %583 : vector<8x32xf32>
    %638 = vector.extract_strided_slice %630 {offsets = [0, 0], sizes = [8, 32], strides = [1, 1]} : vector<8x128xf32> to vector<8x32xf32>
    %639 = arith.mulf %638, %635 : vector<8x32xf32>
    %640 = arith.addf %637, %639 : vector<8x32xf32>
    %641 = vector.extract_strided_slice %630 {offsets = [0, 96], sizes = [8, 32], strides = [1, 1]} : vector<8x128xf32> to vector<8x32xf32>
    %642 = math.tanh %640 : vector<8x32xf32>
    %643 = arith.mulf %641, %642 : vector<8x32xf32>
    %644 = tpu.concatenate %643, %640 in 1 : vector<8x32xf32>, vector<8x32xf32> -> vector<8x64xf32>
    %cst_100 = arith.constant dense<0.000000e+00> : vector<8x4xf32>
    %645 = tpu.matmul %644, %9, %cst_100 {dimension_numbers = #tpu.dot_dimension_numbers<[1], [0], [0], [1], [0, 0, 1, 1], [], []>} : vector<8x64xf32>, vector<64x4xf32>, vector<8x4xf32> -> vector<8x4xf32>
    %646 = vector.broadcast %19 : vector<1x4xf32> to vector<8x4xf32>
    %647 = arith.addf %645, %646 : vector<8x4xf32>
    %648 = vector.shape_cast %647 : vector<8x4xf32> to vector<8x1x4xf32>
    %649 = vector.broadcast %648 : vector<8x1x4xf32> to vector<8x8x4xf32>
    %650 = arith.addf %649, %470 : vector<8x8x4xf32>
    %651 = math.tanh %650 : vector<8x8x4xf32>
    %652 = vector.shape_cast %20 : vector<1x4xf32> to vector<1x1x4xf32>
    %653 = vector.broadcast %652 : vector<1x1x4xf32> to vector<8x8x4xf32>
    %654 = arith.mulf %651, %653 : vector<8x8x4xf32>
    %cst_101 = arith.constant dense<0.000000e+00> : vector<8x8xf32>
    %655 = vector.multi_reduction <add>, %654, %cst_101 [2] : vector<8x8x4xf32> to vector<8x8xf32>
    %656 = vector.broadcast %22 : vector<1x1xf32> to vector<8x8xf32>
    %657 = arith.addf %655, %656 : vector<8x8xf32>
    %658 = math.exp %657 : vector<8x8xf32>
    %cst_102 = arith.constant dense<0.000000e+00> : vector<8xf32>
    %659 = vector.multi_reduction <add>, %658, %cst_102 [1] : vector<8x8xf32> to vector<8xf32>
    %660 = vector.shape_cast %659 : vector<8xf32> to vector<8x1xf32>
    %661 = tpu.reciprocal %660 {approx = true} : vector<8x1xf32> -> vector<8x1xf32>
    %662 = vector.broadcast %661 : vector<8x1xf32> to vector<8x8xf32>
    %663 = arith.mulf %658, %662 : vector<8x8xf32>
    %664 = vector.shape_cast %663 : vector<8x8xf32> to vector<8x8x1xf32>
    %665 = vector.broadcast %664 : vector<8x8x1xf32> to vector<8x8x32xf32>
    %666 = arith.mulf %665, %467 : vector<8x8x32xf32>
    %cst_103 = arith.constant dense<0.000000e+00> : vector<8x32xf32>
    %667 = vector.multi_reduction <add>, %666, %cst_103 [1] : vector<8x8x32xf32> to vector<8x32xf32>
    %668 = vector.extract_strided_slice %0 {offsets = [0, 3, 1], sizes = [8, 1, 1], strides = [1, 1, 1]} : vector<8x8x4xf32> to vector<8x1x1xf32>
    %669 = vector.shape_cast %668 : vector<8x1x1xf32> to vector<8x1xf32>
    %670 = vector.broadcast %14 : vector<1x32xf32> to vector<8x32xf32>
    %671 = arith.mulf %667, %670 : vector<8x32xf32>
    %cst_104 = arith.constant dense<0.000000e+00> : vector<8xf32>
    %672 = vector.multi_reduction <add>, %671, %cst_104 [1] : vector<8x32xf32> to vector<8xf32>
    %673 = vector.shape_cast %672 : vector<8xf32> to vector<8x1xf32>
    %674 = vector.broadcast %23 : vector<1x1xf32> to vector<8x1xf32>
    %675 = arith.mulf %669, %674 : vector<8x1xf32>
    %676 = arith.addf %673, %675 : vector<8x1xf32>
    %677 = vector.broadcast %24 : vector<1x1xf32> to vector<8x1xf32>
    %678 = arith.addf %676, %677 : vector<8x1xf32>
    %679 = tpu.concatenate %678, %643 in 1 : vector<8x1xf32>, vector<8x32xf32> -> vector<8x33xf32>
    %cst_105 = arith.constant dense<0.000000e+00> : vector<8x128xf32>
    %680 = tpu.matmul %679, %4, %cst_105 {dimension_numbers = #tpu.dot_dimension_numbers<[1], [0], [0], [1], [0, 0, 1, 1], [], []>} : vector<8x33xf32>, vector<33x128xf32>, vector<8x128xf32> -> vector<8x128xf32>
    %681 = vector.broadcast %13 : vector<1x128xf32> to vector<8x128xf32>
    %682 = arith.addf %680, %681 : vector<8x128xf32>
    %683 = arith.negf %682 : vector<8x128xf32>
    %684 = math.exp %683 : vector<8x128xf32>
    %cst_106 = arith.constant 1.000000e+00 : f32
    %685 = vector.broadcast %cst_106 : f32 to vector<8x128xf32>
    %686 = arith.addf %685, %684 : vector<8x128xf32>
    %687 = arith.divf %685, %686 : vector<8x128xf32>
    %688 = vector.extract_strided_slice %687 {offsets = [0, 64], sizes = [8, 32], strides = [1, 1]} : vector<8x128xf32> to vector<8x32xf32>
    %cst_107 = arith.constant 2.000000e+00 : f32
    %689 = vector.broadcast %cst_107 : f32 to vector<8x32xf32>
    %690 = arith.mulf %689, %688 : vector<8x32xf32>
    %cst_108 = arith.constant 1.000000e+00 : f32
    %691 = vector.broadcast %cst_108 : f32 to vector<8x32xf32>
    %692 = arith.subf %690, %691 : vector<8x32xf32>
    %693 = vector.extract_strided_slice %687 {offsets = [0, 32], sizes = [8, 32], strides = [1, 1]} : vector<8x128xf32> to vector<8x32xf32>
    %694 = arith.mulf %693, %640 : vector<8x32xf32>
    %695 = vector.extract_strided_slice %687 {offsets = [0, 0], sizes = [8, 32], strides = [1, 1]} : vector<8x128xf32> to vector<8x32xf32>
    %696 = arith.mulf %695, %692 : vector<8x32xf32>
    %697 = arith.addf %694, %696 : vector<8x32xf32>
    %698 = vector.extract_strided_slice %687 {offsets = [0, 96], sizes = [8, 32], strides = [1, 1]} : vector<8x128xf32> to vector<8x32xf32>
    %699 = math.tanh %697 : vector<8x32xf32>
    %700 = arith.mulf %698, %699 : vector<8x32xf32>
    %701 = tpu.concatenate %700, %697 in 1 : vector<8x32xf32>, vector<8x32xf32> -> vector<8x64xf32>
    %cst_109 = arith.constant dense<0.000000e+00> : vector<8x4xf32>
    %702 = tpu.matmul %701, %9, %cst_109 {dimension_numbers = #tpu.dot_dimension_numbers<[1], [0], [0], [1], [0, 0, 1, 1], [], []>} : vector<8x64xf32>, vector<64x4xf32>, vector<8x4xf32> -> vector<8x4xf32>
    %703 = vector.broadcast %19 : vector<1x4xf32> to vector<8x4xf32>
    %704 = arith.addf %702, %703 : vector<8x4xf32>
    %705 = vector.shape_cast %704 : vector<8x4xf32> to vector<8x1x4xf32>
    %706 = vector.broadcast %705 : vector<8x1x4xf32> to vector<8x8x4xf32>
    %707 = arith.addf %706, %470 : vector<8x8x4xf32>
    %708 = math.tanh %707 : vector<8x8x4xf32>
    %709 = vector.shape_cast %20 : vector<1x4xf32> to vector<1x1x4xf32>
    %710 = vector.broadcast %709 : vector<1x1x4xf32> to vector<8x8x4xf32>
    %711 = arith.mulf %708, %710 : vector<8x8x4xf32>
    %cst_110 = arith.constant dense<0.000000e+00> : vector<8x8xf32>
    %712 = vector.multi_reduction <add>, %711, %cst_110 [2] : vector<8x8x4xf32> to vector<8x8xf32>
    %713 = vector.broadcast %22 : vector<1x1xf32> to vector<8x8xf32>
    %714 = arith.addf %712, %713 : vector<8x8xf32>
    %715 = math.exp %714 : vector<8x8xf32>
    %cst_111 = arith.constant dense<0.000000e+00> : vector<8xf32>
    %716 = vector.multi_reduction <add>, %715, %cst_111 [1] : vector<8x8xf32> to vector<8xf32>
    %717 = vector.shape_cast %716 : vector<8xf32> to vector<8x1xf32>
    %718 = tpu.reciprocal %717 {approx = true} : vector<8x1xf32> -> vector<8x1xf32>
    %719 = vector.broadcast %718 : vector<8x1xf32> to vector<8x8xf32>
    %720 = arith.mulf %715, %719 : vector<8x8xf32>
    %721 = vector.shape_cast %720 : vector<8x8xf32> to vector<8x8x1xf32>
    %722 = vector.broadcast %721 : vector<8x8x1xf32> to vector<8x8x32xf32>
    %723 = arith.mulf %722, %467 : vector<8x8x32xf32>
    %cst_112 = arith.constant dense<0.000000e+00> : vector<8x32xf32>
    %724 = vector.multi_reduction <add>, %723, %cst_112 [1] : vector<8x8x32xf32> to vector<8x32xf32>
    %725 = vector.extract_strided_slice %0 {offsets = [0, 4, 1], sizes = [8, 1, 1], strides = [1, 1, 1]} : vector<8x8x4xf32> to vector<8x1x1xf32>
    %726 = vector.shape_cast %725 : vector<8x1x1xf32> to vector<8x1xf32>
    %727 = vector.broadcast %14 : vector<1x32xf32> to vector<8x32xf32>
    %728 = arith.mulf %724, %727 : vector<8x32xf32>
    %cst_113 = arith.constant dense<0.000000e+00> : vector<8xf32>
    %729 = vector.multi_reduction <add>, %728, %cst_113 [1] : vector<8x32xf32> to vector<8xf32>
    %730 = vector.shape_cast %729 : vector<8xf32> to vector<8x1xf32>
    %731 = vector.broadcast %23 : vector<1x1xf32> to vector<8x1xf32>
    %732 = arith.mulf %726, %731 : vector<8x1xf32>
    %733 = arith.addf %730, %732 : vector<8x1xf32>
    %734 = vector.broadcast %24 : vector<1x1xf32> to vector<8x1xf32>
    %735 = arith.addf %733, %734 : vector<8x1xf32>
    %736 = tpu.concatenate %735, %700 in 1 : vector<8x1xf32>, vector<8x32xf32> -> vector<8x33xf32>
    %cst_114 = arith.constant dense<0.000000e+00> : vector<8x128xf32>
    %737 = tpu.matmul %736, %4, %cst_114 {dimension_numbers = #tpu.dot_dimension_numbers<[1], [0], [0], [1], [0, 0, 1, 1], [], []>} : vector<8x33xf32>, vector<33x128xf32>, vector<8x128xf32> -> vector<8x128xf32>
    %738 = vector.broadcast %13 : vector<1x128xf32> to vector<8x128xf32>
    %739 = arith.addf %737, %738 : vector<8x128xf32>
    %740 = arith.negf %739 : vector<8x128xf32>
    %741 = math.exp %740 : vector<8x128xf32>
    %cst_115 = arith.constant 1.000000e+00 : f32
    %742 = vector.broadcast %cst_115 : f32 to vector<8x128xf32>
    %743 = arith.addf %742, %741 : vector<8x128xf32>
    %744 = arith.divf %742, %743 : vector<8x128xf32>
    %745 = vector.extract_strided_slice %744 {offsets = [0, 64], sizes = [8, 32], strides = [1, 1]} : vector<8x128xf32> to vector<8x32xf32>
    %cst_116 = arith.constant 2.000000e+00 : f32
    %746 = vector.broadcast %cst_116 : f32 to vector<8x32xf32>
    %747 = arith.mulf %746, %745 : vector<8x32xf32>
    %cst_117 = arith.constant 1.000000e+00 : f32
    %748 = vector.broadcast %cst_117 : f32 to vector<8x32xf32>
    %749 = arith.subf %747, %748 : vector<8x32xf32>
    %750 = vector.extract_strided_slice %744 {offsets = [0, 32], sizes = [8, 32], strides = [1, 1]} : vector<8x128xf32> to vector<8x32xf32>
    %751 = arith.mulf %750, %697 : vector<8x32xf32>
    %752 = vector.extract_strided_slice %744 {offsets = [0, 0], sizes = [8, 32], strides = [1, 1]} : vector<8x128xf32> to vector<8x32xf32>
    %753 = arith.mulf %752, %749 : vector<8x32xf32>
    %754 = arith.addf %751, %753 : vector<8x32xf32>
    %755 = vector.extract_strided_slice %744 {offsets = [0, 96], sizes = [8, 32], strides = [1, 1]} : vector<8x128xf32> to vector<8x32xf32>
    %756 = math.tanh %754 : vector<8x32xf32>
    %757 = arith.mulf %755, %756 : vector<8x32xf32>
    %758 = tpu.concatenate %757, %754 in 1 : vector<8x32xf32>, vector<8x32xf32> -> vector<8x64xf32>
    %cst_118 = arith.constant dense<0.000000e+00> : vector<8x4xf32>
    %759 = tpu.matmul %758, %9, %cst_118 {dimension_numbers = #tpu.dot_dimension_numbers<[1], [0], [0], [1], [0, 0, 1, 1], [], []>} : vector<8x64xf32>, vector<64x4xf32>, vector<8x4xf32> -> vector<8x4xf32>
    %760 = vector.broadcast %19 : vector<1x4xf32> to vector<8x4xf32>
    %761 = arith.addf %759, %760 : vector<8x4xf32>
    %762 = vector.shape_cast %761 : vector<8x4xf32> to vector<8x1x4xf32>
    %763 = vector.broadcast %762 : vector<8x1x4xf32> to vector<8x8x4xf32>
    %764 = arith.addf %763, %470 : vector<8x8x4xf32>
    %765 = math.tanh %764 : vector<8x8x4xf32>
    %766 = vector.shape_cast %20 : vector<1x4xf32> to vector<1x1x4xf32>
    %767 = vector.broadcast %766 : vector<1x1x4xf32> to vector<8x8x4xf32>
    %768 = arith.mulf %765, %767 : vector<8x8x4xf32>
    %cst_119 = arith.constant dense<0.000000e+00> : vector<8x8xf32>
    %769 = vector.multi_reduction <add>, %768, %cst_119 [2] : vector<8x8x4xf32> to vector<8x8xf32>
    %770 = vector.broadcast %22 : vector<1x1xf32> to vector<8x8xf32>
    %771 = arith.addf %769, %770 : vector<8x8xf32>
    %772 = math.exp %771 : vector<8x8xf32>
    %cst_120 = arith.constant dense<0.000000e+00> : vector<8xf32>
    %773 = vector.multi_reduction <add>, %772, %cst_120 [1] : vector<8x8xf32> to vector<8xf32>
    %774 = vector.shape_cast %773 : vector<8xf32> to vector<8x1xf32>
    %775 = tpu.reciprocal %774 {approx = true} : vector<8x1xf32> -> vector<8x1xf32>
    %776 = vector.broadcast %775 : vector<8x1xf32> to vector<8x8xf32>
    %777 = arith.mulf %772, %776 : vector<8x8xf32>
    %778 = vector.shape_cast %777 : vector<8x8xf32> to vector<8x8x1xf32>
    %779 = vector.broadcast %778 : vector<8x8x1xf32> to vector<8x8x32xf32>
    %780 = arith.mulf %779, %467 : vector<8x8x32xf32>
    %cst_121 = arith.constant dense<0.000000e+00> : vector<8x32xf32>
    %781 = vector.multi_reduction <add>, %780, %cst_121 [1] : vector<8x8x32xf32> to vector<8x32xf32>
    %782 = vector.extract_strided_slice %0 {offsets = [0, 5, 1], sizes = [8, 1, 1], strides = [1, 1, 1]} : vector<8x8x4xf32> to vector<8x1x1xf32>
    %783 = vector.shape_cast %782 : vector<8x1x1xf32> to vector<8x1xf32>
    %784 = vector.broadcast %14 : vector<1x32xf32> to vector<8x32xf32>
    %785 = arith.mulf %781, %784 : vector<8x32xf32>
    %cst_122 = arith.constant dense<0.000000e+00> : vector<8xf32>
    %786 = vector.multi_reduction <add>, %785, %cst_122 [1] : vector<8x32xf32> to vector<8xf32>
    %787 = vector.shape_cast %786 : vector<8xf32> to vector<8x1xf32>
    %788 = vector.broadcast %23 : vector<1x1xf32> to vector<8x1xf32>
    %789 = arith.mulf %783, %788 : vector<8x1xf32>
    %790 = arith.addf %787, %789 : vector<8x1xf32>
    %791 = vector.broadcast %24 : vector<1x1xf32> to vector<8x1xf32>
    %792 = arith.addf %790, %791 : vector<8x1xf32>
    %793 = tpu.concatenate %792, %757 in 1 : vector<8x1xf32>, vector<8x32xf32> -> vector<8x33xf32>
    %cst_123 = arith.constant dense<0.000000e+00> : vector<8x128xf32>
    %794 = tpu.matmul %793, %4, %cst_123 {dimension_numbers = #tpu.dot_dimension_numbers<[1], [0], [0], [1], [0, 0, 1, 1], [], []>} : vector<8x33xf32>, vector<33x128xf32>, vector<8x128xf32> -> vector<8x128xf32>
    %795 = vector.broadcast %13 : vector<1x128xf32> to vector<8x128xf32>
    %796 = arith.addf %794, %795 : vector<8x128xf32>
    %797 = arith.negf %796 : vector<8x128xf32>
    %798 = math.exp %797 : vector<8x128xf32>
    %cst_124 = arith.constant 1.000000e+00 : f32
    %799 = vector.broadcast %cst_124 : f32 to vector<8x128xf32>
    %800 = arith.addf %799, %798 : vector<8x128xf32>
    %801 = arith.divf %799, %800 : vector<8x128xf32>
    %802 = vector.extract_strided_slice %801 {offsets = [0, 64], sizes = [8, 32], strides = [1, 1]} : vector<8x128xf32> to vector<8x32xf32>
    %cst_125 = arith.constant 2.000000e+00 : f32
    %803 = vector.broadcast %cst_125 : f32 to vector<8x32xf32>
    %804 = arith.mulf %803, %802 : vector<8x32xf32>
    %cst_126 = arith.constant 1.000000e+00 : f32
    %805 = vector.broadcast %cst_126 : f32 to vector<8x32xf32>
    %806 = arith.subf %804, %805 : vector<8x32xf32>
    %807 = vector.extract_strided_slice %801 {offsets = [0, 32], sizes = [8, 32], strides = [1, 1]} : vector<8x128xf32> to vector<8x32xf32>
    %808 = arith.mulf %807, %754 : vector<8x32xf32>
    %809 = vector.extract_strided_slice %801 {offsets = [0, 0], sizes = [8, 32], strides = [1, 1]} : vector<8x128xf32> to vector<8x32xf32>
    %810 = arith.mulf %809, %806 : vector<8x32xf32>
    %811 = arith.addf %808, %810 : vector<8x32xf32>
    %812 = vector.extract_strided_slice %801 {offsets = [0, 96], sizes = [8, 32], strides = [1, 1]} : vector<8x128xf32> to vector<8x32xf32>
    %813 = math.tanh %811 : vector<8x32xf32>
    %814 = arith.mulf %812, %813 : vector<8x32xf32>
    %815 = tpu.concatenate %814, %811 in 1 : vector<8x32xf32>, vector<8x32xf32> -> vector<8x64xf32>
    %cst_127 = arith.constant dense<0.000000e+00> : vector<8x4xf32>
    %816 = tpu.matmul %815, %9, %cst_127 {dimension_numbers = #tpu.dot_dimension_numbers<[1], [0], [0], [1], [0, 0, 1, 1], [], []>} : vector<8x64xf32>, vector<64x4xf32>, vector<8x4xf32> -> vector<8x4xf32>
    %817 = vector.broadcast %19 : vector<1x4xf32> to vector<8x4xf32>
    %818 = arith.addf %816, %817 : vector<8x4xf32>
    %819 = vector.shape_cast %818 : vector<8x4xf32> to vector<8x1x4xf32>
    %820 = vector.broadcast %819 : vector<8x1x4xf32> to vector<8x8x4xf32>
    %821 = arith.addf %820, %470 : vector<8x8x4xf32>
    %822 = math.tanh %821 : vector<8x8x4xf32>
    %823 = vector.shape_cast %20 : vector<1x4xf32> to vector<1x1x4xf32>
    %824 = vector.broadcast %823 : vector<1x1x4xf32> to vector<8x8x4xf32>
    %825 = arith.mulf %822, %824 : vector<8x8x4xf32>
    %cst_128 = arith.constant dense<0.000000e+00> : vector<8x8xf32>
    %826 = vector.multi_reduction <add>, %825, %cst_128 [2] : vector<8x8x4xf32> to vector<8x8xf32>
    %827 = vector.broadcast %22 : vector<1x1xf32> to vector<8x8xf32>
    %828 = arith.addf %826, %827 : vector<8x8xf32>
    %829 = math.exp %828 : vector<8x8xf32>
    %cst_129 = arith.constant dense<0.000000e+00> : vector<8xf32>
    %830 = vector.multi_reduction <add>, %829, %cst_129 [1] : vector<8x8xf32> to vector<8xf32>
    %831 = vector.shape_cast %830 : vector<8xf32> to vector<8x1xf32>
    %832 = tpu.reciprocal %831 {approx = true} : vector<8x1xf32> -> vector<8x1xf32>
    %833 = vector.broadcast %832 : vector<8x1xf32> to vector<8x8xf32>
    %834 = arith.mulf %829, %833 : vector<8x8xf32>
    %835 = vector.shape_cast %834 : vector<8x8xf32> to vector<8x8x1xf32>
    %836 = vector.broadcast %835 : vector<8x8x1xf32> to vector<8x8x32xf32>
    %837 = arith.mulf %836, %467 : vector<8x8x32xf32>
    %cst_130 = arith.constant dense<0.000000e+00> : vector<8x32xf32>
    %838 = vector.multi_reduction <add>, %837, %cst_130 [1] : vector<8x8x32xf32> to vector<8x32xf32>
    %839 = vector.extract_strided_slice %0 {offsets = [0, 6, 1], sizes = [8, 1, 1], strides = [1, 1, 1]} : vector<8x8x4xf32> to vector<8x1x1xf32>
    %840 = vector.shape_cast %839 : vector<8x1x1xf32> to vector<8x1xf32>
    %841 = vector.broadcast %14 : vector<1x32xf32> to vector<8x32xf32>
    %842 = arith.mulf %838, %841 : vector<8x32xf32>
    %cst_131 = arith.constant dense<0.000000e+00> : vector<8xf32>
    %843 = vector.multi_reduction <add>, %842, %cst_131 [1] : vector<8x32xf32> to vector<8xf32>
    %844 = vector.shape_cast %843 : vector<8xf32> to vector<8x1xf32>
    %845 = vector.broadcast %23 : vector<1x1xf32> to vector<8x1xf32>
    %846 = arith.mulf %840, %845 : vector<8x1xf32>
    %847 = arith.addf %844, %846 : vector<8x1xf32>
    %848 = vector.broadcast %24 : vector<1x1xf32> to vector<8x1xf32>
    %849 = arith.addf %847, %848 : vector<8x1xf32>
    %850 = tpu.concatenate %849, %814 in 1 : vector<8x1xf32>, vector<8x32xf32> -> vector<8x33xf32>
    %cst_132 = arith.constant dense<0.000000e+00> : vector<8x128xf32>
    %851 = tpu.matmul %850, %4, %cst_132 {dimension_numbers = #tpu.dot_dimension_numbers<[1], [0], [0], [1], [0, 0, 1, 1], [], []>} : vector<8x33xf32>, vector<33x128xf32>, vector<8x128xf32> -> vector<8x128xf32>
    %852 = vector.broadcast %13 : vector<1x128xf32> to vector<8x128xf32>
    %853 = arith.addf %851, %852 : vector<8x128xf32>
    %854 = arith.negf %853 : vector<8x128xf32>
    %855 = math.exp %854 : vector<8x128xf32>
    %cst_133 = arith.constant 1.000000e+00 : f32
    %856 = vector.broadcast %cst_133 : f32 to vector<8x128xf32>
    %857 = arith.addf %856, %855 : vector<8x128xf32>
    %858 = arith.divf %856, %857 : vector<8x128xf32>
    %859 = vector.extract_strided_slice %858 {offsets = [0, 64], sizes = [8, 32], strides = [1, 1]} : vector<8x128xf32> to vector<8x32xf32>
    %cst_134 = arith.constant 2.000000e+00 : f32
    %860 = vector.broadcast %cst_134 : f32 to vector<8x32xf32>
    %861 = arith.mulf %860, %859 : vector<8x32xf32>
    %cst_135 = arith.constant 1.000000e+00 : f32
    %862 = vector.broadcast %cst_135 : f32 to vector<8x32xf32>
    %863 = arith.subf %861, %862 : vector<8x32xf32>
    %864 = vector.extract_strided_slice %858 {offsets = [0, 32], sizes = [8, 32], strides = [1, 1]} : vector<8x128xf32> to vector<8x32xf32>
    %865 = arith.mulf %864, %811 : vector<8x32xf32>
    %866 = vector.extract_strided_slice %858 {offsets = [0, 0], sizes = [8, 32], strides = [1, 1]} : vector<8x128xf32> to vector<8x32xf32>
    %867 = arith.mulf %866, %863 : vector<8x32xf32>
    %868 = arith.addf %865, %867 : vector<8x32xf32>
    %869 = vector.extract_strided_slice %858 {offsets = [0, 96], sizes = [8, 32], strides = [1, 1]} : vector<8x128xf32> to vector<8x32xf32>
    %870 = math.tanh %868 : vector<8x32xf32>
    %871 = arith.mulf %869, %870 : vector<8x32xf32>
    %872 = tpu.concatenate %871, %868 in 1 : vector<8x32xf32>, vector<8x32xf32> -> vector<8x64xf32>
    %cst_136 = arith.constant dense<0.000000e+00> : vector<8x4xf32>
    %873 = tpu.matmul %872, %9, %cst_136 {dimension_numbers = #tpu.dot_dimension_numbers<[1], [0], [0], [1], [0, 0, 1, 1], [], []>} : vector<8x64xf32>, vector<64x4xf32>, vector<8x4xf32> -> vector<8x4xf32>
    %874 = vector.broadcast %19 : vector<1x4xf32> to vector<8x4xf32>
    %875 = arith.addf %873, %874 : vector<8x4xf32>
    %876 = vector.shape_cast %875 : vector<8x4xf32> to vector<8x1x4xf32>
    %877 = vector.broadcast %876 : vector<8x1x4xf32> to vector<8x8x4xf32>
    %878 = arith.addf %877, %470 : vector<8x8x4xf32>
    %879 = math.tanh %878 : vector<8x8x4xf32>
    %880 = vector.shape_cast %20 : vector<1x4xf32> to vector<1x1x4xf32>
    %881 = vector.broadcast %880 : vector<1x1x4xf32> to vector<8x8x4xf32>
    %882 = arith.mulf %879, %881 : vector<8x8x4xf32>
    %cst_137 = arith.constant dense<0.000000e+00> : vector<8x8xf32>
    %883 = vector.multi_reduction <add>, %882, %cst_137 [2] : vector<8x8x4xf32> to vector<8x8xf32>
    %884 = vector.broadcast %22 : vector<1x1xf32> to vector<8x8xf32>
    %885 = arith.addf %883, %884 : vector<8x8xf32>
    %886 = math.exp %885 : vector<8x8xf32>
    %cst_138 = arith.constant dense<0.000000e+00> : vector<8xf32>
    %887 = vector.multi_reduction <add>, %886, %cst_138 [1] : vector<8x8xf32> to vector<8xf32>
    %888 = vector.shape_cast %887 : vector<8xf32> to vector<8x1xf32>
    %889 = tpu.reciprocal %888 {approx = true} : vector<8x1xf32> -> vector<8x1xf32>
    %890 = vector.broadcast %889 : vector<8x1xf32> to vector<8x8xf32>
    %891 = arith.mulf %886, %890 : vector<8x8xf32>
    %892 = vector.shape_cast %891 : vector<8x8xf32> to vector<8x8x1xf32>
    %893 = vector.broadcast %892 : vector<8x8x1xf32> to vector<8x8x32xf32>
    %894 = arith.mulf %893, %467 : vector<8x8x32xf32>
    %cst_139 = arith.constant dense<0.000000e+00> : vector<8x32xf32>
    %895 = vector.multi_reduction <add>, %894, %cst_139 [1] : vector<8x8x32xf32> to vector<8x32xf32>
    %896 = vector.extract_strided_slice %0 {offsets = [0, 7, 1], sizes = [8, 1, 1], strides = [1, 1, 1]} : vector<8x8x4xf32> to vector<8x1x1xf32>
    %897 = vector.shape_cast %896 : vector<8x1x1xf32> to vector<8x1xf32>
    %898 = vector.broadcast %14 : vector<1x32xf32> to vector<8x32xf32>
    %899 = arith.mulf %895, %898 : vector<8x32xf32>
    %cst_140 = arith.constant dense<0.000000e+00> : vector<8xf32>
    %900 = vector.multi_reduction <add>, %899, %cst_140 [1] : vector<8x32xf32> to vector<8xf32>
    %901 = vector.shape_cast %900 : vector<8xf32> to vector<8x1xf32>
    %902 = vector.broadcast %23 : vector<1x1xf32> to vector<8x1xf32>
    %903 = arith.mulf %897, %902 : vector<8x1xf32>
    %904 = arith.addf %901, %903 : vector<8x1xf32>
    %905 = vector.broadcast %24 : vector<1x1xf32> to vector<8x1xf32>
    %906 = arith.addf %904, %905 : vector<8x1xf32>
    %907 = tpu.concatenate %906, %871 in 1 : vector<8x1xf32>, vector<8x32xf32> -> vector<8x33xf32>
    %cst_141 = arith.constant dense<0.000000e+00> : vector<8x128xf32>
    %908 = tpu.matmul %907, %4, %cst_141 {dimension_numbers = #tpu.dot_dimension_numbers<[1], [0], [0], [1], [0, 0, 1, 1], [], []>} : vector<8x33xf32>, vector<33x128xf32>, vector<8x128xf32> -> vector<8x128xf32>
    %909 = vector.broadcast %13 : vector<1x128xf32> to vector<8x128xf32>
    %910 = arith.addf %908, %909 : vector<8x128xf32>
    %911 = arith.negf %910 : vector<8x128xf32>
    %912 = math.exp %911 : vector<8x128xf32>
    %cst_142 = arith.constant 1.000000e+00 : f32
    %913 = vector.broadcast %cst_142 : f32 to vector<8x128xf32>
    %914 = arith.addf %913, %912 : vector<8x128xf32>
    %915 = arith.divf %913, %914 : vector<8x128xf32>
    %916 = vector.extract_strided_slice %915 {offsets = [0, 64], sizes = [8, 32], strides = [1, 1]} : vector<8x128xf32> to vector<8x32xf32>
    %cst_143 = arith.constant 2.000000e+00 : f32
    %917 = vector.broadcast %cst_143 : f32 to vector<8x32xf32>
    %918 = arith.mulf %917, %916 : vector<8x32xf32>
    %cst_144 = arith.constant 1.000000e+00 : f32
    %919 = vector.broadcast %cst_144 : f32 to vector<8x32xf32>
    %920 = arith.subf %918, %919 : vector<8x32xf32>
    %921 = vector.extract_strided_slice %915 {offsets = [0, 32], sizes = [8, 32], strides = [1, 1]} : vector<8x128xf32> to vector<8x32xf32>
    %922 = arith.mulf %921, %868 : vector<8x32xf32>
    %923 = vector.extract_strided_slice %915 {offsets = [0, 0], sizes = [8, 32], strides = [1, 1]} : vector<8x128xf32> to vector<8x32xf32>
    %924 = arith.mulf %923, %920 : vector<8x32xf32>
    %925 = arith.addf %922, %924 : vector<8x32xf32>
    %926 = vector.extract_strided_slice %915 {offsets = [0, 96], sizes = [8, 32], strides = [1, 1]} : vector<8x128xf32> to vector<8x32xf32>
    %927 = math.tanh %925 : vector<8x32xf32>
    %928 = arith.mulf %926, %927 : vector<8x32xf32>
    %929 = vector.broadcast %15 : vector<1x32xf32> to vector<8x32xf32>
    %930 = arith.mulf %928, %929 : vector<8x32xf32>
    %cst_145 = arith.constant dense<0.000000e+00> : vector<8xf32>
    %931 = vector.multi_reduction <add>, %930, %cst_145 [1] : vector<8x32xf32> to vector<8xf32>
    %932 = vector.shape_cast %931 : vector<8xf32> to vector<8x1xf32>
    %933 = vector.broadcast %16 : vector<1x32xf32> to vector<8x32xf32>
    %934 = arith.mulf %895, %933 : vector<8x32xf32>
    %cst_146 = arith.constant dense<0.000000e+00> : vector<8xf32>
    %935 = vector.multi_reduction <add>, %934, %cst_146 [1] : vector<8x32xf32> to vector<8xf32>
    %936 = vector.shape_cast %935 : vector<8xf32> to vector<8x1xf32>
    %937 = arith.addf %932, %936 : vector<8x1xf32>
    %938 = vector.broadcast %25 : vector<1x1xf32> to vector<8x1xf32>
    %939 = arith.addf %937, %938 : vector<8x1xf32>
    %c0_147 = arith.constant 0 : index
    %c0_148 = arith.constant 0 : index
    %940 = vector.load %arg7[%c0_147, %c0_148] : memref<8x1xf32, #tpu.memory_space<vmem>>, vector<8x1xf32>
    tpu.vector_store %arg7[%c0_147, %c0_148], %939 {strides = array<i32>} : memref<8x1xf32, #tpu.memory_space<vmem>>, vector<8x1xf32>,
    return
  }
  func.func @transform_0(%arg0: i32) -> (i32, i32, i32) {
    %c0_i32 = arith.constant 0 : i32
    %c0_i32_0 = arith.constant 0 : i32
    %c0_i32_1 = arith.constant 0 : i32
    return %arg0, %c0_i32, %c0_i32_0 : i32, i32, i32
  }
  func.func @transform_1(%arg0: i32) -> (i32, i32, i32) {
    %c0_i32 = arith.constant 0 : i32
    %c0_i32_0 = arith.constant 0 : i32
    %c0_i32_1 = arith.constant 0 : i32
    %c0_i32_2 = arith.constant 0 : i32
    return %c0_i32, %c0_i32_0, %c0_i32_1 : i32, i32, i32
  }
  func.func @transform_2(%arg0: i32) -> (i32, i32) {
    %c0_i32 = arith.constant 0 : i32
    %c0_i32_0 = arith.constant 0 : i32
    %c0_i32_1 = arith.constant 0 : i32
    return %c0_i32, %c0_i32_0 : i32, i32
  }
  func.func @transform_3(%arg0: i32) -> (i32, i32) {
    %c0_i32 = arith.constant 0 : i32
    %c0_i32_0 = arith.constant 0 : i32
    %c0_i32_1 = arith.constant 0 : i32
    return %c0_i32, %c0_i32_0 : i32, i32
  }
  func.func @transform_4(%arg0: i32) -> (i32, i32) {
    %c0_i32 = arith.constant 0 : i32
    %c0_i32_0 = arith.constant 0 : i32
    %c0_i32_1 = arith.constant 0 : i32
    return %c0_i32, %c0_i32_0 : i32, i32
  }
  func.func @transform_5(%arg0: i32) -> (i32, i32) {
    %c0_i32 = arith.constant 0 : i32
    %c0_i32_0 = arith.constant 0 : i32
    %c0_i32_1 = arith.constant 0 : i32
    return %c0_i32, %c0_i32_0 : i32, i32
  }
  func.func @transform_6(%arg0: i32) -> (i32, i32) {
    %c0_i32 = arith.constant 0 : i32
    %c0_i32_0 = arith.constant 0 : i32
    return %arg0, %c0_i32 : i32, i32
  }
}

</mosaic_0001>

<bundles_post_ra>
// kernel: tpu_custom_call.1
= control target key start
LH: loop header
LB: loop body
LE: loop exit
PB: predicated region body
PF: predicated region fallthrough
CT: control target
= control target key end

     0   :  { %s13410_s21 = smov 0   ;;  %s16896_s0 = inlined_call_operand.vmem [shape: f32[16,8,4], index: 0, kind: input, shape index: {}]   ;;  %s16897_s1 = inlined_call_operand.vmem [shape: f32[2,64,4], index: 1, kind: input, shape index: {}]   ;;  %s16898_s2 = inlined_call_operand.vmem [shape: f32[40,4], index: 2, kind: input, shape index: {}]   ;;  %s16899_s3 = inlined_call_operand.vmem [shape: f32[36,128], index: 3, kind: input, shape index: {}]   ;;  %s16900_s4 = inlined_call_operand.vmem [shape: f32[33,128], index: 4, kind: input, shape index: {}]   ;;  %s16901_s5 = inlined_call_operand.vmem [shape: f32[10,128], index: 5, kind: input, shape index: {}]   ;;  %s16902_s6 = inlined_call_operand.vmem [shape: f32[16,1], index: 6, kind: output, shape index: {}]  }
   0x1 LB: > { %s13416_s22 = sadd.s32 4294967295, %s13360_s21   ;;  %p11500_p0 = scmp.ge.s32.totalorder %s13360_s21, 1  ;;  %s13360_s21 = sphi %s13410_s21, %s16_s21  }
   0x2   : > { %p213_p1 = scmp.lt.s32.totalorder %s13360_s21, 3 }
   0x4   : > { %p214_p2 = pnand %p11500_p0, %p213_p1 }
   0x6   : > { %217 = sbr.rel (%p214_p2) target bundleno = 25635 (0x6423), region = 44 }
   0xd   : > { %v260_v0 = vld [vmem:[%s16897_s1] sm:$0xff]  ;;  %v261_v1 = vld [vmem:[%s16897_s1 + $0x8] sm:$0xff]  ;;  %v262_v2 = vld [vmem:[%s16897_s1 + $0x10] sm:$0xff]  ;;  %s11501_s29 = sshll.u32 %s13416_s22, 3  ;;  %v293_v3 = vlaneseq  ;;  %v16905_v4 = vmov 0.0|0.0   ;;  %vm13363_vm0 = vmmov 0  }
   0xe   : > { %12376 = vmatprep.subr.bf16.mxu0 %v16905_v4  ;;  %v13431_v5 = vpack.c.bf16 %v261_v1, %v260_v0  ;;  %v263_v6 = vld [vmem:[%s16897_s1 + $0x18] sm:$0xff]  ;;  %p243_p3 = scmp.lt.s32.totalorder %s11501_s29, 15  ;;  %12388 = vmatprep.subr.bf16.mxu1 %v16905_v4  ;;  %v264_v13 = vld [vmem:[%s16897_s1 + $0x20] sm:$0xff]  ;;  %v265_v14 = vld [vmem:[%s16897_s1 + $0x28] sm:$0xff]  ;;  %v16903_v15 = vmov 0.0   ;;  %vm1089_vm1 = vcmask 27648  }
   0xf   : > { %v13437_v7 = vshrl.u32 %v293_v3, 7  ;;  %v1152_v8 = vand.u32 127, %v293_v3  ;;  %v13440_v9 = vpack.c.bf16 %v263_v6, %v262_v2  ;;  %11860 = vmatprep.mubr.msk.f32.mxu0 %vm13363_vm0, %v16903_v15  ;;  %11873 = vmatprep.mubr.msk.f32.mxu1 %vm13363_vm0, %v16903_v15  ;;  %v13471_v17 = vpack.c.bf16 %v265_v14, %v264_v13  ;;  %v266_v21 = vld [vmem:[%s16897_s1 + $0x30] sm:$0xff]  ;;  %v267_v22 = vld [vmem:[%s16897_s1 + $0x38] sm:$0xff]  ;;  %s13367_s16 = smov 64   ;;  %s13368_s17 = smov 32  }
  0x10   : > { %17046 = vst [vmem:[#allocation2_spill] sm:$0xff] %v13431_v5  ;;  %12378 = vmatpush3.bf16.msra.mxu0 %v13431_v5  ;;  %s17312_s29 = smov (!%p243_p3, %s11501_s29), 15  ;;  %v13502_v25 = vpack.c.bf16 %v267_v22, %v266_v21  ;;  %vm1185_vm2 = vcmask 1041409   ;;  %vm1187_vm3 = vcmask 1042434   ;;  %vm1189_vm4 = vcmask 1043459   ;;  %s13369_s18 = smov 36  }
  0x11   : > { %17047 = vst [vmem:[#allocation3_spill] sm:$0xff] %v13440_v9  ;;  %12379 = vmatprep.subr.bf16.mxu0 %v16905_v4  ;;  %v13444_v10 = vsub.s32 0, %v13437_v7  ;;  %v13447_v11 = vsub.s32 1, %v13437_v7  ;;  %v13450_v12 = vsub.s32 %v1152_v8, %v13437_v7  ;;  %s11502_s12 = sshll.u32 %s17312_s29, 3  ;;  %17051 = vst [vmem:[#allocation7_spill] sm:$0xff] %v13471_v17  ;;  %v13530_v31 = vsub.s32 2, %v13437_v7 }
  0x12   : > { %s13465_s15 = scalar_lea.vmem %s16896_s0, %s11502_s12  ;;  %17056 = vst [vmem:[#allocation12_spill] sm:$0xff] %v13502_v25  ;;  %v13581_v42 = vsub.s32 3, %v13437_v7  ;;  %v13640_v55 = vsub.s32 4, %v13437_v7  ;;  %v13683_v0 = vsub.s32 5, %v13437_v7  ;;  %v13726_v22 = vsub.s32 6, %v13437_v7  ;;  %s13370_s30 = smov 127  }
  0x13   : > { %17048 = vst [vmem:[#allocation4_spill] sm:$0xff] %v13444_v10  ;;  %17049 = vst [vmem:[#allocation5_spill] sm:$0xff] %v13447_v11  ;;  %v13469_v16 = vld [vmem:[%s13465_s15] sm:$0xff]  ;;  %v13474_v18 = vld [vmem:[%s13465_s15 + $0x8] sm:$0xff]  ;;  %vm1191_vm5 = vcmask 1044484   ;;  %vm1193_vm6 = vcmask 1045509  }
  0x14   : > { %17050 = vst [vmem:[#allocation6_spill] sm:$0xff] %v13450_v12  ;;  %12381 = vmatpush3.bf16.msra.mxu0 %v13440_v9  ;;  %v13479_v19 = vrot.slane %v13469_v16, %v13447_v11  ;;  %v13483_v20 = vrot.slane %v13469_v16, %v13444_v10  ;;  %v13495_v23 = vrot.slane %v13474_v18, %v13447_v11  ;;  %v13505_v26 = vld [vmem:[%s13465_s15 + $0x10] sm:$0xff]  ;;  %v13520_v29 = vld [vmem:[%s13465_s15 + $0x18] sm:$0xff]  ;;  %17060 = vst [vmem:[#allocation16_spill] sm:$0xff] %v13530_v31  ;;  %vm1195_vm7 = vcmask 1046534   ;;  %s13371_s12 = smov 96  }
  0x15   : > { %12382 = vmatprep.subr.bf16.mxu0 %v16905_v4  ;;  %v13499_v24 = vrot.slane %v13474_v18, %v13444_v10  ;;  %v13512_v27 = vrot.slane %v13505_v26, %v13447_v11  ;;  %v13517_v28 = vrot.slane %v13505_v26, %v13444_v10  ;;  %v13527_v30 = vrot.slane %v13520_v29, %v13447_v11  ;;  %v13550_v35 = vld [vmem:[%s13465_s15 + $0x20] sm:$0xff]  ;;  %v13563_v38 = vld [vmem:[%s13465_s15 + $0x28] sm:$0xff]  ;;  %v13599_v46 = vld [vmem:[%s13465_s15 + $0x30] sm:$0xff]  ;;  %p248_p4 = scmp.lt.s32.totalorder %s13416_s22, 1 }
  0x16   : > { %17052 = vst [vmem:[#allocation8_spill] sm:$0xff] %v13479_v19  ;;  %17053 = vst [vmem:[#allocation9_spill] sm:$0xff] %v13483_v20  ;;  %366 = vbcast.lane.b32.xlu1 %v13479_v19, 256  ;;  %298 = vbcast.lane.b32.xlu0 %v13483_v20, 256  ;;  %v13535_v32 = vrot.slane %v13520_v29, %v13444_v10  ;;  %v13542_v33 = vrot.slane %v13474_v18, %v13530_v31  ;;  %v13622_v51 = vld [vmem:[%s13465_s15 + $0x38] sm:$0xff]  ;;  %vm1197_vm8 = vcmask 1047559  }
  0x17   : > { %17054 = vst [vmem:[#allocation10_spill] sm:$0xff] %v13495_v23  ;;  %17055 = vst [vmem:[#allocation11_spill] sm:$0xff] %v13499_v24  ;;  %v13547_v34 = vrot.slane %v13469_v16, %v13530_v31  ;;  %v13555_v36 = vrot.slane %v13550_v35, %v13447_v11  ;;  %v13560_v37 = vrot.slane %v13550_v35, %v13444_v10  ;;  %vm1200_vm9 = vcmask 31744   ;;  %s17314_s22 = smov (!%p248_p4, %s13416_s22), 1 }
  0x18   : > { %12384 = vmatpush3.bf16.msra.mxu0 %v13471_v17  ;;  %17057 = vst [vmem:[#allocation13_spill] sm:$0xff] %v13512_v27  ;;  %17058 = vst [vmem:[#allocation14_spill] sm:$0xff] %v13517_v28  ;;  %v13568_v39 = vrot.slane %v13563_v38, %v13444_v10  ;;  %v13573_v40 = vrot.slane %v13505_v26, %v13530_v31  ;;  %v13578_v41 = vrot.slane %v13520_v29, %v13530_v31  ;;  %vm1415_vm10 = vcmask 1043456  }
  0x19   : > { %12385 = vmatprep.subr.bf16.mxu0 %v16905_v4  ;;  %17059 = vst [vmem:[#allocation15_spill] sm:$0xff] %v13527_v30  ;;  %17061 = vst [vmem:[#allocation17_spill] sm:$0xff] %v13535_v32  ;;  %v13586_v43 = vrot.slane %v13563_v38, %v13447_v11  ;;  %v13591_v44 = vrot.slane %v13474_v18, %v13581_v42  ;;  %v13596_v45 = vrot.slane %v13469_v16, %v13581_v42  ;;  %vm1411_vm11 = vcmask 293888  }
  0x1a   : > { %373 = vbcast.lane.b32.xlu1 %v13495_v23, 256  ;;  %305 = vbcast.lane.b32.xlu0 %v13499_v24, 256  ;;  %17062 = vst [vmem:[#allocation18_spill] sm:$0xff] %v13542_v33  ;;  %17063 = vst [vmem:[#allocation19_spill] sm:$0xff] %v13547_v34  ;;  %v13604_v47 = vrot.slane %v13599_v46, %v13447_v11  ;;  %v13609_v48 = vrot.slane %v13599_v46, %v13444_v10  ;;  %vm1575_vm12 = vcmask 261120   ;;  %vm17005_vm13 = vcmask 523264  }
  0x1b   : > { %17064 = vst [vmem:[#allocation20_spill] sm:$0xff] %v13555_v36  ;;  %17065 = vst [vmem:[#allocation21_spill] sm:$0xff] %v13560_v37  ;;  %v13614_v49 = vrot.slane %v13505_v26, %v13581_v42  ;;  %v13619_v50 = vrot.slane %v13550_v35, %v13530_v31  ;;  %v13627_v52 = vrot.slane %v13622_v51, %v13447_v11  ;;  %vm17006_vm14 = vcmask 1040384  }
  0x1c   : > { %12387 = vmatpush3.bf16.msra.mxu0 %v13502_v25  ;;  %17066 = vst [vmem:[#allocation22_spill] sm:$0xff] %v13568_v39  ;;  %17067 = vst [vmem:[#allocation23_spill] sm:$0xff] %v13573_v40  ;;  %v13632_v53 = vrot.slane %v13622_v51, %v13444_v10  ;;  %v13637_v54 = vrot.slane %v13520_v29, %v13581_v42  ;;  %v13645_v56 = vrot.slane %v13563_v38, %v13530_v31  ;;  %v280_v25 = vld [vmem:[%s16898_s2 + $0x20] sm:$0xff]  ;;  %vm6314_vm15 = vcmask 1041408  }
  0x1d   : > { %12406 = vmatprep.subr.bf16.mxu0 %v16905_v4  ;;  %17068 = vst [vmem:[#allocation24_spill] sm:$0xff] %v13578_v41  ;;  %17069 = vst [vmem:[#allocation25_spill] sm:$0xff] %v13581_v42  ;;  %v13650_v57 = vrot.slane %v13474_v18, %v13640_v55  ;;  %v13655_v58 = vrot.slane %v13469_v16, %v13640_v55  ;;  %v13660_v59 = vrot.slane %v13550_v35, %v13581_v42 }
  0x1e   : > { %380 = vbcast.lane.b32.xlu1 %v13512_v27, 256  ;;  %312 = vbcast.lane.b32.xlu0 %v13517_v28, 256  ;;  %17070 = vst [vmem:[#allocation26_spill] sm:$0xff] %v13586_v43  ;;  %17071 = vst [vmem:[#allocation27_spill] sm:$0xff] %v13591_v44  ;;  %v13665_v60 = vrot.slane %v13599_v46, %v13530_v31  ;;  %v13670_v61 = vrot.slane %v13622_v51, %v13530_v31  ;;  %v13365_v27 = vmov 1966171168  }
  0x1f   : > { %11861 = vmatmul.mubr.f32.vlgmr.msra.gmra.mrb[0].mxu0 %v16903_v15  ;;  %17072 = vst [vmem:[#allocation28_spill] sm:$0xff] %v13596_v45  ;;  %17073 = vst [vmem:[#allocation29_spill] sm:$0xff] %v13604_v47  ;;  %v13675_v62 = vrot.slane %v13505_v26, %v13640_v55  ;;  %v13680_v63 = vrot.slane %v13520_v29, %v13640_v55  ;;  %v13688_v1 = vrot.slane %v13563_v38, %v13581_v42 }
  0x20   : > { %11905 = vmatprep.mubr.msk.f32.mxu0 %vm13363_vm0, %v16903_v15  ;;  %17074 = vst [vmem:[#allocation30_spill] sm:$0xff] %v13609_v48  ;;  %17075 = vst [vmem:[#allocation31_spill] sm:$0xff] %v13614_v49  ;;  %v13693_v2 = vrot.slane %v13474_v18, %v13683_v0  ;;  %v13698_v3 = vrot.slane %v13469_v16, %v13683_v0  ;;  %v13703_v6 = vrot.slane %v13550_v35, %v13640_v55 }
  0x21   : > { %17076 = vst [vmem:[#allocation32_spill] sm:$0xff] %v13619_v50  ;;  %17077 = vst [vmem:[#allocation33_spill] sm:$0xff] %v13627_v52  ;;  %v13708_v8 = vrot.slane %v13599_v46, %v13581_v42  ;;  %v13713_v13 = vrot.slane %v13622_v51, %v13581_v42  ;;  %v13718_v14 = vrot.slane %v13505_v26, %v13683_v0  ;;  %v974_v23 = vunpack.c.l.s4 %v13365_v27 }
  0x22   : > { %387 = vbcast.lane.b32.xlu1 %v13527_v30, 256  ;;  %319 = vbcast.lane.b32.xlu0 %v13535_v32, 256  ;;  %17078 = vst [vmem:[#allocation34_spill] sm:$0xff] %v13632_v53  ;;  %17079 = vst [vmem:[#allocation35_spill] sm:$0xff] %v13637_v54  ;;  %v13723_v21 = vrot.slane %v13520_v29, %v13683_v0  ;;  %v13731_v15 = vrot.slane %v13563_v38, %v13640_v55 }
  0x23   : > { %17080 = vst [vmem:[#allocation36_spill] sm:$0xff] %v13640_v55  ;;  %17081 = vst [vmem:[#allocation37_spill] sm:$0xff] %v13645_v56  ;;  %v13736_v4 = vrot.slane %v13474_v18, %v13726_v22  ;;  %v975_v5 = vunpack.c.0.s8 %v974_v23  ;;  %v352_v12 = vrot.slane %v280_v25, %v13444_v10 }
  0x24   : > { %17082 = vst [vmem:[#allocation38_spill] sm:$0xff] %v13650_v57  ;;  %17083 = vst [vmem:[#allocation39_spill] sm:$0xff] %v13655_v58 }
  0x25   : > { %17084 = vst [vmem:[#allocation40_spill] sm:$0xff] %v13660_v59  ;;  %17085 = vst [vmem:[#allocation41_spill] sm:$0xff] %v13665_v60  ;;  %v13929_v27 = vsub.s32 %v975_v5, %v13437_v7  ;;  %v13939_v5 = vrot.slane %v280_v25, %v13640_v55 }
  0x26   : > { %449 = vbcast.lane.b32.xlu1 %v13542_v33, 256  ;;  %442 = vbcast.lane.b32.xlu0 %v13547_v34, 256  ;;  %17086 = vst [vmem:[#allocation42_spill] sm:$0xff] %v13670_v61  ;;  %17087 = vst [vmem:[#allocation43_spill] sm:$0xff] %v13675_v62 }
  0x27   : > { %17088 = vst [vmem:[#allocation44_spill] sm:$0xff] %v13680_v63  ;;  %17089 = vst [vmem:[#allocation45_spill] sm:$0xff] %v13683_v0 }
  0x28   : > { %17090 = vst [vmem:[#allocation46_spill] sm:$0xff] %v13688_v1  ;;  %17091 = vst [vmem:[#allocation47_spill] sm:$0xff] %v13693_v2 }
  0x29   : > { %17092 = vst [vmem:[#allocation48_spill] sm:$0xff] %v13698_v3  ;;  %17093 = vst [vmem:[#allocation49_spill] sm:$0xff] %v13703_v6 }
  0x2a   : > { %394 = vbcast.lane.b32.xlu1 %v13555_v36, 256  ;;  %326 = vbcast.lane.b32.xlu0 %v13560_v37, 256  ;;  %17094 = vst [vmem:[#allocation50_spill] sm:$0xff] %v13708_v8  ;;  %17095 = vst [vmem:[#allocation51_spill] sm:$0xff] %v13713_v13 }
  0x2b   : > { %17096 = vst [vmem:[#allocation52_spill] sm:$0xff] %v13718_v14  ;;  %17097 = vst [vmem:[#allocation53_spill] sm:$0xff] %v13723_v21 }
  0x2c   : > { %17098 = vst [vmem:[#allocation54_spill] sm:$0xff] %v13726_v22  ;;  %17099 = vst [vmem:[#allocation55_spill] sm:$0xff] %v13731_v15 }
  0x2d   : > { %17100 = vst [vmem:[#allocation56_spill] sm:$0xff] %v13736_v4  ;;  %17128 = vst [vmem:[#allocation84_spill] sm:$0xff] %v13929_v27 }
  0x2e   : > { %333 = vbcast.lane.b32.xlu1 %v13568_v39, 256  ;;  %456 = vbcast.lane.b32.xlu0 %v13573_v40, 256  ;;  %v496_v39 = vrot.slane %v280_v25, %v13530_v31  ;;  %v13936_v31 = vrot.slane %v280_v25, %v13581_v42 }
  0x32   : > { %463 = vbcast.lane.b32.xlu1 %v13578_v41, 256  ;;  %401 = vbcast.lane.b32.xlu0 %v13586_v43, 256 }
  0x36   : > { %525 = vbcast.lane.b32.xlu1 %v13591_v44, 256  ;;  %518 = vbcast.lane.b32.xlu0 %v13596_v45, 256 }
  0x3a   : > { %408 = vbcast.lane.b32.xlu1 %v13604_v47, 256  ;;  %340 = vbcast.lane.b32.xlu0 %v13609_v48, 256  ;;  %v420_v48 = vrot.slane %v280_v25, %v13447_v11 }
  0x3e   : > { %532 = vbcast.lane.b32.xlu1 %v13614_v49, 256  ;;  %470 = vbcast.lane.b32.xlu0 %v13619_v50, 256 }
  0x42   : > { %415 = vbcast.lane.b32.xlu1 %v13627_v52, 256  ;;  %347 = vbcast.lane.b32.xlu0 %v13632_v53, 256 }
  0x46   : > { %539 = vbcast.lane.b32.xlu1 %v13637_v54, 256  ;;  %477 = vbcast.lane.b32.xlu0 %v13645_v56, 256 }
  0x4a   : > { %601 = vbcast.lane.b32.xlu1 %v13650_v57, 256  ;;  %594 = vbcast.lane.b32.xlu0 %v13655_v58, 256 }
  0x4e   : > { %546 = vbcast.lane.b32.xlu1 %v13660_v59, 256  ;;  %484 = vbcast.lane.b32.xlu0 %v13665_v60, 256 }
  0x52   : > { %491 = vbcast.lane.b32.xlu1 %v13670_v61, 256  ;;  %608 = vbcast.lane.b32.xlu0 %v13675_v62, 256 }
  0x56   : > { %615 = vbcast.lane.b32.xlu1 %v13680_v63, 256  ;;  %553 = vbcast.lane.b32.xlu0 %v13688_v1, 256 }
  0x5a   : > { %677 = vbcast.lane.b32.xlu1 %v13693_v2, 256  ;;  %670 = vbcast.lane.b32.xlu0 %v13698_v3, 256  ;;  %v13741_v3 = vrot.slane %v13469_v16, %v13726_v22  ;;  %v13756_v2 = vrot.slane %v13622_v51, %v13640_v55 }
  0x5c   : > { %17101 = vst [vmem:[#allocation57_spill] sm:$0xff] %v13741_v3  ;;  %17104 = vst [vmem:[#allocation60_spill] sm:$0xff] %v13756_v2 }
  0x5e   : > { %622 = vbcast.lane.b32.xlu1 %v13703_v6, 256  ;;  %560 = vbcast.lane.b32.xlu0 %v13708_v8, 256 }
  0x62   : > { %567 = vbcast.lane.b32.xlu1 %v13713_v13, 256  ;;  %684 = vbcast.lane.b32.xlu0 %v13718_v14, 256  ;;  %v13746_v14 = vrot.slane %v13550_v35, %v13683_v0 }
  0x64   : > { %17102 = vst [vmem:[#allocation58_spill] sm:$0xff] %v13746_v14 }
  0x66   : > { %691 = vbcast.lane.b32.xlu1 %v13723_v21, 256  ;;  %629 = vbcast.lane.b32.xlu0 %v13731_v15, 256  ;;  %v13751_v21 = vrot.slane %v13599_v46, %v13640_v55  ;;  %v13769_v15 = vsub.s32 7, %v13437_v7 }
  0x68   : > { %17103 = vst [vmem:[#allocation59_spill] sm:$0xff] %v13751_v21  ;;  %17107 = vst [vmem:[#allocation63_spill] sm:$0xff] %v13769_v15 }
  0x6a   : > { %753 = vbcast.lane.b32.xlu1 %v13736_v4, 256  ;;  %746 = vbcast.lane.b32.xlu0 %v13741_v3, 256  ;;  %v13761_v4 = vrot.slane %v13505_v26, %v13726_v22  ;;  %v13766_v3 = vrot.slane %v13520_v29, %v13726_v22 }
  0x6c   : > { %17105 = vst [vmem:[#allocation61_spill] sm:$0xff] %v13761_v4  ;;  %17106 = vst [vmem:[#allocation62_spill] sm:$0xff] %v13766_v3 }
  0x6e   : > { %698 = vbcast.lane.b32.xlu1 %v13746_v14, 256  ;;  %636 = vbcast.lane.b32.xlu0 %v13751_v21, 256  ;;  %v13774_v14 = vrot.slane %v13563_v38, %v13683_v0  ;;  %v13779_v21 = vrot.slane %v13474_v18, %v13769_v15  ;;  %v13799_v18 = vrot.slane %v13622_v51, %v13683_v0 }
  0x70   : > { %17108 = vst [vmem:[#allocation64_spill] sm:$0xff] %v13774_v14  ;;  %17109 = vst [vmem:[#allocation65_spill] sm:$0xff] %v13779_v21 }
  0x71   : > { %17113 = vst [vmem:[#allocation69_spill] sm:$0xff] %v13799_v18 }
  0x72   : > { %643 = vbcast.lane.b32.xlu1 %v13756_v2, 256  ;;  %760 = vbcast.lane.b32.xlu0 %v13761_v4, 256  ;;  %v13784_v2 = vrot.slane %v13469_v16, %v13769_v15  ;;  %v13789_v4 = vrot.slane %v13550_v35, %v13726_v22  ;;  %v13804_v16 = vrot.slane %v13505_v26, %v13769_v15 }
  0x73   : > { %v13824_v26 = vrot.slane %v13599_v46, %v13726_v22 }
  0x74   : > { %17110 = vst [vmem:[#allocation66_spill] sm:$0xff] %v13784_v2  ;;  %17111 = vst [vmem:[#allocation67_spill] sm:$0xff] %v13789_v4 }
  0x75   : > { %17114 = vst [vmem:[#allocation70_spill] sm:$0xff] %v13804_v16  ;;  %17118 = vst [vmem:[#allocation74_spill] sm:$0xff] %v13824_v26 }
  0x76   : > { %767 = vbcast.lane.b32.xlu1 %v13766_v3, 256  ;;  %705 = vbcast.lane.b32.xlu0 %v13774_v14, 256  ;;  %v13794_v3 = vrot.slane %v13599_v46, %v13683_v0 }
  0x78   : > { %17112 = vst [vmem:[#allocation68_spill] sm:$0xff] %v13794_v3 }
  0x7a   : > { %829 = vbcast.lane.b32.xlu1 %v13779_v21, 256  ;;  %822 = vbcast.lane.b32.xlu0 %v13784_v2, 256  ;;  %v13809_v2 = vrot.slane %v13520_v29, %v13769_v15  ;;  %v13814_v21 = vrot.slane %v13563_v38, %v13726_v22 }
  0x7c   : > { %17115 = vst [vmem:[#allocation71_spill] sm:$0xff] %v13809_v2  ;;  %17116 = vst [vmem:[#allocation72_spill] sm:$0xff] %v13814_v21 }
  0x7e   : > { %774 = vbcast.lane.b32.xlu1 %v13789_v4, 256  ;;  %712 = vbcast.lane.b32.xlu0 %v13794_v3, 256  ;;  %v13819_v4 = vrot.slane %v13550_v35, %v13769_v15  ;;  %v13838_v35 = vrot.slane %v13622_v51, %v13726_v22 }
  0x80   : > { %17117 = vst [vmem:[#allocation73_spill] sm:$0xff] %v13819_v4  ;;  %17120 = vst [vmem:[#allocation76_spill] sm:$0xff] %v13838_v35 }
  0x82   : > { %719 = vbcast.lane.b32.xlu1 %v13799_v18, 256  ;;  %836 = vbcast.lane.b32.xlu0 %v13804_v16, 256  ;;  %v13833_v16 = vrot.slane %v13563_v38, %v13769_v15  ;;  %v13843_v18 = vrot.slane %v13622_v51, %v13769_v15  ;;  %v13848_v38 = vrot.slane %v13599_v46, %v13769_v15  ;;  %v13855_v51 = vld [vmem:[%s16901_s5 + $0x8] sm:$0x3] }
  0x83   : > { %17123 = vst [vmem:[#allocation79_spill] sm:$0xff] %v13855_v51  ;;  %v16945_v6 = vrot.slane %v13855_v51, 1 }
  0x84   : > { %17119 = vst [vmem:[#allocation75_spill] sm:$0xff] %v13833_v16  ;;  %17121 = vst [vmem:[#allocation77_spill] sm:$0xff] %v13843_v18 }
  0x85   : > { %17122 = vst [vmem:[#allocation78_spill] sm:$0xff] %v13848_v38  ;;  %12672 = vpush %v16945_v6 }
  0x86   : > { %843 = vbcast.lane.b32.xlu1 %v13809_v2, 256  ;;  %781 = vbcast.lane.b32.xlu0 %v13814_v21, 256 }
  0x88   : > { %v13826_v29 = vpop.permute.xlu1 %366  ;;  %v13828_v3 = vpop.permute.xlu0 %298 }
  0x89   : > { %v421_v37 = vmul.f32 %v420_v48, %v13826_v29  ;;  %v353_v20 = vmul.f32 %v352_v12, %v13828_v3 }
  0x8a   : > { %850 = vbcast.lane.b32.xlu1 %v13819_v4, 256  ;;  %788 = vbcast.lane.b32.xlu0 %v13824_v26, 256 }
  0x8c   : > { %v374_v2 = vpop.permute.xlu1 %373  ;;  %v306_v21 = vpop.permute.xlu0 %305 }
  0x8d   : > { %v422_v28 = vmul.f32 %v420_v48, %v374_v2  ;;  %v354_v24 = vmul.f32 %v352_v12, %v306_v21  ;;  %v13946_v2 = vld [vmem:[%s16901_s5] sm:$0xff] }
  0x8e   : > { %857 = vbcast.lane.b32.xlu1 %v13833_v16, 256  ;;  %795 = vbcast.lane.b32.xlu0 %v13838_v35, 256 }
  0x8f   : > { %v430_v21 = vadd.f32 %v422_v28, %v354_v24 }
  0x90   : > { %v381_v4 = vpop.permute.xlu1 %380  ;;  %v313_v26 = vpop.permute.xlu0 %312 }
  0x91   : > { %v423_v23 = vmul.f32 %v420_v48, %v381_v4 }
  0x92   : > { %871 = vbcast.lane.b32.xlu1 %v13843_v18, 256  ;;  %864 = vbcast.lane.b32.xlu0 %v13848_v38, 256 }
  0x94   : > { %v388_v14 = vpop.permute.xlu1 %387  ;;  %v320_v63 = vpop.permute.xlu0 %319 }
  0x95   : > { %v424_v11 = vmul.f32 %v420_v48, %v388_v14  ;;  %v429_v14 = vadd.f32 %v421_v37, %v353_v20 }
  0x98   : > { %v450_v58 = vpop.permute.xlu1 %449  ;;  %v443_v16 = vpop.permute.xlu0 %442 }
  0x9c   : > { %v395_v35 = vpop.permute.xlu1 %394  ;;  %v327_v46 = vpop.permute.xlu0 %326 }
  0x9d   : > { %v425_v4 = vmul.f32 %v420_v48, %v395_v35  ;;  %v357_v3 = vmul.f32 %v352_v12, %v327_v46  ;;  %v13962_v35 = vrot.slane %v13946_v2, %v13683_v0 }
  0xa0   : > { %v13860_v62 = vpop.permute.xlu1 %333  ;;  %v457_v18 = vpop.permute.xlu0 %456 }
  0xa4   : > { %v13862_v38 = vpop.permute.xlu1 %463  ;;  %v13864_v57 = vpop.permute.xlu0 %401 }
  0xa5   : > { %v500_v55 = vmul.f32 %v496_v39, %v13862_v38 }
  0xa8   : > { %v13866_v8 = vpop.permute.xlu1 %525  ;;  %v13868_v13 = vpop.permute.xlu0 %518 }
  0xa9   : > { %v574_v20 = vmul.f32 %v13936_v31, %v13866_v8 }
  0xac   : > { %v13870_v1 = vpop.permute.xlu1 %408  ;;  %v13872_v54 = vpop.permute.xlu0 %340 }
  0xad   : > { %v359_v28 = vmul.f32 %v352_v12, %v13872_v54 }
  0xb0   : > { %v13874_v45 = vpop.permute.xlu1 %532  ;;  %v13876_v59 = vpop.permute.xlu0 %470 }
  0xb4   : > { %v13878_v6 = vpop.permute.xlu1 %415  ;;  %v13880_v51 = vpop.permute.xlu0 %347 }
  0xb5   : > { %v428_v8 = vmul.f32 %v420_v48, %v13878_v6 }
  0xb6   : > { %s12673_s28 = spop %12672 }
  0xb8   : > { %v13882_v49 = vpop.permute.xlu1 %539  ;;  %v13884_v44 = vpop.permute.xlu0 %477 }
  0xb9   : > { %v502_v54 = vmul.f32 %v496_v39, %v13884_v44 }
  0xbc   : > { %v13886_v60 = vpop.permute.xlu1 %601  ;;  %v13888_v61 = vpop.permute.xlu0 %594 }
  0xc0   : > { %v13890_v56 = vpop.permute.xlu1 %546  ;;  %v13892_v41 = vpop.permute.xlu0 %484 }
  0xc4   : > { %v13894_v34 = vpop.permute.xlu1 %491  ;;  %v13896_v50 = vpop.permute.xlu0 %608 }
  0xc5   : > { %v504_v6 = vmul.f32 %v496_v39, %v13894_v34 }
  0xc8   : > { %v13898_v40 = vpop.permute.xlu1 %615  ;;  %v13900_v33 = vpop.permute.xlu0 %553 }
  0xcc   : > { %v13902_v47 = vpop.permute.xlu1 %677  ;;  %v13904_v52 = vpop.permute.xlu0 %670 }
  0xd0   : > { %v13906_v43 = vpop.permute.xlu1 %622  ;;  %v13908_v30 = vpop.permute.xlu0 %560 }
  0xd1   : > { %17124 = vst [vmem:[#allocation80_spill] sm:$0xff] %v13908_v30  ;;  %v355_v30 = vmul.f32 %v352_v12, %v313_v26  ;;  %v13955_v26 = vrot.slane %v280_v25, %v13769_v15 }
  0xd3   : > { %v431_v29 = vadd.f32 %v423_v23, %v355_v30  ;;  %v358_v30 = vmul.f32 %v352_v12, %v13860_v62  ;;  %v650_v62 = vmul.f32 %v13939_v5, %v13886_v60  ;;  %v651_v60 = vmul.f32 %v13939_v5, %v13896_v50 }
  0xd4   : > { %v13910_v19 = vpop.permute.xlu1 %567  ;;  %v13912_v36 = vpop.permute.xlu0 %684  ;;  %v653_v50 = vmul.f32 %v13939_v5, %v13906_v43 }
  0xd8   : > { %v13917_v17 = vpop.permute.xlu1 %691  ;;  %v13919_v9 = vpop.permute.xlu0 %629 }
  0xd9   : > { %17125 = vst [vmem:[#allocation81_spill] sm:$0xff] %v13917_v17  ;;  %17126 = vst [vmem:[#allocation82_spill] sm:$0xff] %v13919_v9  ;;  %v356_v9 = vmul.f32 %v352_v12, %v320_v63  ;;  %v497_v17 = vmul.f32 %v496_v39, %v443_v16  ;;  %v13949_v63 = vrot.slane %v280_v25, %v13683_v0 }
  0xda   : > { %v499_v16 = vmul.f32 %v496_v39, %v457_v18  ;;  %v360_v18 = vmul.f32 %v352_v12, %v13880_v51  ;;  %v577_v12 = vmul.f32 %v13936_v31, %v13890_v56  ;;  %v652_v51 = vmul.f32 %v13939_v5, %v13898_v40 }
  0xdb   : > { %v432_v42 = vadd.f32 %v424_v11, %v356_v9  ;;  %v505_v27 = vadd.f32 %v497_v17, %v429_v14  ;;  %v573_v9 = vmul.f32 %v13936_v31, %v13868_v13  ;;  %v427_v11 = vmul.f32 %v420_v48, %v13870_v1 }
  0xdc   : > { %v13923_v53 = vpop.permute.xlu1 %753  ;;  %v13926_v32 = vpop.permute.xlu0 %746  ;;  %v507_v37 = vadd.f32 %v499_v16, %v431_v29  ;;  %v575_v17 = vmul.f32 %v13936_v31, %v13874_v45  ;;  %v576_v13 = vmul.f32 %v13936_v31, %v13882_v49  ;;  %v436_v44 = vadd.f32 %v428_v8, %v360_v18  ;;  %v17133_v8 = vld [vmem:[#allocation80_spill] sm:$0xff] }
  0xdd   : > { %17127 = vst [vmem:[#allocation83_spill] sm:$0xff] %v13923_v53  ;;  %v498_v53 = vmul.f32 %v496_v39, %v450_v58  ;;  %v13952_v58 = vrot.slane %v280_v25, %v13726_v22  ;;  %v426_v22 = vmul.f32 %v420_v48, %v13864_v57  ;;  %v433_v25 = vadd.f32 %v425_v4, %v357_v3 }
  0xde   : > { %v508_v57 = vadd.f32 %v500_v55, %v432_v42  ;;  %v581_v45 = vadd.f32 %v573_v9, %v505_v27  ;;  %v649_v42 = vmul.f32 %v13939_v5, %v13888_v61  ;;  %v583_v48 = vadd.f32 %v575_v17, %v507_v37 }
  0xdf   : > { %v506_v46 = vadd.f32 %v498_v53, %v430_v21  ;;  %v501_v53 = vmul.f32 %v496_v39, %v13876_v59  ;;  %v434_v1 = vadd.f32 %v426_v22, %v358_v30  ;;  %v435_v59 = vadd.f32 %v427_v11, %v359_v28 }
  0xe0   : > { %v13933_v10 = vpop.permute.xlu1 %698  ;;  %v13941_v7 = vpop.permute.xlu0 %636  ;;  %v503_v55 = vmul.f32 %v496_v39, %v13892_v41  ;;  %v584_v22 = vadd.f32 %v576_v13, %v508_v57  ;;  %v578_v56 = vmul.f32 %v13936_v31, %v13900_v33  ;;  %v726_v14 = vmul.f32 %v13949_v63, %v13902_v47  ;;  %v17131_v9 = vld [vmem:[#allocation82_spill] sm:$0xff] }
  0xe1   : > { %17129 = vst [vmem:[#allocation85_spill] sm:$0xff] %v13941_v7  ;;  %v582_v23 = vadd.f32 %v574_v20, %v506_v46  ;;  %v509_v49 = vadd.f32 %v501_v53, %v433_v25  ;;  %v510_v3 = vadd.f32 %v502_v54, %v434_v1  ;;  %v657_v21 = vadd.f32 %v649_v42, %v581_v45  ;;  %v17130_v20 = vld [vmem:[#allocation81_spill] sm:$0xff] }
  0xe2   : > { %v725_v39 = vmul.f32 %v13949_v63, %v13904_v52  ;;  %v14004_v16 = vadd.f32 %v503_v55, %v435_v59  ;;  %v512_v40 = vadd.f32 %v504_v6, %v436_v44  ;;  %v580_v29 = vmul.f32 %v13936_v31, %v13910_v19 }
  0xe3   : > { %v658_v61 = vadd.f32 %v650_v62, %v582_v23  ;;  %v585_v34 = vadd.f32 %v577_v12, %v509_v49  ;;  %v727_v33 = vmul.f32 %v13949_v63, %v13912_v36  ;;  %v659_v46 = vadd.f32 %v651_v60, %v583_v48  ;;  %v17134_v12 = vld [vmem:[#allocation84_spill] sm:$0xff] }
  0xe4   : > { %v13958_v7 = vpop.permute.xlu1 %643  ;;  %v13967_v24 = vpop.permute.xlu0 %760  ;;  %v660_v47 = vadd.f32 %v652_v51, %v584_v22  ;;  %v728_v25 = vmul.f32 %v13949_v63, %v17130_v20  ;;  %v654_v52 = vmul.f32 %v13939_v5, %v17131_v9  ;;  %v586_v28 = vadd.f32 %v578_v56, %v510_v3  ;;  %v17132_v30 = vld [vmem:[#allocation83_spill] sm:$0xff] }
  0xe5   : > { %v734_v43 = vadd.f32 %v726_v14, %v658_v61  ;;  %v802_v37 = vmul.f32 %v13952_v58, %v17132_v30  ;;  %v801_v19 = vmul.f32 %v13952_v58, %v13926_v32  ;;  %v733_v53 = vadd.f32 %v725_v39, %v657_v21 }
  0xe6   : > { %v661_v57 = vadd.f32 %v653_v50, %v585_v34  ;;  %v579_v18 = vmul.f32 %v13936_v31, %v17133_v8  ;;  %v588_v23 = vadd.f32 %v580_v29, %v512_v40  ;;  %v735_v54 = vadd.f32 %v727_v33, %v659_v46  ;;  %v17136_v29 = vld [vmem:[#allocation4_spill] sm:$0xff] }
  0xe7   : > { %v729_v62 = vmul.f32 %v13949_v63, %v13933_v10  ;;  %v803_v45 = vmul.f32 %v13952_v58, %v13967_v24  ;;  %v736_v32 = vadd.f32 %v728_v25, %v660_v47  ;;  %v662_v59 = vadd.f32 %v654_v52, %v586_v28 }
  0xe8   : > { %v768_v38 = vpop.permute.xlu1 %767  ;;  %v13984_v4 = vpop.permute.xlu0 %705  ;;  %v810_v55 = vadd.f32 %v802_v37, %v734_v43  ;;  %v809_v6 = vadd.f32 %v801_v19, %v733_v53  ;;  %v17135_v61 = vld [vmem:[#allocation85_spill] sm:$0xff]  ;;  %v656_v30 = vmul.f32 %v13939_v5, %v13958_v7 }
  0xe9   : > { %v804_v31 = vmul.f32 %v13952_v58, %v768_v38  ;;  %v737_v3 = vadd.f32 %v729_v62, %v661_v57  ;;  %v655_v56 = vmul.f32 %v13939_v5, %v17135_v61  ;;  %v811_v14 = vadd.f32 %v803_v45, %v735_v54 }
  0xea   : > { %v730_v21 = vmul.f32 %v13949_v63, %v13984_v4 }
  0xeb   : > { %v812_v50 = vadd.f32 %v804_v31, %v736_v32 }
  0xec   : > { %v830_v27 = vpop.permute.xlu1 %829  ;;  %v823_v41 = vpop.permute.xlu0 %822  ;;  %v738_v54 = vadd.f32 %v730_v21, %v662_v59 }
  0xed   : > { %v877_v44 = vmul.f32 %v13955_v26, %v823_v41  ;;  %v878_v60 = vmul.f32 %v13955_v26, %v830_v27 }
  0xef   : > { %v14040_v40 = vadd.f32 %v877_v44, %v809_v6  ;;  %v14044_v20 = vadd.f32 %v878_v60, %v810_v55  ;;  %v664_v55 = vadd.f32 %v656_v30, %v588_v23 }
  0xf0   : > { %v775_v11 = vpop.permute.xlu1 %774  ;;  %v14018_v17 = vpop.permute.xlu0 %712 }
  0xf1   : > { %v805_v38 = vmul.f32 %v13952_v58, %v775_v11  ;;  %v731_v6 = vmul.f32 %v13949_v63, %v14018_v17 }
  0xf2   : > { %v967_v36 = vpop.f32.mrb[0].mxu0 }
  0xf3   : > { %v968_v13 = vadd.f32 %v967_v36, %v13962_v35  ;;  %v11862_v1 = vpop.f32.mrb[1].mxu0  ;;  %v813_v37 = vadd.f32 %v805_v38, %v737_v3  ;;  %v17137_v3 = vld [vmem:[#allocation54_spill] sm:$0xff] }
  0xf4   : > { %v720_v49 = vpop.permute.xlu1 %719  ;;  %v837_v22 = vpop.permute.xlu0 %836  ;;  %v14079_v61 = vrot.slane %v13946_v2, %v17137_v3 }
  0xf5   : > { %v972_v42 = vcombine.high %v968_v13, %v968_v13  ;;  %v979_v48 = vrot.slane %v968_v13, %v17134_v12  ;;  %v879_v27 = vmul.f32 %v13955_v26, %v837_v22  ;;  %v732_v62 = vmul.f32 %v13949_v63, %v720_v49 }
  0xf7   : > { %v986_v10 = vrot.slane %v972_v42, %v17134_v12  ;;  %v987_v51 = vcombine.high %v979_v48, %v979_v48  ;;  %v995_v24 = vrot.slane %v979_v48, %v17134_v12  ;;  %v14055_v36 = vadd.f32 %v879_v27, %v811_v14 }
  0xf8   : > { %v844_v39 = vpop.permute.xlu1 %843  ;;  %v782_v47 = vpop.permute.xlu0 %781  ;;  %v587_v48 = vadd.f32 %v579_v18, %v14004_v16 }
  0xf9   : > { %v1009_v41 = vrot.slane %v987_v51, %v17134_v12  ;;  %v1017_v34 = vcombine.high %v995_v24, %v995_v24  ;;  %v1024_v33 = vrot.slane %v995_v24, %v17136_v29  ;;  %v880_v46 = vmul.f32 %v13955_v26, %v844_v39 }
  0xfa   : > { %v988_v25 = vcombine.high %v986_v10, %v986_v10  ;;  %v1002_v52 = vrot.slane %v986_v10, %v17134_v12  ;;  %v806_v8 = vmul.f32 %v13952_v58, %v782_v47  ;;  %v663_v60 = vadd.f32 %v655_v56, %v587_v48 }
  0xfb   : > { %v1019_v4 = vcombine.high %v1009_v41, %v1009_v41  ;;  %v1028_v9 = vrot.slane %v1009_v41, %v17136_v29  ;;  %v1032_v11 = vrot.slane %v1017_v34, %v17136_v29  ;;  %v1061_v28 = vadd.f32 %v1024_v33, %v14040_v40 }
  0xfc   : > { %v14050_v43 = vadd.f32 %v880_v46, %v812_v50  ;;  %v851_v53 = vpop.permute.xlu1 %850  ;;  %v789_v1 = vpop.permute.xlu0 %788  ;;  %v1016_v7 = vrot.slane %v988_v25, %v17134_v12  ;;  %v1040_v32 = vrot.slane %v1002_v52, %v17136_v29  ;;  %v814_v49 = vadd.f32 %v806_v8, %v738_v54 }
  0xfd   : > { %v1036_v19 = vrot.slane %v1019_v4, %v17136_v29  ;;  %v1062_v57 = vadd.f32 %v1028_v9, %v14044_v20  ;;  %12699 = vtanh.f32 %v1061_v28  ;;  %v881_v13 = vmul.f32 %v13955_v26, %v851_v53 }
  0xfe   : > { %v1063_v45 = vadd.f32 %v1032_v11, %v14055_v36  ;;  %v740_v10 = vadd.f32 %v732_v62, %v664_v55  ;;  %v807_v51 = vmul.f32 %v13952_v58, %v789_v1  ;;  %v1020_v16 = vcombine.high %v1016_v7, %v1016_v7 }
  0xff   : > { %v1064_v5 = vadd.f32 %v1036_v19, %v14050_v43  ;;  %12701 = vtanh.f32 %v1062_v57  ;;  %v14065_v42 = vadd.f32 %v881_v13, %v813_v37  ;;  %v1044_v18 = vrot.slane %v1016_v7, %v17136_v29 }
 0x100   : > { %v858_v59 = vpop.permute.xlu1 %857  ;;  %12703 = vtanh.f32 %v1063_v45  ;;  %v796_v44 = vpop.permute.xlu0 %795  ;;  %v739_v63 = vadd.f32 %v731_v6, %v663_v60  ;;  %v1018_v17 = vcombine.high %v1002_v52, %v1002_v52  ;;  %v1052_v39 = vrot.slane %v1020_v16, %v17136_v29  ;;  %v17143_v60 = vld [vmem:[#allocation22_spill] sm:$0xff] }
 0x101   : > { %v882_v31 = vmul.f32 %v13955_v26, %v858_v59  ;;  %v1065_v22 = vadd.f32 %v1040_v32, %v14065_v42  ;;  %12705 = vtanh.f32 %v1064_v5  ;;  %v808_v24 = vmul.f32 %v13952_v58, %v796_v44  ;;  %v17138_v59 = vld [vmem:[#allocation11_spill] sm:$0xff]  ;;  %v17141_v44 = vld [vmem:[#allocation21_spill] sm:$0xff] }
 0x102   : > { %v815_v58 = vadd.f32 %v807_v51, %v739_v63  ;;  %v1048_v33 = vrot.slane %v1018_v17, %v17136_v29  ;;  %v14115_v51 = vstv %s12673_s28  ;;  %s13373_s28 = smov 33  }
 0x103   : > { %v14075_v23 = vadd.f32 %v882_v31, %v814_v49  ;;  %12707 = vtanh.f32 %v1065_v22  ;;  %v816_v21 = vadd.f32 %v808_v24, %v740_v10  ;;  %v17139_v49 = vld [vmem:[#allocation14_spill] sm:$0xff]  ;;  %v17140_v31 = vld [vmem:[#allocation9_spill] sm:$0xff] }
 0x104   : > { %v872_v14 = vpop.permute.xlu1 %871  ;;  %v865_v38 = vpop.permute.xlu0 %864  ;;  %v17142_v22 = vld [vmem:[#allocation17_spill] sm:$0xff]  ;;  %v17144_v10 = vld [vmem:[#allocation34_spill] sm:$0xff] }
 0x105   : > { %v884_v56 = vmul.f32 %v13955_v26, %v872_v14  ;;  %v1066_v41 = vadd.f32 %v1044_v18, %v14075_v23  ;;  %v883_v34 = vmul.f32 %v13955_v26, %v865_v38 }
 0x107   : > { %v12700_v27 = vpop.eup %12699  ;;  %v14085_v50 = vadd.f32 %v884_v56, %v816_v21  ;;  %12709 = vtanh.f32 %v1066_v41  ;;  %v14088_v46 = vadd.f32 %v883_v34, %v815_v58 }
 0x108   : > { %v1081_v47 = vmul.f32 %v12700_v27, %v14079_v61 }
 0x109   : > { %v12702_v25 = vpop.eup %12701  ;;  %v1068_v4 = vadd.f32 %v1052_v39, %v14085_v50  ;;  %v1067_v11 = vadd.f32 %v1048_v33, %v14088_v46 }
 0x10a   : > { %v12704_v9 = vpop.eup %12703  ;;  %v1090_v52 = vsel %vm1089_vm1, %v1081_v47, 0.0  ;;  %v1082_v26 = vmul.f32 %v12702_v25, %v14079_v61 }
 0x10b   : > { %v12706_v28 = vpop.eup %12705  ;;  %1091 = vadd.xlane.f32.xlu0 %v1090_v52  ;;  %v1083_v30 = vmul.f32 %v12704_v9, %v14079_v61  ;;  %12711 = vtanh.f32 %v1068_v4 }
 0x10c   : > { %v1093_v37 = vsel %vm1089_vm1, %v1082_v26, 0.0  ;;  %12713 = vtanh.f32 %v1067_v11  ;;  %v1084_v8 = vmul.f32 %v12706_v28, %v14079_v61 }
 0x10d   : > { %v12708_v19 = vpop.eup %12707  ;;  %1094 = vadd.xlane.f32.xlu1 %v1093_v37  ;;  %v1096_v53 = vsel %vm1089_vm1, %v1083_v30, 0.0 }
 0x10e   : > { %v1085_v57 = vmul.f32 %v12708_v19, %v14079_v61  ;;  %v1099_v54 = vsel %vm1089_vm1, %v1084_v8, 0.0 }
 0x10f   : > { %1097 = vadd.xlane.f32.xlu0 %v1096_v53 }
 0x110   : > { %v1102_v13 = vsel %vm1089_vm1, %v1085_v57, 0.0  ;;  %v17145_v57 = vld [vmem:[#allocation6_spill] sm:$0xff] }
 0x111   : > { %v12710_v1 = vpop.eup %12709  ;;  %1103 = vadd.xlane.f32.xlu1 %v1102_v13 }
 0x112   : > { %v1086_v62 = vmul.f32 %v12710_v1, %v14079_v61 }
 0x113   : > { %1100 = vadd.xlane.f32.xlu0 %v1099_v54 }
 0x114   : > { %v1105_v45 = vsel %vm1089_vm1, %v1086_v62, 0.0 }
 0x115   : > { %v12712_v5 = vpop.eup %12711 }
 0x116   : > { %v12714_v7 = vpop.eup %12713  ;;  %v1088_v32 = vmul.f32 %v12712_v5, %v14079_v61 }
 0x117   : > { %1106 = vadd.xlane.f32.xlu0 %v1105_v45  ;;  %v1087_v48 = vmul.f32 %v12714_v7, %v14079_v61 }
 0x118   : > { %v1111_v55 = vsel %vm1089_vm1, %v1088_v32, 0.0 }
 0x119   : > { %v1108_v6 = vsel %vm1089_vm1, %v1087_v48, 0.0 }
 0x11a   : > { %1109 = vadd.xlane.f32.xlu1 %v1108_v6 }
 0x11b   : > { %1112 = vadd.xlane.f32.xlu0 %v1111_v55 }
 0x12b   : > { %1274 = vbcast.lane.b32.xlu1 %v17138_v59, 256 }
 0x12f   : > { %1281 = vbcast.lane.b32.xlu1 %v17139_v49, 256 }
 0x131   : > { %1267 = vbcast.lane.b32.xlu0 %v17140_v31, 256 }
 0x133   : > { %1295 = vbcast.lane.b32.xlu1 %v17141_v44, 256 }
 0x135   : > { %1288 = vbcast.lane.b32.xlu0 %v17142_v22, 256 }
 0x139   : > { %1302 = vbcast.lane.b32.xlu0 %v17143_v60, 256 }
 0x13d   : > { %1316 = vbcast.lane.b32.xlu0 %v17144_v10, 256 }
 0x198   : > { %v1092_v24 = vpop.xlane.xlu0 %1091 }
 0x199   : > { %v1119_v16 = vadd.f32 %v14115_v51, %v1092_v24 }
 0x19a   : > { %v1095_v18 = vpop.xlane.xlu1 %1094 }
 0x19b   : > { %v1120_v63 = vadd.f32 %v14115_v51, %v1095_v18  ;;  %v1127_v14 = vmul.f32 1.442695, %v1119_v16  ;;  %v17146_v18 = vld [vmem:[#allocation30_spill] sm:$0xff] }
 0x19c   : > { %v1098_v17 = vpop.xlane.xlu0 %1097 }
 0x19d   : > { %v1129_v21 = vmul.f32 1.442695, %v1120_v63  ;;  %v1121_v56 = vadd.f32 %v14115_v51, %v1098_v17  ;;  %v13366_v63 = vmov 0  }
 0x19e   : > { %v1104_v38 = vpop.xlane.xlu1 %1103  ;;  %12698 = vset.pattern.permute.xlu0 %v13366_v63  ;;  %12697 = vset.pattern.permute.xlu1 %v13366_v63  ;;  %v17152_v63 = vmov 0.0  }
 0x19f   : > { %12715 = vpow2.f32 %v1129_v21  ;;  %v1131_v41 = vmul.f32 1.442695, %v1121_v56  ;;  %v1123_v58 = vadd.f32 %v14115_v51, %v1104_v38 }
 0x1a0   : > { %v1101_v34 = vpop.xlane.xlu0 %1100  ;;  %12717 = vpow2.f32 %v1127_v14 }
 0x1a1   : > { %v1122_v27 = vadd.f32 %v14115_v51, %v1101_v34  ;;  %12719 = vpow2.f32 %v1131_v41  ;;  %v1135_v33 = vmul.f32 1.442695, %v1123_v58  ;;  %v17147_v34 = vld [vmem:[#allocation5_spill] sm:$0xff] }
 0x1a3   : > { %v1133_v39 = vmul.f32 1.442695, %v1122_v27 }
 0x1a4   : > { %v1107_v47 = vpop.xlane.xlu0 %1106 }
 0x1a5   : > { %12721 = vpow2.f32 %v1133_v39  ;;  %v1124_v25 = vadd.f32 %v14115_v51, %v1107_v47  ;;  %v17148_v39 = vld [vmem:[#allocation36_spill] sm:$0xff] }
 0x1a6   : > { %12723 = vpow2.f32 %v1135_v33  ;;  %v17149_v47 = vld [vmem:[#allocation16_spill] sm:$0xff] }
 0x1a7   : > { %v1137_v4 = vmul.f32 1.442695, %v1124_v25  ;;  %v1110_v9 = vpop.xlane.xlu1 %1109 }
 0x1a8   : > { %v1125_v52 = vadd.f32 %v14115_v51, %v1110_v9  ;;  %v1113_v26 = vpop.xlane.xlu0 %1112 }
 0x1a9   : > { %v12716_v11 = vpop.eup %12715  ;;  %12725 = vpow2.f32 %v1137_v4  ;;  %v1126_v28 = vadd.f32 %v14115_v51, %v1113_v26  ;;  %v17150_v26 = vld [vmem:[#allocation25_spill] sm:$0xff] }
 0x1aa   : > { %v1139_v30 = vmul.f32 1.442695, %v1125_v52  ;;  %v12718_v37 = vpop.eup %12717  ;;  %v1160_v8 = vrot.slane %v12716_v11, %v17145_v57 }
 0x1ab   : > { %v1141_v19 = vmul.f32 1.442695, %v1126_v28  ;;  %v12720_v53 = vpop.eup %12719  ;;  %v1156_v13 = vrot.slane %v12718_v37, %v17145_v57  ;;  %v1275_v17 = vpop.permute.xlu1 %1274 }
 0x1ac   : > { %12727 = vpow2.f32 %v1139_v30  ;;  %v1164_v54 = vrot.slane %v12720_v53, %v17145_v57  ;;  %v1268_v41 = vpop.permute.xlu0 %1267 }
 0x1ad   : > { %12729 = vpow2.f32 %v1141_v19  ;;  %v1186_v45 = vsel %vm1185_vm2, %v1160_v8, %v1156_v13 }
 0x1ae   : > { %v1188_v32 = vsel %vm1187_vm3, %v1164_v54, %v1186_v45 }
 0x1af   : > { %v12722_v1 = vpop.eup %12721  ;;  %v1282_v14 = vpop.permute.xlu1 %1281 }
 0x1b0   : > { %v1168_v62 = vrot.slane %v12722_v1, %v17145_v57  ;;  %v12724_v5 = vpop.eup %12723  ;;  %v1289_v19 = vpop.permute.xlu0 %1288 }
 0x1b1   : > { %v1172_v6 = vrot.slane %v12724_v5, %v17145_v57 }
 0x1b2   : > { %v1190_v55 = vsel %vm1189_vm4, %v1168_v62, %v1188_v32 }
 0x1b3   : > { %v12726_v7 = vpop.eup %12725  ;;  %v1192_v44 = vsel %vm1191_vm5, %v1172_v6, %v1190_v55  ;;  %v1296_v21 = vpop.permute.xlu1 %1295 }
 0x1b4   : > { %v1176_v48 = vrot.slane %v12726_v7, %v17145_v57 }
 0x1b6   : > { %v12728_v59 = vpop.eup %12727  ;;  %v1194_v60 = vsel %vm1193_vm6, %v1176_v48, %v1192_v44 }
 0x1b7   : > { %v12730_v49 = vpop.eup %12729  ;;  %v1180_v31 = vrot.slane %v12728_v59, %v17145_v57 }
 0x1b8   : > { %v1184_v22 = vrot.slane %v12730_v49, %v17145_v57 }
 0x1b9   : > { %v1196_v10 = vsel %vm1195_vm7, %v1180_v31, %v1194_v60 }
 0x1ba   : > { %v1198_v24 = vsel %vm1197_vm8, %v1184_v22, %v1196_v10 }
 0x1bb   : > { %v1201_v16 = vsel %vm1200_vm9, %v1198_v24, 0.0  ;;  %v17151_v24 = vmov 0.0|0.0  }
 0x1bc   : > { %1202 = vadd.xlane.f32.xlu1 %v1201_v16  ;;  %v284_v16 = vld [vmem:[%s16899_s3 + $0x18] sm:$0xff] }
 0x1cd   : > { %1309 = vbcast.lane.b32.xlu1 %v17146_v18, 256 }
 0x249   : > { %v1203_v56 = vpop.xlane.xlu1 %1202 }
 0x24a   : > { %12731 = vrcp.f32 %v1203_v56 }
 0x24d   : > { %v1310_v6 = vpop.permute.xlu1 %1309 }
 0x254   : > { %v12732_v38 = vpop.eup %12731 }
 0x255   : > { %v1209_v58 = vrot.slane %v12732_v38, %v17136_v29  ;;  %v1213_v27 = vrot.slane %v12732_v38, %v17147_v34  ;;  %v1225_v33 = vrot.slane %v12732_v38, %v17148_v39  ;;  %v1217_v25 = vrot.slane %v12732_v38, %v17149_v47 }
 0x256   : > { %v1221_v28 = vrot.slane %v12732_v38, %v17150_v26  ;;  %v1233_v8 = vrot.slane %v12732_v38, %v17137_v3  ;;  %v1229_v45 = vrot.slane %v12732_v38, %v13683_v0 }
 0x257   : > { %v1246_v4 = vmul.f32 %v12718_v37, %v1209_v58  ;;  %v1247_v9 = vmul.f32 %v12716_v11, %v1213_v27  ;;  %v1248_v30 = vmul.f32 %v12720_v53, %v1217_v25  ;;  %v1250_v54 = vmul.f32 %v12724_v5, %v1225_v33  ;;  %v1303_v11 = vpop.permute.xlu0 %1302 }
 0x258   : > { %v1249_v62 = vmul.f32 %v12722_v1, %v1221_v28  ;;  %v1252_v48 = vmul.f32 %v12728_v59, %v1233_v8  ;;  %v1251_v31 = vmul.f32 %v12726_v7, %v1229_v45  ;;  %v1237_v53 = vrot.slane %v12732_v38, %v13769_v15  ;;  %v281_v1 = vld [vmem:[%s16899_s3] sm:$0xff]  ;;  %v282_v59 = vld [vmem:[%s16899_s3 + $0x8] sm:$0xff] }
 0x259   : > { %v1326_v52 = vmul.f32 %v1268_v41, %v1246_v4  ;;  %v1327_v13 = vmul.f32 %v1275_v17, %v1247_v9  ;;  %v1328_v32 = vmul.f32 %v1282_v14, %v1248_v30  ;;  %v1330_v55 = vmul.f32 %v1296_v21, %v1250_v54  ;;  %v14176_v17 = vld [vmem:[%s16899_s3 + $0x20] sm:$0xf] }
 0x25a   : > { %v1329_v37 = vmul.f32 %v1289_v19, %v1249_v62  ;;  %v1332_v44 = vmul.f32 %v1310_v6, %v1252_v48  ;;  %v1331_v5 = vmul.f32 %v1303_v11, %v1251_v31  ;;  %v1253_v22 = vmul.f32 %v12730_v49, %v1237_v53  ;;  %v283_v49 = vld [vmem:[%s16899_s3 + $0x10] sm:$0xff]  ;;  %v17153_v11 = vld [vmem:[#allocation2_spill] sm:$0xff]  ;;  %v17155_v31 = vld [vmem:[#allocation7_spill] sm:$0xff] }
 0x25b   : > { %1343 = vperm.xlu1 %12697, %v1326_v52   ;;  %1346 = vperm.xlu0 %12698, %v1327_v13   ;;  %v1317_v60 = vpop.permute.xlu0 %1316  ;;  %v14156_v10 = vpack.c.bf16 %v282_v59, %v281_v1  ;;  %v14168_v18 = vpack.c.bf16 %v284_v16, %v283_v49  ;;  %v17156_v53 = vld [vmem:[#allocation12_spill] sm:$0xff] }
 0x25c   : > { %v1333_v7 = vmul.f32 %v1317_v60, %v1253_v22 }
 0x25d   : > { %12390 = vmatpush3.bf16.msra.mxu1 %v14156_v10  ;;  %12408 = vmatpush3.bf16.msra.mxu0 %v14156_v10 }
 0x25e   : > { %12391 = vmatprep.subr.bf16.mxu1 %v17151_v24  ;;  %12409 = vmatprep.subr.bf16.mxu0 %v17151_v24 }
 0x25f   : > { %1349 = vperm.xlu1 %12697, %v1328_v32   ;;  %1355 = vperm.xlu0 %12698, %v1330_v55  }
 0x261   : > { %12393 = vmatpush3.bf16.msra.mxu1 %v14168_v18  ;;  %12411 = vmatpush3.bf16.msra.mxu0 %v14168_v18 }
 0x262   : > { %11871 = vmatprep.subr.mxu1 %v17152_v63  ;;  %11903 = vmatprep.subr.mxu0 %v17152_v63 }
 0x263   : > { %1352 = vperm.xlu1 %12697, %v1329_v37   ;;  %1361 = vperm.xlu0 %12698, %v1332_v44   ;;  %v17154_v37 = vld [vmem:[#allocation3_spill] sm:$0xff]  ;;  %v14214_v44 = vrot.slane %v13946_v2, %v17136_v29 }
 0x265   : > { %11872 = vmatpush3.msk.msra.mxu1 %vm1415_vm10, %v14176_v17  ;;  %11904 = vmatpush3.msk.msra.mxu0 %vm1415_vm10, %v14176_v17 }
 0x266   : > { %12394 = vmatprep.subr.bf16.mxu1 %v17151_v24  ;;  %12412 = vmatprep.subr.bf16.mxu0 %v17151_v24 }
 0x267   : > { %1358 = vperm.xlu1 %12697, %v1331_v5  }
 0x26b   : > { %1364 = vperm.xlu1 %12697, %v1333_v7  }
 0x2da   : > { %v1344_v14 = vpop.permute.xlu1 %1343  ;;  %v1347_v21 = vpop.permute.xlu0 %1346 }
 0x2db   : > { %v1369_v38 = vrot.slane %v1344_v14, %v17145_v57  ;;  %v1373_v41 = vrot.slane %v1347_v21, %v17145_v57 }
 0x2dd   : > { %v1398_v25 = vsel %vm1185_vm2, %v1373_v41, %v1369_v38 }
 0x2de   : > { %v1350_v56 = vpop.permute.xlu1 %1349  ;;  %v1356_v27 = vpop.permute.xlu0 %1355 }
 0x2df   : > { %v1377_v58 = vrot.slane %v1350_v56, %v17145_v57  ;;  %v1385_v28 = vrot.slane %v1356_v27, %v17145_v57 }
 0x2e1   : > { %v1399_v9 = vsel %vm1187_vm3, %v1377_v58, %v1398_v25 }
 0x2e2   : > { %v1353_v33 = vpop.permute.xlu1 %1352  ;;  %v1362_v19 = vpop.permute.xlu0 %1361 }
 0x2e3   : > { %v1381_v4 = vrot.slane %v1353_v33, %v17145_v57  ;;  %v1393_v62 = vrot.slane %v1362_v19, %v17145_v57 }
 0x2e5   : > { %v1400_v52 = vsel %vm1189_vm4, %v1381_v4, %v1399_v9 }
 0x2e6   : > { %v1359_v30 = vpop.permute.xlu1 %1358  ;;  %v1401_v13 = vsel %vm1191_vm5, %v1385_v28, %v1400_v52 }
 0x2e7   : > { %v1389_v8 = vrot.slane %v1359_v30, %v17145_v57 }
 0x2e9   : > { %v1402_v54 = vsel %vm1193_vm6, %v1389_v8, %v1401_v13 }
 0x2ea   : > { %v1365_v45 = vpop.permute.xlu1 %1364  ;;  %v1403_v48 = vsel %vm1195_vm7, %v1393_v62, %v1402_v54 }
 0x2eb   : > { %v1397_v32 = vrot.slane %v1365_v45, %v17145_v57 }
 0x2ed   : > { %v1404_v55 = vsel %vm1197_vm8, %v1397_v32, %v1403_v48 }
 0x2ee   : > { %v1406_v6 = vsel %vm1200_vm9, %v1404_v55, 0.0 }
 0x2ef   : > { %11874 = vmatmul.mubr.msk.f32.vlgmr.msra.gmra.mrb[0].mxu1 %vm1411_vm11, %v1406_v6 }
 0x2f0   : > { %12396 = vmatpush3.bf16.msra.mxu1 %v17153_v11  ;;  %11892 = vmatprep.mubr.msk.f32.mxu1 %vm13363_vm0, %v17152_v63 }
 0x2f1   : > { %12397 = vmatprep.subr.bf16.mxu1 %v17151_v24 }
 0x2f4   : > { %12399 = vmatpush3.bf16.msra.mxu1 %v17154_v37 }
 0x2f5   : > { %12400 = vmatprep.subr.bf16.mxu1 %v17151_v24 }
 0x2f8   : > { %12402 = vmatpush3.bf16.msra.mxu1 %v17155_v31 }
 0x2f9   : > { %12403 = vmatprep.subr.bf16.mxu1 %v17151_v24 }
 0x2fc   : > { %12405 = vmatpush3.bf16.msra.mxu1 %v17156_v53 }
 0x2fd   : > { %12424 = vmatprep.subr.bf16.mxu1 %v17151_v24 }
 0x3c2   : > { %v1485_v5 = vpop.f32.mrb[0].mxu1 }
 0x3c3   : > { %v1486_v22 = vadd.f32 %v1485_v5, %v14214_v44  ;;  %v11875_v1 = vpop.f32.mrb[1].mxu1 }
 0x3c5   : > { %v11506_v59 = vmul.f32 -1.442695, %v1486_v22 }
 0x3c7   : > { %12733 = vpow2.f32 %v11506_v59 }
 0x3d1   : > { %v12734_v60 = vpop.eup %12733 }
 0x3d2   : > { %v1492_v7 = vadd.f32 1.0, %v12734_v60 }
 0x3d4   : > { %12735 = vrcp.f32 %v1492_v7 }
 0x3de   : > { %v12736_v49 = vpop.eup %12735 }
 0x3df   : > { %v1495_v16 = vmul.f32 2.0, %v12736_v49  ;;  %v1497_v2 = vmul.f32 0.0, %v12736_v49 }
 0x3e1   : > { %v11507_v14 = vadd.f32 -1.0, %v1495_v16 }
 0x3e3   : > { %1499 = vrot.lane.b32.xlu0 %v11507_v14, %s13367_s16 }
 0x455   : > { %v1500_v21 = vpop.permute.xlu0 %1499 }
 0x456   : > { %v1502_v56 = vmul.f32 %v12736_v49, %v1500_v21 }
 0x458   : > { %1504 = vrot.lane.b32.xlu1 %v1502_v56, %s13368_s17 }
 0x4ca   : > { %v1505_v38 = vpop.permute.xlu1 %1504 }
 0x4cb   : > { %v14219_v41 = vadd.f32 %v1505_v38, %v1497_v2 }
 0x4cd   : > { %12737 = vtanh.f32 %v14219_v41 }
 0x4d7   : > { %v12738_v58 = vpop.eup %12737 }
 0x4d8   : > { %1510 = vrot.lane.b32.xlu0 %v12738_v58, %s13367_s16 }
 0x54a   : > { %v1511_v27 = vpop.permute.xlu0 %1510 }
 0x54b   : > { %v14223_v33 = vmul.f32 %v12736_v49, %v1511_v27 }
 0x54d   : > { %17157 = vst [vmem:[#allocation81_spill] sm:$0xff] %v14223_v33  ;;  %1572 = vrot.lane.b32.xlu1 %v14223_v33, %s13368_s17 }
 0x5bf   : > { %v1573_v25 = vpop.permute.xlu1 %1572 }
 0x5c0   : > { %v1576_v4 = vsel %vm1575_vm12, %v1573_v25, %v14219_v41 }
 0x5c1   : > { %11893 = vmatmul.mubr.msk.f32.vlgmr.msra.gmra.mrb[2].mxu1 %vm17005_vm13, %v1576_v4 }
 0x5c2   : > { %12426 = vmatpush3.bf16.msra.mxu1 %v14156_v10  ;;  %11937 = vmatprep.mubr.msk.f32.mxu1 %vm13363_vm0, %v17152_v63 }
 0x5c3   : > { %12427 = vmatprep.subr.bf16.mxu1 %v17151_v24 }
 0x5c6   : > { %12429 = vmatpush3.bf16.msra.mxu1 %v14168_v18 }
 0x5c7   : > { %11935 = vmatprep.subr.mxu1 %v17152_v63 }
 0x5ca   : > { %11936 = vmatpush3.msk.msra.mxu1 %vm1415_vm10, %v14176_v17 }
 0x5cb   : > { %12430 = vmatprep.subr.bf16.mxu1 %v17151_v24 }
 0x694   : > { %v1646_v9 = vpop.f32.mrb[2].mxu1 }
 0x695   : > { %v1647_v52 = vadd.f32 %v1646_v9, %v13962_v35  ;;  %v11894_v28 = vpop.f32.mrb[3].mxu1 }
 0x697   : > { %v1651_v30 = vcombine.high %v1647_v52, %v1647_v52  ;;  %v1658_v19 = vrot.slane %v1647_v52, %v17134_v12 }
 0x699   : > { %v1665_v8 = vrot.slane %v1651_v30, %v17134_v12  ;;  %v1666_v13 = vcombine.high %v1658_v19, %v1658_v19  ;;  %v1674_v54 = vrot.slane %v1658_v19, %v17134_v12 }
 0x69b   : > { %v1667_v62 = vcombine.high %v1665_v8, %v1665_v8  ;;  %v1681_v45 = vrot.slane %v1665_v8, %v17134_v12  ;;  %v1688_v32 = vrot.slane %v1666_v13, %v17134_v12  ;;  %v1696_v48 = vcombine.high %v1674_v54, %v1674_v54 }
 0x69c   : > { %v1703_v55 = vrot.slane %v1674_v54, %v17136_v29 }
 0x69d   : > { %v1695_v6 = vrot.slane %v1667_v62, %v17134_v12  ;;  %v1697_v5 = vcombine.high %v1681_v45, %v1681_v45  ;;  %v1698_v22 = vcombine.high %v1688_v32, %v1688_v32  ;;  %v1707_v1 = vrot.slane %v1688_v32, %v17136_v29 }
 0x69e   : > { %v1711_v59 = vrot.slane %v1696_v48, %v17136_v29  ;;  %v1719_v60 = vrot.slane %v1681_v45, %v17136_v29  ;;  %v1740_v7 = vadd.f32 %v1703_v55, %v14040_v40 }
 0x69f   : > { %v1699_v49 = vcombine.high %v1695_v6, %v1695_v6  ;;  %v1715_v16 = vrot.slane %v1698_v22, %v17136_v29  ;;  %v1727_v14 = vrot.slane %v1697_v5, %v17136_v29  ;;  %v1723_v21 = vrot.slane %v1695_v6, %v17136_v29 }
 0x6a0   : > { %v1741_v56 = vadd.f32 %v1707_v1, %v14044_v20  ;;  %v1742_v2 = vadd.f32 %v1711_v59, %v14055_v36  ;;  %12739 = vtanh.f32 %v1740_v7  ;;  %v1744_v58 = vadd.f32 %v1719_v60, %v14065_v42 }
 0x6a1   : > { %v1743_v38 = vadd.f32 %v1715_v16, %v14050_v43  ;;  %v1746_v27 = vadd.f32 %v1727_v14, %v14088_v46  ;;  %v1731_v25 = vrot.slane %v1699_v49, %v17136_v29  ;;  %v1745_v4 = vadd.f32 %v1723_v21, %v14075_v23 }
 0x6a2   : > { %12741 = vtanh.f32 %v1741_v56 }
 0x6a3   : > { %12743 = vtanh.f32 %v1742_v2  ;;  %v1747_v9 = vadd.f32 %v1731_v25, %v14085_v50  ;;  %v17158_v2 = vld [vmem:[#allocation10_spill] sm:$0xff]  ;;  %v17162_v25 = vld [vmem:[#allocation15_spill] sm:$0xff] }
 0x6a4   : > { %12745 = vtanh.f32 %v1743_v38  ;;  %v17159_v38 = vld [vmem:[#allocation13_spill] sm:$0xff] }
 0x6a5   : > { %12747 = vtanh.f32 %v1744_v58  ;;  %v17160_v58 = vld [vmem:[#allocation20_spill] sm:$0xff] }
 0x6a6   : > { %12749 = vtanh.f32 %v1746_v27  ;;  %v17161_v27 = vld [vmem:[#allocation8_spill] sm:$0xff] }
 0x6a7   : > { %12751 = vtanh.f32 %v1745_v4  ;;  %v17163_v4 = vld [vmem:[#allocation26_spill] sm:$0xff] }
 0x6a8   : > { %12753 = vtanh.f32 %v1747_v9  ;;  %v17164_v9 = vld [vmem:[#allocation33_spill] sm:$0xff] }
 0x6aa   : > { %v12740_v52 = vpop.eup %12739 }
 0x6ab   : > { %v1756_v28 = vmul.f32 %v12740_v52, %v14079_v61 }
 0x6ac   : > { %v12742_v30 = vpop.eup %12741 }
 0x6ad   : > { %v12744_v19 = vpop.eup %12743  ;;  %v1764_v8 = vsel %vm1089_vm1, %v1756_v28, 0.0  ;;  %v1757_v13 = vmul.f32 %v12742_v30, %v14079_v61 }
 0x6ae   : > { %v12746_v54 = vpop.eup %12745  ;;  %1765 = vadd.xlane.f32.xlu0 %v1764_v8  ;;  %v1758_v62 = vmul.f32 %v12744_v19, %v14079_v61 }
 0x6af   : > { %v12748_v45 = vpop.eup %12747  ;;  %v1767_v32 = vsel %vm1089_vm1, %v1757_v13, 0.0  ;;  %v1759_v5 = vmul.f32 %v12746_v54, %v14079_v61 }
 0x6b0   : > { %1768 = vadd.xlane.f32.xlu1 %v1767_v32  ;;  %v1760_v48 = vmul.f32 %v12748_v45, %v14079_v61  ;;  %v12750_v55 = vpop.eup %12749  ;;  %v1770_v6 = vsel %vm1089_vm1, %v1758_v62, 0.0 }
 0x6b1   : > { %v12752_v22 = vpop.eup %12751  ;;  %v1762_v59 = vmul.f32 %v12750_v55, %v14079_v61  ;;  %v1773_v60 = vsel %vm1089_vm1, %v1759_v5, 0.0 }
 0x6b2   : > { %1771 = vadd.xlane.f32.xlu0 %v1770_v6  ;;  %v1776_v1 = vsel %vm1089_vm1, %v1760_v48, 0.0  ;;  %v1761_v7 = vmul.f32 %v12752_v22, %v14079_v61  ;;  %v12754_v49 = vpop.eup %12753 }
 0x6b3   : > { %v1782_v16 = vsel %vm1089_vm1, %v1762_v59, 0.0  ;;  %v1763_v21 = vmul.f32 %v12754_v49, %v14079_v61 }
 0x6b4   : > { %1777 = vadd.xlane.f32.xlu1 %v1776_v1  ;;  %v1779_v14 = vsel %vm1089_vm1, %v1761_v7, 0.0 }
 0x6b5   : > { %v1785_v56 = vsel %vm1089_vm1, %v1763_v21, 0.0 }
 0x6b6   : > { %1774 = vadd.xlane.f32.xlu0 %v1773_v60 }
 0x6b8   : > { %1783 = vadd.xlane.f32.xlu1 %v1782_v16 }
 0x6ba   : > { %1780 = vadd.xlane.f32.xlu0 %v1779_v14 }
 0x6be   : > { %1786 = vadd.xlane.f32.xlu0 %v1785_v56 }
 0x6c9   : > { %1925 = vbcast.lane.b32.xlu1 %v17158_v2, 256 }
 0x6cd   : > { %1932 = vbcast.lane.b32.xlu1 %v17159_v38, 256 }
 0x6d1   : > { %1946 = vbcast.lane.b32.xlu1 %v17160_v58, 256 }
 0x6d4   : > { %1918 = vbcast.lane.b32.xlu0 %v17161_v27, 256 }
 0x6d8   : > { %1939 = vbcast.lane.b32.xlu0 %v17162_v25, 256 }
 0x6dc   : > { %1953 = vbcast.lane.b32.xlu0 %v17163_v4, 256 }
 0x6e0   : > { %1967 = vbcast.lane.b32.xlu0 %v17164_v9, 256 }
 0x73b   : > { %v1766_v52 = vpop.xlane.xlu0 %1765 }
 0x73c   : > { %v1788_v28 = vadd.f32 %v1766_v52, %v14115_v51 }
 0x73d   : > { %v1769_v30 = vpop.xlane.xlu1 %1768 }
 0x73e   : > { %v1796_v19 = vmul.f32 1.442695, %v1788_v28  ;;  %v1789_v8 = vadd.f32 %v1769_v30, %v14115_v51 }
 0x73f   : > { %v1772_v13 = vpop.xlane.xlu0 %1771 }
 0x740   : > { %v1798_v54 = vmul.f32 1.442695, %v1789_v8  ;;  %v1790_v62 = vadd.f32 %v1772_v13, %v14115_v51  ;;  %12755 = vpow2.f32 %v1796_v19 }
 0x741   : > { %v1778_v45 = vpop.xlane.xlu1 %1777 }
 0x742   : > { %12757 = vpow2.f32 %v1798_v54  ;;  %v1800_v32 = vmul.f32 1.442695, %v1790_v62  ;;  %v1792_v48 = vadd.f32 %v1778_v45, %v14115_v51 }
 0x743   : > { %v1775_v55 = vpop.xlane.xlu0 %1774 }
 0x744   : > { %12759 = vpow2.f32 %v1800_v32  ;;  %v1791_v6 = vadd.f32 %v1775_v55, %v14115_v51  ;;  %v1804_v5 = vmul.f32 1.442695, %v1792_v48 }
 0x745   : > { %v1784_v22 = vpop.xlane.xlu1 %1783 }
 0x746   : > { %v1802_v1 = vmul.f32 1.442695, %v1791_v6  ;;  %v1794_v59 = vadd.f32 %v1784_v22, %v14115_v51 }
 0x747   : > { %v1781_v60 = vpop.xlane.xlu0 %1780 }
 0x748   : > { %12761 = vpow2.f32 %v1802_v1  ;;  %v1793_v7 = vadd.f32 %v1781_v60, %v14115_v51  ;;  %v1808_v49 = vmul.f32 1.442695, %v1794_v59  ;;  %v17165_v60 = vld [vmem:[#allocation29_spill] sm:$0xff] }
 0x749   : > { %12763 = vpow2.f32 %v1804_v5 }
 0x74a   : > { %v1806_v16 = vmul.f32 1.442695, %v1793_v7  ;;  %v12756_v14 = vpop.eup %12755  ;;  %v1926_v7 = vpop.permute.xlu1 %1925 }
 0x74b   : > { %v1787_v21 = vpop.xlane.xlu0 %1786  ;;  %v1823_v25 = vrot.slane %v12756_v14, %v17145_v57 }
 0x74c   : > { %v12758_v56 = vpop.eup %12757  ;;  %12765 = vpow2.f32 %v1806_v16  ;;  %v1795_v2 = vadd.f32 %v1787_v21, %v14115_v51 }
 0x74d   : > { %v1827_v38 = vrot.slane %v12758_v56, %v17145_v57  ;;  %12767 = vpow2.f32 %v1808_v49 }
 0x74e   : > { %v12760_v58 = vpop.eup %12759  ;;  %v1810_v27 = vmul.f32 1.442695, %v1795_v2  ;;  %v1933_v49 = vpop.permute.xlu1 %1932 }
 0x74f   : > { %v1831_v4 = vrot.slane %v12760_v58, %v17145_v57  ;;  %v1852_v9 = vsel %vm1185_vm2, %v1827_v38, %v1823_v25  ;;  %v1919_v2 = vpop.permute.xlu0 %1918 }
 0x750   : > { %12769 = vpow2.f32 %v1810_v27 }
 0x751   : > { %v1853_v19 = vsel %vm1187_vm3, %v1831_v4, %v1852_v9 }
 0x752   : > { %v12762_v52 = vpop.eup %12761  ;;  %v1947_v16 = vpop.permute.xlu1 %1946 }
 0x753   : > { %v12764_v28 = vpop.eup %12763  ;;  %v1835_v30 = vrot.slane %v12762_v52, %v17145_v57 }
 0x754   : > { %v1839_v54 = vrot.slane %v12764_v28, %v17145_v57 }
 0x755   : > { %v1854_v8 = vsel %vm1189_vm4, %v1835_v30, %v1853_v19  ;;  %v1940_v19 = vpop.permute.xlu0 %1939 }
 0x756   : > { %v12766_v13 = vpop.eup %12765  ;;  %v1855_v32 = vsel %vm1191_vm5, %v1839_v54, %v1854_v8 }
 0x757   : > { %v12768_v62 = vpop.eup %12767  ;;  %v1843_v45 = vrot.slane %v12766_v13, %v17145_v57 }
 0x758   : > { %v1847_v6 = vrot.slane %v12768_v62, %v17145_v57 }
 0x759   : > { %v1856_v48 = vsel %vm1193_vm6, %v1843_v45, %v1855_v32 }
 0x75a   : > { %v12770_v55 = vpop.eup %12769  ;;  %v1857_v22 = vsel %vm1195_vm7, %v1847_v6, %v1856_v48 }
 0x75b   : > { %v1851_v5 = vrot.slane %v12770_v55, %v17145_v57 }
 0x75d   : > { %v1858_v1 = vsel %vm1197_vm8, %v1851_v5, %v1857_v22  ;;  %v1954_v22 = vpop.permute.xlu0 %1953 }
 0x75e   : > { %v1860_v59 = vsel %vm1200_vm9, %v1858_v1, 0.0 }
 0x75f   : > { %1861 = vadd.xlane.f32.xlu1 %v1860_v59 }
 0x770   : > { %1960 = vbcast.lane.b32.xlu1 %v17165_v60, 256 }
 0x7ec   : > { %v1862_v21 = vpop.xlane.xlu1 %1861 }
 0x7ed   : > { %12771 = vrcp.f32 %v1862_v21 }
 0x7f7   : > { %v12772_v38 = vpop.eup %12771 }
 0x7f8   : > { %v1868_v27 = vrot.slane %v12772_v38, %v17136_v29  ;;  %v1880_v25 = vrot.slane %v12772_v38, %v17150_v26  ;;  %v1872_v4 = vrot.slane %v12772_v38, %v17147_v34  ;;  %v1876_v9 = vrot.slane %v12772_v38, %v17149_v47 }
 0x7f9   : > { %v1884_v32 = vrot.slane %v12772_v38, %v17148_v39  ;;  %v1888_v6 = vrot.slane %v12772_v38, %v13683_v0  ;;  %v1892_v1 = vrot.slane %v12772_v38, %v17137_v3 }
 0x7fa   : > { %v1905_v30 = vmul.f32 %v12756_v14, %v1868_v27  ;;  %v1906_v8 = vmul.f32 %v12758_v56, %v1872_v4  ;;  %v1907_v45 = vmul.f32 %v12760_v58, %v1876_v9  ;;  %v1908_v48 = vmul.f32 %v12762_v52, %v1880_v25  ;;  %v1961_v52 = vpop.permute.xlu1 %1960  ;;  %v1968_v25 = vpop.permute.xlu0 %1967 }
 0x7fb   : > { %v1909_v60 = vmul.f32 %v12764_v28, %v1884_v32  ;;  %v1910_v47 = vmul.f32 %v12766_v13, %v1888_v6  ;;  %v1896_v14 = vrot.slane %v12772_v38, %v13769_v15  ;;  %v1911_v56 = vmul.f32 %v12768_v62, %v1892_v1 }
 0x7fc   : > { %v1977_v54 = vmul.f32 %v1919_v2, %v1905_v30  ;;  %v1978_v5 = vmul.f32 %v1926_v7, %v1906_v8  ;;  %v1979_v59 = vmul.f32 %v1933_v49, %v1907_v45  ;;  %v1980_v21 = vmul.f32 %v1940_v19, %v1908_v48 }
 0x7fd   : > { %v1981_v58 = vmul.f32 %v1947_v16, %v1909_v60  ;;  %v1982_v2 = vmul.f32 %v1954_v22, %v1910_v47  ;;  %v1912_v27 = vmul.f32 %v12770_v55, %v1896_v14  ;;  %v1983_v7 = vmul.f32 %v1961_v52, %v1911_v56 }
 0x7fe   : > { %1994 = vperm.xlu1 %12697, %v1977_v54   ;;  %1997 = vperm.xlu0 %12698, %v1978_v5  }
 0x7ff   : > { %v1984_v4 = vmul.f32 %v1968_v25, %v1912_v27 }
 0x802   : > { %2000 = vperm.xlu1 %12697, %v1979_v59   ;;  %2003 = vperm.xlu0 %12698, %v1980_v21  }
 0x806   : > { %2006 = vperm.xlu1 %12697, %v1981_v58   ;;  %2009 = vperm.xlu0 %12698, %v1982_v2  }
 0x80a   : > { %2012 = vperm.xlu1 %12697, %v1983_v7   ;;  %2015 = vperm.xlu0 %12698, %v1984_v4  }
 0x80e   : > { %2057 = vrot.lane.b32.xlu1 %v14223_v33, %s13369_s18 }
 0x87d   : > { %v1995_v28 = vpop.permute.xlu1 %1994  ;;  %v1998_v13 = vpop.permute.xlu0 %1997 }
 0x87e   : > { %v2020_v49 = vrot.slane %v1995_v28, %v17145_v57  ;;  %v2024_v62 = vrot.slane %v1998_v13, %v17145_v57 }
 0x880   : > { %v2049_v38 = vsel %vm1185_vm2, %v2024_v62, %v2020_v49 }
 0x881   : > { %v2001_v47 = vpop.permute.xlu1 %2000  ;;  %v2004_v16 = vpop.permute.xlu0 %2003 }
 0x882   : > { %v2028_v55 = vrot.slane %v2001_v47, %v17145_v57  ;;  %v2032_v9 = vrot.slane %v2004_v16, %v17145_v57 }
 0x884   : > { %v2050_v30 = vsel %vm1187_vm3, %v2028_v55, %v2049_v38 }
 0x885   : > { %v2007_v19 = vpop.permute.xlu1 %2006  ;;  %v2010_v54 = vpop.permute.xlu0 %2009  ;;  %v2051_v45 = vsel %vm1189_vm4, %v2032_v9, %v2050_v30 }
 0x886   : > { %v2036_v8 = vrot.slane %v2007_v19, %v17145_v57  ;;  %v2040_v32 = vrot.slane %v2010_v54, %v17145_v57 }
 0x888   : > { %v2052_v48 = vsel %vm1191_vm5, %v2036_v8, %v2051_v45 }
 0x889   : > { %v2013_v6 = vpop.permute.xlu1 %2012  ;;  %v2016_v22 = vpop.permute.xlu0 %2015  ;;  %v2053_v1 = vsel %vm1193_vm6, %v2040_v32, %v2052_v48 }
 0x88a   : > { %v2044_v5 = vrot.slane %v2013_v6, %v17145_v57  ;;  %v2048_v59 = vrot.slane %v2016_v22, %v17145_v57 }
 0x88c   : > { %v2054_v60 = vsel %vm1195_vm7, %v2044_v5, %v2053_v1 }
 0x88d   : > { %v2058_v21 = vpop.permute.xlu1 %2057  ;;  %v2055_v14 = vsel %vm1197_vm8, %v2048_v59, %v2054_v60 }
 0x88e   : > { %v2060_v56 = vsel %vm1200_vm9, %v2055_v14, %v2058_v21 }
 0x88f   : > { %11906 = vmatmul.mubr.msk.f32.vlgmr.msra.gmra.mrb[2].mxu0 %vm1411_vm11, %v2060_v56 }
 0x890   : > { %12414 = vmatpush3.bf16.msra.mxu0 %v17153_v11  ;;  %11924 = vmatprep.mubr.msk.f32.mxu0 %vm13363_vm0, %v17152_v63 }
 0x891   : > { %12415 = vmatprep.subr.bf16.mxu0 %v17151_v24 }
 0x894   : > { %12417 = vmatpush3.bf16.msra.mxu0 %v17154_v37 }
 0x895   : > { %12418 = vmatprep.subr.bf16.mxu0 %v17151_v24 }
 0x898   : > { %12420 = vmatpush3.bf16.msra.mxu0 %v17155_v31 }
 0x899   : > { %12421 = vmatprep.subr.bf16.mxu0 %v17151_v24 }
 0x89c   : > { %12423 = vmatpush3.bf16.msra.mxu0 %v17156_v53 }
 0x89d   : > { %12442 = vmatprep.subr.bf16.mxu0 %v17151_v24 }
 0x962   : > { %v2130_v58 = vpop.f32.mrb[2].mxu0 }
 0x963   : > { %v2131_v2 = vadd.f32 %v2130_v58, %v14214_v44  ;;  %v11907_v52 = vpop.f32.mrb[3].mxu0 }
 0x965   : > { %v11511_v27 = vmul.f32 -1.442695, %v2131_v2 }
 0x967   : > { %12773 = vpow2.f32 %v11511_v27 }
 0x971   : > { %v12774_v25 = vpop.eup %12773 }
 0x972   : > { %v2137_v7 = vadd.f32 1.0, %v12774_v25 }
 0x974   : > { %12775 = vrcp.f32 %v2137_v7 }
 0x97e   : > { %v12776_v4 = vpop.eup %12775 }
 0x97f   : > { %v2140_v28 = vmul.f32 2.0, %v12776_v4  ;;  %v2142_v47 = vmul.f32 %v12776_v4, %v14219_v41 }
 0x981   : > { %v11512_v13 = vadd.f32 -1.0, %v2140_v28 }
 0x983   : > { %2144 = vrot.lane.b32.xlu0 %v11512_v13, %s13367_s16 }
 0x9f5   : > { %v2145_v49 = vpop.permute.xlu0 %2144 }
 0x9f6   : > { %v2147_v62 = vmul.f32 %v12776_v4, %v2145_v49 }
 0x9f8   : > { %2149 = vrot.lane.b32.xlu1 %v2147_v62, %s13368_s17 }
 0xa6a   : > { %v2150_v55 = vpop.permute.xlu1 %2149 }
 0xa6b   : > { %v14351_v16 = vadd.f32 %v2150_v55, %v2142_v47 }
 0xa6d   : > { %12777 = vtanh.f32 %v14351_v16 }
 0xa77   : > { %v12778_v38 = vpop.eup %12777 }
 0xa78   : > { %2155 = vrot.lane.b32.xlu0 %v12778_v38, %s13367_s16 }
 0xaea   : > { %v2156_v9 = vpop.permute.xlu0 %2155 }
 0xaeb   : > { %v14355_v30 = vmul.f32 %v12776_v4, %v2156_v9 }
 0xaed   : > { %17166 = vst [vmem:[#allocation82_spill] sm:$0xff] %v14355_v30  ;;  %2209 = vrot.lane.b32.xlu1 %v14355_v30, %s13368_s17 }
 0xb5f   : > { %v2210_v19 = vpop.permute.xlu1 %2209 }
 0xb60   : > { %v2212_v8 = vsel %vm1575_vm12, %v2210_v19, %v14351_v16 }
 0xb61   : > { %11925 = vmatmul.mubr.msk.f32.vlgmr.msra.gmra.mrb[4].mxu0 %vm17005_vm13, %v2212_v8 }
 0xb62   : > { %12444 = vmatpush3.bf16.msra.mxu0 %v14156_v10  ;;  %11969 = vmatprep.mubr.msk.f32.mxu0 %vm13363_vm0, %v17152_v63 }
 0xb63   : > { %12445 = vmatprep.subr.bf16.mxu0 %v17151_v24 }
 0xb66   : > { %12447 = vmatpush3.bf16.msra.mxu0 %v14168_v18 }
 0xb67   : > { %11967 = vmatprep.subr.mxu0 %v17152_v63 }
 0xb6a   : > { %11968 = vmatpush3.msk.msra.mxu0 %vm1415_vm10, %v14176_v17 }
 0xb6b   : > { %12448 = vmatprep.subr.bf16.mxu0 %v17151_v24 }
 0xc34   : > { %v2282_v41 = vpop.f32.mrb[4].mxu0 }
 0xc35   : > { %v2283_v54 = vadd.f32 %v2282_v41, %v13962_v35  ;;  %v11926_v45 = vpop.f32.mrb[5].mxu0 }
 0xc37   : > { %v2287_v32 = vcombine.high %v2283_v54, %v2283_v54  ;;  %v2294_v48 = vrot.slane %v2283_v54, %v17134_v12 }
 0xc39   : > { %v2301_v6 = vrot.slane %v2287_v32, %v17134_v12  ;;  %v2302_v5 = vcombine.high %v2294_v48, %v2294_v48  ;;  %v2310_v22 = vrot.slane %v2294_v48, %v17134_v12 }
 0xc3b   : > { %v2303_v1 = vcombine.high %v2301_v6, %v2301_v6  ;;  %v2317_v59 = vrot.slane %v2301_v6, %v17134_v12  ;;  %v2324_v60 = vrot.slane %v2302_v5, %v17134_v12  ;;  %v2332_v17 = vcombine.high %v2310_v22, %v2310_v22 }
 0xc3c   : > { %v2339_v21 = vrot.slane %v2310_v22, %v17136_v29 }
 0xc3d   : > { %v2331_v14 = vrot.slane %v2303_v1, %v17134_v12  ;;  %v2333_v56 = vcombine.high %v2317_v59, %v2317_v59  ;;  %v2334_v58 = vcombine.high %v2324_v60, %v2324_v60  ;;  %v2343_v2 = vrot.slane %v2324_v60, %v17136_v29 }
 0xc3e   : > { %v2347_v52 = vrot.slane %v2332_v17, %v17136_v29  ;;  %v2355_v27 = vrot.slane %v2317_v59, %v17136_v29  ;;  %v2376_v25 = vadd.f32 %v2339_v21, %v14040_v40 }
 0xc3f   : > { %v2335_v7 = vcombine.high %v2331_v14, %v2331_v14  ;;  %v2351_v4 = vrot.slane %v2334_v58, %v17136_v29  ;;  %v2363_v28 = vrot.slane %v2333_v56, %v17136_v29  ;;  %v2359_v13 = vrot.slane %v2331_v14, %v17136_v29 }
 0xc40   : > { %v2377_v49 = vadd.f32 %v2343_v2, %v14044_v20  ;;  %v2378_v62 = vadd.f32 %v2347_v52, %v14055_v36  ;;  %12779 = vtanh.f32 %v2376_v25  ;;  %v2380_v55 = vadd.f32 %v2355_v27, %v14065_v42 }
 0xc41   : > { %v2379_v47 = vadd.f32 %v2351_v4, %v14050_v43  ;;  %v2382_v38 = vadd.f32 %v2363_v28, %v14088_v46  ;;  %v2367_v9 = vrot.slane %v2335_v7, %v17136_v29  ;;  %v2381_v19 = vadd.f32 %v2359_v13, %v14075_v23 }
 0xc42   : > { %12781 = vtanh.f32 %v2377_v49  ;;  %v17167_v49 = vld [vmem:[#allocation18_spill] sm:$0xff] }
 0xc43   : > { %12783 = vtanh.f32 %v2378_v62  ;;  %v2383_v8 = vadd.f32 %v2367_v9, %v14085_v50  ;;  %v17168_v62 = vld [vmem:[#allocation23_spill] sm:$0xff]  ;;  %v17172_v9 = vld [vmem:[#allocation37_spill] sm:$0xff] }
 0xc44   : > { %12785 = vtanh.f32 %v2379_v47  ;;  %v17169_v47 = vld [vmem:[#allocation32_spill] sm:$0xff] }
 0xc45   : > { %12787 = vtanh.f32 %v2380_v55  ;;  %v17170_v55 = vld [vmem:[#allocation19_spill] sm:$0xff] }
 0xc46   : > { %12789 = vtanh.f32 %v2382_v38  ;;  %v17171_v38 = vld [vmem:[#allocation24_spill] sm:$0xff] }
 0xc47   : > { %12791 = vtanh.f32 %v2381_v19  ;;  %v17173_v19 = vld [vmem:[#allocation42_spill] sm:$0xff] }
 0xc48   : > { %12793 = vtanh.f32 %v2383_v8 }
 0xc4a   : > { %v12780_v41 = vpop.eup %12779 }
 0xc4b   : > { %v2392_v54 = vmul.f32 %v12780_v41, %v14079_v61 }
 0xc4c   : > { %v12782_v45 = vpop.eup %12781 }
 0xc4d   : > { %v12784_v32 = vpop.eup %12783  ;;  %v2400_v48 = vsel %vm1089_vm1, %v2392_v54, 0.0  ;;  %v2393_v6 = vmul.f32 %v12782_v45, %v14079_v61 }
 0xc4e   : > { %v12786_v5 = vpop.eup %12785  ;;  %2401 = vadd.xlane.f32.xlu0 %v2400_v48  ;;  %v2394_v22 = vmul.f32 %v12784_v32, %v14079_v61 }
 0xc4f   : > { %v12788_v1 = vpop.eup %12787  ;;  %v2403_v59 = vsel %vm1089_vm1, %v2393_v6, 0.0  ;;  %v2395_v14 = vmul.f32 %v12786_v5, %v14079_v61 }
 0xc50   : > { %2404 = vadd.xlane.f32.xlu1 %v2403_v59  ;;  %v2396_v60 = vmul.f32 %v12788_v1, %v14079_v61  ;;  %v12790_v17 = vpop.eup %12789  ;;  %v2406_v21 = vsel %vm1089_vm1, %v2394_v22, 0.0 }
 0xc51   : > { %v12792_v56 = vpop.eup %12791  ;;  %v2398_v2 = vmul.f32 %v12790_v17, %v14079_v61  ;;  %v2409_v52 = vsel %vm1089_vm1, %v2395_v14, 0.0 }
 0xc52   : > { %2407 = vadd.xlane.f32.xlu0 %v2406_v21  ;;  %v2412_v58 = vsel %vm1089_vm1, %v2396_v60, 0.0  ;;  %v2397_v27 = vmul.f32 %v12792_v56, %v14079_v61  ;;  %v12794_v25 = vpop.eup %12793 }
 0xc53   : > { %v2418_v7 = vsel %vm1089_vm1, %v2398_v2, 0.0  ;;  %v2399_v28 = vmul.f32 %v12794_v25, %v14079_v61 }
 0xc54   : > { %2413 = vadd.xlane.f32.xlu1 %v2412_v58  ;;  %v2415_v4 = vsel %vm1089_vm1, %v2397_v27, 0.0 }
 0xc55   : > { %v2421_v13 = vsel %vm1089_vm1, %v2399_v28, 0.0 }
 0xc56   : > { %2410 = vadd.xlane.f32.xlu0 %v2409_v52 }
 0xc58   : > { %2419 = vadd.xlane.f32.xlu1 %v2418_v7 }
 0xc5a   : > { %2416 = vadd.xlane.f32.xlu0 %v2415_v4 }
 0xc5e   : > { %2422 = vadd.xlane.f32.xlu0 %v2421_v13 }
 0xc69   : > { %2561 = vbcast.lane.b32.xlu1 %v17167_v49, 256 }
 0xc6d   : > { %2568 = vbcast.lane.b32.xlu1 %v17168_v62, 256 }
 0xc71   : > { %2582 = vbcast.lane.b32.xlu1 %v17169_v47, 256 }
 0xc74   : > { %2554 = vbcast.lane.b32.xlu0 %v17170_v55, 256 }
 0xc78   : > { %2575 = vbcast.lane.b32.xlu0 %v17171_v38, 256 }
 0xc7c   : > { %2589 = vbcast.lane.b32.xlu0 %v17172_v9, 256 }
 0xc80   : > { %2603 = vbcast.lane.b32.xlu0 %v17173_v19, 256 }
 0xcdb   : > { %v2402_v8 = vpop.xlane.xlu0 %2401 }
 0xcdc   : > { %v2424_v41 = vadd.f32 %v2402_v8, %v14115_v51 }
 0xcdd   : > { %v2405_v54 = vpop.xlane.xlu1 %2404 }
 0xcde   : > { %v2432_v45 = vmul.f32 1.442695, %v2424_v41  ;;  %v2425_v32 = vadd.f32 %v2405_v54, %v14115_v51 }
 0xcdf   : > { %v2408_v48 = vpop.xlane.xlu0 %2407 }
 0xce0   : > { %v2434_v6 = vmul.f32 1.442695, %v2425_v32  ;;  %v2426_v5 = vadd.f32 %v2408_v48, %v14115_v51  ;;  %12795 = vpow2.f32 %v2432_v45 }
 0xce1   : > { %v2414_v22 = vpop.xlane.xlu1 %2413 }
 0xce2   : > { %12797 = vpow2.f32 %v2434_v6  ;;  %v2436_v1 = vmul.f32 1.442695, %v2426_v5  ;;  %v2428_v59 = vadd.f32 %v2414_v22, %v14115_v51 }
 0xce3   : > { %v2411_v60 = vpop.xlane.xlu0 %2410 }
 0xce4   : > { %12799 = vpow2.f32 %v2436_v1  ;;  %v2427_v17 = vadd.f32 %v2411_v60, %v14115_v51  ;;  %v2440_v21 = vmul.f32 1.442695, %v2428_v59 }
 0xce5   : > { %v2420_v14 = vpop.xlane.xlu1 %2419 }
 0xce6   : > { %v2438_v56 = vmul.f32 1.442695, %v2427_v17  ;;  %v2430_v58 = vadd.f32 %v2420_v14, %v14115_v51 }
 0xce7   : > { %v2417_v2 = vpop.xlane.xlu0 %2416 }
 0xce8   : > { %12801 = vpow2.f32 %v2438_v56  ;;  %v2429_v52 = vadd.f32 %v2417_v2, %v14115_v51  ;;  %v2444_v27 = vmul.f32 1.442695, %v2430_v58  ;;  %v17174_v58 = vld [vmem:[#allocation41_spill] sm:$0xff] }
 0xce9   : > { %12803 = vpow2.f32 %v2440_v21  ;;  %v2562_v2 = vpop.permute.xlu1 %2561 }
 0xcea   : > { %v2442_v25 = vmul.f32 1.442695, %v2429_v52  ;;  %v12796_v7 = vpop.eup %12795 }
 0xceb   : > { %v2423_v4 = vpop.xlane.xlu0 %2422  ;;  %v2459_v55 = vrot.slane %v12796_v7, %v17145_v57 }
 0xcec   : > { %v12798_v28 = vpop.eup %12797  ;;  %12805 = vpow2.f32 %v2442_v25  ;;  %v2431_v13 = vadd.f32 %v2423_v4, %v14115_v51 }
 0xced   : > { %v2463_v49 = vrot.slane %v12798_v28, %v17145_v57  ;;  %12807 = vpow2.f32 %v2444_v27  ;;  %v2569_v52 = vpop.permute.xlu1 %2568 }
 0xcee   : > { %v12800_v62 = vpop.eup %12799  ;;  %v2446_v47 = vmul.f32 1.442695, %v2431_v13 }
 0xcef   : > { %v2467_v38 = vrot.slane %v12800_v62, %v17145_v57  ;;  %v2488_v9 = vsel %vm1185_vm2, %v2463_v49, %v2459_v55  ;;  %v2555_v4 = vpop.permute.xlu0 %2554 }
 0xcf0   : > { %12809 = vpow2.f32 %v2446_v47 }
 0xcf1   : > { %v2489_v54 = vsel %vm1187_vm3, %v2467_v38, %v2488_v9  ;;  %v2583_v27 = vpop.permute.xlu1 %2582  ;;  %v17175_v38 = vld [vmem:[#allocation16_spill] sm:$0xff] }
 0xcf2   : > { %v12802_v19 = vpop.eup %12801 }
 0xcf3   : > { %v12804_v8 = vpop.eup %12803  ;;  %v2471_v41 = vrot.slane %v12802_v19, %v17145_v57 }
 0xcf4   : > { %v2475_v48 = vrot.slane %v12804_v8, %v17145_v57 }
 0xcf5   : > { %v2490_v45 = vsel %vm1189_vm4, %v2471_v41, %v2489_v54  ;;  %v2576_v54 = vpop.permute.xlu0 %2575 }
 0xcf6   : > { %v12806_v32 = vpop.eup %12805  ;;  %v2491_v22 = vsel %vm1191_vm5, %v2475_v48, %v2490_v45 }
 0xcf7   : > { %v12808_v6 = vpop.eup %12807  ;;  %v2479_v5 = vrot.slane %v12806_v32, %v17145_v57 }
 0xcf8   : > { %v2483_v60 = vrot.slane %v12808_v6, %v17145_v57 }
 0xcf9   : > { %v2492_v1 = vsel %vm1193_vm6, %v2479_v5, %v2491_v22 }
 0xcfa   : > { %v12810_v59 = vpop.eup %12809  ;;  %v2493_v21 = vsel %vm1195_vm7, %v2483_v60, %v2492_v1 }
 0xcfb   : > { %v2487_v17 = vrot.slane %v12810_v59, %v17145_v57 }
 0xcfd   : > { %v2494_v14 = vsel %vm1197_vm8, %v2487_v17, %v2493_v21  ;;  %v2590_v21 = vpop.permute.xlu0 %2589 }
 0xcfe   : > { %v2496_v56 = vsel %vm1200_vm9, %v2494_v14, 0.0 }
 0xcff   : > { %2497 = vadd.xlane.f32.xlu1 %v2496_v56 }
 0xd10   : > { %2596 = vbcast.lane.b32.xlu1 %v17174_v58, 256 }
 0xd8c   : > { %v2498_v25 = vpop.xlane.xlu1 %2497 }
 0xd8d   : > { %12811 = vrcp.f32 %v2498_v25 }
 0xd97   : > { %v12812_v13 = vpop.eup %12811 }
 0xd98   : > { %v2504_v49 = vrot.slane %v12812_v13, %v17136_v29  ;;  %v2516_v47 = vrot.slane %v12812_v13, %v17150_v26  ;;  %v2508_v55 = vrot.slane %v12812_v13, %v17147_v34  ;;  %v2512_v9 = vrot.slane %v12812_v13, %v17175_v38 }
 0xd99   : > { %v2520_v22 = vrot.slane %v12812_v13, %v17148_v39  ;;  %v2524_v60 = vrot.slane %v12812_v13, %v13683_v0  ;;  %v2528_v14 = vrot.slane %v12812_v13, %v17137_v3 }
 0xd9a   : > { %v2541_v41 = vmul.f32 %v12796_v7, %v2504_v49  ;;  %v2542_v45 = vmul.f32 %v12798_v28, %v2508_v55  ;;  %v2543_v5 = vmul.f32 %v12800_v62, %v2512_v9  ;;  %v2544_v1 = vmul.f32 %v12802_v19, %v2516_v47  ;;  %v2597_v19 = vpop.permute.xlu1 %2596  ;;  %v2604_v47 = vpop.permute.xlu0 %2603 }
 0xd9b   : > { %v2545_v58 = vmul.f32 %v12804_v8, %v2520_v22  ;;  %v2546_v33 = vmul.f32 %v12806_v32, %v2524_v60  ;;  %v2532_v7 = vrot.slane %v12812_v13, %v13769_v15  ;;  %v2547_v28 = vmul.f32 %v12808_v6, %v2528_v14 }
 0xd9c   : > { %v2613_v48 = vmul.f32 %v2555_v4, %v2541_v41  ;;  %v2614_v17 = vmul.f32 %v2562_v2, %v2542_v45  ;;  %v2615_v56 = vmul.f32 %v2569_v52, %v2543_v5  ;;  %v2616_v25 = vmul.f32 %v2576_v54, %v2544_v1 }
 0xd9d   : > { %v2617_v62 = vmul.f32 %v2583_v27, %v2545_v58  ;;  %v2618_v4 = vmul.f32 %v2590_v21, %v2546_v33  ;;  %v2548_v49 = vmul.f32 %v12810_v59, %v2532_v7  ;;  %v2619_v2 = vmul.f32 %v2597_v19, %v2547_v28 }
 0xd9e   : > { %2630 = vperm.xlu1 %12697, %v2613_v48   ;;  %2633 = vperm.xlu0 %12698, %v2614_v17  }
 0xd9f   : > { %v2620_v55 = vmul.f32 %v2604_v47, %v2548_v49 }
 0xda2   : > { %2636 = vperm.xlu1 %12697, %v2615_v56   ;;  %2639 = vperm.xlu0 %12698, %v2616_v25  }
 0xda6   : > { %2642 = vperm.xlu1 %12697, %v2617_v62   ;;  %2645 = vperm.xlu0 %12698, %v2618_v4  }
 0xdaa   : > { %2648 = vperm.xlu1 %12697, %v2619_v2   ;;  %2651 = vperm.xlu0 %12698, %v2620_v55  }
 0xdae   : > { %2693 = vrot.lane.b32.xlu1 %v14355_v30, %s13369_s18 }
 0xe1d   : > { %v2631_v8 = vpop.permute.xlu1 %2630  ;;  %v2634_v32 = vpop.permute.xlu0 %2633 }
 0xe1e   : > { %v2656_v52 = vrot.slane %v2631_v8, %v17145_v57  ;;  %v2660_v6 = vrot.slane %v2634_v32, %v17145_v57 }
 0xe20   : > { %v2685_v13 = vsel %vm1185_vm2, %v2660_v6, %v2656_v52 }
 0xe21   : > { %v2637_v27 = vpop.permute.xlu1 %2636  ;;  %v2640_v59 = vpop.permute.xlu0 %2639 }
 0xe22   : > { %v2664_v33 = vrot.slane %v2637_v27, %v17145_v57  ;;  %v2668_v9 = vrot.slane %v2640_v59, %v17145_v57 }
 0xe24   : > { %v2686_v41 = vsel %vm1187_vm3, %v2664_v33, %v2685_v13 }
 0xe25   : > { %v2643_v54 = vpop.permute.xlu1 %2642  ;;  %v2646_v48 = vpop.permute.xlu0 %2645  ;;  %v2687_v5 = vsel %vm1189_vm4, %v2668_v9, %v2686_v41 }
 0xe26   : > { %v2672_v45 = vrot.slane %v2643_v54, %v17145_v57  ;;  %v2676_v22 = vrot.slane %v2646_v48, %v17145_v57 }
 0xe28   : > { %v2688_v1 = vsel %vm1191_vm5, %v2672_v45, %v2687_v5 }
 0xe29   : > { %v2649_v60 = vpop.permute.xlu1 %2648  ;;  %v2652_v21 = vpop.permute.xlu0 %2651  ;;  %v2689_v14 = vsel %vm1193_vm6, %v2676_v22, %v2688_v1 }
 0xe2a   : > { %v2680_v17 = vrot.slane %v2649_v60, %v17145_v57  ;;  %v2684_v56 = vrot.slane %v2652_v21, %v17145_v57 }
 0xe2c   : > { %v2690_v58 = vsel %vm1195_vm7, %v2680_v17, %v2689_v14 }
 0xe2d   : > { %v2694_v25 = vpop.permute.xlu1 %2693  ;;  %v2691_v7 = vsel %vm1197_vm8, %v2684_v56, %v2690_v58 }
 0xe2e   : > { %v2696_v28 = vsel %vm1200_vm9, %v2691_v7, %v2694_v25 }
 0xe2f   : > { %11938 = vmatmul.mubr.msk.f32.vlgmr.msra.gmra.mrb[4].mxu1 %vm1411_vm11, %v2696_v28 }
 0xe30   : > { %12432 = vmatpush3.bf16.msra.mxu1 %v17153_v11  ;;  %11956 = vmatprep.mubr.msk.f32.mxu1 %vm13363_vm0, %v17152_v63 }
 0xe31   : > { %12433 = vmatprep.subr.bf16.mxu1 %v17151_v24 }
 0xe34   : > { %12435 = vmatpush3.bf16.msra.mxu1 %v17154_v37 }
 0xe35   : > { %12436 = vmatprep.subr.bf16.mxu1 %v17151_v24 }
 0xe38   : > { %12438 = vmatpush3.bf16.msra.mxu1 %v17155_v31 }
 0xe39   : > { %12439 = vmatprep.subr.bf16.mxu1 %v17151_v24 }
 0xe3c   : > { %12441 = vmatpush3.bf16.msra.mxu1 %v17156_v53 }
 0xe3d   : > { %12460 = vmatprep.subr.bf16.mxu1 %v17151_v24 }
 0xf02   : > { %v2766_v62 = vpop.f32.mrb[4].mxu1 }
 0xf03   : > { %v2767_v4 = vadd.f32 %v2766_v62, %v14214_v44  ;;  %v11939_v19 = vpop.f32.mrb[5].mxu1 }
 0xf05   : > { %v11516_v49 = vmul.f32 -1.442695, %v2767_v4 }
 0xf07   : > { %12813 = vpow2.f32 %v11516_v49 }
 0xf11   : > { %v12814_v47 = vpop.eup %12813 }
 0xf12   : > { %v2773_v2 = vadd.f32 1.0, %v12814_v47 }
 0xf14   : > { %12815 = vrcp.f32 %v2773_v2 }
 0xf1e   : > { %v12816_v55 = vpop.eup %12815 }
 0xf1f   : > { %v2776_v8 = vmul.f32 2.0, %v12816_v55  ;;  %v2778_v27 = vmul.f32 %v12816_v55, %v14351_v16  ;;  %v14503_v16 = vld [vmem:[%s16899_s3 + $0x20] sm:$0xf] }
 0xf21   : > { %v11517_v32 = vadd.f32 -1.0, %v2776_v8 }
 0xf23   : > { %2780 = vrot.lane.b32.xlu0 %v11517_v32, %s13367_s16 }
 0xf95   : > { %v2781_v52 = vpop.permute.xlu0 %2780 }
 0xf96   : > { %v2783_v6 = vmul.f32 %v12816_v55, %v2781_v52 }
 0xf98   : > { %2785 = vrot.lane.b32.xlu1 %v2783_v6, %s13368_s17 }
0x100a   : > { %v2786_v33 = vpop.permute.xlu1 %2785 }
0x100b   : > { %v14483_v59 = vadd.f32 %v2786_v33, %v2778_v27 }
0x100d   : > { %12817 = vtanh.f32 %v14483_v59 }
0x1017   : > { %v12818_v13 = vpop.eup %12817 }
0x1018   : > { %2791 = vrot.lane.b32.xlu0 %v12818_v13, %s13367_s16 }
0x108a   : > { %v2792_v9 = vpop.permute.xlu0 %2791 }
0x108b   : > { %v14487_v41 = vmul.f32 %v12816_v55, %v2792_v9 }
0x108d   : > { %17176 = vst [vmem:[#allocation83_spill] sm:$0xff] %v14487_v41  ;;  %2845 = vrot.lane.b32.xlu1 %v14487_v41, %s13368_s17 }
0x10ff   : > { %v2846_v54 = vpop.permute.xlu1 %2845 }
0x1100   : > { %v2848_v45 = vsel %vm1575_vm12, %v2846_v54, %v14483_v59 }
0x1101   : > { %11957 = vmatmul.mubr.msk.f32.vlgmr.msra.gmra.mrb[6].mxu1 %vm17005_vm13, %v2848_v45 }
0x1102   : > { %12462 = vmatpush3.bf16.msra.mxu1 %v14156_v10  ;;  %12001 = vmatprep.mubr.msk.f32.mxu1 %vm13363_vm0, %v17152_v63 }
0x1103   : > { %12463 = vmatprep.subr.bf16.mxu1 %v17151_v24 }
0x1106   : > { %12465 = vmatpush3.bf16.msra.mxu1 %v14168_v18 }
0x1107   : > { %11999 = vmatprep.subr.mxu1 %v17152_v63 }
0x110a   : > { %12000 = vmatpush3.msk.msra.mxu1 %vm1415_vm10, %v14503_v16 }
0x110b   : > { %12466 = vmatprep.subr.bf16.mxu1 %v17151_v24 }
0x11d4   : > { %v2918_v48 = vpop.f32.mrb[6].mxu1 }
0x11d5   : > { %v2919_v5 = vadd.f32 %v2918_v48, %v13962_v35  ;;  %v11958_v22 = vpop.f32.mrb[7].mxu1 }
0x11d7   : > { %v2923_v1 = vcombine.high %v2919_v5, %v2919_v5  ;;  %v2930_v60 = vrot.slane %v2919_v5, %v17134_v12 }
0x11d9   : > { %v2937_v17 = vrot.slane %v2923_v1, %v17134_v12  ;;  %v2938_v21 = vcombine.high %v2930_v60, %v2930_v60  ;;  %v2946_v14 = vrot.slane %v2930_v60, %v17134_v12 }
0x11db   : > { %v2939_v56 = vcombine.high %v2937_v17, %v2937_v17  ;;  %v2953_v58 = vrot.slane %v2937_v17, %v17134_v12  ;;  %v2960_v25 = vrot.slane %v2938_v21, %v17134_v12  ;;  %v2968_v7 = vcombine.high %v2946_v14, %v2946_v14 }
0x11dc   : > { %v2975_v28 = vrot.slane %v2946_v14, %v17136_v29 }
0x11dd   : > { %v2967_v62 = vrot.slane %v2939_v56, %v17134_v12  ;;  %v2969_v4 = vcombine.high %v2953_v58, %v2953_v58  ;;  %v2970_v19 = vcombine.high %v2960_v25, %v2960_v25  ;;  %v2979_v49 = vrot.slane %v2960_v25, %v17136_v29 }
0x11de   : > { %v2983_v47 = vrot.slane %v2968_v7, %v17136_v29  ;;  %v2991_v2 = vrot.slane %v2953_v58, %v17136_v29  ;;  %v3012_v55 = vadd.f32 %v2975_v28, %v14040_v40 }
0x11df   : > { %v2971_v8 = vcombine.high %v2967_v62, %v2967_v62  ;;  %v2987_v32 = vrot.slane %v2970_v19, %v17136_v29  ;;  %v2999_v52 = vrot.slane %v2969_v4, %v17136_v29  ;;  %v2995_v6 = vrot.slane %v2967_v62, %v17136_v29 }
0x11e0   : > { %v3013_v27 = vadd.f32 %v2979_v49, %v14044_v20  ;;  %v3014_v33 = vadd.f32 %v2983_v47, %v14055_v36  ;;  %12819 = vtanh.f32 %v3012_v55  ;;  %v3016_v9 = vadd.f32 %v2991_v2, %v14065_v42 }
0x11e1   : > { %v3015_v13 = vadd.f32 %v2987_v32, %v14050_v43  ;;  %v3018_v54 = vadd.f32 %v2999_v52, %v14088_v46  ;;  %v3003_v45 = vrot.slane %v2971_v8, %v17136_v29  ;;  %v3017_v48 = vadd.f32 %v2995_v6, %v14075_v23 }
0x11e2   : > { %12821 = vtanh.f32 %v3013_v27 }
0x11e3   : > { %12823 = vtanh.f32 %v3014_v33  ;;  %v3019_v5 = vadd.f32 %v3003_v45, %v14085_v50  ;;  %v17180_v45 = vld [vmem:[#allocation28_spill] sm:$0xff] }
0x11e4   : > { %12825 = vtanh.f32 %v3015_v13  ;;  %v17177_v13 = vld [vmem:[#allocation27_spill] sm:$0xff] }
0x11e5   : > { %12827 = vtanh.f32 %v3016_v9  ;;  %v17178_v9 = vld [vmem:[#allocation31_spill] sm:$0xff] }
0x11e6   : > { %12829 = vtanh.f32 %v3018_v54  ;;  %v17179_v54 = vld [vmem:[#allocation40_spill] sm:$0xff] }
0x11e7   : > { %12831 = vtanh.f32 %v3017_v48  ;;  %v17181_v48 = vld [vmem:[#allocation35_spill] sm:$0xff] }
0x11e8   : > { %12833 = vtanh.f32 %v3019_v5  ;;  %v17182_v5 = vld [vmem:[#allocation46_spill] sm:$0xff] }
0x11ea   : > { %v12820_v22 = vpop.eup %12819 }
0x11eb   : > { %v3028_v1 = vmul.f32 %v12820_v22, %v14079_v61  ;;  %v17183_v22 = vld [vmem:[#allocation51_spill] sm:$0xff] }
0x11ec   : > { %v12822_v60 = vpop.eup %12821 }
0x11ed   : > { %v12824_v17 = vpop.eup %12823  ;;  %v3036_v21 = vsel %vm1089_vm1, %v3028_v1, 0.0  ;;  %v3029_v14 = vmul.f32 %v12822_v60, %v14079_v61 }
0x11ee   : > { %v12826_v56 = vpop.eup %12825  ;;  %3037 = vadd.xlane.f32.xlu0 %v3036_v21  ;;  %v3030_v58 = vmul.f32 %v12824_v17, %v14079_v61 }
0x11ef   : > { %v12828_v25 = vpop.eup %12827  ;;  %v3039_v7 = vsel %vm1089_vm1, %v3029_v14, 0.0  ;;  %v3031_v19 = vmul.f32 %v12826_v56, %v14079_v61 }
0x11f0   : > { %3040 = vadd.xlane.f32.xlu1 %v3039_v7  ;;  %v3032_v28 = vmul.f32 %v12828_v25, %v14079_v61  ;;  %v12830_v62 = vpop.eup %12829  ;;  %v3042_v4 = vsel %vm1089_vm1, %v3030_v58, 0.0 }
0x11f1   : > { %v12832_v49 = vpop.eup %12831  ;;  %v3034_v2 = vmul.f32 %v12830_v62, %v14079_v61  ;;  %v3045_v55 = vsel %vm1089_vm1, %v3031_v19, 0.0 }
0x11f2   : > { %3043 = vadd.xlane.f32.xlu0 %v3042_v4  ;;  %v3048_v47 = vsel %vm1089_vm1, %v3032_v28, 0.0  ;;  %v3033_v8 = vmul.f32 %v12832_v49, %v14079_v61  ;;  %v12834_v32 = vpop.eup %12833 }
0x11f3   : > { %v3054_v52 = vsel %vm1089_vm1, %v3034_v2, 0.0  ;;  %v3035_v27 = vmul.f32 %v12834_v32, %v14079_v61 }
0x11f4   : > { %3049 = vadd.xlane.f32.xlu1 %v3048_v47  ;;  %v3051_v6 = vsel %vm1089_vm1, %v3033_v8, 0.0 }
0x11f5   : > { %v3057_v33 = vsel %vm1089_vm1, %v3035_v27, 0.0 }
0x11f6   : > { %3046 = vadd.xlane.f32.xlu0 %v3045_v55 }
0x11f8   : > { %3055 = vadd.xlane.f32.xlu1 %v3054_v52 }
0x11fa   : > { %3052 = vadd.xlane.f32.xlu0 %v3051_v6 }
0x11fe   : > { %3058 = vadd.xlane.f32.xlu0 %v3057_v33 }
0x1209   : > { %3197 = vbcast.lane.b32.xlu1 %v17177_v13, 256 }
0x120d   : > { %3204 = vbcast.lane.b32.xlu1 %v17178_v9, 256 }
0x1211   : > { %3218 = vbcast.lane.b32.xlu1 %v17179_v54, 256 }
0x1214   : > { %3190 = vbcast.lane.b32.xlu0 %v17180_v45, 256 }
0x1218   : > { %3211 = vbcast.lane.b32.xlu0 %v17181_v48, 256 }
0x121c   : > { %3225 = vbcast.lane.b32.xlu0 %v17182_v5, 256 }
0x1220   : > { %3239 = vbcast.lane.b32.xlu0 %v17183_v22, 256 }
0x127b   : > { %v3038_v1 = vpop.xlane.xlu0 %3037 }
0x127c   : > { %v3060_v60 = vadd.f32 %v3038_v1, %v14115_v51 }
0x127d   : > { %v3041_v17 = vpop.xlane.xlu1 %3040 }
0x127e   : > { %v3068_v21 = vmul.f32 1.442695, %v3060_v60  ;;  %v3061_v14 = vadd.f32 %v3041_v17, %v14115_v51 }
0x127f   : > { %v3044_v56 = vpop.xlane.xlu0 %3043 }
0x1280   : > { %v3070_v58 = vmul.f32 1.442695, %v3061_v14  ;;  %v3062_v25 = vadd.f32 %v3044_v56, %v14115_v51  ;;  %12835 = vpow2.f32 %v3068_v21 }
0x1281   : > { %v3050_v7 = vpop.xlane.xlu1 %3049 }
0x1282   : > { %12837 = vpow2.f32 %v3070_v58  ;;  %v3072_v28 = vmul.f32 1.442695, %v3062_v25  ;;  %v3064_v62 = vadd.f32 %v3050_v7, %v14115_v51 }
0x1283   : > { %v3047_v4 = vpop.xlane.xlu0 %3046 }
0x1284   : > { %12839 = vpow2.f32 %v3072_v28  ;;  %v3063_v19 = vadd.f32 %v3047_v4, %v14115_v51  ;;  %v3076_v49 = vmul.f32 1.442695, %v3064_v62 }
0x1285   : > { %v3056_v47 = vpop.xlane.xlu1 %3055 }
0x1286   : > { %v3074_v2 = vmul.f32 1.442695, %v3063_v19  ;;  %v3066_v55 = vadd.f32 %v3056_v47, %v14115_v51 }
0x1287   : > { %v3053_v8 = vpop.xlane.xlu0 %3052 }
0x1288   : > { %12841 = vpow2.f32 %v3074_v2  ;;  %v3065_v32 = vadd.f32 %v3053_v8, %v14115_v51  ;;  %v3080_v52 = vmul.f32 1.442695, %v3066_v55 }
0x1289   : > { %12843 = vpow2.f32 %v3076_v49 }
0x128a   : > { %v3078_v6 = vmul.f32 1.442695, %v3065_v32  ;;  %v12836_v27 = vpop.eup %12835  ;;  %v17184_v32 = vld [vmem:[#allocation50_spill] sm:$0xff] }
0x128b   : > { %v3059_v33 = vpop.xlane.xlu0 %3058  ;;  %v3095_v5 = vrot.slane %v12836_v27, %v17145_v57 }
0x128c   : > { %v12838_v13 = vpop.eup %12837  ;;  %12845 = vpow2.f32 %v3078_v6  ;;  %v3067_v9 = vadd.f32 %v3059_v33, %v14115_v51 }
0x128d   : > { %v3099_v54 = vrot.slane %v12838_v13, %v17145_v57  ;;  %12847 = vpow2.f32 %v3080_v52  ;;  %v3198_v52 = vpop.permute.xlu1 %3197 }
0x128e   : > { %v12840_v45 = vpop.eup %12839  ;;  %v3082_v48 = vmul.f32 1.442695, %v3067_v9 }
0x128f   : > { %v3103_v22 = vrot.slane %v12840_v45, %v17145_v57  ;;  %v3124_v1 = vsel %vm1185_vm2, %v3099_v54, %v3095_v5  ;;  %v3191_v54 = vpop.permute.xlu0 %3190 }
0x1290   : > { %12849 = vpow2.f32 %v3082_v48 }
0x1291   : > { %v3125_v14 = vsel %vm1187_vm3, %v3103_v22, %v3124_v1  ;;  %v3205_v6 = vpop.permute.xlu1 %3204 }
0x1292   : > { %v12842_v60 = vpop.eup %12841 }
0x1293   : > { %v12844_v17 = vpop.eup %12843  ;;  %v3107_v21 = vrot.slane %v12842_v60, %v17145_v57 }
0x1294   : > { %v3111_v25 = vrot.slane %v12844_v17, %v17145_v57 }
0x1295   : > { %v3126_v56 = vsel %vm1189_vm4, %v3107_v21, %v3125_v14  ;;  %v3219_v33 = vpop.permute.xlu1 %3218 }
0x1296   : > { %v12846_v58 = vpop.eup %12845  ;;  %v3127_v62 = vsel %vm1191_vm5, %v3111_v25, %v3126_v56  ;;  %v3212_v56 = vpop.permute.xlu0 %3211 }
0x1297   : > { %v12848_v7 = vpop.eup %12847  ;;  %v3115_v28 = vrot.slane %v12846_v58, %v17145_v57 }
0x1298   : > { %v3119_v49 = vrot.slane %v12848_v7, %v17145_v57 }
0x1299   : > { %v3128_v4 = vsel %vm1193_vm6, %v3115_v28, %v3127_v62 }
0x129a   : > { %v12850_v19 = vpop.eup %12849  ;;  %v3129_v2 = vsel %vm1195_vm7, %v3119_v49, %v3128_v4 }
0x129b   : > { %v3123_v47 = vrot.slane %v12850_v19, %v17145_v57 }
0x129d   : > { %v3130_v55 = vsel %vm1197_vm8, %v3123_v47, %v3129_v2 }
0x129e   : > { %v3132_v8 = vsel %vm1200_vm9, %v3130_v55, 0.0  ;;  %v3226_v55 = vpop.permute.xlu0 %3225 }
0x129f   : > { %3133 = vadd.xlane.f32.xlu1 %v3132_v8 }
0x12b0   : > { %3232 = vbcast.lane.b32.xlu1 %v17184_v32, 256 }
0x132c   : > { %v3134_v9 = vpop.xlane.xlu1 %3133 }
0x132d   : > { %12851 = vrcp.f32 %v3134_v9 }
0x1337   : > { %v12852_v48 = vpop.eup %12851 }
0x1338   : > { %v3140_v5 = vrot.slane %v12852_v48, %v17136_v29  ;;  %v3152_v22 = vrot.slane %v12852_v48, %v17150_v26  ;;  %v3144_v1 = vrot.slane %v12852_v48, %v17147_v34  ;;  %v3148_v21 = vrot.slane %v12852_v48, %v17175_v38 }
0x1339   : > { %v3156_v4 = vrot.slane %v12852_v48, %v17148_v39  ;;  %v3160_v47 = vrot.slane %v12852_v48, %v13683_v0  ;;  %v3164_v8 = vrot.slane %v12852_v48, %v17137_v3 }
0x133a   : > { %v3177_v14 = vmul.f32 %v12836_v27, %v3140_v5  ;;  %v3178_v25 = vmul.f32 %v12838_v13, %v3144_v1  ;;  %v3179_v62 = vmul.f32 %v12840_v45, %v3148_v21  ;;  %v3180_v49 = vmul.f32 %v12842_v60, %v3152_v22  ;;  %v3233_v60 = vpop.permute.xlu1 %3232  ;;  %v3240_v22 = vpop.permute.xlu0 %3239 }
0x133b   : > { %v3181_v9 = vmul.f32 %v12844_v17, %v3156_v4  ;;  %v3182_v38 = vmul.f32 %v12846_v58, %v3160_v47  ;;  %v3168_v27 = vrot.slane %v12852_v48, %v13769_v15  ;;  %v3183_v13 = vmul.f32 %v12848_v7, %v3164_v8 }
0x133c   : > { %v3249_v28 = vmul.f32 %v3191_v54, %v3177_v14  ;;  %v3250_v2 = vmul.f32 %v3198_v52, %v3178_v25  ;;  %v3251_v32 = vmul.f32 %v3205_v6, %v3179_v62  ;;  %v3252_v30 = vmul.f32 %v3212_v56, %v3180_v49 }
0x133d   : > { %v3253_v45 = vmul.f32 %v3219_v33, %v3181_v9  ;;  %v3254_v54 = vmul.f32 %v3226_v55, %v3182_v38  ;;  %v3184_v5 = vmul.f32 %v12850_v19, %v3168_v27  ;;  %v3255_v52 = vmul.f32 %v3233_v60, %v3183_v13 }
0x133e   : > { %3266 = vperm.xlu1 %12697, %v3249_v28   ;;  %3269 = vperm.xlu0 %12698, %v3250_v2  }
0x133f   : > { %v3256_v1 = vmul.f32 %v3240_v22, %v3184_v5 }
0x1342   : > { %3272 = vperm.xlu1 %12697, %v3251_v32   ;;  %3275 = vperm.xlu0 %12698, %v3252_v30  }
0x1346   : > { %3278 = vperm.xlu1 %12697, %v3253_v45   ;;  %3281 = vperm.xlu0 %12698, %v3254_v54  }
0x134a   : > { %3284 = vperm.xlu1 %12697, %v3255_v52   ;;  %3287 = vperm.xlu0 %12698, %v3256_v1  }
0x134e   : > { %3329 = vrot.lane.b32.xlu1 %v14487_v41, %s13369_s18 }
0x13bd   : > { %v3267_v17 = vpop.permute.xlu1 %3266  ;;  %v3270_v58 = vpop.permute.xlu0 %3269 }
0x13be   : > { %v3292_v6 = vrot.slane %v3267_v17, %v17145_v57  ;;  %v3296_v30 = vrot.slane %v3270_v58, %v17145_v57 }
0x13c0   : > { %v3321_v33 = vsel %vm1185_vm2, %v3296_v30, %v3292_v6 }
0x13c1   : > { %v3273_v7 = vpop.permute.xlu1 %3272  ;;  %v3276_v19 = vpop.permute.xlu0 %3275 }
0x13c2   : > { %v3300_v38 = vrot.slane %v3273_v7, %v17145_v57  ;;  %v3304_v48 = vrot.slane %v3276_v19, %v17145_v57 }
0x13c4   : > { %v3322_v21 = vsel %vm1187_vm3, %v3300_v38, %v3321_v33 }
0x13c5   : > { %v3279_v14 = vpop.permute.xlu1 %3278  ;;  %v3282_v25 = vpop.permute.xlu0 %3281  ;;  %v3323_v28 = vsel %vm1189_vm4, %v3304_v48, %v3322_v21 }
0x13c6   : > { %v3308_v56 = vrot.slane %v3279_v14, %v17145_v57  ;;  %v3312_v62 = vrot.slane %v3282_v25, %v17145_v57 }
0x13c8   : > { %v3324_v4 = vsel %vm1191_vm5, %v3308_v56, %v3323_v28 }
0x13c9   : > { %v3285_v49 = vpop.permute.xlu1 %3284  ;;  %v3288_v2 = vpop.permute.xlu0 %3287  ;;  %v3325_v55 = vsel %vm1193_vm6, %v3312_v62, %v3324_v4 }
0x13ca   : > { %v3316_v47 = vrot.slane %v3285_v49, %v17145_v57  ;;  %v3320_v8 = vrot.slane %v3288_v2, %v17145_v57 }
0x13cc   : > { %v3326_v32 = vsel %vm1195_vm7, %v3316_v47, %v3325_v55 }
0x13cd   : > { %v3330_v9 = vpop.permute.xlu1 %3329  ;;  %v3327_v27 = vsel %vm1197_vm8, %v3320_v8, %v3326_v32 }
0x13ce   : > { %v3332_v13 = vsel %vm1200_vm9, %v3327_v27, %v3330_v9 }
0x13cf   : > { %11970 = vmatmul.mubr.msk.f32.vlgmr.msra.gmra.mrb[6].mxu0 %vm1411_vm11, %v3332_v13 }
0x13d0   : > { %12450 = vmatpush3.bf16.msra.mxu0 %v17153_v11  ;;  %11988 = vmatprep.mubr.msk.f32.mxu0 %vm13363_vm0, %v17152_v63 }
0x13d1   : > { %12451 = vmatprep.subr.bf16.mxu0 %v17151_v24 }
0x13d4   : > { %12453 = vmatpush3.bf16.msra.mxu0 %v17154_v37 }
0x13d5   : > { %12454 = vmatprep.subr.bf16.mxu0 %v17151_v24 }
0x13d8   : > { %12456 = vmatpush3.bf16.msra.mxu0 %v17155_v31 }
0x13d9   : > { %12457 = vmatprep.subr.bf16.mxu0 %v17151_v24 }
0x13dc   : > { %12459 = vmatpush3.bf16.msra.mxu0 %v17156_v53 }
0x13dd   : > { %12478 = vmatprep.subr.bf16.mxu0 %v17151_v24 }
0x14a2   : > { %v3402_v45 = vpop.f32.mrb[6].mxu0 }
0x14a3   : > { %v3403_v54 = vadd.f32 %v3402_v45, %v14214_v44  ;;  %v11971_v60 = vpop.f32.mrb[7].mxu0 }
0x14a5   : > { %v11521_v5 = vmul.f32 -1.442695, %v3403_v54 }
0x14a7   : > { %12853 = vpow2.f32 %v11521_v5 }
0x14b1   : > { %v12854_v22 = vpop.eup %12853 }
0x14b2   : > { %v3409_v52 = vadd.f32 1.0, %v12854_v22 }
0x14b4   : > { %12855 = vrcp.f32 %v3409_v52 }
0x14be   : > { %v12856_v1 = vpop.eup %12855 }
0x14bf   : > { %v3412_v17 = vmul.f32 2.0, %v12856_v1  ;;  %v3414_v7 = vmul.f32 %v12856_v1, %v14483_v59 }
0x14c1   : > { %v11522_v58 = vadd.f32 -1.0, %v3412_v17 }
0x14c3   : > { %3416 = vrot.lane.b32.xlu0 %v11522_v58, %s13367_s16 }
0x1535   : > { %v3417_v6 = vpop.permute.xlu0 %3416 }
0x1536   : > { %v3419_v30 = vmul.f32 %v12856_v1, %v3417_v6 }
0x1538   : > { %3421 = vrot.lane.b32.xlu1 %v3419_v30, %s13368_s17 }
0x15aa   : > { %v3422_v38 = vpop.permute.xlu1 %3421 }
0x15ab   : > { %v14620_v19 = vadd.f32 %v3422_v38, %v3414_v7 }
0x15ad   : > { %12857 = vtanh.f32 %v14620_v19 }
0x15b7   : > { %v12858_v33 = vpop.eup %12857 }
0x15b8   : > { %3427 = vrot.lane.b32.xlu0 %v12858_v33, %s13367_s16 }
0x162a   : > { %v3428_v48 = vpop.permute.xlu0 %3427 }
0x162b   : > { %v14624_v21 = vmul.f32 %v12856_v1, %v3428_v48 }
0x162d   : > { %17185 = vst [vmem:[#allocation80_spill] sm:$0xff] %v14624_v21  ;;  %3481 = vrot.lane.b32.xlu1 %v14624_v21, %s13368_s17 }
0x169f   : > { %v3482_v14 = vpop.permute.xlu1 %3481 }
0x16a0   : > { %v3484_v56 = vsel %vm1575_vm12, %v3482_v14, %v14620_v19 }
0x16a1   : > { %11989 = vmatmul.mubr.msk.f32.vlgmr.msra.gmra.mrb[8].mxu0 %vm17005_vm13, %v3484_v56 }
0x16a2   : > { %12480 = vmatpush3.bf16.msra.mxu0 %v14156_v10  ;;  %12033 = vmatprep.mubr.msk.f32.mxu0 %vm13363_vm0, %v17152_v63 }
0x16a3   : > { %12481 = vmatprep.subr.bf16.mxu0 %v17151_v24 }
0x16a6   : > { %12483 = vmatpush3.bf16.msra.mxu0 %v14168_v18 }
0x16a7   : > { %12031 = vmatprep.subr.mxu0 %v17152_v63 }
0x16aa   : > { %12032 = vmatpush3.msk.msra.mxu0 %vm1415_vm10, %v14503_v16 }
0x16ab   : > { %12484 = vmatprep.subr.bf16.mxu0 %v17151_v24 }
0x1774   : > { %v3554_v59 = vpop.f32.mrb[8].mxu0 }
0x1775   : > { %v3555_v25 = vadd.f32 %v3554_v59, %v13962_v35  ;;  %v11990_v28 = vpop.f32.mrb[9].mxu0 }
0x1777   : > { %v3559_v62 = vcombine.high %v3555_v25, %v3555_v25  ;;  %v3566_v4 = vrot.slane %v3555_v25, %v17134_v12 }
0x1779   : > { %v3573_v49 = vrot.slane %v3559_v62, %v17134_v12  ;;  %v3574_v47 = vcombine.high %v3566_v4, %v3566_v4  ;;  %v3582_v2 = vrot.slane %v3566_v4, %v17134_v12 }
0x177b   : > { %v3575_v55 = vcombine.high %v3573_v49, %v3573_v49  ;;  %v3589_v8 = vrot.slane %v3573_v49, %v17134_v12  ;;  %v3596_v32 = vrot.slane %v3574_v47, %v17134_v12  ;;  %v3604_v9 = vcombine.high %v3582_v2, %v3582_v2 }
0x177c   : > { %v3611_v27 = vrot.slane %v3582_v2, %v17136_v29 }
0x177d   : > { %v3603_v13 = vrot.slane %v3575_v55, %v17134_v12  ;;  %v3605_v45 = vcombine.high %v3589_v8, %v3589_v8  ;;  %v3606_v54 = vcombine.high %v3596_v32, %v3596_v32  ;;  %v3615_v60 = vrot.slane %v3596_v32, %v17136_v29 }
0x177e   : > { %v3619_v5 = vrot.slane %v3604_v9, %v17136_v29  ;;  %v3627_v22 = vrot.slane %v3589_v8, %v17136_v29  ;;  %v3648_v52 = vadd.f32 %v3611_v27, %v14040_v40 }
0x177f   : > { %v3607_v1 = vcombine.high %v3603_v13, %v3603_v13  ;;  %v3623_v17 = vrot.slane %v3606_v54, %v17136_v29  ;;  %v3635_v58 = vrot.slane %v3605_v45, %v17136_v29  ;;  %v3631_v6 = vrot.slane %v3603_v13, %v17136_v29 }
0x1780   : > { %v3649_v30 = vadd.f32 %v3615_v60, %v14044_v20  ;;  %v3650_v7 = vadd.f32 %v3619_v5, %v14055_v36  ;;  %12859 = vtanh.f32 %v3648_v52  ;;  %v3652_v33 = vadd.f32 %v3627_v22, %v14065_v42 }
0x1781   : > { %v3651_v38 = vadd.f32 %v3623_v17, %v14050_v43  ;;  %v3654_v48 = vadd.f32 %v3635_v58, %v14088_v46  ;;  %v3639_v14 = vrot.slane %v3607_v1, %v17136_v29  ;;  %v3653_v56 = vadd.f32 %v3631_v6, %v14075_v23 }
0x1782   : > { %12861 = vtanh.f32 %v3649_v30 }
0x1783   : > { %12863 = vtanh.f32 %v3650_v7  ;;  %v3655_v59 = vadd.f32 %v3639_v14, %v14085_v50  ;;  %v17186_v7 = vld [vmem:[#allocation38_spill] sm:$0xff]  ;;  %v17190_v14 = vld [vmem:[#allocation44_spill] sm:$0xff] }
0x1784   : > { %12865 = vtanh.f32 %v3651_v38  ;;  %v17187_v38 = vld [vmem:[#allocation43_spill] sm:$0xff] }
0x1785   : > { %12867 = vtanh.f32 %v3652_v33  ;;  %v17188_v33 = vld [vmem:[#allocation49_spill] sm:$0xff] }
0x1786   : > { %12869 = vtanh.f32 %v3654_v48  ;;  %v17189_v48 = vld [vmem:[#allocation39_spill] sm:$0xff] }
0x1787   : > { %12871 = vtanh.f32 %v3653_v56  ;;  %v17191_v56 = vld [vmem:[#allocation55_spill] sm:$0xff] }
0x1788   : > { %12873 = vtanh.f32 %v3655_v59  ;;  %v17192_v59 = vld [vmem:[#allocation60_spill] sm:$0xff] }
0x178a   : > { %v12860_v25 = vpop.eup %12859 }
0x178b   : > { %v3664_v28 = vmul.f32 %v12860_v25, %v14079_v61 }
0x178c   : > { %v12862_v62 = vpop.eup %12861 }
0x178d   : > { %v12864_v4 = vpop.eup %12863  ;;  %v3672_v49 = vsel %vm1089_vm1, %v3664_v28, 0.0  ;;  %v3665_v47 = vmul.f32 %v12862_v62, %v14079_v61 }
0x178e   : > { %v12866_v2 = vpop.eup %12865  ;;  %3673 = vadd.xlane.f32.xlu0 %v3672_v49  ;;  %v3666_v55 = vmul.f32 %v12864_v4, %v14079_v61 }
0x178f   : > { %v12868_v8 = vpop.eup %12867  ;;  %v3675_v32 = vsel %vm1089_vm1, %v3665_v47, 0.0  ;;  %v3667_v45 = vmul.f32 %v12866_v2, %v14079_v61 }
0x1790   : > { %3676 = vadd.xlane.f32.xlu1 %v3675_v32  ;;  %v3668_v9 = vmul.f32 %v12868_v8, %v14079_v61  ;;  %v12870_v27 = vpop.eup %12869  ;;  %v3678_v13 = vsel %vm1089_vm1, %v3666_v55, 0.0 }
0x1791   : > { %v12872_v54 = vpop.eup %12871  ;;  %v3670_v5 = vmul.f32 %v12870_v27, %v14079_v61  ;;  %v3681_v22 = vsel %vm1089_vm1, %v3667_v45, 0.0 }
0x1792   : > { %3679 = vadd.xlane.f32.xlu0 %v3678_v13  ;;  %v3684_v60 = vsel %vm1089_vm1, %v3668_v9, 0.0  ;;  %v3669_v52 = vmul.f32 %v12872_v54, %v14079_v61  ;;  %v12874_v1 = vpop.eup %12873 }
0x1793   : > { %v3690_v17 = vsel %vm1089_vm1, %v3670_v5, 0.0  ;;  %v3671_v6 = vmul.f32 %v12874_v1, %v14079_v61 }
0x1794   : > { %3685 = vadd.xlane.f32.xlu1 %v3684_v60  ;;  %v3687_v58 = vsel %vm1089_vm1, %v3669_v52, 0.0 }
0x1795   : > { %v3693_v30 = vsel %vm1089_vm1, %v3671_v6, 0.0 }
0x1796   : > { %3682 = vadd.xlane.f32.xlu0 %v3681_v22 }
0x1798   : > { %3691 = vadd.xlane.f32.xlu1 %v3690_v17 }
0x179a   : > { %3688 = vadd.xlane.f32.xlu0 %v3687_v58 }
0x179e   : > { %3694 = vadd.xlane.f32.xlu0 %v3693_v30 }
0x17a9   : > { %3833 = vbcast.lane.b32.xlu1 %v17186_v7, 256 }
0x17ad   : > { %3840 = vbcast.lane.b32.xlu1 %v17187_v38, 256 }
0x17b1   : > { %3854 = vbcast.lane.b32.xlu1 %v17188_v33, 256 }
0x17b4   : > { %3826 = vbcast.lane.b32.xlu0 %v17189_v48, 256 }
0x17b8   : > { %3847 = vbcast.lane.b32.xlu0 %v17190_v14, 256 }
0x17bc   : > { %3861 = vbcast.lane.b32.xlu0 %v17191_v56, 256 }
0x17c0   : > { %3875 = vbcast.lane.b32.xlu0 %v17192_v59, 256 }
0x181b   : > { %v3674_v25 = vpop.xlane.xlu0 %3673 }
0x181c   : > { %v3696_v28 = vadd.f32 %v3674_v25, %v14115_v51 }
0x181d   : > { %v3677_v62 = vpop.xlane.xlu1 %3676 }
0x181e   : > { %v3704_v4 = vmul.f32 1.442695, %v3696_v28  ;;  %v3697_v49 = vadd.f32 %v3677_v62, %v14115_v51 }
0x181f   : > { %v3680_v47 = vpop.xlane.xlu0 %3679 }
0x1820   : > { %v3706_v2 = vmul.f32 1.442695, %v3697_v49  ;;  %v3698_v55 = vadd.f32 %v3680_v47, %v14115_v51  ;;  %12875 = vpow2.f32 %v3704_v4 }
0x1821   : > { %v3686_v8 = vpop.xlane.xlu1 %3685 }
0x1822   : > { %12877 = vpow2.f32 %v3706_v2  ;;  %v3708_v32 = vmul.f32 1.442695, %v3698_v55  ;;  %v3700_v9 = vadd.f32 %v3686_v8, %v14115_v51 }
0x1823   : > { %v3683_v27 = vpop.xlane.xlu0 %3682 }
0x1824   : > { %12879 = vpow2.f32 %v3708_v32  ;;  %v3699_v13 = vadd.f32 %v3683_v27, %v14115_v51  ;;  %v3712_v45 = vmul.f32 1.442695, %v3700_v9 }
0x1825   : > { %v3692_v54 = vpop.xlane.xlu1 %3691 }
0x1826   : > { %v3710_v60 = vmul.f32 1.442695, %v3699_v13  ;;  %v3702_v5 = vadd.f32 %v3692_v54, %v14115_v51 }
0x1827   : > { %v3689_v22 = vpop.xlane.xlu0 %3688 }
0x1828   : > { %12881 = vpow2.f32 %v3710_v60  ;;  %v3701_v52 = vadd.f32 %v3689_v22, %v14115_v51  ;;  %v3716_v1 = vmul.f32 1.442695, %v3702_v5  ;;  %v17193_v22 = vld [vmem:[#allocation59_spill] sm:$0xff] }
0x1829   : > { %12883 = vpow2.f32 %v3712_v45 }
0x182a   : > { %v3714_v17 = vmul.f32 1.442695, %v3701_v52  ;;  %v12876_v58 = vpop.eup %12875  ;;  %v3834_v52 = vpop.permute.xlu1 %3833 }
0x182b   : > { %v3695_v6 = vpop.xlane.xlu0 %3694  ;;  %v3731_v14 = vrot.slane %v12876_v58, %v17145_v57 }
0x182c   : > { %v12878_v30 = vpop.eup %12877  ;;  %12885 = vpow2.f32 %v3714_v17  ;;  %v3703_v7 = vadd.f32 %v3695_v6, %v14115_v51 }
0x182d   : > { %v3735_v38 = vrot.slane %v12878_v30, %v17145_v57  ;;  %12887 = vpow2.f32 %v3716_v1 }
0x182e   : > { %v12880_v33 = vpop.eup %12879  ;;  %v3718_v48 = vmul.f32 1.442695, %v3703_v7  ;;  %v3841_v1 = vpop.permute.xlu1 %3840 }
0x182f   : > { %v3739_v56 = vrot.slane %v12880_v33, %v17145_v57  ;;  %v3760_v59 = vsel %vm1185_vm2, %v3735_v38, %v3731_v14  ;;  %v3827_v7 = vpop.permute.xlu0 %3826 }
0x1830   : > { %12889 = vpow2.f32 %v3718_v48 }
0x1831   : > { %v3761_v4 = vsel %vm1187_vm3, %v3739_v56, %v3760_v59  ;;  %v17194_v59 = vld [vmem:[#allocation16_spill] sm:$0xff] }
0x1832   : > { %v12882_v25 = vpop.eup %12881  ;;  %v3855_v17 = vpop.permute.xlu1 %3854 }
0x1833   : > { %v12884_v28 = vpop.eup %12883  ;;  %v3743_v62 = vrot.slane %v12882_v25, %v17145_v57 }
0x1834   : > { %v3747_v2 = vrot.slane %v12884_v28, %v17145_v57 }
0x1835   : > { %v3762_v49 = vsel %vm1189_vm4, %v3743_v62, %v3761_v4 }
0x1836   : > { %v12886_v47 = vpop.eup %12885  ;;  %v3763_v32 = vsel %vm1191_vm5, %v3747_v2, %v3762_v49  ;;  %v3848_v49 = vpop.permute.xlu0 %3847 }
0x1837   : > { %v12888_v55 = vpop.eup %12887  ;;  %v3751_v8 = vrot.slane %v12886_v47, %v17145_v57 }
0x1838   : > { %v3755_v13 = vrot.slane %v12888_v55, %v17145_v57 }
0x1839   : > { %v3764_v9 = vsel %vm1193_vm6, %v3751_v8, %v3763_v32 }
0x183a   : > { %v12890_v27 = vpop.eup %12889  ;;  %v3765_v54 = vsel %vm1195_vm7, %v3755_v13, %v3764_v9 }
0x183b   : > { %v3759_v45 = vrot.slane %v12890_v27, %v17145_v57 }
0x183d   : > { %v3766_v60 = vsel %vm1197_vm8, %v3759_v45, %v3765_v54 }
0x183e   : > { %v3768_v5 = vsel %vm1200_vm9, %v3766_v60, 0.0  ;;  %v3862_v60 = vpop.permute.xlu0 %3861 }
0x183f   : > { %3769 = vadd.xlane.f32.xlu1 %v3768_v5 }
0x1850   : > { %3868 = vbcast.lane.b32.xlu1 %v17193_v22, 256 }
0x18cc   : > { %v3770_v6 = vpop.xlane.xlu1 %3769 }
0x18cd   : > { %12891 = vrcp.f32 %v3770_v6 }
0x18d7   : > { %v12892_v38 = vpop.eup %12891 }
0x18d8   : > { %v3776_v48 = vrot.slane %v12892_v38, %v17136_v29  ;;  %v3788_v14 = vrot.slane %v12892_v38, %v17150_v26  ;;  %v3780_v56 = vrot.slane %v12892_v38, %v17147_v34  ;;  %v3784_v62 = vrot.slane %v12892_v38, %v17194_v59 }
0x18d9   : > { %v3792_v9 = vrot.slane %v12892_v38, %v17148_v39  ;;  %v3796_v45 = vrot.slane %v12892_v38, %v13683_v0  ;;  %v3800_v5 = vrot.slane %v12892_v38, %v17137_v3 }
0x18da   : > { %v3813_v4 = vmul.f32 %v12876_v58, %v3776_v48  ;;  %v3814_v2 = vmul.f32 %v12878_v30, %v3780_v56  ;;  %v3815_v32 = vmul.f32 %v12880_v33, %v3784_v62  ;;  %v3816_v13 = vmul.f32 %v12882_v25, %v3788_v14  ;;  %v3869_v25 = vpop.permute.xlu1 %3868  ;;  %v3876_v14 = vpop.permute.xlu0 %3875 }
0x18db   : > { %v3817_v6 = vmul.f32 %v12884_v28, %v3792_v9  ;;  %v3818_v59 = vmul.f32 %v12886_v47, %v3796_v45  ;;  %v3804_v58 = vrot.slane %v12892_v38, %v13769_v15  ;;  %v3819_v30 = vmul.f32 %v12888_v55, %v3800_v5 }
0x18dc   : > { %v3885_v8 = vmul.f32 %v3827_v7, %v3813_v4  ;;  %v3886_v54 = vmul.f32 %v3834_v52, %v3814_v2  ;;  %v3887_v22 = vmul.f32 %v3841_v1, %v3815_v32  ;;  %v3888_v41 = vmul.f32 %v3848_v49, %v3816_v13 }
0x18dd   : > { %v3889_v33 = vmul.f32 %v3855_v17, %v3817_v6  ;;  %v3890_v7 = vmul.f32 %v3862_v60, %v3818_v59  ;;  %v3820_v48 = vmul.f32 %v12890_v27, %v3804_v58  ;;  %v3891_v52 = vmul.f32 %v3869_v25, %v3819_v30 }
0x18de   : > { %3902 = vperm.xlu1 %12697, %v3885_v8   ;;  %3905 = vperm.xlu0 %12698, %v3886_v54  }
0x18df   : > { %v3892_v56 = vmul.f32 %v3876_v14, %v3820_v48 }
0x18e2   : > { %3908 = vperm.xlu1 %12697, %v3887_v22   ;;  %3911 = vperm.xlu0 %12698, %v3888_v41  }
0x18e6   : > { %3914 = vperm.xlu1 %12697, %v3889_v33   ;;  %3917 = vperm.xlu0 %12698, %v3890_v7  }
0x18ea   : > { %3920 = vperm.xlu1 %12697, %v3891_v52   ;;  %3923 = vperm.xlu0 %12698, %v3892_v56  }
0x18ee   : > { %3965 = vrot.lane.b32.xlu1 %v14624_v21, %s13369_s18 }
0x195d   : > { %v3903_v28 = vpop.permute.xlu1 %3902  ;;  %v3906_v47 = vpop.permute.xlu0 %3905 }
0x195e   : > { %v3928_v1 = vrot.slane %v3903_v28, %v17145_v57  ;;  %v3932_v41 = vrot.slane %v3906_v47, %v17145_v57 }
0x1960   : > { %v3957_v38 = vsel %vm1185_vm2, %v3932_v41, %v3928_v1 }
0x1961   : > { %v3909_v55 = vpop.permute.xlu1 %3908  ;;  %v3912_v27 = vpop.permute.xlu0 %3911 }
0x1962   : > { %v3936_v17 = vrot.slane %v3909_v55, %v17145_v57  ;;  %v3940_v59 = vrot.slane %v3912_v27, %v17145_v57 }
0x1964   : > { %v3958_v62 = vsel %vm1187_vm3, %v3936_v17, %v3957_v38 }
0x1965   : > { %v3915_v4 = vpop.permute.xlu1 %3914  ;;  %v3918_v2 = vpop.permute.xlu0 %3917  ;;  %v3959_v8 = vsel %vm1189_vm4, %v3940_v59, %v3958_v62 }
0x1966   : > { %v3944_v49 = vrot.slane %v3915_v4, %v17145_v57  ;;  %v3948_v32 = vrot.slane %v3918_v2, %v17145_v57 }
0x1968   : > { %v3960_v9 = vsel %vm1191_vm5, %v3944_v49, %v3959_v8 }
0x1969   : > { %v3921_v13 = vpop.permute.xlu1 %3920  ;;  %v3924_v54 = vpop.permute.xlu0 %3923  ;;  %v3961_v60 = vsel %vm1193_vm6, %v3948_v32, %v3960_v9 }
0x196a   : > { %v3952_v45 = vrot.slane %v3921_v13, %v17145_v57  ;;  %v3956_v5 = vrot.slane %v3924_v54, %v17145_v57 }
0x196c   : > { %v3962_v22 = vsel %vm1195_vm7, %v3952_v45, %v3961_v60 }
0x196d   : > { %v3966_v6 = vpop.permute.xlu1 %3965  ;;  %v3963_v58 = vsel %vm1197_vm8, %v3956_v5, %v3962_v22 }
0x196e   : > { %v3968_v30 = vsel %vm1200_vm9, %v3963_v58, %v3966_v6 }
0x196f   : > { %12002 = vmatmul.mubr.msk.f32.vlgmr.msra.gmra.mrb[8].mxu1 %vm1411_vm11, %v3968_v30 }
0x1970   : > { %12468 = vmatpush3.bf16.msra.mxu1 %v17153_v11  ;;  %12020 = vmatprep.mubr.msk.f32.mxu1 %vm13363_vm0, %v17152_v63 }
0x1971   : > { %12469 = vmatprep.subr.bf16.mxu1 %v17151_v24 }
0x1974   : > { %12471 = vmatpush3.bf16.msra.mxu1 %v17154_v37 }
0x1975   : > { %12472 = vmatprep.subr.bf16.mxu1 %v17151_v24 }
0x1978   : > { %12474 = vmatpush3.bf16.msra.mxu1 %v17155_v31 }
0x1979   : > { %12475 = vmatprep.subr.bf16.mxu1 %v17151_v24 }
0x197c   : > { %12477 = vmatpush3.bf16.msra.mxu1 %v17156_v53 }
0x197d   : > { %12496 = vmatprep.subr.bf16.mxu1 %v17151_v24 }
0x1a42   : > { %v4038_v33 = vpop.f32.mrb[8].mxu1 }
0x1a43   : > { %v4039_v7 = vadd.f32 %v4038_v33, %v14214_v44  ;;  %v12003_v25 = vpop.f32.mrb[9].mxu1 }
0x1a45   : > { %v11526_v48 = vmul.f32 -1.442695, %v4039_v7 }
0x1a47   : > { %12893 = vpow2.f32 %v11526_v48 }
0x1a51   : > { %v12894_v14 = vpop.eup %12893 }
0x1a52   : > { %v4045_v52 = vadd.f32 1.0, %v12894_v14 }
0x1a54   : > { %12895 = vrcp.f32 %v4045_v52 }
0x1a5e   : > { %v12896_v56 = vpop.eup %12895 }
0x1a5f   : > { %v4048_v28 = vmul.f32 2.0, %v12896_v56  ;;  %v4050_v55 = vmul.f32 %v12896_v56, %v14620_v19 }
0x1a61   : > { %v11527_v47 = vadd.f32 -1.0, %v4048_v28 }
0x1a63   : > { %4052 = vrot.lane.b32.xlu0 %v11527_v47, %s13367_s16 }
0x1ad5   : > { %v4053_v1 = vpop.permute.xlu0 %4052 }
0x1ad6   : > { %v4055_v41 = vmul.f32 %v12896_v56, %v4053_v1 }
0x1ad8   : > { %4057 = vrot.lane.b32.xlu1 %v4055_v41, %s13368_s17 }
0x1b4a   : > { %v4058_v17 = vpop.permute.xlu1 %4057 }
0x1b4b   : > { %v14752_v27 = vadd.f32 %v4058_v17, %v4050_v55 }
0x1b4d   : > { %12897 = vtanh.f32 %v14752_v27 }
0x1b57   : > { %v12898_v38 = vpop.eup %12897 }
0x1b58   : > { %4063 = vrot.lane.b32.xlu0 %v12898_v38, %s13367_s16 }
0x1bca   : > { %v4064_v59 = vpop.permute.xlu0 %4063 }
0x1bcb   : > { %v14756_v62 = vmul.f32 %v12896_v56, %v4064_v59 }
0x1bcd   : > { %4117 = vrot.lane.b32.xlu1 %v14756_v62, %s13368_s17 }
0x1c3f   : > { %v4118_v4 = vpop.permute.xlu1 %4117 }
0x1c40   : > { %v4120_v49 = vsel %vm1575_vm12, %v4118_v4, %v14752_v27 }
0x1c41   : > { %12021 = vmatmul.mubr.msk.f32.vlgmr.msra.gmra.mrb[10].mxu1 %vm17005_vm13, %v4120_v49 }
0x1c42   : > { %12498 = vmatpush3.bf16.msra.mxu1 %v14156_v10  ;;  %12065 = vmatprep.mubr.msk.f32.mxu1 %vm13363_vm0, %v17152_v63 }
0x1c43   : > { %12499 = vmatprep.subr.bf16.mxu1 %v17151_v24 }
0x1c46   : > { %12501 = vmatpush3.bf16.msra.mxu1 %v14168_v18 }
0x1c47   : > { %12063 = vmatprep.subr.mxu1 %v17152_v63 }
0x1c4a   : > { %12064 = vmatpush3.msk.msra.mxu1 %vm1415_vm10, %v14503_v16 }
0x1c4b   : > { %12502 = vmatprep.subr.bf16.mxu1 %v17151_v24 }
0x1d14   : > { %v4190_v19 = vpop.f32.mrb[10].mxu1 }
0x1d15   : > { %v4191_v2 = vadd.f32 %v4190_v19, %v13962_v35  ;;  %v12022_v8 = vpop.f32.mrb[11].mxu1 }
0x1d17   : > { %v4195_v32 = vcombine.high %v4191_v2, %v4191_v2  ;;  %v4202_v9 = vrot.slane %v4191_v2, %v17134_v12 }
0x1d19   : > { %v4209_v13 = vrot.slane %v4195_v32, %v17134_v12  ;;  %v4210_v45 = vcombine.high %v4202_v9, %v4202_v9  ;;  %v4218_v54 = vrot.slane %v4202_v9, %v17134_v12 }
0x1d1b   : > { %v4211_v60 = vcombine.high %v4209_v13, %v4209_v13  ;;  %v4225_v5 = vrot.slane %v4209_v13, %v17134_v12  ;;  %v4232_v22 = vrot.slane %v4210_v45, %v17134_v12  ;;  %v4240_v16 = vcombine.high %v4218_v54, %v4218_v54 }
0x1d1c   : > { %v4247_v6 = vrot.slane %v4218_v54, %v17136_v29 }
0x1d1d   : > { %v4239_v58 = vrot.slane %v4211_v60, %v17134_v12  ;;  %v4241_v30 = vcombine.high %v4225_v5, %v4225_v5  ;;  %v4242_v33 = vcombine.high %v4232_v22, %v4232_v22  ;;  %v4251_v7 = vrot.slane %v4232_v22, %v17136_v29 }
0x1d1e   : > { %v4255_v25 = vrot.slane %v4240_v16, %v17136_v29  ;;  %v4263_v48 = vrot.slane %v4225_v5, %v17136_v29  ;;  %v4284_v14 = vadd.f32 %v4247_v6, %v14040_v40 }
0x1d1f   : > { %v4243_v52 = vcombine.high %v4239_v58, %v4239_v58  ;;  %v4259_v56 = vrot.slane %v4242_v33, %v17136_v29  ;;  %v4271_v28 = vrot.slane %v4241_v30, %v17136_v29  ;;  %v4267_v47 = vrot.slane %v4239_v58, %v17136_v29 }
0x1d20   : > { %v4285_v1 = vadd.f32 %v4251_v7, %v14044_v20  ;;  %v4286_v41 = vadd.f32 %v4255_v25, %v14055_v36  ;;  %12899 = vtanh.f32 %v4284_v14  ;;  %v4288_v17 = vadd.f32 %v4263_v48, %v14065_v42 }
0x1d21   : > { %v4287_v55 = vadd.f32 %v4259_v56, %v14050_v43  ;;  %v4290_v38 = vadd.f32 %v4271_v28, %v14088_v46  ;;  %v4275_v59 = vrot.slane %v4243_v52, %v17136_v29  ;;  %v4289_v4 = vadd.f32 %v4267_v47, %v14075_v23 }
0x1d22   : > { %12901 = vtanh.f32 %v4285_v1  ;;  %v17195_v1 = vld [vmem:[#allocation47_spill] sm:$0xff] }
0x1d23   : > { %12903 = vtanh.f32 %v4286_v41  ;;  %v4291_v49 = vadd.f32 %v4275_v59, %v14085_v50  ;;  %v17196_v41 = vld [vmem:[#allocation52_spill] sm:$0xff] }
0x1d24   : > { %12905 = vtanh.f32 %v4287_v55  ;;  %v17197_v55 = vld [vmem:[#allocation58_spill] sm:$0xff]  ;;  %v17200_v59 = vld [vmem:[#allocation64_spill] sm:$0xff] }
0x1d25   : > { %12907 = vtanh.f32 %v4288_v17  ;;  %v17198_v17 = vld [vmem:[#allocation48_spill] sm:$0xff] }
0x1d26   : > { %12909 = vtanh.f32 %v4290_v38  ;;  %v17199_v38 = vld [vmem:[#allocation53_spill] sm:$0xff] }
0x1d27   : > { %12911 = vtanh.f32 %v4289_v4  ;;  %v17201_v4 = vld [vmem:[#allocation69_spill] sm:$0xff] }
0x1d28   : > { %12913 = vtanh.f32 %v4291_v49 }
0x1d2a   : > { %v12900_v19 = vpop.eup %12899 }
0x1d2b   : > { %v4300_v2 = vmul.f32 %v12900_v19, %v14079_v61 }
0x1d2c   : > { %v12902_v8 = vpop.eup %12901 }
0x1d2d   : > { %v12904_v32 = vpop.eup %12903  ;;  %v4308_v9 = vsel %vm1089_vm1, %v4300_v2, 0.0  ;;  %v4301_v13 = vmul.f32 %v12902_v8, %v14079_v61 }
0x1d2e   : > { %v12906_v45 = vpop.eup %12905  ;;  %4309 = vadd.xlane.f32.xlu0 %v4308_v9  ;;  %v4302_v54 = vmul.f32 %v12904_v32, %v14079_v61 }
0x1d2f   : > { %v12908_v60 = vpop.eup %12907  ;;  %v4311_v5 = vsel %vm1089_vm1, %v4301_v13, 0.0  ;;  %v4303_v58 = vmul.f32 %v12906_v45, %v14079_v61 }
0x1d30   : > { %4312 = vadd.xlane.f32.xlu1 %v4311_v5  ;;  %v4304_v22 = vmul.f32 %v12908_v60, %v14079_v61  ;;  %v12910_v16 = vpop.eup %12909  ;;  %v4314_v6 = vsel %vm1089_vm1, %v4302_v54, 0.0 }
0x1d31   : > { %v12912_v30 = vpop.eup %12911  ;;  %v4306_v7 = vmul.f32 %v12910_v16, %v14079_v61  ;;  %v4317_v25 = vsel %vm1089_vm1, %v4303_v58, 0.0 }
0x1d32   : > { %4315 = vadd.xlane.f32.xlu0 %v4314_v6  ;;  %v4320_v33 = vsel %vm1089_vm1, %v4304_v22, 0.0  ;;  %v4305_v48 = vmul.f32 %v12912_v30, %v14079_v61  ;;  %v12914_v14 = vpop.eup %12913 }
0x1d33   : > { %v4326_v52 = vsel %vm1089_vm1, %v4306_v7, 0.0  ;;  %v4307_v28 = vmul.f32 %v12914_v14, %v14079_v61 }
0x1d34   : > { %4321 = vadd.xlane.f32.xlu1 %v4320_v33  ;;  %v4323_v56 = vsel %vm1089_vm1, %v4305_v48, 0.0 }
0x1d35   : > { %v4329_v47 = vsel %vm1089_vm1, %v4307_v28, 0.0 }
0x1d36   : > { %4318 = vadd.xlane.f32.xlu0 %v4317_v25 }
0x1d38   : > { %4327 = vadd.xlane.f32.xlu1 %v4326_v52 }
0x1d3a   : > { %4324 = vadd.xlane.f32.xlu0 %v4323_v56 }
0x1d3e   : > { %4330 = vadd.xlane.f32.xlu0 %v4329_v47 }
0x1d49   : > { %4469 = vbcast.lane.b32.xlu1 %v17195_v1, 256 }
0x1d4d   : > { %4476 = vbcast.lane.b32.xlu1 %v17196_v41, 256 }
0x1d51   : > { %4490 = vbcast.lane.b32.xlu1 %v17197_v55, 256 }
0x1d54   : > { %4462 = vbcast.lane.b32.xlu0 %v17198_v17, 256 }
0x1d58   : > { %4483 = vbcast.lane.b32.xlu0 %v17199_v38, 256 }
0x1d5c   : > { %4497 = vbcast.lane.b32.xlu0 %v17200_v59, 256 }
0x1d60   : > { %4511 = vbcast.lane.b32.xlu0 %v17201_v4, 256 }
0x1dbb   : > { %v4310_v49 = vpop.xlane.xlu0 %4309 }
0x1dbc   : > { %v4332_v19 = vadd.f32 %v4310_v49, %v14115_v51 }
0x1dbd   : > { %v4313_v2 = vpop.xlane.xlu1 %4312 }
0x1dbe   : > { %v4340_v8 = vmul.f32 1.442695, %v4332_v19  ;;  %v4333_v32 = vadd.f32 %v4313_v2, %v14115_v51 }
0x1dbf   : > { %v4316_v9 = vpop.xlane.xlu0 %4315 }
0x1dc0   : > { %v4342_v13 = vmul.f32 1.442695, %v4333_v32  ;;  %v4334_v45 = vadd.f32 %v4316_v9, %v14115_v51  ;;  %12915 = vpow2.f32 %v4340_v8 }
0x1dc1   : > { %v4322_v54 = vpop.xlane.xlu1 %4321 }
0x1dc2   : > { %12917 = vpow2.f32 %v4342_v13  ;;  %v4344_v60 = vmul.f32 1.442695, %v4334_v45  ;;  %v4336_v5 = vadd.f32 %v4322_v54, %v14115_v51 }
0x1dc3   : > { %v4319_v22 = vpop.xlane.xlu0 %4318 }
0x1dc4   : > { %12919 = vpow2.f32 %v4344_v60  ;;  %v4335_v16 = vadd.f32 %v4319_v22, %v14115_v51  ;;  %v4348_v6 = vmul.f32 1.442695, %v4336_v5 }
0x1dc5   : > { %v4328_v58 = vpop.xlane.xlu1 %4327 }
0x1dc6   : > { %v4346_v30 = vmul.f32 1.442695, %v4335_v16  ;;  %v4338_v33 = vadd.f32 %v4328_v58, %v14115_v51 }
0x1dc7   : > { %v4325_v7 = vpop.xlane.xlu0 %4324 }
0x1dc8   : > { %12921 = vpow2.f32 %v4346_v30  ;;  %v4337_v25 = vadd.f32 %v4325_v7, %v14115_v51  ;;  %v4352_v48 = vmul.f32 1.442695, %v4338_v33  ;;  %v17202_v33 = vld [vmem:[#allocation68_spill] sm:$0xff] }
0x1dc9   : > { %12923 = vpow2.f32 %v4348_v6  ;;  %v4470_v7 = vpop.permute.xlu1 %4469 }
0x1dca   : > { %v4350_v14 = vmul.f32 1.442695, %v4337_v25  ;;  %v12916_v52 = vpop.eup %12915 }
0x1dcb   : > { %v4331_v56 = vpop.xlane.xlu0 %4330  ;;  %v4367_v17 = vrot.slane %v12916_v52, %v17145_v57 }
0x1dcc   : > { %v12918_v28 = vpop.eup %12917  ;;  %12925 = vpow2.f32 %v4350_v14  ;;  %v4339_v47 = vadd.f32 %v4331_v56, %v14115_v51 }
0x1dcd   : > { %v4371_v1 = vrot.slane %v12918_v28, %v17145_v57  ;;  %12927 = vpow2.f32 %v4352_v48  ;;  %v4477_v25 = vpop.permute.xlu1 %4476 }
0x1dce   : > { %v12920_v41 = vpop.eup %12919  ;;  %v4354_v55 = vmul.f32 1.442695, %v4339_v47 }
0x1dcf   : > { %v4375_v38 = vrot.slane %v12920_v41, %v17145_v57  ;;  %v4396_v59 = vsel %vm1185_vm2, %v4371_v1, %v4367_v17  ;;  %v4463_v56 = vpop.permute.xlu0 %4462 }
0x1dd0   : > { %12929 = vpow2.f32 %v4354_v55 }
0x1dd1   : > { %v4397_v2 = vsel %vm1187_vm3, %v4375_v38, %v4396_v59  ;;  %v4491_v48 = vpop.permute.xlu1 %4490  ;;  %v17203_v38 = vld [vmem:[#allocation16_spill] sm:$0xff] }
0x1dd2   : > { %v12922_v4 = vpop.eup %12921 }
0x1dd3   : > { %v12924_v49 = vpop.eup %12923  ;;  %v4379_v19 = vrot.slane %v12922_v4, %v17145_v57 }
0x1dd4   : > { %v4383_v9 = vrot.slane %v12924_v49, %v17145_v57 }
0x1dd5   : > { %v4398_v8 = vsel %vm1189_vm4, %v4379_v19, %v4397_v2  ;;  %v4484_v2 = vpop.permute.xlu0 %4483 }
0x1dd6   : > { %v12926_v32 = vpop.eup %12925  ;;  %v4399_v54 = vsel %vm1191_vm5, %v4383_v9, %v4398_v8 }
0x1dd7   : > { %v12928_v13 = vpop.eup %12927  ;;  %v4387_v45 = vrot.slane %v12926_v32, %v17145_v57 }
0x1dd8   : > { %v4391_v22 = vrot.slane %v12928_v13, %v17145_v57 }
0x1dd9   : > { %v4400_v60 = vsel %vm1193_vm6, %v4387_v45, %v4399_v54 }
0x1dda   : > { %v12930_v5 = vpop.eup %12929  ;;  %v4401_v6 = vsel %vm1195_vm7, %v4391_v22, %v4400_v60 }
0x1ddb   : > { %v4395_v16 = vrot.slane %v12930_v5, %v17145_v57 }
0x1ddd   : > { %v4402_v58 = vsel %vm1197_vm8, %v4395_v16, %v4401_v6  ;;  %v4498_v6 = vpop.permute.xlu0 %4497 }
0x1dde   : > { %v4404_v30 = vsel %vm1200_vm9, %v4402_v58, 0.0 }
0x1ddf   : > { %4405 = vadd.xlane.f32.xlu1 %v4404_v30 }
0x1df0   : > { %4504 = vbcast.lane.b32.xlu1 %v17202_v33, 256 }
0x1e6c   : > { %v4406_v14 = vpop.xlane.xlu1 %4405 }
0x1e6d   : > { %12931 = vrcp.f32 %v4406_v14 }
0x1e77   : > { %v12932_v47 = vpop.eup %12931 }
0x1e78   : > { %v4412_v1 = vrot.slane %v12932_v47, %v17136_v29  ;;  %v4424_v55 = vrot.slane %v12932_v47, %v17150_v26  ;;  %v4416_v17 = vrot.slane %v12932_v47, %v17147_v34  ;;  %v4420_v59 = vrot.slane %v12932_v47, %v17203_v38 }
0x1e79   : > { %v4428_v54 = vrot.slane %v12932_v47, %v17148_v39  ;;  %v4432_v22 = vrot.slane %v12932_v47, %v13683_v0  ;;  %v4436_v58 = vrot.slane %v12932_v47, %v17137_v3 }
0x1e7a   : > { %v4449_v19 = vmul.f32 %v12916_v52, %v4412_v1  ;;  %v4450_v8 = vmul.f32 %v12918_v28, %v4416_v17  ;;  %v4451_v45 = vmul.f32 %v12920_v41, %v4420_v59  ;;  %v4452_v60 = vmul.f32 %v12922_v4, %v4424_v55  ;;  %v4505_v4 = vpop.permute.xlu1 %4504  ;;  %v4512_v55 = vpop.permute.xlu0 %4511 }
0x1e7b   : > { %v4453_v33 = vmul.f32 %v12924_v49, %v4428_v54  ;;  %v4454_v21 = vmul.f32 %v12926_v32, %v4432_v22  ;;  %v4440_v52 = vrot.slane %v12932_v47, %v13769_v15  ;;  %v4455_v28 = vmul.f32 %v12928_v13, %v4436_v58 }
0x1e7c   : > { %v4521_v9 = vmul.f32 %v4463_v56, %v4449_v19  ;;  %v4522_v16 = vmul.f32 %v4470_v7, %v4450_v8  ;;  %v4523_v30 = vmul.f32 %v4477_v25, %v4451_v45  ;;  %v4524_v14 = vmul.f32 %v4484_v2, %v4452_v60 }
0x1e7d   : > { %v4525_v41 = vmul.f32 %v4491_v48, %v4453_v33  ;;  %v4526_v56 = vmul.f32 %v4498_v6, %v4454_v21  ;;  %v4456_v1 = vmul.f32 %v12930_v5, %v4440_v52  ;;  %v4527_v7 = vmul.f32 %v4505_v4, %v4455_v28 }
0x1e7e   : > { %4538 = vperm.xlu1 %12697, %v4521_v9   ;;  %4541 = vperm.xlu0 %12698, %v4522_v16  }
0x1e7f   : > { %v4528_v17 = vmul.f32 %v4512_v55, %v4456_v1 }
0x1e82   : > { %4544 = vperm.xlu1 %12697, %v4523_v30   ;;  %4547 = vperm.xlu0 %12698, %v4524_v14  }
0x1e86   : > { %4550 = vperm.xlu1 %12697, %v4525_v41   ;;  %4553 = vperm.xlu0 %12698, %v4526_v56  }
0x1e8a   : > { %4556 = vperm.xlu1 %12697, %v4527_v7   ;;  %4559 = vperm.xlu0 %12698, %v4528_v17  }
0x1e8e   : > { %4601 = vrot.lane.b32.xlu1 %v14756_v62, %s13369_s18 }
0x1efd   : > { %v4539_v49 = vpop.permute.xlu1 %4538  ;;  %v4542_v32 = vpop.permute.xlu0 %4541 }
0x1efe   : > { %v4564_v25 = vrot.slane %v4539_v49, %v17145_v57  ;;  %v4568_v13 = vrot.slane %v4542_v32, %v17145_v57 }
0x1f00   : > { %v4593_v47 = vsel %vm1185_vm2, %v4568_v13, %v4564_v25 }
0x1f01   : > { %v4545_v48 = vpop.permute.xlu1 %4544  ;;  %v4548_v5 = vpop.permute.xlu0 %4547 }
0x1f02   : > { %v4572_v21 = vrot.slane %v4545_v48, %v17145_v57  ;;  %v4576_v59 = vrot.slane %v4548_v5, %v17145_v57 }
0x1f04   : > { %v4594_v19 = vsel %vm1187_vm3, %v4572_v21, %v4593_v47 }
0x1f05   : > { %v4551_v2 = vpop.permute.xlu1 %4550  ;;  %v4554_v9 = vpop.permute.xlu0 %4553  ;;  %v4595_v45 = vsel %vm1189_vm4, %v4576_v59, %v4594_v19 }
0x1f06   : > { %v4580_v8 = vrot.slane %v4551_v2, %v17145_v57  ;;  %v4584_v54 = vrot.slane %v4554_v9, %v17145_v57 }
0x1f08   : > { %v4596_v60 = vsel %vm1191_vm5, %v4580_v8, %v4595_v45 }
0x1f09   : > { %v4557_v22 = vpop.permute.xlu1 %4556  ;;  %v4560_v6 = vpop.permute.xlu0 %4559  ;;  %v4597_v58 = vsel %vm1193_vm6, %v4584_v54, %v4596_v60 }
0x1f0a   : > { %v4588_v16 = vrot.slane %v4557_v22, %v17145_v57  ;;  %v4592_v30 = vrot.slane %v4560_v6, %v17145_v57 }
0x1f0c   : > { %v4598_v33 = vsel %vm1195_vm7, %v4588_v16, %v4597_v58 }
0x1f0d   : > { %v4602_v14 = vpop.permute.xlu1 %4601  ;;  %v4599_v52 = vsel %vm1197_vm8, %v4592_v30, %v4598_v33 }
0x1f0e   : > { %v4604_v28 = vsel %vm1200_vm9, %v4599_v52, %v4602_v14 }
0x1f0f   : > { %12034 = vmatmul.mubr.msk.f32.vlgmr.msra.gmra.mrb[10].mxu0 %vm1411_vm11, %v4604_v28 }
0x1f10   : > { %12486 = vmatpush3.bf16.msra.mxu0 %v17153_v11  ;;  %12052 = vmatprep.mubr.msk.f32.mxu0 %vm13363_vm0, %v17152_v63 }
0x1f11   : > { %12487 = vmatprep.subr.bf16.mxu0 %v17151_v24 }
0x1f14   : > { %12489 = vmatpush3.bf16.msra.mxu0 %v17154_v37 }
0x1f15   : > { %12490 = vmatprep.subr.bf16.mxu0 %v17151_v24 }
0x1f18   : > { %12492 = vmatpush3.bf16.msra.mxu0 %v17155_v31 }
0x1f19   : > { %12493 = vmatprep.subr.bf16.mxu0 %v17151_v24 }
0x1f1c   : > { %12495 = vmatpush3.bf16.msra.mxu0 %v17156_v53 }
0x1f1d   : > { %12514 = vmatprep.subr.bf16.mxu0 %v17151_v24 }
0x1fe2   : > { %v4674_v41 = vpop.f32.mrb[10].mxu0 }
0x1fe3   : > { %v4675_v56 = vadd.f32 %v4674_v41, %v14214_v44  ;;  %v12035_v4 = vpop.f32.mrb[11].mxu0 }
0x1fe5   : > { %v11531_v1 = vmul.f32 -1.442695, %v4675_v56 }
0x1fe7   : > { %12933 = vpow2.f32 %v11531_v1 }
0x1ff1   : > { %v12934_v55 = vpop.eup %12933 }
0x1ff2   : > { %v4681_v7 = vadd.f32 1.0, %v12934_v55 }
0x1ff4   : > { %12935 = vrcp.f32 %v4681_v7 }
0x1ffe   : > { %v12936_v17 = vpop.eup %12935 }
0x1fff   : > { %v4684_v49 = vmul.f32 2.0, %v12936_v17  ;;  %v4686_v48 = vmul.f32 %v12936_v17, %v14752_v27  ;;  %v13340_v27 = vld [vmem:[%s16899_s3 + $0x20] sm:$0xf] }
0x2001   : > { %v11532_v32 = vadd.f32 -1.0, %v4684_v49 }
0x2003   : > { %4688 = vrot.lane.b32.xlu0 %v11532_v32, %s13367_s16 }
0x2075   : > { %v4689_v25 = vpop.permute.xlu0 %4688 }
0x2076   : > { %v4691_v13 = vmul.f32 %v12936_v17, %v4689_v25 }
0x2078   : > { %4693 = vrot.lane.b32.xlu1 %v4691_v13, %s13368_s17 }
0x20ea   : > { %v4694_v21 = vpop.permute.xlu1 %4693 }
0x20eb   : > { %v14884_v5 = vadd.f32 %v4694_v21, %v4686_v48 }
0x20ed   : > { %12937 = vtanh.f32 %v14884_v5 }
0x20f7   : > { %v12938_v47 = vpop.eup %12937 }
0x20f8   : > { %4699 = vrot.lane.b32.xlu0 %v12938_v47, %s13367_s16 }
0x216a   : > { %v4700_v59 = vpop.permute.xlu0 %4699 }
0x216b   : > { %v14888_v19 = vmul.f32 %v12936_v17, %v4700_v59 }
0x216d   : > { %4753 = vrot.lane.b32.xlu1 %v14888_v19, %s13368_s17 }
0x21df   : > { %v4754_v2 = vpop.permute.xlu1 %4753 }
0x21e0   : > { %v4756_v8 = vsel %vm1575_vm12, %v4754_v2, %v14884_v5 }
0x21e1   : > { %12053 = vmatmul.mubr.msk.f32.vlgmr.msra.gmra.mrb[12].mxu0 %vm17005_vm13, %v4756_v8 }
0x21e2   : > { %12516 = vmatpush3.bf16.msra.mxu0 %v14156_v10  ;;  %12097 = vmatprep.mubr.msk.f32.mxu0 %vm13363_vm0, %v17152_v63 }
0x21e3   : > { %12517 = vmatprep.subr.bf16.mxu0 %v17151_v24 }
0x21e6   : > { %12519 = vmatpush3.bf16.msra.mxu0 %v14168_v18 }
0x21e7   : > { %12095 = vmatprep.subr.mxu0 %v17152_v63 }
0x21ea   : > { %12096 = vmatpush3.msk.msra.mxu0 %vm1415_vm10, %v13340_v27 }
0x22b4   : > { %v4826_v9 = vpop.f32.mrb[12].mxu0 }
0x22b5   : > { %v4827_v45 = vadd.f32 %v4826_v9, %v13962_v35  ;;  %v12054_v54 = vpop.f32.mrb[13].mxu0 }
0x22b7   : > { %v4831_v10 = vcombine.high %v4827_v45, %v4827_v45  ;;  %v4838_v60 = vrot.slane %v4827_v45, %v17134_v12 }
0x22b9   : > { %v4845_v22 = vrot.slane %v4831_v10, %v17134_v12  ;;  %v4846_v16 = vcombine.high %v4838_v60, %v4838_v60  ;;  %v4854_v18 = vrot.slane %v4838_v60, %v17134_v12 }
0x22bb   : > { %v4847_v6 = vcombine.high %v4845_v22, %v4845_v22  ;;  %v4861_v58 = vrot.slane %v4845_v22, %v17134_v12  ;;  %v4868_v30 = vrot.slane %v4846_v16, %v17134_v12  ;;  %v4876_v33 = vcombine.high %v4854_v18, %v4854_v18 }
0x22bc   : > { %v4883_v14 = vrot.slane %v4854_v18, %v17136_v29 }
0x22bd   : > { %v4875_v52 = vrot.slane %v4847_v6, %v17134_v12  ;;  %v4877_v28 = vcombine.high %v4861_v58, %v4861_v58  ;;  %v4878_v41 = vcombine.high %v4868_v30, %v4868_v30  ;;  %v4887_v56 = vrot.slane %v4868_v30, %v17136_v29 }
0x22be   : > { %v4891_v4 = vrot.slane %v4876_v33, %v17136_v29  ;;  %v4899_v1 = vrot.slane %v4861_v58, %v17136_v29  ;;  %v4920_v55 = vadd.f32 %v4883_v14, %v14040_v40 }
0x22bf   : > { %v4879_v7 = vcombine.high %v4875_v52, %v4875_v52  ;;  %v4895_v17 = vrot.slane %v4878_v41, %v17136_v29  ;;  %v4907_v49 = vrot.slane %v4877_v28, %v17136_v29  ;;  %v4903_v32 = vrot.slane %v4875_v52, %v17136_v29 }
0x22c0   : > { %v4921_v25 = vadd.f32 %v4887_v56, %v14044_v20  ;;  %v4922_v13 = vadd.f32 %v4891_v4, %v14055_v36  ;;  %12939 = vtanh.f32 %v4920_v55  ;;  %v4924_v21 = vadd.f32 %v4899_v1, %v14065_v42 }
0x22c1   : > { %v4923_v48 = vadd.f32 %v4895_v17, %v14050_v43  ;;  %v4926_v47 = vadd.f32 %v4907_v49, %v14088_v46  ;;  %v4911_v59 = vrot.slane %v4879_v7, %v17136_v29  ;;  %v4925_v2 = vadd.f32 %v4903_v32, %v14075_v23  ;;  %v17204_v32 = vld [vmem:[#allocation56_spill] sm:$0xff] }
0x22c2   : > { %12941 = vtanh.f32 %v4921_v25  ;;  %v17205_v25 = vld [vmem:[#allocation61_spill] sm:$0xff] }
0x22c3   : > { %12943 = vtanh.f32 %v4922_v13  ;;  %v4927_v8 = vadd.f32 %v4911_v59, %v14085_v50  ;;  %v17206_v13 = vld [vmem:[#allocation67_spill] sm:$0xff]  ;;  %v17210_v59 = vld [vmem:[#allocation76_spill] sm:$0xff] }
0x22c4   : > { %12945 = vtanh.f32 %v4923_v48  ;;  %v17207_v48 = vld [vmem:[#allocation57_spill] sm:$0xff] }
0x22c5   : > { %12947 = vtanh.f32 %v4924_v21  ;;  %v17208_v21 = vld [vmem:[#allocation62_spill] sm:$0xff] }
0x22c6   : > { %12949 = vtanh.f32 %v4926_v47  ;;  %v17209_v47 = vld [vmem:[#allocation72_spill] sm:$0xff] }
0x22c7   : > { %12951 = vtanh.f32 %v4925_v2 }
0x22c8   : > { %12953 = vtanh.f32 %v4927_v8 }
0x22ca   : > { %v12940_v27 = vpop.eup %12939 }
0x22cb   : > { %v4936_v9 = vmul.f32 %v12940_v27, %v14079_v61 }
0x22cc   : > { %v12942_v45 = vpop.eup %12941 }
0x22cd   : > { %v12944_v54 = vpop.eup %12943  ;;  %v4944_v10 = vsel %vm1089_vm1, %v4936_v9, 0.0  ;;  %v4937_v60 = vmul.f32 %v12942_v45, %v14079_v61 }
0x22ce   : > { %v12946_v22 = vpop.eup %12945  ;;  %4945 = vadd.xlane.f32.xlu0 %v4944_v10  ;;  %v4938_v16 = vmul.f32 %v12944_v54, %v14079_v61 }
0x22cf   : > { %v12948_v18 = vpop.eup %12947  ;;  %v4947_v6 = vsel %vm1089_vm1, %v4937_v60, 0.0  ;;  %v4939_v14 = vmul.f32 %v12946_v22, %v14079_v61 }
0x22d0   : > { %4948 = vadd.xlane.f32.xlu1 %v4947_v6  ;;  %v4940_v58 = vmul.f32 %v12948_v18, %v14079_v61  ;;  %v12950_v30 = vpop.eup %12949  ;;  %v4950_v33 = vsel %vm1089_vm1, %v4938_v16, 0.0 }
0x22d1   : > { %v12952_v52 = vpop.eup %12951  ;;  %v4942_v41 = vmul.f32 %v12950_v30, %v14079_v61  ;;  %v4953_v56 = vsel %vm1089_vm1, %v4939_v14, 0.0 }
0x22d2   : > { %4951 = vadd.xlane.f32.xlu0 %v4950_v33  ;;  %v4956_v28 = vsel %vm1089_vm1, %v4940_v58, 0.0  ;;  %v4941_v4 = vmul.f32 %v12952_v52, %v14079_v61  ;;  %v12954_v1 = vpop.eup %12953 }
0x22d3   : > { %v4962_v55 = vsel %vm1089_vm1, %v4942_v41, 0.0  ;;  %v4943_v17 = vmul.f32 %v12954_v1, %v14079_v61 }
0x22d4   : > { %4957 = vadd.xlane.f32.xlu1 %v4956_v28  ;;  %v4959_v7 = vsel %vm1089_vm1, %v4941_v4, 0.0 }
0x22d5   : > { %v4965_v49 = vsel %vm1089_vm1, %v4943_v17, 0.0 }
0x22d6   : > { %4954 = vadd.xlane.f32.xlu0 %v4953_v56 }
0x22d8   : > { %4963 = vadd.xlane.f32.xlu1 %v4962_v55 }
0x22da   : > { %4960 = vadd.xlane.f32.xlu0 %v4959_v7 }
0x22de   : > { %4966 = vadd.xlane.f32.xlu0 %v4965_v49 }
0x22e9   : > { %5105 = vbcast.lane.b32.xlu1 %v17204_v32, 256 }
0x22ed   : > { %5112 = vbcast.lane.b32.xlu1 %v17205_v25, 256 }
0x22f1   : > { %5126 = vbcast.lane.b32.xlu1 %v17206_v13, 256 }
0x22f4   : > { %5098 = vbcast.lane.b32.xlu0 %v17207_v48, 256 }
0x22f8   : > { %5119 = vbcast.lane.b32.xlu0 %v17208_v21, 256 }
0x22fc   : > { %5133 = vbcast.lane.b32.xlu0 %v17209_v47, 256 }
0x2300   : > { %5147 = vbcast.lane.b32.xlu0 %v17210_v59, 256 }
0x235b   : > { %v4946_v2 = vpop.xlane.xlu0 %4945 }
0x235c   : > { %v4968_v8 = vadd.f32 %v4946_v2, %v14115_v51 }
0x235d   : > { %v4949_v27 = vpop.xlane.xlu1 %4948 }
0x235e   : > { %v4976_v9 = vmul.f32 1.442695, %v4968_v8  ;;  %v4969_v45 = vadd.f32 %v4949_v27, %v14115_v51 }
0x235f   : > { %v4952_v54 = vpop.xlane.xlu0 %4951 }
0x2360   : > { %v4978_v10 = vmul.f32 1.442695, %v4969_v45  ;;  %v4970_v60 = vadd.f32 %v4952_v54, %v14115_v51  ;;  %12955 = vpow2.f32 %v4976_v9 }
0x2361   : > { %v4958_v22 = vpop.xlane.xlu1 %4957 }
0x2362   : > { %12957 = vpow2.f32 %v4978_v10  ;;  %v4980_v16 = vmul.f32 1.442695, %v4970_v60  ;;  %v4972_v18 = vadd.f32 %v4958_v22, %v14115_v51 }
0x2363   : > { %v4955_v6 = vpop.xlane.xlu0 %4954 }
0x2364   : > { %12959 = vpow2.f32 %v4980_v16  ;;  %v4971_v58 = vadd.f32 %v4955_v6, %v14115_v51  ;;  %v4984_v30 = vmul.f32 1.442695, %v4972_v18 }
0x2365   : > { %v4964_v33 = vpop.xlane.xlu1 %4963 }
0x2366   : > { %v4982_v14 = vmul.f32 1.442695, %v4971_v58  ;;  %v4974_v52 = vadd.f32 %v4964_v33, %v14115_v51 }
0x2367   : > { %v4961_v28 = vpop.xlane.xlu0 %4960 }
0x2368   : > { %12961 = vpow2.f32 %v4982_v14  ;;  %v4973_v41 = vadd.f32 %v4961_v28, %v14115_v51  ;;  %v4988_v56 = vmul.f32 1.442695, %v4974_v52  ;;  %v17211_v14 = vld [vmem:[#allocation74_spill] sm:$0xff] }
0x2369   : > { %12963 = vpow2.f32 %v4984_v30  ;;  %v5106_v52 = vpop.permute.xlu1 %5105 }
0x236a   : > { %v4986_v4 = vmul.f32 1.442695, %v4973_v41  ;;  %v12956_v1 = vpop.eup %12955 }
0x236b   : > { %v4967_v55 = vpop.xlane.xlu0 %4966  ;;  %v5003_v13 = vrot.slane %v12956_v1, %v17145_v57 }
0x236c   : > { %v12958_v7 = vpop.eup %12957  ;;  %12965 = vpow2.f32 %v4986_v4  ;;  %v4975_v17 = vadd.f32 %v4967_v55, %v14115_v51 }
0x236d   : > { %v5007_v49 = vrot.slane %v12958_v7, %v17145_v57  ;;  %12967 = vpow2.f32 %v4988_v56  ;;  %v5113_v28 = vpop.permute.xlu1 %5112 }
0x236e   : > { %v12960_v32 = vpop.eup %12959  ;;  %v4990_v25 = vmul.f32 1.442695, %v4975_v17 }
0x236f   : > { %v5011_v48 = vrot.slane %v12960_v32, %v17145_v57  ;;  %v5032_v21 = vsel %vm1185_vm2, %v5007_v49, %v5003_v13  ;;  %v5099_v4 = vpop.permute.xlu0 %5098 }
0x2370   : > { %12969 = vpow2.f32 %v4990_v25 }
0x2371   : > { %v5033_v8 = vsel %vm1187_vm3, %v5011_v48, %v5032_v21  ;;  %v5127_v41 = vpop.permute.xlu1 %5126 }
0x2372   : > { %v12962_v47 = vpop.eup %12961 }
0x2373   : > { %v12964_v59 = vpop.eup %12963  ;;  %v5015_v2 = vrot.slane %v12962_v47, %v17145_v57  ;;  %v5120_v21 = vpop.permute.xlu0 %5119 }
0x2374   : > { %v5019_v45 = vrot.slane %v12964_v59, %v17145_v57 }
0x2375   : > { %v5034_v27 = vsel %vm1189_vm4, %v5015_v2, %v5033_v8 }
0x2376   : > { %v12966_v9 = vpop.eup %12965  ;;  %v5035_v60 = vsel %vm1191_vm5, %v5019_v45, %v5034_v27 }
0x2377   : > { %v12968_v54 = vpop.eup %12967  ;;  %v5023_v10 = vrot.slane %v12966_v9, %v17145_v57 }
0x2378   : > { %v5027_v18 = vrot.slane %v12968_v54, %v17145_v57 }
0x2379   : > { %v5036_v22 = vsel %vm1193_vm6, %v5023_v10, %v5035_v60 }
0x237a   : > { %v12970_v16 = vpop.eup %12969  ;;  %v5037_v58 = vsel %vm1195_vm7, %v5027_v18, %v5036_v22  ;;  %v5134_v18 = vpop.permute.xlu0 %5133 }
0x237b   : > { %v5031_v6 = vrot.slane %v12970_v16, %v17145_v57 }
0x237d   : > { %v5038_v30 = vsel %vm1197_vm8, %v5031_v6, %v5037_v58 }
0x237e   : > { %v5040_v33 = vsel %vm1200_vm9, %v5038_v30, 0.0 }
0x237f   : > { %5041 = vadd.xlane.f32.xlu1 %v5040_v33 }
0x2390   : > { %5140 = vbcast.lane.b32.xlu1 %v17211_v14, 256 }
0x240c   : > { %v5042_v56 = vpop.xlane.xlu1 %5041 }
0x240d   : > { %12971 = vrcp.f32 %v5042_v56 }
0x2417   : > { %v12972_v55 = vpop.eup %12971 }
0x2418   : > { %v5048_v17 = vrot.slane %v12972_v55, %v17136_v29  ;;  %v5060_v49 = vrot.slane %v12972_v55, %v17150_v26  ;;  %v5052_v25 = vrot.slane %v12972_v55, %v17147_v34  ;;  %v5056_v13 = vrot.slane %v12972_v55, %v17203_v38 }
0x2419   : > { %v5064_v45 = vrot.slane %v12972_v55, %v17148_v39  ;;  %v5068_v60 = vrot.slane %v12972_v55, %v13683_v0  ;;  %v5072_v6 = vrot.slane %v12972_v55, %v17137_v3 }
0x241a   : > { %v5085_v48 = vmul.f32 %v12956_v1, %v5048_v17  ;;  %v5086_v2 = vmul.f32 %v12958_v7, %v5052_v25  ;;  %v5087_v27 = vmul.f32 %v12960_v32, %v5056_v13  ;;  %v5088_v10 = vmul.f32 %v12962_v47, %v5060_v49  ;;  %v5141_v47 = vpop.permute.xlu1 %5140  ;;  %v5148_v17 = vpop.permute.xlu0 %5147 }
0x241b   : > { %v5089_v30 = vmul.f32 %v12964_v59, %v5064_v45  ;;  %v5090_v14 = vmul.f32 %v12966_v9, %v5068_v60  ;;  %v5076_v1 = vrot.slane %v12972_v55, %v13769_v15  ;;  %v5091_v7 = vmul.f32 %v12968_v54, %v5072_v6 }
0x241c   : > { %v5157_v8 = vmul.f32 %v5099_v4, %v5085_v48  ;;  %v5158_v22 = vmul.f32 %v5106_v52, %v5086_v2  ;;  %v5159_v58 = vmul.f32 %v5113_v28, %v5087_v27  ;;  %v5160_v33 = vmul.f32 %v5120_v21, %v5088_v10 }
0x241d   : > { %v5161_v32 = vmul.f32 %v5127_v41, %v5089_v30  ;;  %v5162_v56 = vmul.f32 %v5134_v18, %v5090_v14  ;;  %v5092_v4 = vmul.f32 %v12970_v16, %v5076_v1  ;;  %v5163_v52 = vmul.f32 %v5141_v47, %v5091_v7 }
0x241e   : > { %5174 = vperm.xlu1 %12697, %v5157_v8   ;;  %5177 = vperm.xlu0 %12698, %v5158_v22  }
0x241f   : > { %v5164_v49 = vmul.f32 %v5148_v17, %v5092_v4 }
0x2422   : > { %5180 = vperm.xlu1 %12697, %v5159_v58   ;;  %5183 = vperm.xlu0 %12698, %v5160_v33  }
0x2426   : > { %5186 = vperm.xlu1 %12697, %v5161_v32   ;;  %5189 = vperm.xlu0 %12698, %v5162_v56  }
0x242a   : > { %5192 = vperm.xlu1 %12697, %v5163_v52   ;;  %5195 = vperm.xlu0 %12698, %v5164_v49  }
0x242e   : > { %5237 = vrot.lane.b32.xlu1 %v14888_v19, %s13369_s18 }
0x249d   : > { %v5175_v59 = vpop.permute.xlu1 %5174  ;;  %v5178_v9 = vpop.permute.xlu0 %5177 }
0x249e   : > { %v5200_v28 = vrot.slane %v5175_v59, %v17145_v57  ;;  %v5204_v54 = vrot.slane %v5178_v9, %v17145_v57 }
0x24a0   : > { %v5229_v25 = vsel %vm1185_vm2, %v5204_v54, %v5200_v28 }
0x24a1   : > { %v5181_v41 = vpop.permute.xlu1 %5180  ;;  %v5184_v16 = vpop.permute.xlu0 %5183 }
0x24a2   : > { %v5208_v55 = vrot.slane %v5181_v41, %v17145_v57  ;;  %v5212_v13 = vrot.slane %v5184_v16, %v17145_v57 }
0x24a4   : > { %v5230_v48 = vsel %vm1187_vm3, %v5208_v55, %v5229_v25 }
0x24a5   : > { %v5187_v21 = vpop.permute.xlu1 %5186  ;;  %v5190_v8 = vpop.permute.xlu0 %5189  ;;  %v5231_v27 = vsel %vm1189_vm4, %v5212_v13, %v5230_v48 }
0x24a6   : > { %v5216_v2 = vrot.slane %v5187_v21, %v17145_v57  ;;  %v5220_v45 = vrot.slane %v5190_v8, %v17145_v57 }
0x24a8   : > { %v5232_v10 = vsel %vm1191_vm5, %v5216_v2, %v5231_v27 }
0x24a9   : > { %v5193_v60 = vpop.permute.xlu1 %5192  ;;  %v5196_v18 = vpop.permute.xlu0 %5195  ;;  %v5233_v6 = vsel %vm1193_vm6, %v5220_v45, %v5232_v10 }
0x24aa   : > { %v5224_v22 = vrot.slane %v5193_v60, %v17145_v57  ;;  %v5228_v58 = vrot.slane %v5196_v18, %v17145_v57 }
0x24ac   : > { %v5234_v30 = vsel %vm1195_vm7, %v5224_v22, %v5233_v6 }
0x24ad   : > { %v5238_v33 = vpop.permute.xlu1 %5237  ;;  %v5235_v14 = vsel %vm1197_vm8, %v5228_v58, %v5234_v30 }
0x24ae   : > { %v5240_v1 = vsel %vm1200_vm9, %v5235_v14, %v5238_v33 }
0x24af   : > { %12066 = vmatmul.mubr.msk.f32.vlgmr.msra.gmra.mrb[12].mxu1 %vm1411_vm11, %v5240_v1 }
0x24b0   : > { %12504 = vmatpush3.bf16.msra.mxu1 %v17153_v11  ;;  %12084 = vmatprep.mubr.msk.f32.mxu1 %vm13363_vm0, %v17152_v63 }
0x24b1   : > { %12505 = vmatprep.subr.bf16.mxu1 %v17151_v24 }
0x24b4   : > { %12507 = vmatpush3.bf16.msra.mxu1 %v17154_v37 }
0x24b5   : > { %12508 = vmatprep.subr.bf16.mxu1 %v17151_v24 }
0x24b8   : > { %12510 = vmatpush3.bf16.msra.mxu1 %v17155_v31 }
0x24b9   : > { %12511 = vmatprep.subr.bf16.mxu1 %v17151_v24 }
0x24bc   : > { %12513 = vmatpush3.bf16.msra.mxu1 %v17156_v53 }
0x24bd   : > { %12528 = vmatprep.subr.bf16.mxu1 %v17151_v24 }
0x2582   : > { %v5310_v7 = vpop.f32.mrb[12].mxu1 }
0x2583   : > { %v5311_v11 = vadd.f32 %v5310_v7, %v14214_v44  ;;  %v12067_v32 = vpop.f32.mrb[13].mxu1 }
0x2585   : > { %v11536_v56 = vmul.f32 -1.442695, %v5311_v11 }
0x2587   : > { %12973 = vpow2.f32 %v11536_v56 }
0x2591   : > { %v12974_v47 = vpop.eup %12973 }
0x2592   : > { %v5317_v4 = vadd.f32 1.0, %v12974_v47 }
0x2594   : > { %12975 = vrcp.f32 %v5317_v4 }
0x259e   : > { %v12976_v37 = vpop.eup %12975 }
0x259f   : > { %v5320_v17 = vmul.f32 2.0, %v12976_v37  ;;  %v5322_v53 = vmul.f32 %v12976_v37, %v14884_v5 }
0x25a1   : > { %v11537_v52 = vadd.f32 -1.0, %v5320_v17 }
0x25a3   : > { %5324 = vrot.lane.b32.xlu0 %v11537_v52, %s13367_s16 }
0x2615   : > { %v5325_v31 = vpop.permute.xlu0 %5324 }
0x2616   : > { %v5327_v49 = vmul.f32 %v12976_v37, %v5325_v31 }
0x2618   : > { %5329 = vrot.lane.b32.xlu1 %v5327_v49, %s13368_s17 }
0x268a   : > { %v5330_v59 = vpop.permute.xlu1 %5329 }
0x268b   : > { %v15017_v9 = vadd.f32 %v5330_v59, %v5322_v53 }
0x268d   : > { %12977 = vtanh.f32 %v15017_v9 }
0x2697   : > { %v12978_v28 = vpop.eup %12977 }
0x2698   : > { %5335 = vrot.lane.b32.xlu0 %v12978_v28, %s13367_s16 }
0x270a   : > { %v5336_v54 = vpop.permute.xlu0 %5335 }
0x270b   : > { %v15021_v41 = vmul.f32 %v12976_v37, %v5336_v54 }
0x270d   : > { %5389 = vrot.lane.b32.xlu1 %v15021_v41, %s13368_s17 }
0x277f   : > { %v5390_v55 = vpop.permute.xlu1 %5389 }
0x2780   : > { %v5392_v16 = vsel %vm1575_vm12, %v5390_v55, %v15017_v9 }
0x2781   : > { %12085 = vmatmul.mubr.msk.f32.vlgmr.msra.gmra.mrb[14].mxu1 %vm17005_vm13, %v5392_v16  ;;  %vm6349_vm13 = vcmask 1045504  }
0x2782   : > { %12136 = vmatprep.mubr.msk.f32.mxu1 %vm13363_vm0, %v17152_v63 }
0x2854   : > { %v5462_v5 = vpop.f32.mrb[14].mxu1 }
0x2855   : > { %v5463_v25 = vadd.f32 %v5462_v5, %v13962_v35  ;;  %v12086_v13 = vpop.f32.mrb[15].mxu1 }
0x2857   : > { %v5467_v48 = vcombine.high %v5463_v25, %v5463_v25  ;;  %v5474_v21 = vrot.slane %v5463_v25, %v17134_v12 }
0x2859   : > { %v5481_v2 = vrot.slane %v5467_v48, %v17134_v12  ;;  %v5482_v8 = vcombine.high %v5474_v21, %v5474_v21  ;;  %v5490_v27 = vrot.slane %v5474_v21, %v17134_v12 }
0x285b   : > { %v5483_v45 = vcombine.high %v5481_v2, %v5481_v2  ;;  %v5497_v10 = vrot.slane %v5481_v2, %v17134_v12  ;;  %v5504_v60 = vrot.slane %v5482_v8, %v17134_v12  ;;  %v5512_v22 = vcombine.high %v5490_v27, %v5490_v27 }
0x285c   : > { %v5519_v18 = vrot.slane %v5490_v27, %v17136_v29 }
0x285d   : > { %v5511_v6 = vrot.slane %v5483_v45, %v17134_v12  ;;  %v5513_v35 = vcombine.high %v5497_v10, %v5497_v10  ;;  %v5514_v58 = vcombine.high %v5504_v60, %v5504_v60  ;;  %v5523_v30 = vrot.slane %v5504_v60, %v17136_v29 }
0x285e   : > { %v5527_v33 = vrot.slane %v5512_v22, %v17136_v29  ;;  %v5535_v14 = vrot.slane %v5497_v10, %v17136_v29  ;;  %v5556_v1 = vadd.f32 %v5519_v18, %v14040_v40  ;;  %v17212_v22 = vld [vmem:[#allocation65_spill] sm:$0xff]  ;;  %v17213_v18 = vld [vmem:[#allocation70_spill] sm:$0xff] }
0x285f   : > { %v5515_v7 = vcombine.high %v5511_v6, %v5511_v6  ;;  %v5531_v11 = vrot.slane %v5514_v58, %v17136_v29  ;;  %v5543_v32 = vrot.slane %v5513_v35, %v17136_v29  ;;  %v5539_v56 = vrot.slane %v5511_v6, %v17136_v29  ;;  %v17214_v6 = vld [vmem:[#allocation73_spill] sm:$0xff]  ;;  %v17215_v35 = vld [vmem:[#allocation66_spill] sm:$0xff]  ;;  %v17216_v58 = vld [vmem:[#allocation71_spill] sm:$0xff] }
0x2860   : > { %v5557_v47 = vadd.f32 %v5523_v30, %v14044_v20  ;;  %v5558_v4 = vadd.f32 %v5527_v33, %v14055_v36  ;;  %12979 = vtanh.f32 %v5556_v1  ;;  %v5560_v17 = vadd.f32 %v5535_v14, %v14065_v42  ;;  %v17217_v30 = vld [vmem:[#allocation75_spill] sm:$0xff]  ;;  %v17218_v33 = vld [vmem:[#allocation77_spill] sm:$0xff] }
0x2861   : > { %v5559_v37 = vadd.f32 %v5531_v11, %v14050_v43  ;;  %v5562_v52 = vadd.f32 %v5543_v32, %v14088_v46  ;;  %v5547_v40 = vrot.slane %v5515_v7, %v17136_v29  ;;  %v5561_v31 = vadd.f32 %v5539_v56, %v14075_v23 }
0x2862   : > { %12981 = vtanh.f32 %v5557_v47 }
0x2863   : > { %12983 = vtanh.f32 %v5558_v4  ;;  %v5563_v20 = vadd.f32 %v5547_v40, %v14085_v50 }
0x2864   : > { %12985 = vtanh.f32 %v5559_v37 }
0x2865   : > { %12987 = vtanh.f32 %v5560_v17 }
0x2866   : > { %12989 = vtanh.f32 %v5562_v52 }
0x2867   : > { %12991 = vtanh.f32 %v5561_v31 }
0x2868   : > { %12993 = vtanh.f32 %v5563_v20 }
0x286a   : > { %v12980_v36 = vpop.eup %12979 }
0x286b   : > { %v5572_v49 = vmul.f32 %v12980_v36, %v14079_v61 }
0x286c   : > { %v12982_v43 = vpop.eup %12981 }
0x286d   : > { %v12984_v42 = vpop.eup %12983  ;;  %v5580_v53 = vsel %vm1089_vm1, %v5572_v49, 0.0  ;;  %v5573_v46 = vmul.f32 %v12982_v43, %v14079_v61 }
0x286e   : > { %v12986_v59 = vpop.eup %12985  ;;  %5581 = vadd.xlane.f32.xlu0 %v5580_v53  ;;  %v5574_v23 = vmul.f32 %v12984_v42, %v14079_v61 }
0x286f   : > { %v12988_v28 = vpop.eup %12987  ;;  %v5583_v54 = vsel %vm1089_vm1, %v5573_v46, 0.0  ;;  %v5575_v5 = vmul.f32 %v12986_v59, %v14079_v61 }
0x2870   : > { %5584 = vadd.xlane.f32.xlu1 %v5583_v54  ;;  %v5576_v50 = vmul.f32 %v12988_v28, %v14079_v61  ;;  %v12990_v55 = vpop.eup %12989  ;;  %v5586_v16 = vsel %vm1089_vm1, %v5574_v23, 0.0 }
0x2871   : > { %v12992_v25 = vpop.eup %12991  ;;  %v5578_v48 = vmul.f32 %v12990_v55, %v14079_v61  ;;  %v5589_v21 = vsel %vm1089_vm1, %v5575_v5, 0.0 }
0x2872   : > { %5587 = vadd.xlane.f32.xlu0 %v5586_v16  ;;  %v5592_v13 = vsel %vm1089_vm1, %v5576_v50, 0.0  ;;  %v5577_v2 = vmul.f32 %v12992_v25, %v14079_v61  ;;  %v12994_v8 = vpop.eup %12993 }
0x2873   : > { %v5598_v27 = vsel %vm1089_vm1, %v5578_v48, 0.0  ;;  %v5579_v10 = vmul.f32 %v12994_v8, %v14079_v61 }
0x2874   : > { %5593 = vadd.xlane.f32.xlu1 %v5592_v13  ;;  %v5595_v45 = vsel %vm1089_vm1, %v5577_v2, 0.0 }
0x2875   : > { %v5601_v60 = vsel %vm1089_vm1, %v5579_v10, 0.0  ;;  %vm6323_vm1 = vcmask 1042432  }
0x2876   : > { %5590 = vadd.xlane.f32.xlu0 %v5589_v21 }
0x2878   : > { %5599 = vadd.xlane.f32.xlu1 %v5598_v27 }
0x287a   : > { %5596 = vadd.xlane.f32.xlu0 %v5595_v45 }
0x287e   : > { %5602 = vadd.xlane.f32.xlu0 %v5601_v60 }
0x2889   : > { %5741 = vbcast.lane.b32.xlu1 %v17212_v22, 256 }
0x288d   : > { %5748 = vbcast.lane.b32.xlu1 %v17213_v18, 256 }
0x2891   : > { %5762 = vbcast.lane.b32.xlu1 %v17214_v6, 256 }
0x2894   : > { %5734 = vbcast.lane.b32.xlu0 %v17215_v35, 256 }
0x2898   : > { %5755 = vbcast.lane.b32.xlu0 %v17216_v58, 256 }
0x289c   : > { %5769 = vbcast.lane.b32.xlu0 %v17217_v30, 256 }
0x28a0   : > { %5783 = vbcast.lane.b32.xlu0 %v17218_v33, 256 }
0x28fb   : > { %v5582_v14 = vpop.xlane.xlu0 %5581 }
0x28fc   : > { %v5604_v61 = vadd.f32 %v5582_v14, %v14115_v51 }
0x28fd   : > { %v5585_v1 = vpop.xlane.xlu1 %5584 }
0x28fe   : > { %v5612_v7 = vmul.f32 1.442695, %v5604_v61  ;;  %v5605_v11 = vadd.f32 %v5585_v1, %v14115_v51  ;;  %v17219_v61 = vld [vmem:[#allocation78_spill] sm:$0xff] }
0x28ff   : > { %v5588_v32 = vpop.xlane.xlu0 %5587 }
0x2900   : > { %v5614_v56 = vmul.f32 1.442695, %v5605_v11  ;;  %v5606_v47 = vadd.f32 %v5588_v32, %v14115_v51  ;;  %12995 = vpow2.f32 %v5612_v7 }
0x2901   : > { %v5594_v4 = vpop.xlane.xlu1 %5593 }
0x2902   : > { %12997 = vpow2.f32 %v5614_v56  ;;  %v5616_v37 = vmul.f32 1.442695, %v5606_v47  ;;  %v5608_v17 = vadd.f32 %v5594_v4, %v14115_v51 }
0x2903   : > { %v5591_v52 = vpop.xlane.xlu0 %5590 }
0x2904   : > { %12999 = vpow2.f32 %v5616_v37  ;;  %v5607_v40 = vadd.f32 %v5591_v52, %v14115_v51  ;;  %v5620_v31 = vmul.f32 1.442695, %v5608_v17 }
0x2905   : > { %v5600_v20 = vpop.xlane.xlu1 %5599 }
0x2906   : > { %v5618_v36 = vmul.f32 1.442695, %v5607_v40  ;;  %v5610_v49 = vadd.f32 %v5600_v20, %v14115_v51 }
0x2907   : > { %v5597_v43 = vpop.xlane.xlu0 %5596 }
0x2908   : > { %13001 = vpow2.f32 %v5618_v36  ;;  %v5609_v42 = vadd.f32 %v5597_v43, %v14115_v51  ;;  %v5624_v53 = vmul.f32 1.442695, %v5610_v49 }
0x2909   : > { %13003 = vpow2.f32 %v5620_v31  ;;  %v5742_v1 = vpop.permute.xlu1 %5741 }
0x290a   : > { %v5622_v46 = vmul.f32 1.442695, %v5609_v42  ;;  %v12996_v59 = vpop.eup %12995 }
0x290b   : > { %v5603_v23 = vpop.xlane.xlu0 %5602  ;;  %v5639_v5 = vrot.slane %v12996_v59, %v17145_v57 }
0x290c   : > { %v12998_v28 = vpop.eup %12997  ;;  %13005 = vpow2.f32 %v5622_v46  ;;  %v5611_v54 = vadd.f32 %v5603_v23, %v14115_v51 }
0x290d   : > { %v5643_v50 = vrot.slane %v12998_v28, %v17145_v57  ;;  %13007 = vpow2.f32 %v5624_v53  ;;  %v5749_v7 = vpop.permute.xlu1 %5748 }
0x290e   : > { %v13000_v55 = vpop.eup %12999  ;;  %v5626_v16 = vmul.f32 1.442695, %v5611_v54 }
0x290f   : > { %v5647_v25 = vrot.slane %v13000_v55, %v17145_v57  ;;  %v5668_v13 = vsel %vm1185_vm2, %v5643_v50, %v5639_v5  ;;  %v5735_v56 = vpop.permute.xlu0 %5734 }
0x2910   : > { %13009 = vpow2.f32 %v5626_v16 }
0x2911   : > { %v5669_v8 = vsel %vm1187_vm3, %v5647_v25, %v5668_v13  ;;  %v5763_v11 = vpop.permute.xlu1 %5762 }
0x2912   : > { %v13002_v48 = vpop.eup %13001 }
0x2913   : > { %v13004_v21 = vpop.eup %13003  ;;  %v5651_v2 = vrot.slane %v13002_v48, %v17145_v57  ;;  %v5756_v31 = vpop.permute.xlu0 %5755 }
0x2914   : > { %v5655_v45 = vrot.slane %v13004_v21, %v17145_v57 }
0x2915   : > { %v5670_v51 = vsel %vm1189_vm4, %v5651_v2, %v5669_v8 }
0x2916   : > { %v13006_v27 = vpop.eup %13005  ;;  %v5671_v22 = vsel %vm1191_vm5, %v5655_v45, %v5670_v51 }
0x2917   : > { %v13008_v10 = vpop.eup %13007  ;;  %v5659_v60 = vrot.slane %v13006_v27, %v17145_v57  ;;  %v5770_v23 = vpop.permute.xlu0 %5769 }
0x2918   : > { %v5663_v35 = vrot.slane %v13008_v10, %v17145_v57 }
0x2919   : > { %v5672_v18 = vsel %vm1193_vm6, %v5659_v60, %v5671_v22 }
0x291a   : > { %v13010_v6 = vpop.eup %13009  ;;  %v5673_v30 = vsel %vm1195_vm7, %v5663_v35, %v5672_v18 }
0x291b   : > { %v5667_v58 = vrot.slane %v13010_v6, %v17145_v57  ;;  %v5784_v8 = vpop.permute.xlu0 %5783 }
0x291d   : > { %v5674_v33 = vsel %vm1197_vm8, %v5667_v58, %v5673_v30 }
0x291e   : > { %v5676_v14 = vsel %vm1200_vm9, %v5674_v33, 0.0 }
0x291f   : > { %5677 = vadd.xlane.f32.xlu1 %v5676_v14 }
0x2930   : > { %5776 = vbcast.lane.b32.xlu1 %v17219_v61, 256 }
0x29ac   : > { %v5678_v32 = vpop.xlane.xlu1 %5677 }
0x29ad   : > { %13011 = vrcp.f32 %v5678_v32 }
0x29b7   : > { %v13012_v47 = vpop.eup %13011 }
0x29b8   : > { %v5684_v4 = vrot.slane %v13012_v47, %v17136_v29  ;;  %v5696_v37 = vrot.slane %v13012_v47, %v17150_v26  ;;  %v5688_v17 = vrot.slane %v13012_v47, %v17147_v34  ;;  %v5692_v52 = vrot.slane %v13012_v47, %v17203_v38 }
0x29b9   : > { %v5700_v43 = vrot.slane %v13012_v47, %v17148_v39  ;;  %v5704_v53 = vrot.slane %v13012_v47, %v13683_v0  ;;  %v5708_v54 = vrot.slane %v13012_v47, %v17137_v3 }
0x29ba   : > { %v5721_v40 = vmul.f32 %v12996_v59, %v5684_v4  ;;  %v5722_v20 = vmul.f32 %v12998_v28, %v5688_v17  ;;  %v5723_v49 = vmul.f32 %v13000_v55, %v5692_v52  ;;  %v5724_v42 = vmul.f32 %v13002_v48, %v5696_v37  ;;  %v5777_v48 = vpop.permute.xlu1 %5776 }
0x29bb   : > { %v5725_v16 = vmul.f32 %v13004_v21, %v5700_v43  ;;  %v5726_v25 = vmul.f32 %v13006_v27, %v5704_v53  ;;  %v5712_v59 = vrot.slane %v13012_v47, %v13769_v15  ;;  %v5727_v28 = vmul.f32 %v13008_v10, %v5708_v54 }
0x29bc   : > { %v5793_v36 = vmul.f32 %v5735_v56, %v5721_v40  ;;  %v5794_v46 = vmul.f32 %v5742_v1, %v5722_v20  ;;  %v5795_v50 = vmul.f32 %v5749_v7, %v5723_v49  ;;  %v5796_v5 = vmul.f32 %v5756_v31, %v5724_v42 }
0x29bd   : > { %v5797_v55 = vmul.f32 %v5763_v11, %v5725_v16  ;;  %v5798_v13 = vmul.f32 %v5770_v23, %v5726_v25  ;;  %v5728_v2 = vmul.f32 %v13010_v6, %v5712_v59  ;;  %v5799_v51 = vmul.f32 %v5777_v48, %v5727_v28  ;;  %v268_v28 = vld [vmem:[%s16897_s1 + $0x40] sm:$0xff] }
0x29be   : > { %5810 = vperm.xlu1 %12697, %v5793_v36   ;;  %5813 = vperm.xlu0 %12698, %v5794_v46  }
0x29bf   : > { %v5800_v45 = vmul.f32 %v5784_v8, %v5728_v2  ;;  %v276_v2 = vld [vmem:[%s16898_s2] sm:$0xff] }
0x29c2   : > { %5816 = vperm.xlu1 %12697, %v5795_v50   ;;  %5819 = vperm.xlu0 %12698, %v5796_v5  }
0x29c6   : > { %5822 = vperm.xlu1 %12697, %v5797_v55   ;;  %5825 = vperm.xlu0 %12698, %v5798_v13   ;;  %v269_v55 = vld [vmem:[%s16897_s1 + $0x48] sm:$0xff]  ;;  %v270_v13 = vld [vmem:[%s16897_s1 + $0x50] sm:$0xff] }
0x29c7   : > { %v15147_v48 = vpack.c.bf16 %v269_v55, %v268_v28 }
0x29c9   : > { %17220 = vst [vmem:[#allocation84_spill] sm:$0xff] %v15147_v48  ;;  %12530 = vmatpush3.bf16.msra.mxu1 %v15147_v48 }
0x29ca   : > { %5828 = vperm.xlu1 %12697, %v5799_v51   ;;  %5831 = vperm.xlu0 %12698, %v5800_v45   ;;  %v277_v51 = vld [vmem:[%s16898_s2 + $0x8] sm:$0xff]  ;;  %v278_v45 = vld [vmem:[%s16898_s2 + $0x10] sm:$0xff] }
0x29cb   : > { %12531 = vmatprep.subr.bf16.mxu1 %v17151_v24 }
0x29ce   : > { %5873 = vrot.lane.b32.xlu1 %v15021_v41, %s13369_s18 }
0x2a3d   : > { %v5811_v21 = vpop.permute.xlu1 %5810  ;;  %v5814_v27 = vpop.permute.xlu0 %5813 }
0x2a3e   : > { %v5836_v60 = vrot.slane %v5811_v21, %v17145_v57  ;;  %v5840_v10 = vrot.slane %v5814_v27, %v17145_v57  ;;  %v279_v21 = vld [vmem:[%s16898_s2 + $0x18] sm:$0xff]  ;;  %v272_v27 = vld [vmem:[%s16897_s1 + $0x60] sm:$0xff] }
0x2a40   : > { %v5865_v35 = vsel %vm1185_vm2, %v5840_v10, %v5836_v60  ;;  %v273_v60 = vld [vmem:[%s16897_s1 + $0x68] sm:$0xff]  ;;  %v12520_v10 = vpack.c.bf16 %v277_v51, %v276_v2 }
0x2a41   : > { %v5817_v22 = vpop.permute.xlu1 %5816  ;;  %v5820_v6 = vpop.permute.xlu0 %5819 }
0x2a42   : > { %v5844_v18 = vrot.slane %v5817_v22, %v17145_v57  ;;  %v5848_v58 = vrot.slane %v5820_v6, %v17145_v57  ;;  %v12524_v22 = vpack.c.bf16 %v279_v21, %v278_v45  ;;  %12521 = vmatprep.subr.bf16.mxu0 %v12520_v10  ;;  %v274_v6 = vld [vmem:[%s16897_s1 + $0x70] sm:$0xff] }
0x2a43   : > { %v17227_v21 = vld [vmem:[#allocation80_spill] sm:$0xff] }
0x2a44   : > { %v5866_v30 = vsel %vm1187_vm3, %v5844_v18, %v5865_v35  ;;  %v15175_v18 = vpack.c.bf16 %v273_v60, %v272_v27  ;;  %v275_v35 = vld [vmem:[%s16897_s1 + $0x78] sm:$0xff]  ;;  %v3432_v27 = vcombine.high %v17227_v21, %v17227_v21  ;;  %v3439_v60 = vrot.slane %v17227_v21, %v17134_v12 }
0x2a45   : > { %v5823_v33 = vpop.permute.xlu1 %5822  ;;  %v5826_v61 = vpop.permute.xlu0 %5825  ;;  %v5867_v1 = vsel %vm1189_vm4, %v5848_v58, %v5866_v30  ;;  %v15185_v58 = vpack.c.bf16 %v275_v35, %v274_v6  ;;  %v17224_v30 = vld [vmem:[#allocation81_spill] sm:$0xff] }
0x2a46   : > { %v5852_v14 = vrot.slane %v5823_v33, %v17145_v57  ;;  %v5856_v7 = vrot.slane %v5826_v61, %v17145_v57  ;;  %17222 = vst [vmem:[#allocation4_spill] sm:$0xff] %v15175_v18  ;;  %v1515_v33 = vcombine.high %v17224_v30, %v17224_v30 }
0x2a47   : > { %17223 = vst [vmem:[#allocation11_spill] sm:$0xff] %v15185_v58 }
0x2a48   : > { %v5868_v11 = vsel %vm1191_vm5, %v5852_v14, %v5867_v1  ;;  %v17225_v14 = vld [vmem:[#allocation82_spill] sm:$0xff] }
0x2a49   : > { %v5829_v32 = vpop.permute.xlu1 %5828  ;;  %v5832_v47 = vpop.permute.xlu0 %5831  ;;  %v5869_v4 = vsel %vm1193_vm6, %v5856_v7, %v5868_v11  ;;  %v2160_v61 = vcombine.high %v17225_v14, %v17225_v14  ;;  %v2167_v1 = vrot.slane %v17225_v14, %v17134_v12  ;;  %v1522_v7 = vrot.slane %v17224_v30, %v17134_v12 }
0x2a4a   : > { %v5860_v56 = vrot.slane %v5829_v32, %v17145_v57  ;;  %v5864_v37 = vrot.slane %v5832_v47, %v17145_v57  ;;  %v1529_v11 = vrot.slane %v1515_v33, %v17134_v12 }
0x2a4b   : > { %v2174_v32 = vrot.slane %v2160_v61, %v17134_v12  ;;  %v2183_v47 = vrot.slane %v2167_v1, %v17134_v12 }
0x2a4c   : > { %v5870_v17 = vsel %vm1195_vm7, %v5860_v56, %v5869_v4  ;;  %v2175_v56 = vcombine.high %v2167_v1, %v2167_v1  ;;  %v1530_v4 = vcombine.high %v1522_v7, %v1522_v7 }
0x2a4d   : > { %v5874_v52 = vpop.permute.xlu1 %5873  ;;  %v5871_v40 = vsel %vm1197_vm8, %v5864_v37, %v5870_v17  ;;  %v17226_v37 = vld [vmem:[#allocation83_spill] sm:$0xff]  ;;  %v6028_v28 = vrot.slane %v2183_v47, %v17136_v29 }
0x2a4e   : > { %v5876_v31 = vsel %vm1200_vm9, %v5871_v40, %v5874_v52  ;;  %v2796_v17 = vcombine.high %v17226_v37, %v17226_v37  ;;  %v2803_v52 = vrot.slane %v17226_v37, %v17134_v12  ;;  %v1531_v40 = vcombine.high %v1529_v11, %v1529_v11 }
0x2a4f   : > { %12098 = vmatmul.mubr.msk.f32.vlgmr.msra.gmra.mrb[14].mxu0 %vm1411_vm11, %v5876_v31  ;;  %v1538_v31 = vrot.slane %v1522_v7, %v17134_v12  ;;  %v3447_v37 = vcombine.high %v3439_v60, %v3439_v60  ;;  %vm6340_vm11 = vcmask 1044480  }
0x2a50   : > { %12523 = vmatpush3.bf16.msra.mxu0 %v12520_v10  ;;  %v2819_v2 = vrot.slane %v2803_v52, %v17134_v12 }
0x2a51   : > { %12525 = vmatprep.subr.bf16.mxu0 %v12524_v22  ;;  %v6306_v14 = vsel %vm17006_vm14, %v1538_v31, %v6028_v28 }
0x2a54   : > { %12527 = vmatpush3.bf16.msra.mxu0 %v12524_v22 }
0x2a55   : > { %12540 = vmatprep.subr.bf16.mxu0 %v17151_v24 }
0x2b22   : > { %v5946_v20 = vpop.f32.mrb[14].mxu0 }
0x2b23   : > { %v5947_v36 = vadd.f32 %v5946_v20, %v14214_v44  ;;  %v12099_v49 = vpop.f32.mrb[15].mxu0  ;;  %v2176_v20 = vcombine.high %v2174_v32, %v2174_v32 }
0x2b24   : > { %v1545_v49 = vrot.slane %v1529_v11, %v17134_v12 }
0x2b25   : > { %v11541_v43 = vmul.f32 -1.442695, %v5947_v36  ;;  %v2197_v36 = vrot.slane %v2175_v56, %v17134_v12 }
0x2b27   : > { %13013 = vpow2.f32 %v11541_v43  ;;  %v2190_v43 = vrot.slane %v2174_v32, %v17134_v12  ;;  %v6032_v55 = vrot.slane %v2197_v36, %v17136_v29  ;;  %v2841_v32 = vcombine.high %v2819_v2, %v2819_v2 }
0x2b31   : > { %v13014_v42 = vpop.eup %13013 }
0x2b32   : > { %v5953_v53 = vadd.f32 1.0, %v13014_v42  ;;  %v2205_v42 = vcombine.high %v2183_v47, %v2183_v47 }
0x2b34   : > { %13015 = vrcp.f32 %v5953_v53  ;;  %v1552_v53 = vrot.slane %v1530_v4, %v17134_v12  ;;  %v3446_v4 = vrot.slane %v3432_v27, %v17134_v12 }
0x2b36   : > { %v1562_v10 = vcombine.high %v1552_v53, %v1552_v53  ;;  %v6307_v1 = vsel %vm17006_vm14, %v1552_v53, %v6032_v55  ;;  %v3462_v55 = vrot.slane %v3446_v4, %v17134_v12 }
0x2b3e   : > { %v15129_v46 = vpop.eup %13015 }
0x2b3f   : > { %v5956_v23 = vmul.f32 2.0, %v15129_v46  ;;  %v5958_v44 = vmul.f32 %v15129_v46, %v15017_v9  ;;  %v271_v9 = vld [vmem:[%s16897_s1 + $0x58] sm:$0xff] }
0x2b40   : > { %v15156_v8 = vpack.c.bf16 %v271_v9, %v270_v13  ;;  %v6036_v13 = vrot.slane %v2205_v42, %v17136_v29  ;;  %v6044_v9 = vrot.slane %v2190_v43, %v17136_v29  ;;  %v6076_v42 = vrot.slane %v2841_v32, %v17136_v29 }
0x2b41   : > { %v11542_v54 = vadd.f32 -1.0, %v5956_v23  ;;  %v2810_v23 = vrot.slane %v2796_v17, %v17134_v12 }
0x2b42   : > { %17221 = vst [vmem:[#allocation85_spill] sm:$0xff] %v15156_v8  ;;  %12533 = vmatpush3.bf16.msra.mxu1 %v15156_v8  ;;  %v6310_v11 = vsel %vm17006_vm14, %v1545_v49, %v6044_v9 }
0x2b43   : > { %5960 = vrot.lane.b32.xlu0 %v11542_v54, %s13367_s16  ;;  %12534 = vmatprep.subr.bf16.mxu1 %v17151_v24  ;;  %v2811_v54 = vcombine.high %v2803_v52, %v2803_v52  ;;  %v2812_v51 = vcombine.high %v2810_v23, %v2810_v23  ;;  %v2826_v61 = vrot.slane %v2810_v23, %v17134_v12 }
0x2b44   : > { %v4068_v23 = vcombine.high %v14756_v62, %v14756_v62 }
0x2b45   : > { %v2833_v45 = vrot.slane %v2811_v54, %v17134_v12  ;;  %v2840_v56 = vrot.slane %v2812_v51, %v17134_v12  ;;  %v6084_v53 = vrot.slane %v2826_v61, %v17136_v29 }
0x2b46   : > { %12536 = vmatpush3.bf16.msra.mxu1 %v15175_v18 }
0x2b47   : > { %12537 = vmatprep.subr.bf16.mxu1 %v17151_v24  ;;  %v2843_v47 = vcombine.high %v2833_v45, %v2833_v45  ;;  %v2844_v54 = vcombine.high %v2840_v56, %v2840_v56  ;;  %v6088_v28 = vrot.slane %v2840_v56, %v17136_v29  ;;  %v6319_v21 = vsel %vm6314_vm15, %v6310_v11, %v6084_v53 }
0x2b48   : > { %v6124_v11 = vrot.slane %v3462_v55, %v17136_v29  ;;  %v4704_v56 = vcombine.high %v14888_v19, %v14888_v19 }
0x2b49   : > { %v15272_v27 = vrot.slane %v2844_v54, %v17136_v29  ;;  %v5347_v54 = vrot.slane %v15021_v41, %v17134_v12 }
0x2b4a   : > { %12539 = vmatpush3.bf16.msra.mxu1 %v15185_v58  ;;  %v6328_v53 = vsel %vm6323_vm1, %v6319_v21, %v6124_v11 }
0x2b4b   : > { %12546 = vmatprep.subr.bf16.mxu1 %v17151_v24 }
0x2b4d   : > { %12137 = vmatmul.mubr.f32.vlgmr.msra.gmra.mrb[16].mxu1 %v17152_v63 }
0x2b4e   : > { %12548 = vmatpush3.bf16.msra.mxu1 %v15147_v48  ;;  %12168 = vmatprep.mubr.msk.f32.mxu1 %vm13363_vm0, %v17152_v63 }
0x2b4f   : > { %12549 = vmatprep.subr.bf16.mxu1 %v17151_v24 }
0x2b52   : > { %12551 = vmatpush3.bf16.msra.mxu1 %v15156_v8 }
0x2b53   : > { %12552 = vmatprep.subr.bf16.mxu1 %v17151_v24 }
0x2b56   : > { %12554 = vmatpush3.bf16.msra.mxu1 %v15175_v18 }
0x2b57   : > { %12555 = vmatprep.subr.bf16.mxu1 %v17151_v24 }
0x2b5a   : > { %12557 = vmatpush3.bf16.msra.mxu1 %v15185_v58 }
0x2b5b   : > { %12564 = vmatprep.subr.bf16.mxu1 %v17151_v24 }
0x2bb5   : > { %v5961_v50 = vpop.permute.xlu0 %5960 }
0x2bb6   : > { %v5963_v16 = vmul.f32 %v15129_v46, %v5961_v50  ;;  %v1559_v50 = vrot.slane %v1531_v40, %v17134_v12 }
0x2bb8   : > { %5965 = vrot.lane.b32.xlu1 %v5963_v16, %s13368_s17  ;;  %v1560_v16 = vcombine.high %v1538_v31, %v1538_v31  ;;  %v1563_v30 = vcombine.high %v1559_v50, %v1559_v50  ;;  %v2842_v31 = vcombine.high %v2826_v61, %v2826_v61 }
0x2bba   : > { %v6308_v7 = vsel %vm17006_vm14, %v1560_v16, %v6036_v13  ;;  %v3448_v16 = vcombine.high %v3446_v4, %v3446_v4  ;;  %v6092_v13 = vrot.slane %v2842_v31, %v17136_v29 }
0x2c2a   : > { %v5966_v5 = vpop.permute.xlu1 %5965 }
0x2c2b   : > { %v5968_v25 = vadd.f32 %v5966_v5, %v5958_v44  ;;  %v2204_v44 = vrot.slane %v2176_v20, %v17134_v12  ;;  %v2207_v5 = vcombine.high %v2197_v36, %v2197_v36  ;;  %v6068_v20 = vrot.slane %v2819_v2, %v17136_v29 }
0x2c2c   : > { %v3455_v36 = vrot.slane %v3439_v60, %v17134_v12 }
0x2c2d   : > { %13017 = vtanh.f32 %v5968_v25  ;;  %v1561_v25 = vcombine.high %v1545_v49, %v1545_v49  ;;  %v2208_v22 = vcombine.high %v2204_v44, %v2204_v44  ;;  %v6040_v6 = vrot.slane %v2207_v5, %v17136_v29 }
0x2c2e   : > { %v6048_v35 = vrot.slane %v2204_v44, %v17136_v29  ;;  %v4075_v49 = vrot.slane %v14756_v62, %v17134_v12  ;;  %v3469_v44 = vrot.slane %v3447_v37, %v17134_v12  ;;  %v6315_v9 = vsel %vm6314_vm15, %v6306_v14, %v6068_v20 }
0x2c2f   : > { %v6056_v17 = vrot.slane %v2208_v22, %v17136_v29  ;;  %v6309_v52 = vsel %vm17006_vm14, %v1562_v10, %v6040_v6  ;;  %v3477_v62 = vcombine.high %v3455_v36, %v3455_v36  ;;  %v3476_v10 = vrot.slane %v3448_v16, %v17134_v12 }
0x2c30   : > { %v6311_v40 = vsel %vm17006_vm14, %v1559_v50, %v6048_v35  ;;  %v6080_v50 = vrot.slane %v2843_v47, %v17136_v29  ;;  %v4083_v2 = vcombine.high %v4075_v49, %v4075_v49  ;;  %v3479_v22 = vcombine.high %v3469_v44, %v3469_v44 }
0x2c31   : > { %v6320_v6 = vsel %vm6314_vm15, %v6311_v40, %v6088_v28  ;;  %v3478_v35 = vcombine.high %v3462_v55, %v3462_v55  ;;  %v6112_v14 = vrot.slane %v3469_v44, %v17136_v29  ;;  %v6116_v61 = vrot.slane %v3477_v62, %v17136_v29 }
0x2c32   : > { %v6318_v60 = vsel %vm6314_vm15, %v6309_v52, %v6080_v50  ;;  %v3480_v47 = vcombine.high %v3476_v10, %v3476_v10  ;;  %v6120_v4 = vrot.slane %v3479_v22, %v17136_v29  ;;  %v6128_v52 = vrot.slane %v3476_v10, %v17136_v29 }
0x2c33   : > { %v6132_v40 = vrot.slane %v3478_v35, %v17136_v29  ;;  %v5355_v10 = vcombine.high %v5347_v54, %v5347_v54 }
0x2c34   : > { %v15304_v50 = vrot.slane %v3480_v47, %v17136_v29  ;;  %v6327_v16 = vsel %vm6323_vm1, %v6318_v60, %v6120_v4  ;;  %v15308_v28 = vsel %vm6323_vm1, %v6320_v6, %v6128_v52  ;;  %v5340_v60 = vcombine.high %v15021_v41, %v15021_v41 }
0x2c36   : > { %v5354_v4 = vrot.slane %v5340_v60, %v17134_v12 }
0x2c37   : > { %v13018_v59 = vpop.eup %13017 }
0x2c38   : > { %5971 = vrot.lane.b32.xlu0 %v13018_v59, %s13367_s16  ;;  %v2206_v59 = vcombine.high %v2190_v43, %v2190_v43  ;;  %v6072_v43 = vrot.slane %v2833_v45, %v17136_v29  ;;  %v6317_v45 = vsel %vm6314_vm15, %v6308_v7, %v6076_v42 }
0x2c3a   : > { %v6052_v33 = vrot.slane %v2206_v59, %v17136_v29  ;;  %v15261_v59 = vsel %vm17006_vm14, %v1563_v30, %v6056_v17  ;;  %v6316_v51 = vsel %vm6314_vm15, %v6307_v1, %v6072_v43  ;;  %v6108_v30 = vrot.slane %v3455_v36, %v17136_v29 }
0x2c3b   : > { %v4105_v1 = vrot.slane %v4083_v2, %v17134_v12  ;;  %v4711_v17 = vrot.slane %v14888_v19, %v17134_v12  ;;  %v6325_v36 = vsel %vm6323_vm1, %v6316_v51, %v6112_v14  ;;  %v4718_v19 = vrot.slane %v4704_v56, %v17134_v12 }
0x2c3c   : > { %v6312_v5 = vsel %vm17006_vm14, %v1561_v25, %v6052_v33  ;;  %v4082_v25 = vrot.slane %v4068_v23, %v17134_v12  ;;  %v4091_v33 = vrot.slane %v4075_v49, %v17134_v12  ;;  %v6324_v31 = vsel %vm6323_vm1, %v6315_v9, %v6108_v30 }
0x2c3d   : > { %v6321_v7 = vsel %vm6314_vm15, %v6312_v5, %v6092_v13  ;;  %v6326_v49 = vsel %vm6323_vm1, %v6317_v45, %v6116_v61  ;;  %v4115_v43 = vcombine.high %v4105_v1, %v4105_v1  ;;  %v4719_v5 = vcombine.high %v4711_v17, %v4711_v17 }
0x2c3e   : > { %v4084_v32 = vcombine.high %v4082_v25, %v4082_v25  ;;  %v4098_v37 = vrot.slane %v4082_v25, %v17134_v12  ;;  %v4113_v20 = vcombine.high %v4091_v33, %v4091_v33  ;;  %v6148_v42 = vrot.slane %v4091_v33, %v17136_v29 }
0x2c3f   : > { %v6152_v55 = vrot.slane %v4105_v1, %v17136_v29  ;;  %v4727_v9 = vrot.slane %v4711_v17, %v17134_v12  ;;  %v15314_v62 = vsel %vm6323_vm1, %v6321_v7, %v6132_v40  ;;  %v6160_v2 = vrot.slane %v4115_v43, %v17136_v29 }
0x2c40   : > { %v15298_v23 = vrot.slane %v4084_v32, %v17134_v12  ;;  %v4114_v44 = vcombine.high %v4098_v37, %v4098_v37  ;;  %v6156_v13 = vrot.slane %v4113_v20, %v17136_v29  ;;  %v6164_v51 = vrot.slane %v4098_v37, %v17136_v29 }
0x2c41   : > { %v6332_v45 = vsel %vm1415_vm10, %v6324_v31, %v6148_v42  ;;  %v4720_v25 = vcombine.high %v4718_v19, %v4718_v19  ;;  %v15329_v35 = vrot.slane %v4718_v19, %v17134_v12  ;;  %v4741_v30 = vrot.slane %v4719_v5, %v17134_v12 }
0x2c42   : > { %v4116_v21 = vcombine.high %v15298_v23, %v15298_v23  ;;  %v6168_v22 = vrot.slane %v15298_v23, %v17136_v29  ;;  %v15326_v6 = vrot.slane %v4114_v44, %v17136_v29  ;;  %v6333_v33 = vsel %vm1415_vm10, %v6325_v36, %v6152_v55 }
0x2c43   : > { %v6334_v14 = vsel %vm1415_vm10, %v6326_v49, %v6156_v13  ;;  %v4749_v61 = vcombine.high %v4727_v9, %v4727_v9  ;;  %v5363_v1 = vrot.slane %v5347_v54, %v17134_v12  ;;  %v6335_v7 = vsel %vm1415_vm10, %v6327_v16, %v6160_v2 }
0x2c44   : > { %v15337_v11 = vsel %vm1415_vm10, %v6328_v53, %v6164_v51  ;;  %v15341_v56 = vrot.slane %v4720_v25, %v17134_v12  ;;  %v6188_v47 = vrot.slane %v4727_v9, %v17136_v29  ;;  %v5377_v37 = vrot.slane %v5355_v10, %v17134_v12 }
0x2c45   : > { %v4750_v17 = vcombine.high %v15329_v35, %v15329_v35  ;;  %v4751_v52 = vcombine.high %v4741_v30, %v4741_v30  ;;  %v6192_v20 = vrot.slane %v4741_v30, %v17136_v29  ;;  %v6204_v36 = vrot.slane %v15329_v35, %v17136_v29 }
0x2c46   : > { %v5385_v49 = vcombine.high %v5363_v1, %v5363_v1  ;;  %v6228_v43 = vrot.slane %v5363_v1, %v17136_v29  ;;  %v5356_v54 = vcombine.high %v5354_v4, %v5354_v4  ;;  %v5387_v16 = vcombine.high %v5377_v37, %v5377_v37 }
0x2c47   : > { %v6341_v44 = vsel %vm6340_vm11, %v6332_v45, %v6188_v47  ;;  %v6232_v5 = vrot.slane %v5377_v37, %v17136_v29  ;;  %vm6358_vm14 = vcmask 1046528   ;;  %v6200_v9 = vrot.slane %v4751_v52, %v17136_v29 }
0x2c48   : > { %v5370_v2 = vrot.slane %v5354_v4, %v17134_v12  ;;  %v6236_v60 = vrot.slane %v5385_v49, %v17136_v29  ;;  %v6350_v10 = vsel %vm6349_vm13, %v6341_v44, %v6228_v43  ;;  %v6342_v30 = vsel %vm6340_vm11, %v6333_v33, %v6192_v20 }
0x2c49   : > { %v5384_v47 = vrot.slane %v5356_v54, %v17134_v12  ;;  %v6240_v4 = vrot.slane %v5387_v16, %v17136_v29  ;;  %v6351_v37 = vsel %vm6349_vm13, %v6342_v30, %v6232_v5  ;;  %v6208_v20 = vrot.slane %v15341_v56, %v17136_v29 }
0x2c4a   : > { %v5386_v49 = vcombine.high %v5370_v2, %v5370_v2  ;;  %v6244_v43 = vrot.slane %v5370_v2, %v17136_v29  ;;  %v6212_v54 = vrot.slane %v4750_v17, %v17136_v29  ;;  %v6345_v5 = vsel %vm6340_vm11, %v15337_v11, %v6204_v36 }
0x2c4b   : > { %v5388_v16 = vcombine.high %v5384_v47, %v5384_v47  ;;  %v6176_v17 = vrot.slane %v4116_v21, %v17136_v29  ;;  %v6322_v23 = vsel %vm6314_vm15, %v15261_v59, %v15272_v27  ;;  %vm7054_vm15 = vcmask 7168  }
0x2c4c   : > { %v6252_v2 = vrot.slane %v5386_v49, %v17136_v29  ;;  %v6354_v11 = vsel %vm6349_vm13, %v6345_v5, %v6244_v43 }
0x2caa   : > { %v5972_v41 = vpop.permute.xlu0 %5971 }
0x2cab   : > { %v5974_v32 = vmul.f32 %v15129_v46, %v5972_v41  ;;  %v6196_v46 = vrot.slane %v4749_v61, %v17136_v29 }
0x2cad   : > { %v5976_v40 = vcombine.high %v5974_v32, %v5974_v32  ;;  %v5983_v31 = vrot.slane %v5974_v32, %v17134_v12  ;;  %v4752_v32 = vcombine.high %v15341_v56, %v15341_v56  ;;  %v6343_v33 = vsel %vm6340_vm11, %v6334_v14, %v6196_v46 }
0x2cae   : > { %v6344_v14 = vsel %vm6340_vm11, %v6335_v7, %v6200_v9  ;;  %v6248_v56 = vrot.slane %v5384_v47, %v17136_v29  ;;  %v6337_v9 = vsel %vm1415_vm10, %v15308_v28, %v6168_v22  ;;  %v6338_v28 = vsel %vm1415_vm10, %v15314_v62, %v15326_v6 }
0x2caf   : > { %v5990_v42 = vrot.slane %v5976_v40, %v17134_v12  ;;  %v5991_v53 = vcombine.high %v5983_v31, %v5983_v31  ;;  %v5999_v19 = vrot.slane %v5983_v31, %v17134_v12  ;;  %v6353_v44 = vsel %vm6349_vm13, %v6344_v14, %v6240_v4  ;;  %v6582_v4 = vpop.f32.mrb[16].mxu1 }
0x2cb0   : > { %v6216_v36 = vrot.slane %v4752_v32, %v17136_v29  ;;  %v6256_v22 = vrot.slane %v5388_v16, %v17136_v29 }
0x2cb1   : > { %v6013_v55 = vrot.slane %v5991_v53, %v17134_v12  ;;  %v6021_v13 = vcombine.high %v5999_v19, %v5999_v19  ;;  %v5992_v51 = vcombine.high %v5990_v42, %v5990_v42  ;;  %v6268_v25 = vrot.slane %v5999_v19, %v17136_v29 }
0x2cb2   : > { %v6006_v61 = vrot.slane %v5990_v42, %v17134_v12  ;;  %v6352_v42 = vsel %vm6349_vm13, %v6343_v33, %v6236_v60  ;;  %v12138_v33 = vpop.f32.mrb[17].mxu1 }
0x2cb3   : > { %v6023_v35 = vcombine.high %v6013_v55, %v6013_v55  ;;  %v6272_v45 = vrot.slane %v6013_v55, %v17136_v29  ;;  %v6276_v1 = vrot.slane %v6021_v13, %v17136_v29  ;;  %v15369_v41 = vsel %vm6358_vm14, %v6350_v10, %v6268_v25 }
0x2cb4   : > { %17228 = vst [vmem:[#allocation14_spill] sm:$0xff] %v15369_v41  ;;  %6375 = vrot.lane.b32.xlu1 %v15369_v41, %s13368_s17  ;;  %v6020_v52 = vrot.slane %v5992_v51, %v17134_v12  ;;  %v6022_v46 = vcombine.high %v6006_v61, %v6006_v61  ;;  %v6284_v53 = vrot.slane %v6006_v61, %v17136_v29 }
0x2cb5   : > { %v6280_v40 = vrot.slane %v6023_v35, %v17136_v29  ;;  %v15382_v31 = vsel %vm6358_vm14, %v6351_v37, %v6272_v45  ;;  %v15393_v19 = vsel %vm6358_vm14, %v6352_v42, %v6276_v1  ;;  %v6346_v51 = vsel %vm6340_vm11, %v6337_v9, %v6208_v20  ;;  %v17236_v1 = vld [vmem:[#allocation79_spill] sm:$0xff] }
0x2cb6   : > { %17229 = vst [vmem:[#allocation9_spill] sm:$0xff] %v15382_v31  ;;  %6377 = vrot.lane.b32.xlu0 %v15382_v31, %s13368_s17  ;;  %17230 = vst [vmem:[#allocation21_spill] sm:$0xff] %v15393_v19  ;;  %v6024_v7 = vcombine.high %v6020_v52, %v6020_v52  ;;  %v6288_v55 = vrot.slane %v6020_v52, %v17136_v29  ;;  %v6292_v25 = vrot.slane %v6022_v46, %v17136_v29  ;;  %v15474_v46 = vld [vmem:[%s16901_s5] sm:$0xff] }
0x2cb7   : > { %v15404_v13 = vsel %vm6358_vm14, %v6353_v44, %v6280_v40  ;;  %v15423_v21 = vsel %vm6358_vm14, %v6354_v11, %v6284_v53  ;;  %v6355_v60 = vsel %vm6349_vm13, %v6346_v51, %v6248_v56  ;;  %v6331_v10 = vsel %vm6323_vm1, %v6322_v23, %v15304_v50 }
0x2cb8   : > { %6379 = vrot.lane.b32.xlu1 %v15393_v19, %s13368_s17  ;;  %17231 = vst [vmem:[#allocation17_spill] sm:$0xff] %v15404_v13  ;;  %17232 = vst [vmem:[#allocation22_spill] sm:$0xff] %v15423_v21  ;;  %v6347_v35 = vsel %vm6340_vm11, %v6338_v28, %v6212_v54  ;;  %v6296_v45 = vrot.slane %v6024_v7, %v17136_v29  ;;  %v15440_v59 = vsel %vm6358_vm14, %v6355_v60, %v6288_v55  ;;  %vm7060_vm1 = vcmask 269312  }
0x2cb9   : > { %17233 = vst [vmem:[#allocation34_spill] sm:$0xff] %v15440_v59  ;;  %v6339_v27 = vsel %vm1415_vm10, %v6331_v10, %v6176_v17  ;;  %v6356_v62 = vsel %vm6349_vm13, %v6347_v35, %v6252_v2  ;;  %v17237_v32 = vrot.slane %v17236_v1, 1  ;;  %v15478_v53 = vrot.slane %v15474_v46, %v13769_v15 }
0x2cba   : > { %6381 = vrot.lane.b32.xlu0 %v15404_v13, %s13368_s17  ;;  %v6348_v6 = vsel %vm6340_vm11, %v6339_v27, %v6216_v36  ;;  %v15448_v30 = vsel %vm6358_vm14, %v6356_v62, %v6292_v25  ;;  %vm6805_vm10 = vcmask 64512  }
0x2cbb   : > { %17234 = vst [vmem:[#allocation6_spill] sm:$0xff] %v15448_v30  ;;  %v6357_v50 = vsel %vm6349_vm13, %v6348_v6, %v6256_v22  ;;  %v6583_v54 = vadd.f32 %v6582_v4, %v15478_v53  ;;  %vm6907_vm13 = vcmask 1048320  }
0x2cbc   : > { %6383 = vrot.lane.b32.xlu1 %v15423_v21, %s13368_s17  ;;  %v15454_v61 = vsel %vm6358_vm14, %v6357_v50, %v6296_v45  ;;  %vm17246_vm14 = vcmask 1040384  }
0x2cbd   : > { %17235 = vst [vmem:[#allocation30_spill] sm:$0xff] %v15454_v61  ;;  %v6594_v16 = vrot.slane %v6583_v54, %v17134_v12  ;;  %v6587_v44 = vcombine.high %v6583_v54, %v6583_v54  ;;  %vm17247_vm11 = vmmov %vm17246_vm14 }
0x2cbe   : > { %6385 = vrot.lane.b32.xlu0 %v15440_v59, %s13368_s17 }
0x2cbf   : > { %v6602_v56 = vcombine.high %v6594_v16, %v6594_v16  ;;  %v6610_v7 = vrot.slane %v6594_v16, %v17134_v12  ;;  %v6601_v55 = vrot.slane %v6587_v44, %v17134_v12 }
0x2cc0   : > { %6387 = vrot.lane.b32.xlu1 %v15448_v30, %s13368_s17 }
0x2cc1   : > { %v6624_v5 = vrot.slane %v6602_v56, %v17134_v12  ;;  %v6639_v2 = vrot.slane %v6610_v7, %v17136_v29  ;;  %v6603_v11 = vcombine.high %v6601_v55, %v6601_v55  ;;  %v6632_v36 = vcombine.high %v6610_v7, %v6610_v7 }
0x2cc2   : > { %6389 = vrot.lane.b32.xlu0 %v15454_v61, %s13368_s17  ;;  %v6617_v10 = vrot.slane %v6601_v55, %v17134_v12 }
0x2cc3   : > { %v6634_v17 = vcombine.high %v6624_v5, %v6624_v5  ;;  %v6643_v9 = vrot.slane %v6624_v5, %v17136_v29  ;;  %v6631_v60 = vrot.slane %v6603_v11, %v17134_v12  ;;  %v6647_v35 = vrot.slane %v6632_v36, %v17136_v29 }
0x2cc4   : > { %6728 = vrot.lane.b32.xlu1 %v17237_v32, %s13370_s30  ;;  %v6633_v32 = vcombine.high %v6617_v10, %v6617_v10 }
0x2cc5   : > { %v6651_v25 = vrot.slane %v6634_v17, %v17136_v29  ;;  %v6635_v50 = vcombine.high %v6631_v60, %v6631_v60  ;;  %v6659_v1 = vrot.slane %v6631_v60, %v17136_v29 }
0x2d26   : > { %v6376_v47 = vpop.permute.xlu1 %6375 }
0x2d27   : > { %12108 = vmatprep.mubr.msk.f32.mxu0 %vm1575_vm12, %v6376_v47  ;;  %v6655_v47 = vrot.slane %v6617_v10, %v17136_v29 }
0x2d28   : > { %v6378_v37 = vpop.permute.xlu0 %6377 }
0x2d29   : > { %12109 = vmatmul.mubr.msk.f32.vlgmr.msra.gmra.mrb[16].mxu0 %vm1575_vm12, %v6378_v37 }
0x2d2a   : > { %v6380_v52 = vpop.permute.xlu1 %6379 }
0x2d2b   : > { %12111 = vmatprep.mubr.msk.f32.mxu0 %vm1575_vm12, %v6380_v52  ;;  %v15513_v52 = vld [vmem:[%s16901_s5 + $0x8] sm:$0x3] }
0x2d2c   : > { %v6382_v40 = vpop.permute.xlu0 %6381 }
0x2d2d   : > { %12112 = vmatmul.mubr.msk.f32.gmra.mrb[18].mxu0 %vm1575_vm12, %v6382_v40  ;;  %v15517_v40 = vrot.slane %v15513_v52, %v17136_v29 }
0x2d2e   : > { %v6384_v20 = vpop.permute.xlu1 %6383 }
0x2d2f   : > { %12114 = vmatprep.mubr.msk.f32.mxu0 %vm1575_vm12, %v6384_v20 }
0x2d30   : > { %v6386_v49 = vpop.permute.xlu0 %6385 }
0x2d31   : > { %12115 = vmatmul.mubr.msk.f32.gmra.mrb[20].mxu0 %vm1575_vm12, %v6386_v49  ;;  %v6667_v49 = vrot.slane %v6635_v50, %v17136_v29 }
0x2d32   : > { %v6388_v43 = vpop.permute.xlu1 %6387 }
0x2d33   : > { %12117 = vmatprep.mubr.msk.f32.mxu0 %vm1575_vm12, %v6388_v43  ;;  %v6663_v43 = vrot.slane %v6633_v32, %v17136_v29 }
0x2d34   : > { %v6390_v42 = vpop.permute.xlu0 %6389 }
0x2d35   : > { %12118 = vmatmul.mubr.msk.f32.gmra.mrb[22].mxu0 %vm1575_vm12, %v6390_v42 }
0x2d36   : > { %12149 = vmatprep.mubr.msk.f32.mxu0 %vm13363_vm0, %v17152_v63  ;;  %v6729_v14 = vpop.permute.xlu1 %6728 }
0x2d37   : > { %12674 = vpush %v6729_v14 }
0x2d68   : > { %s12675_s11 = spop %12674 }
0x2dfc   : > { %v15487_v51 = vpop.f32.mrb[16].mxu0 }
0x2dfd   : > { %v15490_v23 = vpop.f32.mrb[17].mxu0  ;;  %v6677_v28 = vadd.f32 %v15487_v51, %v6643_v9 }
0x2dfe   : > { %v6676_v22 = vadd.f32 %v6639_v2, %v15490_v23 }
0x2dff   : > { %13019 = vtanh.f32 %v6677_v28 }
0x2e00   : > { %v15497_v45 = vpop.f32.mrb[18].mxu0  ;;  %13021 = vtanh.f32 %v6676_v22 }
0x2e01   : > { %v15499_v27 = vpop.f32.mrb[19].mxu0  ;;  %v6679_v62 = vadd.f32 %v15497_v45, %v6651_v25 }
0x2e02   : > { %v6678_v6 = vadd.f32 %v6647_v35, %v15499_v27 }
0x2e03   : > { %13023 = vtanh.f32 %v6679_v62 }
0x2e04   : > { %v15505_v4 = vpop.f32.mrb[20].mxu0  ;;  %13025 = vtanh.f32 %v6678_v6 }
0x2e05   : > { %v15507_v37 = vpop.f32.mrb[21].mxu0  ;;  %v6681_v33 = vadd.f32 %v15505_v4, %v6659_v1 }
0x2e06   : > { %v6680_v20 = vadd.f32 %v6655_v47, %v15507_v37 }
0x2e07   : > { %13027 = vtanh.f32 %v6681_v33 }
0x2e08   : > { %v15522_v42 = vpop.f32.mrb[22].mxu0  ;;  %13029 = vtanh.f32 %v6680_v20 }
0x2e09   : > { %v13020_v14 = vpop.eup %13019  ;;  %v15524_v54 = vpop.f32.mrb[23].mxu0  ;;  %v6683_v16 = vadd.f32 %v15522_v42, %v6667_v49  ;;  %v15544_v49 = vstv %s12675_s11  ;;  %s11503_s11 = sshll.u32 %s17314_s22, 3 }
0x2e0a   : > { %v13022_v56 = vpop.eup %13021  ;;  %v6697_v44 = vmul.f32 %v13020_v14, %v15517_v40  ;;  %v6682_v5 = vadd.f32 %v6663_v43, %v15524_v54  ;;  %s251_s13 = scalar_lea.vmem %s16902_s6, %s11503_s11 }
0x2e0b   : > { %v6696_v7 = vmul.f32 %v13022_v56, %v15517_v40  ;;  %13031 = vtanh.f32 %v6683_v16 }
0x2e0c   : > { %v6707_v55 = vsel %vm1200_vm9, %v6697_v44, 0.0  ;;  %13033 = vtanh.f32 %v6682_v5 }
0x2e0d   : > { %v13024_v17 = vpop.eup %13023  ;;  %6708 = vadd.xlane.f32.xlu1 %v6707_v55  ;;  %v6704_v9 = vsel %vm1200_vm9, %v6696_v7, 0.0 }
0x2e0e   : > { %v13026_v2 = vpop.eup %13025  ;;  %6705 = vadd.xlane.f32.xlu0 %v6704_v9  ;;  %v6699_v11 = vmul.f32 %v13024_v17, %v15517_v40 }
0x2e0f   : > { %v6698_v28 = vmul.f32 %v13026_v2, %v15517_v40 }
0x2e10   : > { %v6713_v36 = vsel %vm1200_vm9, %v6699_v11, 0.0 }
0x2e11   : > { %v13028_v25 = vpop.eup %13027  ;;  %v6710_v35 = vsel %vm1200_vm9, %v6698_v28, 0.0 }
0x2e12   : > { %v13030_v22 = vpop.eup %13029  ;;  %6714 = vadd.xlane.f32.xlu0 %v6713_v36  ;;  %v6701_v6 = vmul.f32 %v13028_v25, %v15517_v40 }
0x2e13   : > { %v6700_v60 = vmul.f32 %v13030_v22, %v15517_v40 }
0x2e14   : > { %v6719_v47 = vsel %vm1200_vm9, %v6701_v6, 0.0 }
0x2e15   : > { %v13032_v10 = vpop.eup %13031  ;;  %v6716_v62 = vsel %vm1200_vm9, %v6700_v60, 0.0 }
0x2e16   : > { %v13034_v50 = vpop.eup %13033  ;;  %6711 = vadd.xlane.f32.xlu0 %v6710_v35  ;;  %6717 = vadd.xlane.f32.xlu1 %v6716_v62  ;;  %v6703_v33 = vmul.f32 %v13032_v10, %v15517_v40 }
0x2e17   : > { %v6702_v1 = vmul.f32 %v13034_v50, %v15517_v40 }
0x2e18   : > { %v6725_v20 = vsel %vm1200_vm9, %v6703_v33, 0.0 }
0x2e19   : > { %v6722_v32 = vsel %vm1200_vm9, %v6702_v1, 0.0 }
0x2e1a   : > { %6723 = vadd.xlane.f32.xlu1 %v6722_v32  ;;  %6720 = vadd.xlane.f32.xlu0 %v6719_v47 }
0x2e1e   : > { %6726 = vadd.xlane.f32.xlu0 %v6725_v20 }
0x2e9a   : > { %v6709_v43 = vpop.xlane.xlu1 %6708 }
0x2e9b   : > { %v6734_v14 = vadd.f32 %v15544_v49, %v6709_v43  ;;  %v6706_v16 = vpop.xlane.xlu0 %6705 }
0x2e9c   : > { %v6733_v56 = vadd.f32 %v15544_v49, %v6706_v16 }
0x2e9d   : > { %v6743_v44 = vmul.f32 1.442695, %v6734_v14 }
0x2e9e   : > { %v6741_v5 = vmul.f32 1.442695, %v6733_v56 }
0x2e9f   : > { %v6715_v7 = vpop.xlane.xlu0 %6714  ;;  %13035 = vpow2.f32 %v6743_v44 }
0x2ea0   : > { %v6736_v55 = vadd.f32 %v15544_v49, %v6715_v7  ;;  %13037 = vpow2.f32 %v6741_v5 }
0x2ea2   : > { %v6747_v17 = vmul.f32 1.442695, %v6736_v55 }
0x2ea3   : > { %v6712_v9 = vpop.xlane.xlu0 %6711  ;;  %v6718_v2 = vpop.xlane.xlu1 %6717 }
0x2ea4   : > { %v6735_v11 = vadd.f32 %v15544_v49, %v6712_v9  ;;  %v6737_v36 = vadd.f32 %v15544_v49, %v6718_v2  ;;  %13039 = vpow2.f32 %v6747_v17 }
0x2ea6   : > { %v6745_v25 = vmul.f32 1.442695, %v6735_v11  ;;  %v6749_v28 = vmul.f32 1.442695, %v6737_v36 }
0x2ea7   : > { %v6724_v22 = vpop.xlane.xlu1 %6723  ;;  %v6721_v60 = vpop.xlane.xlu0 %6720 }
0x2ea8   : > { %13041 = vpow2.f32 %v6745_v25  ;;  %v6739_v10 = vadd.f32 %v15544_v49, %v6724_v22  ;;  %v6738_v35 = vadd.f32 %v15544_v49, %v6721_v60 }
0x2ea9   : > { %13043 = vpow2.f32 %v6749_v28  ;;  %v13036_v1 = vpop.eup %13035 }
0x2eaa   : > { %v6753_v62 = vmul.f32 1.442695, %v6739_v10  ;;  %v6751_v6 = vmul.f32 1.442695, %v6738_v35  ;;  %v13038_v47 = vpop.eup %13037  ;;  %v6772_v20 = vrot.slane %v13036_v1, %v17145_v57 }
0x2eab   : > { %v6727_v50 = vpop.xlane.xlu0 %6726  ;;  %v6768_v43 = vrot.slane %v13038_v47, %v17145_v57 }
0x2eac   : > { %13045 = vpow2.f32 %v6753_v62  ;;  %v6740_v32 = vadd.f32 %v15544_v49, %v6727_v50 }
0x2ead   : > { %13047 = vpow2.f32 %v6751_v6  ;;  %v6797_v7 = vsel %vm1185_vm2, %v6772_v20, %v6768_v43 }
0x2eae   : > { %v6755_v33 = vmul.f32 1.442695, %v6740_v32  ;;  %v13040_v14 = vpop.eup %13039 }
0x2eaf   : > { %v6780_v5 = vrot.slane %v13040_v14, %v17145_v57 }
0x2eb0   : > { %13049 = vpow2.f32 %v6755_v33 }
0x2eb2   : > { %v13042_v16 = vpop.eup %13041 }
0x2eb3   : > { %v13044_v56 = vpop.eup %13043  ;;  %v6776_v44 = vrot.slane %v13042_v16, %v17145_v57 }
0x2eb4   : > { %v6784_v55 = vrot.slane %v13044_v56, %v17145_v57 }
0x2eb5   : > { %v6798_v17 = vsel %vm1187_vm3, %v6776_v44, %v6797_v7 }
0x2eb6   : > { %v13046_v9 = vpop.eup %13045  ;;  %v6799_v2 = vsel %vm1189_vm4, %v6780_v5, %v6798_v17 }
0x2eb7   : > { %v13048_v11 = vpop.eup %13047  ;;  %v6800_v36 = vsel %vm1191_vm5, %v6784_v55, %v6799_v2  ;;  %v6792_v28 = vrot.slane %v13046_v9, %v17145_v57 }
0x2eb8   : > { %v6788_v25 = vrot.slane %v13048_v11, %v17145_v57 }
0x2eba   : > { %v13050_v22 = vpop.eup %13049  ;;  %v6801_v60 = vsel %vm1193_vm6, %v6788_v25, %v6800_v36 }
0x2ebb   : > { %v6796_v10 = vrot.slane %v13050_v22, %v17145_v57  ;;  %v6802_v35 = vsel %vm1195_vm7, %v6792_v28, %v6801_v60 }
0x2ebd   : > { %v6803_v62 = vsel %vm1197_vm8, %v6796_v10, %v6802_v35 }
0x2ebe   : > { %v6806_v6 = vsel %vm6805_vm10, %v6803_v62, 0.0 }
0x2ebf   : > { %6807 = vadd.xlane.f32.xlu1 %v6806_v6 }
0x2f4c   : > { %v6808_v50 = vpop.xlane.xlu1 %6807 }
0x2f4d   : > { %13051 = vrcp.f32 %v6808_v50 }
0x2f57   : > { %v13052_v32 = vpop.eup %13051 }
0x2f58   : > { %v6822_v33 = vrot.slane %v13052_v32, %v17203_v38  ;;  %v6818_v20 = vrot.slane %v13052_v32, %v17147_v34  ;;  %v6826_v5 = vrot.slane %v13052_v32, %v17150_v26  ;;  %v6814_v7 = vrot.slane %v13052_v32, %v17136_v29 }
0x2f59   : > { %v6834_v2 = vrot.slane %v13052_v32, %v13683_v0  ;;  %v6830_v36 = vrot.slane %v13052_v32, %v17148_v39  ;;  %v6842_v60 = vrot.slane %v13052_v32, %v13769_v15 }
0x2f5a   : > { %v6853_v43 = vmul.f32 %v13042_v16, %v6822_v33  ;;  %v6852_v44 = vmul.f32 %v13036_v1, %v6818_v20  ;;  %v6854_v55 = vmul.f32 %v13040_v14, %v6826_v5  ;;  %v6851_v17 = vmul.f32 %v13038_v47, %v6814_v7 }
0x2f5b   : > { %v6856_v25 = vmul.f32 %v13048_v11, %v6834_v2  ;;  %v6855_v28 = vmul.f32 %v13044_v56, %v6830_v36  ;;  %v6838_v1 = vrot.slane %v13052_v32, %v17137_v3  ;;  %v6858_v16 = vmul.f32 %v13050_v22, %v6842_v60 }
0x2f5c   : > { %6871 = vperm.xlu1 %12697, %v6853_v43   ;;  %6866 = vperm.xlu0 %12698, %v6852_v44   ;;  %v6967_v47 = vrot.slane %v15474_v46, %v17203_v38  ;;  %v15582_v14 = vrot.slane %v15513_v52, %v17147_v34 }
0x2f5d   : > { %v6857_v10 = vmul.f32 %v13046_v9, %v6838_v1 }
0x2f5e   : > { %17238 = vst [vmem:[#allocation5_spill] sm:$0xff] %v15582_v14 }
0x2f60   : > { %6876 = vperm.xlu0 %12698, %v6854_v55   ;;  %6861 = vperm.xlu1 %12697, %v6851_v17  }
0x2f64   : > { %6886 = vperm.xlu0 %12698, %v6856_v25   ;;  %6881 = vperm.xlu1 %12697, %v6855_v28  }
0x2f68   : > { %6896 = vperm.xlu0 %12698, %v6858_v16   ;;  %6891 = vperm.xlu1 %12697, %v6857_v10  }
0x2f6c   : > { %6969 = vrot.lane.b32.xlu1 %v6967_v47, %s13371_s12 }
0x2f70   : > { %7013 = vrot.lane.b32.xlu1 %v15582_v14, %s13370_s30 }
0x2fdb   : > { %v6872_v56 = vpop.permute.xlu1 %6871  ;;  %v6867_v11 = vpop.permute.xlu0 %6866 }
0x2fdc   : > { %v6901_v9 = vmul.f32 %v6872_v56, %v15393_v19  ;;  %v6900_v22 = vmul.f32 %v6867_v11, %v15382_v31 }
0x2fde   : > { %v6922_v35 = vsel %vm6907_vm13, %v6901_v9, 0.0  ;;  %v6915_v62 = vsel %vm6907_vm13, %v6900_v22, 0.0 }
0x2fdf   : > { %v6923_v6 = vrot.slane %v6922_v35, 4  ;;  %v6916_v52 = vrot.slane %v6915_v62, 4  ;;  %v6877_v50 = vpop.permute.xlu0 %6876  ;;  %v6862_v32 = vpop.permute.xlu1 %6861 }
0x2fe0   : > { %v6902_v33 = vmul.f32 %v6877_v50, %v15404_v13  ;;  %v6899_v20 = vmul.f32 %v6862_v32, %v15369_v41 }
0x2fe1   : > { %v6924_v43 = vadd.f32 %v6923_v6, %v6922_v35  ;;  %v6917_v44 = vadd.f32 %v6916_v52, %v6915_v62 }
0x2fe2   : > { %v6929_v5 = vsel %vm6907_vm13, %v6902_v33, 0.0  ;;  %v6908_v7 = vsel %vm6907_vm13, %v6899_v20, 0.0 }
0x2fe3   : > { %v6925_v55 = vrot.slane %v6924_v43, 2  ;;  %v6918_v17 = vrot.slane %v6917_v44, 2  ;;  %v6930_v2 = vrot.slane %v6929_v5, 4  ;;  %v6909_v36 = vrot.slane %v6908_v7, 4  ;;  %v6887_v25 = vpop.permute.xlu0 %6886  ;;  %v6882_v28 = vpop.permute.xlu1 %6881 }
0x2fe4   : > { %v6904_v60 = vmul.f32 %v6887_v25, %v15440_v59  ;;  %v6903_v1 = vmul.f32 %v6882_v28, %v15423_v21 }
0x2fe5   : > { %v6926_v16 = vadd.f32 %v6925_v55, %v6924_v43  ;;  %v6919_v10 = vadd.f32 %v6918_v17, %v6917_v44  ;;  %v6931_v47 = vadd.f32 %v6930_v2, %v6929_v5  ;;  %v6910_v56 = vadd.f32 %v6909_v36, %v6908_v7 }
0x2fe6   : > { %v6943_v11 = vsel %vm6907_vm13, %v6904_v60, 0.0  ;;  %v6936_v9 = vsel %vm6907_vm13, %v6903_v1, 0.0 }
0x2fe7   : > { %v6927_v22 = vrot.slane %v6926_v16, 1  ;;  %v6920_v35 = vrot.slane %v6919_v10, 1  ;;  %v6932_v62 = vrot.slane %v6931_v47, 2  ;;  %v6911_v6 = vrot.slane %v6910_v56, 2  ;;  %v6897_v52 = vpop.permute.xlu0 %6896  ;;  %v6892_v50 = vpop.permute.xlu1 %6891 }
0x2fe8   : > { %v6944_v32 = vrot.slane %v6943_v11, 4  ;;  %v6937_v33 = vrot.slane %v6936_v9, 4  ;;  %v6906_v20 = vmul.f32 %v6897_v52, %v15454_v61  ;;  %v6905_v25 = vmul.f32 %v6892_v50, %v15448_v30 }
0x2fe9   : > { %v6928_v43 = vadd.f32 %v6927_v22, %v6926_v16  ;;  %v6921_v44 = vadd.f32 %v6920_v35, %v6919_v10  ;;  %v6933_v5 = vadd.f32 %v6932_v62, %v6931_v47  ;;  %v6912_v7 = vadd.f32 %v6911_v6, %v6910_v56 }
0x2fea   : > { %v6945_v55 = vadd.f32 %v6944_v32, %v6943_v11  ;;  %v6938_v17 = vadd.f32 %v6937_v33, %v6936_v9  ;;  %v6957_v2 = vsel %vm6907_vm13, %v6906_v20, 0.0  ;;  %v6950_v36 = vsel %vm6907_vm13, %v6905_v25, 0.0 }
0x2feb   : > { %v6934_v28 = vrot.slane %v6933_v5, 1  ;;  %v6913_v60 = vrot.slane %v6912_v7, 1  ;;  %v6958_v1 = vrot.slane %v6957_v2, 4  ;;  %v6951_v59 = vrot.slane %v6950_v36, 4  ;;  %v15603_v13 = vpop.permute.xlu1 %6969 }
0x2fec   : > { %17239 = vst [vmem:[#allocation36_spill] sm:$0xff] %v15603_v13  ;;  %v6946_v41 = vrot.slane %v6945_v55, 2  ;;  %v6939_v52 = vrot.slane %v6938_v17, 2  ;;  %v6973_v50 = vmul.f32 %v15603_v13, %v6921_v44  ;;  %v6974_v16 = vmul.f32 %v15603_v13, %v6928_v43 }
0x2fed   : > { %v6935_v10 = vadd.f32 %v6934_v28, %v6933_v5  ;;  %v6914_v47 = vadd.f32 %v6913_v60, %v6912_v7  ;;  %v6959_v56 = vadd.f32 %v6958_v1, %v6957_v2  ;;  %v6952_v11 = vadd.f32 %v6951_v59, %v6950_v36  ;;  %v13343_v60 = vld [vmem:[%s13465_s15] sm:$0xff] }
0x2fee   : > { %v6947_v9 = vadd.f32 %v6946_v41, %v6945_v55  ;;  %v6940_v22 = vadd.f32 %v6939_v52, %v6938_v17  ;;  %v6988_v35 = vrot.slane %v6973_v50, 7  ;;  %v6990_v61 = vrot.slane %v6974_v16, 6  ;;  %v13344_v16 = vld [vmem:[%s13465_s15 + $0x8] sm:$0xff] }
0x2fef   : > { %v6960_v62 = vrot.slane %v6959_v56, 2  ;;  %v6953_v6 = vrot.slane %v6952_v11, 2  ;;  %v6972_v32 = vmul.f32 %v15603_v13, %v6914_v47  ;;  %v6975_v33 = vmul.f32 %v15603_v13, %v6935_v10  ;;  %v7014_v41 = vpop.permute.xlu1 %7013  ;;  %v13345_v47 = vld [vmem:[%s13465_s15 + $0x10] sm:$0xff] }
0x2ff0   : > { %v6948_v20 = vrot.slane %v6947_v9, 1  ;;  %v6941_v25 = vrot.slane %v6940_v22, 1  ;;  %v15613_v1 = vmul.f32 %v13343_v60, %v7014_v41  ;;  %v15618_v10 = vmul.f32 %v13344_v16, %v7014_v41 }
0x2ff1   : > { %v6961_v44 = vadd.f32 %v6960_v62, %v6959_v56  ;;  %v6954_v43 = vadd.f32 %v6953_v6, %v6952_v11  ;;  %v6989_v5 = vsel %vm1185_vm2, %v6988_v35, %v6972_v32  ;;  %v6992_v59 = vrot.slane %v6975_v33, 5  ;;  %v13347_v35 = vld [vmem:[%s13465_s15 + $0x20] sm:$0xff]  ;;  %v13348_v33 = vld [vmem:[%s13465_s15 + $0x28] sm:$0xff] }
0x2ff2   : > { %v6949_v7 = vadd.f32 %v6948_v20, %v6947_v9  ;;  %v6942_v55 = vadd.f32 %v6941_v25, %v6940_v22  ;;  %v6991_v17 = vsel %vm1187_vm3, %v6990_v61, %v6989_v5  ;;  %v15621_v56 = vmul.f32 %v13345_v47, %v7014_v41  ;;  %v13346_v9 = vld [vmem:[%s13465_s15 + $0x18] sm:$0xff] }
0x2ff3   : > { %v6962_v2 = vrot.slane %v6961_v44, 1  ;;  %v6955_v36 = vrot.slane %v6954_v43, 1  ;;  %v6993_v28 = vsel %vm1189_vm4, %v6992_v59, %v6991_v17  ;;  %v15624_v22 = vmul.f32 %v13346_v9, %v7014_v41  ;;  %v13349_v25 = vld [vmem:[%s13465_s15 + $0x38] sm:$0xff]  ;;  %v287_v17 = vld [vmem:[%s16900_s4 + $0x8] sm:$0xff]  ;;  %v288_v9 = vld [vmem:[%s16900_s4 + $0x10] sm:$0xff] }
0x2ff4   : > { %v6976_v52 = vmul.f32 %v15603_v13, %v6942_v55  ;;  %v6977_v50 = vmul.f32 %v15603_v13, %v6949_v7  ;;  %v15627_v62 = vmul.f32 %v13347_v35, %v7014_v41  ;;  %v15630_v20 = vmul.f32 %v13348_v33, %v7014_v41  ;;  %v286_v55 = vld [vmem:[%s16900_s4] sm:$0xff] }
0x2ff5   : > { %v6963_v61 = vadd.f32 %v6962_v2, %v6961_v44  ;;  %v6956_v11 = vadd.f32 %v6955_v36, %v6954_v43  ;;  %v15633_v5 = vmul.f32 %v13349_v25, %v7014_v41  ;;  %v7032_v43 = vrot.slane %v15618_v10, 7  ;;  %v13350_v36 = vld [vmem:[%s13465_s15 + $0x30] sm:$0xff]  ;;  %s13372_s15 = smov 125  }
0x2ff6   : > { %v6994_v6 = vrot.slane %v6976_v52, 4  ;;  %v6996_v32 = vrot.slane %v6977_v50, 3  ;;  %v7034_v7 = vrot.slane %v15621_v56, 6  ;;  %v15647_v60 = vmul.f32 %v13350_v36, %v7014_v41  ;;  %v289_v41 = vld [vmem:[%s16900_s4 + $0x18] sm:$0xff] }
0x2ff7   : > { %v6978_v59 = vmul.f32 %v15603_v13, %v6956_v11  ;;  %v6979_v44 = vmul.f32 %v15603_v13, %v6963_v61  ;;  %v7036_v52 = vrot.slane %v15624_v22, 5  ;;  %v7038_v50 = vrot.slane %v15627_v62, 4 }
0x2ff8   : > { %v6995_v2 = vsel %vm1191_vm5, %v6994_v6, %v6993_v28  ;;  %v7033_v61 = vsel %vm1185_vm2, %v7032_v43, %v15613_v1  ;;  %v7040_v11 = vrot.slane %v15630_v20, 3  ;;  %v7042_v6 = vrot.slane %v15647_v60, 2 }
0x2ff9   : > { %v6998_v16 = vrot.slane %v6978_v59, 2  ;;  %v7000_v47 = vrot.slane %v6979_v44, 1  ;;  %v6997_v28 = vsel %vm1193_vm6, %v6996_v32, %v6995_v2  ;;  %v7035_v35 = vsel %vm1187_vm3, %v7034_v7, %v7033_v61 }
0x2ffa   : > { %v15663_v33 = vpack.c.bf16 %v287_v17, %v286_v55  ;;  %v7037_v59 = vsel %vm1189_vm4, %v7036_v52, %v7035_v35  ;;  %v7044_v44 = vrot.slane %v15633_v5, 1  ;;  %v15671_v13 = vpack.c.bf16 %v289_v41, %v288_v9 }
0x2ffb   : > { %v6999_v25 = vsel %vm1195_vm7, %v6998_v16, %v6997_v28  ;;  %v7039_v36 = vsel %vm1191_vm5, %v7038_v50, %v7037_v59  ;;  %v7643_v17 = vrot.slane %v15613_v1, 1  ;;  %v7645_v2 = vrot.slane %v15621_v56, 7 }
0x2ffc   : > { %v7001_v43 = vsel %vm1197_vm8, %v7000_v47, %v6999_v25  ;;  %12542 = vmatpush3.bf16.msra.mxu0 %v15663_v33  ;;  %v7041_v32 = vsel %vm1193_vm6, %v7040_v11, %v7039_v36  ;;  %v8245_v52 = vrot.slane %v15613_v1, 2  ;;  %v8246_v50 = vrot.slane %v15618_v10, 1 }
0x2ffd   : > { %7002 = vrot.lane.b32.xlu0 %v7001_v43, %s13368_s17  ;;  %12543 = vmatprep.subr.bf16.mxu0 %v17151_v24  ;;  %v7043_v7 = vsel %vm1195_vm7, %v7042_v6, %v7041_v32  ;;  %v7644_v16 = vsel %vm1185_vm2, %v15618_v10, %v7643_v17  ;;  %v7647_v47 = vrot.slane %v15624_v22, 6  ;;  %v7649_v11 = vrot.slane %v15627_v62, 5 }
0x2ffe   : > { %v7045_v55 = vsel %vm1197_vm8, %v7044_v44, %v7043_v7  ;;  %v7646_v61 = vsel %vm1187_vm3, %v7645_v2, %v7644_v16  ;;  %v8247_v9 = vsel %vm1185_vm2, %v8246_v50, %v8245_v52  ;;  %v8249_v41 = vrot.slane %v15624_v22, 7 }
0x2fff   : > { %7046 = vrot.lane.b32.xlu1 %v7045_v55, %s13370_s30  ;;  %v7648_v28 = vsel %vm1189_vm4, %v7647_v47, %v7646_v61  ;;  %v7651_v35 = vrot.slane %v15630_v20, 4  ;;  %v8248_v6 = vsel %vm1187_vm3, %v15621_v56, %v8247_v9  ;;  %v8251_v25 = vrot.slane %v15627_v62, 6 }
0x3000   : > { %12545 = vmatpush3.bf16.msra.mxu0 %v15671_v13  ;;  %v7650_v59 = vsel %vm1191_vm5, %v7649_v11, %v7648_v28  ;;  %v7653_v44 = vrot.slane %v15647_v60, 3  ;;  %v8250_v43 = vsel %vm1189_vm4, %v8249_v41, %v8248_v6  ;;  %v8253_v36 = vrot.slane %v15630_v20, 5 }
0x3001   : > { %12147 = vmatprep.subr.mxu0 %v17152_v63  ;;  %v7652_v32 = vsel %vm1193_vm6, %v7651_v35, %v7650_v59  ;;  %v7655_v7 = vrot.slane %v15633_v5, 2  ;;  %v8252_v55 = vsel %vm1191_vm5, %v8251_v25, %v8250_v43  ;;  %v8255_v17 = vrot.slane %v15647_v60, 4 }
0x3002   : > { %v7654_v2 = vsel %vm1195_vm7, %v7653_v44, %v7652_v32  ;;  %v8254_v52 = vsel %vm1193_vm6, %v8253_v36, %v8252_v55  ;;  %v8257_v50 = vrot.slane %v15633_v5, 3  ;;  %v8847_v16 = vrot.slane %v15613_v1, 3 }
0x3003   : > { %7050 = vrot.lane.b32.xlu1 %v15582_v14, %s13372_s15  ;;  %v15711_v47 = vsel %vm1197_vm8, %v7655_v7, %v7654_v2  ;;  %v8256_v61 = vsel %vm1195_vm7, %v8255_v17, %v8254_v52  ;;  %v8848_v11 = vrot.slane %v15618_v10, 2  ;;  %v8850_v9 = vrot.slane %v15621_v56, 1 }
0x3004   : > { %v15717_v41 = vsel %vm1197_vm8, %v8257_v50, %v8256_v61  ;;  %v8853_v28 = vrot.slane %v15627_v62, 7  ;;  %v8855_v35 = vrot.slane %v15630_v20, 6  ;;  %v8857_v6 = vrot.slane %v15647_v60, 5 }
0x3005   : > { %17240 = vst [vmem:[#allocation25_spill] sm:$0xff] %v15717_v41  ;;  %v8849_v25 = vsel %vm1185_vm2, %v8848_v11, %v8847_v16  ;;  %v8859_v59 = vrot.slane %v15633_v5, 4  ;;  %v9449_v44 = vrot.slane %v15613_v1, 4  ;;  %v9450_v43 = vrot.slane %v15618_v10, 3 }
0x3006   : > { %v8851_v36 = vsel %vm1187_vm3, %v8850_v9, %v8849_v25  ;;  %v9452_v32 = vrot.slane %v15621_v56, 2  ;;  %v9454_v7 = vrot.slane %v15624_v22, 1  ;;  %v9457_v55 = vrot.slane %v15630_v20, 7 }
0x3007   : > { %v8852_v17 = vsel %vm1189_vm4, %v15624_v22, %v8851_v36  ;;  %v9451_v2 = vsel %vm1185_vm2, %v9450_v43, %v9449_v44  ;;  %v9459_v52 = vrot.slane %v15647_v60, 6  ;;  %v9461_v50 = vrot.slane %v15633_v5, 5 }
0x3008   : > { %v8854_v16 = vsel %vm1191_vm5, %v8853_v28, %v8852_v17  ;;  %v9453_v61 = vsel %vm1187_vm3, %v9452_v32, %v9451_v2  ;;  %v10051_v11 = vrot.slane %v15613_v1, 5  ;;  %v10052_v9 = vrot.slane %v15618_v10, 4 }
0x3009   : > { %v8856_v25 = vsel %vm1193_vm6, %v8855_v35, %v8854_v16  ;;  %v9455_v14 = vsel %vm1189_vm4, %v9454_v7, %v9453_v61  ;;  %v10054_v36 = vrot.slane %v15621_v56, 3  ;;  %v10056_v44 = vrot.slane %v15624_v22, 2 }
0x300a   : > { %v8858_v43 = vsel %vm1195_vm7, %v8857_v6, %v8856_v25  ;;  %v9456_v41 = vsel %vm1191_vm5, %v15627_v62, %v9455_v14  ;;  %v10053_v28 = vsel %vm1185_vm2, %v10052_v9, %v10051_v11  ;;  %v10058_v32 = vrot.slane %v15627_v62, 1 }
0x300b   : > { %v15749_v17 = vsel %vm1197_vm8, %v8859_v59, %v8858_v43  ;;  %v9458_v35 = vsel %vm1193_vm6, %v9457_v55, %v9456_v41  ;;  %v10055_v7 = vsel %vm1187_vm3, %v10054_v36, %v10053_v28  ;;  %v10061_v2 = vrot.slane %v15647_v60, 7 }
0x300c   : > { %17241 = vst [vmem:[#allocation2_spill] sm:$0xff] %v15749_v17  ;;  %v9460_v16 = vsel %vm1195_vm7, %v9459_v52, %v9458_v35  ;;  %v10057_v6 = vsel %vm1189_vm4, %v10056_v44, %v10055_v7  ;;  %v10063_v61 = vrot.slane %v15633_v5, 6  ;;  %v10653_v14 = vrot.slane %v15613_v1, 6 }
0x300d   : > { %v15759_v11 = vsel %vm1197_vm8, %v9461_v50, %v9460_v16  ;;  %v10059_v59 = vsel %vm1191_vm5, %v10058_v32, %v10057_v6  ;;  %v10654_v9 = vrot.slane %v15618_v10, 5  ;;  %v10656_v41 = vrot.slane %v15621_v56, 4 }
0x300e   : > { %17242 = vst [vmem:[#allocation3_spill] sm:$0xff] %v15759_v11  ;;  %v10060_v55 = vsel %vm1193_vm6, %v15630_v20, %v10059_v59  ;;  %v10658_v52 = vrot.slane %v15624_v22, 3  ;;  %v10660_v25 = vrot.slane %v15627_v62, 2  ;;  %v10662_v50 = vrot.slane %v15630_v20, 1 }
0x300f   : > { %v10062_v36 = vsel %vm1195_vm7, %v10061_v2, %v10060_v55  ;;  %v10655_v44 = vsel %vm1185_vm2, %v10654_v9, %v10653_v14  ;;  %v11255_v43 = vrot.slane %v15613_v1, 7  ;;  %v11256_v35 = vrot.slane %v15618_v10, 6 }
0x3010   : > { %v15773_v28 = vsel %vm1197_vm8, %v10063_v61, %v10062_v36  ;;  %v10657_v32 = vsel %vm1187_vm3, %v10656_v41, %v10655_v44  ;;  %v11258_v7 = vrot.slane %v15621_v56, 5  ;;  %v10665_v6 = vrot.slane %v15633_v5, 7 }
0x3011   : > { %17243 = vst [vmem:[#allocation7_spill] sm:$0xff] %v15773_v28  ;;  %v10659_v16 = vsel %vm1189_vm4, %v10658_v52, %v10657_v32  ;;  %v11260_v2 = vrot.slane %v15624_v22, 4  ;;  %v11262_v14 = vrot.slane %v15627_v62, 3  ;;  %v11257_v1 = vsel %vm1185_vm2, %v11256_v35, %v11255_v43 }
0x3012   : > { %v10661_v59 = vsel %vm1191_vm5, %v10660_v25, %v10659_v16  ;;  %v11264_v61 = vrot.slane %v15630_v20, 2  ;;  %v11259_v10 = vsel %vm1187_vm3, %v11258_v7, %v11257_v1  ;;  %v11266_v56 = vrot.slane %v15647_v60, 1 }
0x3013   : > { %v10663_v9 = vsel %vm1193_vm6, %v10662_v50, %v10661_v59  ;;  %v11261_v55 = vsel %vm1189_vm4, %v11260_v2, %v11259_v10  ;;  %v15826_v16 = vrot.slane %v15474_v46, %v17147_v34 }
0x3014   : > { %v10664_v41 = vsel %vm1195_vm7, %v15647_v60, %v10663_v9  ;;  %v11263_v62 = vsel %vm1191_vm5, %v11262_v14, %v11261_v55  ;;  %v15805_v60 = vld [vmem:[%s16900_s4 + $0x20] sm:$0x1] }
0x3015   : > { %v15792_v22 = vsel %vm1197_vm8, %v10665_v6, %v10664_v41  ;;  %v11265_v52 = vsel %vm1193_vm6, %v11264_v61, %v11263_v62  ;;  %12148 = vmatpush3.msk.msra.mxu0 %vm17246_vm14, %v15805_v60  ;;  %vm17248_vm14 = vcmask 523264  }
0x3016   : > { %17244 = vst [vmem:[#allocation12_spill] sm:$0xff] %v15792_v22  ;;  %v11267_v20 = vsel %vm1195_vm7, %v11266_v56, %v11265_v52  ;;  %12558 = vmatprep.subr.bf16.mxu0 %v17151_v24 }
0x3017   : > { %v15799_v25 = vsel %vm1197_vm8, %v15633_v5, %v11267_v20 }
0x3018   : > { %17245 = vst [vmem:[#allocation10_spill] sm:$0xff] %v15799_v25 }
0x306f   : > { %v7003_v36 = vpop.permute.xlu0 %7002 }
0x3070   : > { %v7005_v44 = vsel %vm1575_vm12, %v7003_v36, 0.0 }
0x3071   : > { %7006 = vadd.xlane.f32.xlu0 %v7005_v44  ;;  %v7047_v50 = vpop.permute.xlu1 %7046 }
0x3075   : > { %v15810_v32 = vpop.permute.xlu1 %7050 }
0x30fe   : > { %v7007_v43 = vpop.xlane.xlu0 %7006 }
0x30ff   : > { %v7049_v5 = vadd.f32 %v7047_v50, %v7007_v43 }
0x3101   : > { %v7053_v35 = vadd.f32 %v15810_v32, %v7049_v5 }
0x3103   : > { %v7055_v7 = vsel %vm7054_vm15, %v7053_v35, 0.0 }
0x3104   : > { %12150 = vmatmul.mubr.msk.f32.vlgmr.msra.gmra.mrb[24].mxu0 %vm7060_vm1, %v7055_v7 }
0x3105   : > { %12560 = vmatpush3.bf16.msra.mxu0 %v15663_v33  ;;  %12181 = vmatprep.mubr.msk.f32.mxu0 %vm13363_vm0, %v17152_v63 }
0x3106   : > { %12561 = vmatprep.subr.bf16.mxu0 %v17151_v24 }
0x3109   : > { %12563 = vmatpush3.bf16.msra.mxu0 %v15671_v13 }
0x310a   : > { %12179 = vmatprep.subr.mxu0 %v17152_v63 }
0x310d   : > { %12180 = vmatpush3.msk.msra.mxu0 %vm17247_vm11, %v15805_v60 }
0x310e   : > { %12576 = vmatprep.subr.bf16.mxu0 %v17151_v24 }
0x31d7   : > { %v7133_v6 = vpop.f32.mrb[24].mxu0 }
0x31d8   : > { %v7134_v2 = vadd.f32 %v7133_v6, %v15826_v16  ;;  %v12151_v14 = vpop.f32.mrb[25].mxu0 }
0x31da   : > { %v11553_v59 = vmul.f32 -1.442695, %v7134_v2 }
0x31dc   : > { %13053 = vpow2.f32 %v11553_v59 }
0x31e6   : > { %v13054_v1 = vpop.eup %13053 }
0x31e7   : > { %v7140_v61 = vadd.f32 1.0, %v13054_v1 }
0x31e9   : > { %13055 = vrcp.f32 %v7140_v61 }
0x31f3   : > { %v13056_v9 = vpop.eup %13055 }
0x31f4   : > { %v7143_v10 = vmul.f32 2.0, %v13056_v9  ;;  %v7145_v46 = vmul.f32 0.0, %v13056_v9 }
0x31f6   : > { %v11554_v56 = vadd.f32 -1.0, %v7143_v10 }
0x31f8   : > { %7147 = vrot.lane.b32.xlu1 %v11554_v56, %s13367_s16 }
0x326a   : > { %v7148_v41 = vpop.permute.xlu1 %7147 }
0x326b   : > { %v7150_v55 = vmul.f32 %v13056_v9, %v7148_v41 }
0x326d   : > { %7152 = vrot.lane.b32.xlu1 %v7150_v55, %s13368_s17 }
0x32df   : > { %v7153_v62 = vpop.permute.xlu1 %7152 }
0x32e0   : > { %v15831_v52 = vadd.f32 %v7153_v62, %v7145_v46 }
0x32e2   : > { %13057 = vtanh.f32 %v15831_v52 }
0x32ec   : > { %v13058_v20 = vpop.eup %13057 }
0x32ed   : > { %7158 = vrot.lane.b32.xlu1 %v13058_v20, %s13367_s16 }
0x335f   : > { %v7159_v36 = vpop.permute.xlu1 %7158 }
0x3360   : > { %v15835_v44 = vmul.f32 %v13056_v9, %v7159_v36 }
0x3362   : > { %7163 = vrot.lane.b32.xlu1 %v15835_v44, %s13368_s17 }
0x33d4   : > { %v7164_v50 = vpop.permute.xlu1 %7163 }
0x33d5   : > { %v7166_v43 = vsel %vm1575_vm12, %v7164_v50, %v15831_v52 }
0x33d6   : > { %12169 = vmatmul.mubr.msk.f32.vlgmr.msra.gmra.mrb[18].mxu1 %vm17248_vm14, %v7166_v43 }
0x33d7   : > { %12566 = vmatpush3.bf16.msra.mxu1 %v15147_v48  ;;  %12200 = vmatprep.mubr.msk.f32.mxu1 %vm13363_vm0, %v17152_v63 }
0x33d8   : > { %12567 = vmatprep.subr.bf16.mxu1 %v17151_v24 }
0x33db   : > { %12569 = vmatpush3.bf16.msra.mxu1 %v15156_v8 }
0x33dc   : > { %12570 = vmatprep.subr.bf16.mxu1 %v17151_v24 }
0x33df   : > { %12572 = vmatpush3.bf16.msra.mxu1 %v15175_v18  ;;  %v17251_v18 = vld [vmem:[#allocation34_spill] sm:$0xff] }
0x33e0   : > { %12573 = vmatprep.subr.bf16.mxu1 %v17151_v24 }
0x33e3   : > { %12575 = vmatpush3.bf16.msra.mxu1 %v15185_v58 }
0x33e4   : > { %12594 = vmatprep.subr.bf16.mxu1 %v17151_v24 }
0x34a9   : > { %v7236_v5 = vpop.f32.mrb[18].mxu1 }
0x34aa   : > { %v7237_v35 = vadd.f32 %v7236_v5, %v15478_v53  ;;  %v12170_v7 = vpop.f32.mrb[19].mxu1 }
0x34ac   : > { %v7241_v6 = vcombine.high %v7237_v35, %v7237_v35  ;;  %v7248_v2 = vrot.slane %v7237_v35, %v17134_v12 }
0x34ae   : > { %v7255_v14 = vrot.slane %v7241_v6, %v17134_v12  ;;  %v7256_v59 = vcombine.high %v7248_v2, %v7248_v2  ;;  %v7264_v1 = vrot.slane %v7248_v2, %v17134_v12 }
0x34b0   : > { %v7257_v61 = vcombine.high %v7255_v14, %v7255_v14  ;;  %v7271_v9 = vrot.slane %v7255_v14, %v17134_v12  ;;  %v7278_v10 = vrot.slane %v7256_v59, %v17134_v12  ;;  %v7286_v56 = vcombine.high %v7264_v1, %v7264_v1 }
0x34b1   : > { %v7293_v41 = vrot.slane %v7264_v1, %v17136_v29 }
0x34b2   : > { %v7285_v55 = vrot.slane %v7257_v61, %v17134_v12  ;;  %v7287_v46 = vcombine.high %v7271_v9, %v7271_v9  ;;  %v7288_v62 = vcombine.high %v7278_v10, %v7278_v10  ;;  %v7297_v20 = vrot.slane %v7278_v10, %v17136_v29 }
0x34b3   : > { %v7301_v36 = vrot.slane %v7286_v56, %v17136_v29  ;;  %v7309_v50 = vrot.slane %v7271_v9, %v17136_v29  ;;  %v7330_v43 = vadd.f32 %v7293_v41, %v15490_v23 }
0x34b4   : > { %v7289_v5 = vcombine.high %v7285_v55, %v7285_v55  ;;  %v7305_v35 = vrot.slane %v7288_v62, %v17136_v29  ;;  %v7313_v7 = vrot.slane %v7285_v55, %v17136_v29  ;;  %v7317_v6 = vrot.slane %v7287_v46, %v17136_v29 }
0x34b5   : > { %v7331_v2 = vadd.f32 %v15487_v51, %v7297_v20  ;;  %v7332_v14 = vadd.f32 %v7301_v36, %v15499_v27  ;;  %v7334_v59 = vadd.f32 %v7309_v50, %v15507_v37  ;;  %13059 = vtanh.f32 %v7330_v43 }
0x34b6   : > { %v7321_v1 = vrot.slane %v7289_v5, %v17136_v29  ;;  %v7333_v61 = vadd.f32 %v15497_v45, %v7305_v35  ;;  %v7335_v9 = vadd.f32 %v15505_v4, %v7313_v7  ;;  %v7336_v10 = vadd.f32 %v7317_v6, %v15524_v54 }
0x34b7   : > { %13061 = vtanh.f32 %v7331_v2 }
0x34b8   : > { %v7337_v56 = vadd.f32 %v15522_v42, %v7321_v1  ;;  %13063 = vtanh.f32 %v7332_v14 }
0x34b9   : > { %13065 = vtanh.f32 %v7334_v59 }
0x34ba   : > { %13067 = vtanh.f32 %v7333_v61 }
0x34bb   : > { %13069 = vtanh.f32 %v7335_v9 }
0x34bc   : > { %13071 = vtanh.f32 %v7336_v10 }
0x34bd   : > { %13073 = vtanh.f32 %v7337_v56 }
0x34bf   : > { %v13060_v41 = vpop.eup %13059 }
0x34c0   : > { %v7346_v55 = vmul.f32 %v13060_v41, %v15517_v40 }
0x34c1   : > { %v13062_v46 = vpop.eup %13061 }
0x34c2   : > { %v13064_v62 = vpop.eup %13063  ;;  %v7354_v20 = vsel %vm1200_vm9, %v7346_v55, 0.0  ;;  %v7347_v36 = vmul.f32 %v13062_v46, %v15517_v40 }
0x34c3   : > { %7355 = vadd.xlane.f32.xlu1 %v7354_v20  ;;  %v7348_v43 = vmul.f32 %v13064_v62, %v15517_v40  ;;  %v13066_v5 = vpop.eup %13065 }
0x34c4   : > { %v7357_v50 = vsel %vm1200_vm9, %v7347_v36, 0.0  ;;  %v7350_v7 = vmul.f32 %v13066_v5, %v15517_v40  ;;  %v13068_v6 = vpop.eup %13067 }
0x34c5   : > { %7358 = vadd.xlane.f32.xlu0 %v7357_v50  ;;  %v7360_v35 = vsel %vm1200_vm9, %v7348_v43, 0.0  ;;  %v7349_v14 = vmul.f32 %v13068_v6, %v15517_v40  ;;  %v13070_v59 = vpop.eup %13069 }
0x34c6   : > { %v7366_v2 = vsel %vm1200_vm9, %v7350_v7, 0.0  ;;  %v7351_v61 = vmul.f32 %v13070_v59, %v15517_v40  ;;  %v13072_v9 = vpop.eup %13071 }
0x34c7   : > { %v7363_v1 = vsel %vm1200_vm9, %v7349_v14, 0.0  ;;  %v7352_v41 = vmul.f32 %v13072_v9, %v15517_v40  ;;  %v13074_v55 = vpop.eup %13073 }
0x34c8   : > { %v7369_v10 = vsel %vm1200_vm9, %v7351_v61, 0.0  ;;  %v7353_v46 = vmul.f32 %v13074_v55, %v15517_v40 }
0x34c9   : > { %7361 = vadd.xlane.f32.xlu0 %v7360_v35  ;;  %v7372_v56 = vsel %vm1200_vm9, %v7352_v41, 0.0 }
0x34ca   : > { %v7375_v62 = vsel %vm1200_vm9, %v7353_v46, 0.0 }
0x34cd   : > { %7367 = vadd.xlane.f32.xlu0 %v7366_v2 }
0x34d1   : > { %7364 = vadd.xlane.f32.xlu0 %v7363_v1 }
0x34d5   : > { %7370 = vadd.xlane.f32.xlu0 %v7369_v10 }
0x34d9   : > { %7373 = vadd.xlane.f32.xlu0 %v7372_v56 }
0x34dd   : > { %7376 = vadd.xlane.f32.xlu0 %v7375_v62 }
0x3550   : > { %v7356_v50 = vpop.xlane.xlu1 %7355 }
0x3551   : > { %v7378_v43 = vadd.f32 %v7356_v50, %v15544_v49 }
0x3552   : > { %v7359_v20 = vpop.xlane.xlu0 %7358 }
0x3553   : > { %v7379_v35 = vadd.f32 %v7359_v20, %v15544_v49  ;;  %v7386_v6 = vmul.f32 1.442695, %v7378_v43 }
0x3555   : > { %v7388_v14 = vmul.f32 1.442695, %v7379_v35  ;;  %13075 = vpow2.f32 %v7386_v6 }
0x3556   : > { %v7362_v36 = vpop.xlane.xlu0 %7361 }
0x3557   : > { %v7380_v7 = vadd.f32 %v7362_v36, %v15544_v49  ;;  %13077 = vpow2.f32 %v7388_v14 }
0x3559   : > { %v7390_v1 = vmul.f32 1.442695, %v7380_v7 }
0x355a   : > { %v7368_v5 = vpop.xlane.xlu0 %7367 }
0x355b   : > { %v7382_v9 = vadd.f32 %v7368_v5, %v15544_v49  ;;  %13079 = vpow2.f32 %v7390_v1 }
0x355d   : > { %v7394_v56 = vmul.f32 1.442695, %v7382_v9 }
0x355e   : > { %v7365_v2 = vpop.xlane.xlu0 %7364 }
0x355f   : > { %v7381_v59 = vadd.f32 %v7365_v2, %v15544_v49  ;;  %v13076_v43 = vpop.eup %13075 }
0x3561   : > { %v7392_v61 = vmul.f32 1.442695, %v7381_v59  ;;  %v13078_v5 = vpop.eup %13077  ;;  %v7413_v59 = vrot.slane %v13076_v43, %v17145_v57 }
0x3562   : > { %v7371_v10 = vpop.xlane.xlu0 %7370  ;;  %v7417_v2 = vrot.slane %v13078_v5, %v17145_v57 }
0x3563   : > { %v7383_v41 = vadd.f32 %v7371_v10, %v15544_v49  ;;  %13081 = vpow2.f32 %v7392_v61 }
0x3564   : > { %v7442_v10 = vsel %vm1185_vm2, %v7417_v2, %v7413_v59 }
0x3565   : > { %v7396_v55 = vmul.f32 1.442695, %v7383_v41  ;;  %v13080_v7 = vpop.eup %13079 }
0x3566   : > { %v7374_v46 = vpop.xlane.xlu0 %7373  ;;  %v7421_v14 = vrot.slane %v13080_v7, %v17145_v57 }
0x3567   : > { %v7384_v62 = vadd.f32 %v7374_v46, %v15544_v49  ;;  %13083 = vpow2.f32 %v7396_v55 }
0x3568   : > { %13085 = vpow2.f32 %v7394_v56  ;;  %v7443_v55 = vsel %vm1187_vm3, %v7421_v14, %v7442_v10 }
0x3569   : > { %v7398_v20 = vmul.f32 1.442695, %v7384_v62 }
0x356a   : > { %v7377_v36 = vpop.xlane.xlu0 %7376 }
0x356b   : > { %13087 = vpow2.f32 %v7398_v20  ;;  %v7385_v50 = vadd.f32 %v7377_v36, %v15544_v49 }
0x356d   : > { %v7400_v35 = vmul.f32 1.442695, %v7385_v50  ;;  %v13082_v6 = vpop.eup %13081 }
0x356e   : > { %v7425_v1 = vrot.slane %v13082_v6, %v17145_v57 }
0x356f   : > { %13089 = vpow2.f32 %v7400_v35 }
0x3570   : > { %v7444_v46 = vsel %vm1189_vm4, %v7425_v1, %v7443_v55 }
0x3571   : > { %v13084_v61 = vpop.eup %13083 }
0x3572   : > { %v13086_v9 = vpop.eup %13085  ;;  %v7433_v56 = vrot.slane %v13084_v61, %v17145_v57 }
0x3573   : > { %v7429_v62 = vrot.slane %v13086_v9, %v17145_v57 }
0x3575   : > { %v13088_v41 = vpop.eup %13087  ;;  %v7445_v50 = vsel %vm1191_vm5, %v7429_v62, %v7444_v46 }
0x3576   : > { %v7437_v20 = vrot.slane %v13088_v41, %v17145_v57  ;;  %v7446_v25 = vsel %vm1193_vm6, %v7433_v56, %v7445_v50 }
0x3578   : > { %v7447_v2 = vsel %vm1195_vm7, %v7437_v20, %v7446_v25 }
0x3579   : > { %v13090_v36 = vpop.eup %13089 }
0x357a   : > { %v7441_v35 = vrot.slane %v13090_v36, %v17145_v57 }
0x357c   : > { %v7448_v59 = vsel %vm1197_vm8, %v7441_v35, %v7447_v2 }
0x357d   : > { %v7450_v14 = vsel %vm6805_vm10, %v7448_v59, 0.0 }
0x357e   : > { %7451 = vadd.xlane.f32.xlu0 %v7450_v14 }
0x360b   : > { %v7452_v10 = vpop.xlane.xlu0 %7451 }
0x360c   : > { %13091 = vrcp.f32 %v7452_v10 }
0x3616   : > { %v13092_v1 = vpop.eup %13091 }
0x3617   : > { %v7466_v55 = vrot.slane %v13092_v1, %v17203_v38  ;;  %v7462_v22 = vrot.slane %v13092_v1, %v17147_v34  ;;  %v7474_v62 = vrot.slane %v13092_v1, %v17148_v39  ;;  %v7458_v56 = vrot.slane %v13092_v1, %v17136_v29 }
0x3618   : > { %v7482_v50 = vrot.slane %v13092_v1, %v17137_v3  ;;  %v7470_v35 = vrot.slane %v13092_v1, %v17150_v26  ;;  %v7478_v14 = vrot.slane %v13092_v1, %v13683_v0 }
0x3619   : > { %v7497_v28 = vmul.f32 %v13080_v7, %v7466_v55  ;;  %v7496_v46 = vmul.f32 %v13078_v5, %v7462_v22  ;;  %v7499_v25 = vmul.f32 %v13086_v9, %v7474_v62  ;;  %v7495_v20 = vmul.f32 %v13076_v43, %v7458_v56 }
0x361a   : > { %v7501_v2 = vmul.f32 %v13088_v41, %v7482_v50  ;;  %v7498_v59 = vmul.f32 %v13082_v6, %v7470_v35  ;;  %v7500_v22 = vmul.f32 %v13084_v61, %v7478_v14  ;;  %v7486_v5 = vrot.slane %v13092_v1, %v13769_v15  ;;  %v17249_v1 = vld [vmem:[#allocation14_spill] sm:$0xff] }
0x361b   : > { %7515 = vperm.xlu0 %12698, %v7497_v28   ;;  %7510 = vperm.xlu1 %12697, %v7496_v46  }
0x361c   : > { %v7502_v28 = vmul.f32 %v13090_v36, %v7486_v5 }
0x361f   : > { %7525 = vperm.xlu0 %12698, %v7499_v25   ;;  %7505 = vperm.xlu1 %12697, %v7495_v20  }
0x3623   : > { %7535 = vperm.xlu0 %12698, %v7501_v2   ;;  %7520 = vperm.xlu1 %12697, %v7498_v59  }
0x3627   : > { %7530 = vperm.xlu1 %12697, %v7500_v22  }
0x362b   : > { %7540 = vperm.xlu1 %12697, %v7502_v28  }
0x369a   : > { %v7516_v7 = vpop.permute.xlu0 %7515  ;;  %v7511_v43 = vpop.permute.xlu1 %7510 }
0x369b   : > { %v7545_v9 = vmul.f32 %v7516_v7, %v15393_v19  ;;  %v7544_v10 = vmul.f32 %v7511_v43, %v15382_v31  ;;  %v17250_v43 = vld [vmem:[#allocation17_spill] sm:$0xff] }
0x369d   : > { %v7565_v55 = vsel %vm6907_vm13, %v7545_v9, 0.0  ;;  %v7558_v6 = vsel %vm6907_vm13, %v7544_v10, 0.0 }
0x369e   : > { %v7566_v41 = vrot.slane %v7565_v55, 4  ;;  %v7559_v46 = vrot.slane %v7558_v6, 4  ;;  %v7526_v62 = vpop.permute.xlu0 %7525  ;;  %v7506_v56 = vpop.permute.xlu1 %7505 }
0x369f   : > { %v7547_v61 = vmul.f32 %v7526_v62, %v15423_v21  ;;  %v7543_v25 = vmul.f32 %v7506_v56, %v17249_v1  ;;  %v17253_v1 = vld [vmem:[#allocation36_spill] sm:$0xff] }
0x36a0   : > { %v7567_v36 = vadd.f32 %v7566_v41, %v7565_v55  ;;  %v7560_v20 = vadd.f32 %v7559_v46, %v7558_v6 }
0x36a1   : > { %v7579_v50 = vsel %vm6907_vm13, %v7547_v61, 0.0  ;;  %v7551_v35 = vsel %vm6907_vm13, %v7543_v25, 0.0 }
0x36a2   : > { %v7568_v2 = vrot.slane %v7567_v36, 2  ;;  %v7561_v59 = vrot.slane %v7560_v20, 2  ;;  %v7580_v14 = vrot.slane %v7579_v50, 4  ;;  %v7552_v22 = vrot.slane %v7551_v35, 4  ;;  %v7536_v5 = vpop.permute.xlu0 %7535  ;;  %v7521_v28 = vpop.permute.xlu1 %7520 }
0x36a3   : > { %v7549_v7 = vmul.f32 %v7536_v5, %v15448_v30  ;;  %v7546_v9 = vmul.f32 %v7521_v28, %v17250_v43 }
0x36a4   : > { %v7569_v10 = vadd.f32 %v7568_v2, %v7567_v36  ;;  %v7562_v62 = vadd.f32 %v7561_v59, %v7560_v20  ;;  %v7581_v11 = vadd.f32 %v7580_v14, %v7579_v50  ;;  %v7553_v56 = vadd.f32 %v7552_v22, %v7551_v35 }
0x36a5   : > { %v7593_v55 = vsel %vm6907_vm13, %v7549_v7, 0.0  ;;  %v7572_v6 = vsel %vm6907_vm13, %v7546_v9, 0.0  ;;  %v17252_v7 = vld [vmem:[#allocation30_spill] sm:$0xff] }
0x36a6   : > { %v7563_v41 = vrot.slane %v7562_v62, 1  ;;  %v7582_v46 = vrot.slane %v7581_v11, 2  ;;  %v7554_v61 = vrot.slane %v7553_v56, 2  ;;  %v7531_v25 = vpop.permute.xlu1 %7530  ;;  %v7594_v17 = vrot.slane %v7593_v55, 4 }
0x36a7   : > { %v7573_v58 = vrot.slane %v7572_v6, 4  ;;  %v7548_v8 = vmul.f32 %v7531_v25, %v17251_v18  ;;  %v7570_v48 = vrot.slane %v7569_v10, 1 }
0x36a8   : > { %v7564_v5 = vadd.f32 %v7563_v41, %v7562_v62  ;;  %v7583_v30 = vadd.f32 %v7582_v46, %v7581_v11  ;;  %v7555_v28 = vadd.f32 %v7554_v61, %v7553_v56  ;;  %v7595_v36 = vadd.f32 %v7594_v17, %v7593_v55 }
0x36a9   : > { %v7574_v20 = vadd.f32 %v7573_v58, %v7572_v6  ;;  %v7586_v50 = vsel %vm6907_vm13, %v7548_v8, 0.0  ;;  %v7571_v21 = vadd.f32 %v7570_v48, %v7569_v10 }
0x36aa   : > { %v7556_v35 = vrot.slane %v7555_v28, 1  ;;  %v7541_v2 = vpop.permute.xlu1 %7540  ;;  %v7596_v59 = vrot.slane %v7595_v36, 2  ;;  %v7587_v22 = vrot.slane %v7586_v50, 4  ;;  %v7608_v43 = vmul.f32 %v7564_v5, %v17253_v1 }
0x36ab   : > { %v7575_v14 = vrot.slane %v7574_v20, 2  ;;  %v7550_v9 = vmul.f32 %v7541_v2, %v17252_v7  ;;  %v7584_v31 = vrot.slane %v7583_v30, 1  ;;  %v7609_v41 = vmul.f32 %v7571_v21, %v17253_v1 }
0x36ac   : > { %v7557_v25 = vadd.f32 %v7556_v35, %v7555_v28  ;;  %v7597_v18 = vadd.f32 %v7596_v59, %v7595_v36  ;;  %v7588_v11 = vadd.f32 %v7587_v22, %v7586_v50  ;;  %v7623_v48 = vrot.slane %v7608_v43, 7 }
0x36ad   : > { %v7576_v62 = vadd.f32 %v7575_v14, %v7574_v20  ;;  %v7600_v17 = vsel %vm6907_vm13, %v7550_v9, 0.0  ;;  %v7585_v46 = vadd.f32 %v7584_v31, %v7583_v30  ;;  %v7625_v35 = vrot.slane %v7609_v41, 6 }
0x36ae   : > { %v7601_v58 = vrot.slane %v7600_v17, 4  ;;  %v7607_v8 = vmul.f32 %v7557_v25, %v17253_v1  ;;  %v7598_v56 = vrot.slane %v7597_v18, 1  ;;  %v7589_v6 = vrot.slane %v7588_v11, 2 }
0x36af   : > { %v7577_v55 = vrot.slane %v7576_v62, 1  ;;  %v7611_v59 = vmul.f32 %v7585_v46, %v17253_v1 }
0x36b0   : > { %v7602_v61 = vadd.f32 %v7601_v58, %v7600_v17  ;;  %v7590_v5 = vadd.f32 %v7589_v6, %v7588_v11  ;;  %v7624_v28 = vsel %vm1185_vm2, %v7623_v48, %v7607_v8  ;;  %v7599_v36 = vadd.f32 %v7598_v56, %v7597_v18 }
0x36b1   : > { %v7578_v10 = vadd.f32 %v7577_v55, %v7576_v62  ;;  %v7626_v31 = vsel %vm1187_vm3, %v7625_v35, %v7624_v28  ;;  %v7629_v62 = vrot.slane %v7611_v59, 4 }
0x36b2   : > { %v7603_v2 = vrot.slane %v7602_v61, 2  ;;  %v7591_v50 = vrot.slane %v7590_v5, 1  ;;  %v7613_v30 = vmul.f32 %v7599_v36, %v17253_v1 }
0x36b3   : > { %v7610_v20 = vmul.f32 %v7578_v10, %v17253_v1 }
0x36b4   : > { %v7604_v14 = vadd.f32 %v7603_v2, %v7602_v61  ;;  %v7592_v9 = vadd.f32 %v7591_v50, %v7590_v5  ;;  %v7633_v56 = vrot.slane %v7613_v30, 2 }
0x36b5   : > { %v7627_v22 = vrot.slane %v7610_v20, 5 }
0x36b6   : > { %v7605_v25 = vrot.slane %v7604_v14, 1  ;;  %v7612_v21 = vmul.f32 %v7592_v9, %v17253_v1 }
0x36b7   : > { %v7628_v43 = vsel %vm1189_vm4, %v7627_v22, %v7626_v31 }
0x36b8   : > { %v7606_v18 = vadd.f32 %v7605_v25, %v7604_v14  ;;  %v7631_v11 = vrot.slane %v7612_v21, 3  ;;  %v7630_v58 = vsel %vm1191_vm5, %v7629_v62, %v7628_v43 }
0x36ba   : > { %v7614_v17 = vmul.f32 %v7606_v18, %v17253_v1  ;;  %v7632_v8 = vsel %vm1193_vm6, %v7631_v11, %v7630_v58 }
0x36bb   : > { %v7634_v6 = vsel %vm1195_vm7, %v7633_v56, %v7632_v8 }
0x36bc   : > { %v7635_v55 = vrot.slane %v7614_v17, 1 }
0x36be   : > { %v7636_v41 = vsel %vm1197_vm8, %v7635_v55, %v7634_v6 }
0x36bf   : > { %7637 = vrot.lane.b32.xlu0 %v7636_v41, %s13368_s17 }
0x36c3   : > { %7657 = vrot.lane.b32.xlu0 %v15711_v47, %s13370_s30 }
0x36c7   : > { %7662 = vrot.lane.b32.xlu0 %v15835_v44, %s13373_s28 }
0x3731   : > { %v7638_v46 = vpop.permute.xlu0 %7637 }
0x3732   : > { %v7640_v61 = vsel %vm1575_vm12, %v7638_v46, 0.0 }
0x3733   : > { %7641 = vadd.xlane.f32.xlu1 %v7640_v61 }
0x3735   : > { %v7658_v48 = vpop.permute.xlu0 %7657 }
0x3739   : > { %v7663_v28 = vpop.permute.xlu0 %7662 }
0x37c0   : > { %v7642_v10 = vpop.xlane.xlu1 %7641 }
0x37c1   : > { %v7660_v5 = vadd.f32 %v7658_v48, %v7642_v10 }
0x37c3   : > { %v7661_v2 = vadd.f32 %v7660_v5, %v15810_v32 }
0x37c5   : > { %v7665_v36 = vsel %vm7054_vm15, %v7661_v2, %v7663_v28 }
0x37c6   : > { %12182 = vmatmul.mubr.msk.f32.vlgmr.msra.gmra.mrb[26].mxu0 %vm7060_vm1, %v7665_v36 }
0x37c7   : > { %12578 = vmatpush3.bf16.msra.mxu0 %v15663_v33  ;;  %12213 = vmatprep.mubr.msk.f32.mxu0 %vm13363_vm0, %v17152_v63 }
0x37c8   : > { %12579 = vmatprep.subr.bf16.mxu0 %v17151_v24 }
0x37cb   : > { %12581 = vmatpush3.bf16.msra.mxu0 %v15671_v13 }
0x37cc   : > { %12211 = vmatprep.subr.mxu0 %v17152_v63 }
0x37cf   : > { %12212 = vmatpush3.msk.msra.mxu0 %vm17247_vm11, %v15805_v60 }
0x37d0   : > { %12582 = vmatprep.subr.bf16.mxu0 %v17151_v24 }
0x3899   : > { %v7735_v47 = vpop.f32.mrb[26].mxu0 }
0x389a   : > { %v7736_v44 = vadd.f32 %v7735_v47, %v15826_v16  ;;  %v12183_v20 = vpop.f32.mrb[27].mxu0 }
0x389c   : > { %v11558_v50 = vmul.f32 -1.442695, %v7736_v44 }
0x389e   : > { %13093 = vpow2.f32 %v11558_v50 }
0x38a8   : > { %v13094_v35 = vpop.eup %13093 }
0x38a9   : > { %v7742_v59 = vadd.f32 1.0, %v13094_v35 }
0x38ab   : > { %13095 = vrcp.f32 %v7742_v59 }
0x38b5   : > { %v13096_v14 = vpop.eup %13095 }
0x38b6   : > { %v7745_v22 = vmul.f32 2.0, %v13096_v14  ;;  %v7747_v21 = vmul.f32 %v13096_v14, %v15831_v52 }
0x38b8   : > { %v11559_v9 = vadd.f32 -1.0, %v7745_v22 }
0x38ba   : > { %7749 = vrot.lane.b32.xlu0 %v11559_v9, %s13367_s16 }
0x392c   : > { %v7750_v25 = vpop.permute.xlu0 %7749 }
0x392d   : > { %v7752_v31 = vmul.f32 %v13096_v14, %v7750_v25 }
0x392f   : > { %7754 = vrot.lane.b32.xlu0 %v7752_v31, %s13368_s17 }
0x39a1   : > { %v7755_v30 = vpop.permute.xlu0 %7754 }
0x39a2   : > { %v15976_v43 = vadd.f32 %v7755_v30, %v7747_v21 }
0x39a4   : > { %13097 = vtanh.f32 %v15976_v43 }
0x39ae   : > { %v13098_v62 = vpop.eup %13097 }
0x39af   : > { %7760 = vrot.lane.b32.xlu0 %v13098_v62, %s13367_s16 }
0x3a21   : > { %v7761_v18 = vpop.permute.xlu0 %7760 }
0x3a22   : > { %v15980_v11 = vmul.f32 %v13096_v14, %v7761_v18 }
0x3a24   : > { %7765 = vrot.lane.b32.xlu0 %v15980_v11, %s13368_s17 }
0x3a96   : > { %v7766_v17 = vpop.permute.xlu0 %7765 }
0x3a97   : > { %v7768_v58 = vsel %vm1575_vm12, %v7766_v17, %v15976_v43 }
0x3a98   : > { %12201 = vmatmul.mubr.msk.f32.vlgmr.msra.gmra.mrb[20].mxu1 %vm17248_vm14, %v7768_v58 }
0x3a99   : > { %12596 = vmatpush3.bf16.msra.mxu1 %v15663_v33  ;;  %12245 = vmatprep.mubr.msk.f32.mxu1 %vm13363_vm0, %v17152_v63 }
0x3a9a   : > { %12597 = vmatprep.subr.bf16.mxu1 %v17151_v24 }
0x3a9d   : > { %12599 = vmatpush3.bf16.msra.mxu1 %v15671_v13 }
0x3a9e   : > { %12243 = vmatprep.subr.mxu1 %v17152_v63 }
0x3aa1   : > { %12244 = vmatpush3.msk.msra.mxu1 %vm17247_vm11, %v15805_v60 }
0x3aa2   : > { %12600 = vmatprep.subr.bf16.mxu1 %v17151_v24 }
0x3b6b   : > { %v7838_v52 = vpop.f32.mrb[20].mxu1 }
0x3b6c   : > { %v7839_v8 = vadd.f32 %v7838_v52, %v15478_v53  ;;  %v12202_v56 = vpop.f32.mrb[21].mxu1 }
0x3b6e   : > { %v7843_v55 = vcombine.high %v7839_v8, %v7839_v8  ;;  %v7850_v6 = vrot.slane %v7839_v8, %v17134_v12 }
0x3b70   : > { %v7857_v41 = vrot.slane %v7843_v55, %v17134_v12  ;;  %v7858_v46 = vcombine.high %v7850_v6, %v7850_v6  ;;  %v7866_v61 = vrot.slane %v7850_v6, %v17134_v12 }
0x3b72   : > { %v7859_v48 = vcombine.high %v7857_v41, %v7857_v41  ;;  %v7873_v10 = vrot.slane %v7857_v41, %v17134_v12  ;;  %v7880_v5 = vrot.slane %v7858_v46, %v17134_v12  ;;  %v7888_v60 = vcombine.high %v7866_v61, %v7866_v61 }
0x3b73   : > { %v7895_v2 = vrot.slane %v7866_v61, %v17136_v29 }
0x3b74   : > { %v7887_v28 = vrot.slane %v7859_v48, %v17134_v12  ;;  %v7889_v36 = vcombine.high %v7873_v10, %v7873_v10  ;;  %v7890_v47 = vcombine.high %v7880_v5, %v7880_v5  ;;  %v7899_v44 = vrot.slane %v7880_v5, %v17136_v29 }
0x3b75   : > { %v7903_v20 = vrot.slane %v7888_v60, %v17136_v29  ;;  %v7911_v50 = vrot.slane %v7873_v10, %v17136_v29  ;;  %v7932_v35 = vadd.f32 %v7895_v2, %v15490_v23 }
0x3b76   : > { %v7891_v59 = vcombine.high %v7887_v28, %v7887_v28  ;;  %v7907_v14 = vrot.slane %v7890_v47, %v17136_v29  ;;  %v7915_v22 = vrot.slane %v7887_v28, %v17136_v29  ;;  %v7919_v9 = vrot.slane %v7889_v36, %v17136_v29 }
0x3b77   : > { %v7933_v25 = vadd.f32 %v15487_v51, %v7899_v44  ;;  %v7934_v31 = vadd.f32 %v7903_v20, %v15499_v27  ;;  %v7936_v21 = vadd.f32 %v7911_v50, %v15507_v37  ;;  %13099 = vtanh.f32 %v7932_v35 }
0x3b78   : > { %v7923_v30 = vrot.slane %v7891_v59, %v17136_v29  ;;  %v7935_v62 = vadd.f32 %v15497_v45, %v7907_v14  ;;  %v7937_v18 = vadd.f32 %v15505_v4, %v7915_v22  ;;  %v7938_v17 = vadd.f32 %v7919_v9, %v15524_v54 }
0x3b79   : > { %13101 = vtanh.f32 %v7933_v25 }
0x3b7a   : > { %v7939_v58 = vadd.f32 %v15522_v42, %v7923_v30  ;;  %13103 = vtanh.f32 %v7934_v31 }
0x3b7b   : > { %13105 = vtanh.f32 %v7936_v21 }
0x3b7c   : > { %13107 = vtanh.f32 %v7939_v58 }
0x3b7d   : > { %13109 = vtanh.f32 %v7935_v62 }
0x3b7e   : > { %13111 = vtanh.f32 %v7937_v18 }
0x3b7f   : > { %13113 = vtanh.f32 %v7938_v17 }
0x3b81   : > { %v13100_v52 = vpop.eup %13099 }
0x3b82   : > { %v7948_v8 = vmul.f32 %v13100_v52, %v15517_v40 }
0x3b83   : > { %v13102_v56 = vpop.eup %13101 }
0x3b84   : > { %v13104_v55 = vpop.eup %13103  ;;  %v7956_v6 = vsel %vm1200_vm9, %v7948_v8, 0.0  ;;  %v7949_v41 = vmul.f32 %v13102_v56, %v15517_v40 }
0x3b85   : > { %7957 = vadd.xlane.f32.xlu0 %v7956_v6  ;;  %v7950_v61 = vmul.f32 %v13104_v55, %v15517_v40  ;;  %v13106_v48 = vpop.eup %13105 }
0x3b86   : > { %v7959_v46 = vsel %vm1200_vm9, %v7949_v41, 0.0  ;;  %v13108_v10 = vpop.eup %13107  ;;  %v7952_v2 = vmul.f32 %v13106_v48, %v15517_v40 }
0x3b87   : > { %7960 = vadd.xlane.f32.xlu1 %v7959_v46  ;;  %v7962_v5 = vsel %vm1200_vm9, %v7950_v61, 0.0  ;;  %v7955_v60 = vmul.f32 %v13108_v10, %v15517_v40  ;;  %v13110_v28 = vpop.eup %13109 }
0x3b88   : > { %v7968_v47 = vsel %vm1200_vm9, %v7952_v2, 0.0  ;;  %v7951_v44 = vmul.f32 %v13110_v28, %v15517_v40  ;;  %v13112_v20 = vpop.eup %13111 }
0x3b89   : > { %v7977_v36 = vsel %vm1200_vm9, %v7955_v60, 0.0  ;;  %v7953_v35 = vmul.f32 %v13112_v20, %v15517_v40  ;;  %v13114_v59 = vpop.eup %13113 }
0x3b8a   : > { %7978 = vadd.xlane.f32.xlu0 %v7977_v36  ;;  %v7965_v50 = vsel %vm1200_vm9, %v7951_v44, 0.0  ;;  %v7954_v22 = vmul.f32 %v13114_v59, %v15517_v40 }
0x3b8b   : > { %7963 = vadd.xlane.f32.xlu1 %v7962_v5  ;;  %v7971_v14 = vsel %vm1200_vm9, %v7953_v35, 0.0 }
0x3b8c   : > { %v7974_v9 = vsel %vm1200_vm9, %v7954_v22, 0.0 }
0x3b8f   : > { %7969 = vadd.xlane.f32.xlu1 %v7968_v47 }
0x3b93   : > { %7966 = vadd.xlane.f32.xlu1 %v7965_v50 }
0x3b97   : > { %7972 = vadd.xlane.f32.xlu1 %v7971_v14 }
0x3b9b   : > { %7975 = vadd.xlane.f32.xlu1 %v7974_v9 }
0x3c12   : > { %v7958_v21 = vpop.xlane.xlu0 %7957 }
0x3c13   : > { %v7980_v18 = vadd.f32 %v7958_v21, %v15544_v49 }
0x3c14   : > { %v7961_v25 = vpop.xlane.xlu1 %7960 }
0x3c15   : > { %v7981_v30 = vadd.f32 %v7961_v25, %v15544_v49  ;;  %v7988_v8 = vmul.f32 1.442695, %v7980_v18 }
0x3c17   : > { %v7990_v58 = vmul.f32 1.442695, %v7981_v30  ;;  %v7979_v6 = vpop.xlane.xlu0 %7978 }
0x3c18   : > { %v7964_v31 = vpop.xlane.xlu1 %7963  ;;  %v7987_v61 = vadd.f32 %v7979_v6, %v15544_v49 }
0x3c19   : > { %v7982_v62 = vadd.f32 %v7964_v31, %v15544_v49  ;;  %13115 = vpow2.f32 %v7990_v58 }
0x3c1a   : > { %v8002_v2 = vmul.f32 1.442695, %v7987_v61 }
0x3c1b   : > { %v7992_v52 = vmul.f32 1.442695, %v7982_v62 }
0x3c1c   : > { %v7970_v17 = vpop.xlane.xlu1 %7969 }
0x3c1d   : > { %v7984_v56 = vadd.f32 %v7970_v17, %v15544_v49  ;;  %13117 = vpow2.f32 %v7992_v52 }
0x3c1e   : > { %13119 = vpow2.f32 %v7988_v8 }
0x3c1f   : > { %v7996_v48 = vmul.f32 1.442695, %v7984_v56 }
0x3c20   : > { %v7967_v55 = vpop.xlane.xlu1 %7966 }
0x3c21   : > { %v7983_v41 = vadd.f32 %v7967_v55, %v15544_v49 }
0x3c23   : > { %v7994_v46 = vmul.f32 1.442695, %v7983_v41  ;;  %v13116_v44 = vpop.eup %13115 }
0x3c24   : > { %v7973_v10 = vpop.xlane.xlu1 %7972  ;;  %v8019_v59 = vrot.slane %v13116_v44, %v17145_v57 }
0x3c25   : > { %13121 = vpow2.f32 %v7994_v46  ;;  %v7985_v5 = vadd.f32 %v7973_v10, %v15544_v49 }
0x3c26   : > { %13123 = vpow2.f32 %v7996_v48 }
0x3c27   : > { %v7998_v60 = vmul.f32 1.442695, %v7985_v5  ;;  %v13118_v20 = vpop.eup %13117 }
0x3c28   : > { %v7976_v28 = vpop.xlane.xlu1 %7975  ;;  %v13120_v50 = vpop.eup %13119  ;;  %v8023_v14 = vrot.slane %v13118_v20, %v17145_v57 }
0x3c29   : > { %13125 = vpow2.f32 %v7998_v60  ;;  %v7986_v36 = vadd.f32 %v7976_v28, %v15544_v49  ;;  %v8015_v22 = vrot.slane %v13120_v50, %v17145_v57 }
0x3c2a   : > { %13127 = vpow2.f32 %v8002_v2 }
0x3c2b   : > { %v8000_v47 = vmul.f32 1.442695, %v7986_v36  ;;  %v8044_v21 = vsel %vm1185_vm2, %v8019_v59, %v8015_v22 }
0x3c2c   : > { %v8045_v30 = vsel %vm1187_vm3, %v8023_v14, %v8044_v21 }
0x3c2d   : > { %13129 = vpow2.f32 %v8000_v47 }
0x3c2f   : > { %v13122_v35 = vpop.eup %13121 }
0x3c30   : > { %v8027_v9 = vrot.slane %v13122_v35, %v17145_v57  ;;  %v13124_v25 = vpop.eup %13123 }
0x3c31   : > { %v8031_v58 = vrot.slane %v13124_v25, %v17145_v57 }
0x3c32   : > { %v8046_v18 = vsel %vm1189_vm4, %v8027_v9, %v8045_v30 }
0x3c33   : > { %v13126_v31 = vpop.eup %13125  ;;  %v8047_v56 = vsel %vm1191_vm5, %v8031_v58, %v8046_v18 }
0x3c34   : > { %v8035_v62 = vrot.slane %v13126_v31, %v17145_v57  ;;  %v13128_v17 = vpop.eup %13127 }
0x3c35   : > { %v8043_v55 = vrot.slane %v13128_v17, %v17145_v57 }
0x3c36   : > { %v8048_v6 = vsel %vm1193_vm6, %v8035_v62, %v8047_v56 }
0x3c37   : > { %v13130_v52 = vpop.eup %13129 }
0x3c38   : > { %v8039_v8 = vrot.slane %v13130_v52, %v17145_v57 }
0x3c3a   : > { %v8049_v41 = vsel %vm1195_vm7, %v8039_v8, %v8048_v6  ;;  %v17254_v8 = vld [vmem:[#allocation9_spill] sm:$0xff] }
0x3c3b   : > { %v8050_v46 = vsel %vm1197_vm8, %v8043_v55, %v8049_v41 }
0x3c3c   : > { %v8052_v61 = vsel %vm6805_vm10, %v8050_v46, 0.0 }
0x3c3d   : > { %8053 = vadd.xlane.f32.xlu1 %v8052_v61  ;;  %v17255_v61 = vld [vmem:[#allocation17_spill] sm:$0xff] }
0x3cca   : > { %v8054_v48 = vpop.xlane.xlu1 %8053 }
0x3ccb   : > { %13131 = vrcp.f32 %v8054_v48 }
0x3cd5   : > { %v13132_v10 = vpop.eup %13131 }
0x3cd6   : > { %v8068_v5 = vrot.slane %v13132_v10, %v17203_v38  ;;  %v8064_v60 = vrot.slane %v13132_v10, %v17147_v34  ;;  %v8072_v36 = vrot.slane %v13132_v10, %v17150_v26  ;;  %v8060_v47 = vrot.slane %v13132_v10, %v17136_v29 }
0x3cd7   : > { %v8080_v22 = vrot.slane %v13132_v10, %v13683_v0  ;;  %v8076_v9 = vrot.slane %v13132_v10, %v17148_v39  ;;  %v8088_v62 = vrot.slane %v13132_v10, %v13769_v15 }
0x3cd8   : > { %v8099_v2 = vmul.f32 %v13118_v20, %v8068_v5  ;;  %v8098_v28 = vmul.f32 %v13116_v44, %v8064_v60  ;;  %v8100_v59 = vmul.f32 %v13122_v35, %v8072_v36  ;;  %v8097_v14 = vmul.f32 %v13120_v50, %v8060_v47 }
0x3cd9   : > { %v8102_v21 = vmul.f32 %v13126_v31, %v8080_v22  ;;  %v8101_v30 = vmul.f32 %v13124_v25, %v8076_v9  ;;  %v8084_v44 = vrot.slane %v13132_v10, %v17137_v3  ;;  %v8104_v20 = vmul.f32 %v13128_v17, %v8088_v62  ;;  %v17256_v17 = vld [vmem:[#allocation14_spill] sm:$0xff] }
0x3cda   : > { %8117 = vperm.xlu1 %12697, %v8099_v2   ;;  %8112 = vperm.xlu0 %12698, %v8098_v28   ;;  %v17257_v9 = vld [vmem:[#allocation34_spill] sm:$0xff] }
0x3cdb   : > { %v8103_v18 = vmul.f32 %v13130_v52, %v8084_v44 }
0x3cde   : > { %8122 = vperm.xlu0 %12698, %v8100_v59   ;;  %8107 = vperm.xlu1 %12697, %v8097_v14  }
0x3ce2   : > { %8132 = vperm.xlu0 %12698, %v8102_v21   ;;  %8127 = vperm.xlu1 %12697, %v8101_v30   ;;  %v17258_v30 = vld [vmem:[#allocation22_spill] sm:$0xff] }
0x3ce6   : > { %8142 = vperm.xlu0 %12698, %v8104_v20   ;;  %8137 = vperm.xlu1 %12697, %v8103_v18  }
0x3d59   : > { %v8118_v35 = vpop.permute.xlu1 %8117  ;;  %v8113_v50 = vpop.permute.xlu0 %8112 }
0x3d5a   : > { %v8147_v58 = vmul.f32 %v8118_v35, %v15393_v19  ;;  %v8146_v56 = vmul.f32 %v8113_v50, %v17254_v8 }
0x3d5c   : > { %v8167_v55 = vsel %vm6907_vm13, %v8147_v58, 0.0  ;;  %v8160_v25 = vsel %vm6907_vm13, %v8146_v56, 0.0 }
0x3d5d   : > { %v8168_v31 = vrot.slane %v8167_v55, 4  ;;  %v8161_v6 = vrot.slane %v8160_v25, 4  ;;  %v8123_v41 = vpop.permute.xlu0 %8122  ;;  %v8108_v46 = vpop.permute.xlu1 %8107 }
0x3d5e   : > { %v8148_v48 = vmul.f32 %v8123_v41, %v17255_v61  ;;  %v8145_v52 = vmul.f32 %v8108_v46, %v17256_v17 }
0x3d5f   : > { %v8169_v10 = vadd.f32 %v8168_v31, %v8167_v55  ;;  %v8162_v5 = vadd.f32 %v8161_v6, %v8160_v25 }
0x3d60   : > { %v8174_v60 = vsel %vm6907_vm13, %v8148_v48, 0.0  ;;  %v8153_v2 = vsel %vm6907_vm13, %v8145_v52, 0.0 }
0x3d61   : > { %v8170_v28 = vrot.slane %v8169_v10, 2  ;;  %v8163_v36 = vrot.slane %v8162_v5, 2  ;;  %v8175_v47 = vrot.slane %v8174_v60, 4  ;;  %v8154_v59 = vrot.slane %v8153_v2, 4  ;;  %v8133_v14 = vpop.permute.xlu0 %8132  ;;  %v8128_v22 = vpop.permute.xlu1 %8127 }
0x3d62   : > { %v8150_v21 = vmul.f32 %v8133_v14, %v17257_v9  ;;  %v8149_v62 = vmul.f32 %v8128_v22, %v17258_v30  ;;  %v17259_v14 = vld [vmem:[#allocation6_spill] sm:$0xff] }
0x3d63   : > { %v8171_v44 = vadd.f32 %v8170_v28, %v8169_v10  ;;  %v8164_v20 = vadd.f32 %v8163_v36, %v8162_v5  ;;  %v8176_v18 = vadd.f32 %v8175_v47, %v8174_v60  ;;  %v8155_v35 = vadd.f32 %v8154_v59, %v8153_v2 }
0x3d64   : > { %v8188_v50 = vsel %vm6907_vm13, %v8150_v21, 0.0  ;;  %v8181_v58 = vsel %vm6907_vm13, %v8149_v62, 0.0 }
0x3d65   : > { %v8172_v56 = vrot.slane %v8171_v44, 1  ;;  %v8165_v55 = vrot.slane %v8164_v20, 1  ;;  %v8177_v25 = vrot.slane %v8176_v18, 2  ;;  %v8156_v31 = vrot.slane %v8155_v35, 2  ;;  %v8143_v6 = vpop.permute.xlu0 %8142  ;;  %v8138_v41 = vpop.permute.xlu1 %8137 }
0x3d66   : > { %v8189_v46 = vrot.slane %v8188_v50, 4  ;;  %v8182_v48 = vrot.slane %v8181_v58, 4  ;;  %v8152_v52 = vmul.f32 %v8143_v6, %v17252_v7  ;;  %v8151_v22 = vmul.f32 %v8138_v41, %v17259_v14 }
0x3d67   : > { %v8173_v10 = vadd.f32 %v8172_v56, %v8171_v44  ;;  %v8166_v5 = vadd.f32 %v8165_v55, %v8164_v20  ;;  %v8178_v60 = vadd.f32 %v8177_v25, %v8176_v18  ;;  %v8157_v2 = vadd.f32 %v8156_v31, %v8155_v35 }
0x3d68   : > { %v8190_v28 = vadd.f32 %v8189_v46, %v8188_v50  ;;  %v8183_v36 = vadd.f32 %v8182_v48, %v8181_v58  ;;  %v8202_v47 = vsel %vm6907_vm13, %v8152_v52, 0.0  ;;  %v8195_v59 = vsel %vm6907_vm13, %v8151_v22, 0.0 }
0x3d69   : > { %v8210_v21 = vmul.f32 %v8166_v5, %v17253_v1  ;;  %v8179_v62 = vrot.slane %v8178_v60, 1  ;;  %v8158_v9 = vrot.slane %v8157_v2, 1  ;;  %v8203_v30 = vrot.slane %v8202_v47, 4 }
0x3d6a   : > { %v8191_v61 = vrot.slane %v8190_v28, 2  ;;  %v8184_v17 = vrot.slane %v8183_v36, 2  ;;  %v8196_v6 = vrot.slane %v8195_v59, 4  ;;  %v8211_v41 = vmul.f32 %v8173_v10, %v17253_v1 }
0x3d6b   : > { %v8180_v44 = vadd.f32 %v8179_v62, %v8178_v60  ;;  %v8159_v20 = vadd.f32 %v8158_v9, %v8157_v2  ;;  %v8204_v50 = vadd.f32 %v8203_v30, %v8202_v47  ;;  %v8225_v56 = vrot.slane %v8210_v21, 7 }
0x3d6c   : > { %v8192_v18 = vadd.f32 %v8191_v61, %v8190_v28  ;;  %v8185_v35 = vadd.f32 %v8184_v17, %v8183_v36  ;;  %v8197_v58 = vadd.f32 %v8196_v6, %v8195_v59  ;;  %v8227_v22 = vrot.slane %v8211_v41, 6 }
0x3d6d   : > { %v8212_v55 = vmul.f32 %v8180_v44, %v17253_v1  ;;  %v8209_v25 = vmul.f32 %v8159_v20, %v17253_v1  ;;  %v8205_v48 = vrot.slane %v8204_v50, 2 }
0x3d6e   : > { %v8193_v31 = vrot.slane %v8192_v18, 1  ;;  %v8186_v46 = vrot.slane %v8185_v35, 1  ;;  %v8198_v52 = vrot.slane %v8197_v58, 2 }
0x3d6f   : > { %v8226_v5 = vsel %vm1185_vm2, %v8225_v56, %v8209_v25  ;;  %v8206_v60 = vadd.f32 %v8205_v48, %v8204_v50  ;;  %v8229_v61 = vrot.slane %v8212_v55, 5  ;;  %v17260_v56 = vld [vmem:[#allocation25_spill] sm:$0xff] }
0x3d70   : > { %v8194_v7 = vadd.f32 %v8193_v31, %v8192_v18  ;;  %v8187_v10 = vadd.f32 %v8186_v46, %v8185_v35  ;;  %v8199_v9 = vadd.f32 %v8198_v52, %v8197_v58  ;;  %v8228_v17 = vsel %vm1187_vm3, %v8227_v22, %v8226_v5 }
0x3d71   : > { %v8207_v28 = vrot.slane %v8206_v60, 1  ;;  %v8230_v6 = vsel %vm1189_vm4, %v8229_v61, %v8228_v17 }
0x3d72   : > { %v8214_v30 = vmul.f32 %v8194_v7, %v17253_v1  ;;  %v8213_v2 = vmul.f32 %v8187_v10, %v17253_v1  ;;  %v8200_v36 = vrot.slane %v8199_v9, 1  ;;  %v17261_v10 = vld [vmem:[#allocation84_spill] sm:$0xff] }
0x3d73   : > { %v8208_v59 = vadd.f32 %v8207_v28, %v8206_v60  ;;  %v17263_v60 = vld [vmem:[#allocation4_spill] sm:$0xff] }
0x3d74   : > { %v8231_v47 = vrot.slane %v8213_v2, 4  ;;  %v8201_v21 = vadd.f32 %v8200_v36, %v8199_v9  ;;  %v8233_v62 = vrot.slane %v8214_v30, 3  ;;  %v17264_v9 = vld [vmem:[#allocation11_spill] sm:$0xff] }
0x3d75   : > { %v8216_v44 = vmul.f32 %v8208_v59, %v17253_v1 }
0x3d76   : > { %v8215_v41 = vmul.f32 %v8201_v21, %v17253_v1  ;;  %v8232_v20 = vsel %vm1191_vm5, %v8231_v47, %v8230_v6 }
0x3d77   : > { %v8237_v35 = vrot.slane %v8216_v44, 1  ;;  %v8234_v7 = vsel %vm1193_vm6, %v8233_v62, %v8232_v20 }
0x3d78   : > { %v8235_v18 = vrot.slane %v8215_v41, 2 }
0x3d7a   : > { %v8236_v50 = vsel %vm1195_vm7, %v8235_v18, %v8234_v7 }
0x3d7b   : > { %v8238_v58 = vsel %vm1197_vm8, %v8237_v35, %v8236_v50 }
0x3d7c   : > { %8239 = vrot.lane.b32.xlu1 %v8238_v58, %s13368_s17 }
0x3d80   : > { %8259 = vrot.lane.b32.xlu1 %v17260_v56, %s13370_s30 }
0x3d84   : > { %8264 = vrot.lane.b32.xlu1 %v15980_v11, %s13373_s28  ;;  %v17262_v11 = vld [vmem:[#allocation85_spill] sm:$0xff] }
0x3dee   : > { %v8240_v55 = vpop.permute.xlu1 %8239 }
0x3def   : > { %v8242_v25 = vsel %vm1575_vm12, %v8240_v55, 0.0 }
0x3df0   : > { %8243 = vadd.xlane.f32.xlu0 %v8242_v25 }
0x3df2   : > { %v8260_v31 = vpop.permute.xlu1 %8259 }
0x3df6   : > { %v8265_v22 = vpop.permute.xlu1 %8264 }
0x3e7d   : > { %v8244_v46 = vpop.xlane.xlu0 %8243 }
0x3e7e   : > { %v8262_v48 = vadd.f32 %v8260_v31, %v8244_v46 }
0x3e80   : > { %v8263_v52 = vadd.f32 %v8262_v48, %v15810_v32 }
0x3e82   : > { %v8267_v5 = vsel %vm7054_vm15, %v8263_v52, %v8265_v22 }
0x3e83   : > { %12214 = vmatmul.mubr.msk.f32.vlgmr.msra.gmra.mrb[28].mxu0 %vm7060_vm1, %v8267_v5 }
0x3e84   : > { %12584 = vmatpush3.bf16.msra.mxu0 %v17261_v10  ;;  %12232 = vmatprep.mubr.msk.f32.mxu0 %vm13363_vm0, %v17152_v63 }
0x3e85   : > { %12585 = vmatprep.subr.bf16.mxu0 %v17151_v24 }
0x3e88   : > { %12587 = vmatpush3.bf16.msra.mxu0 %v17262_v11 }
0x3e89   : > { %12588 = vmatprep.subr.bf16.mxu0 %v17151_v24 }
0x3e8c   : > { %12590 = vmatpush3.bf16.msra.mxu0 %v17263_v60 }
0x3e8d   : > { %12591 = vmatprep.subr.bf16.mxu0 %v17151_v24 }
0x3e90   : > { %12593 = vmatpush3.bf16.msra.mxu0 %v17264_v9 }
0x3e91   : > { %12612 = vmatprep.subr.bf16.mxu0 %v17151_v24 }
0x3f56   : > { %v8337_v61 = vpop.f32.mrb[28].mxu0 }
0x3f57   : > { %v8338_v17 = vadd.f32 %v8337_v61, %v15826_v16  ;;  %v12215_v30 = vpop.f32.mrb[29].mxu0 }
0x3f59   : > { %v11563_v2 = vmul.f32 -1.442695, %v8338_v17 }
0x3f5b   : > { %13133 = vpow2.f32 %v11563_v2 }
0x3f65   : > { %v13134_v28 = vpop.eup %13133 }
0x3f66   : > { %v8344_v36 = vadd.f32 1.0, %v13134_v28 }
0x3f68   : > { %13135 = vrcp.f32 %v8344_v36 }
0x3f72   : > { %v13136_v47 = vpop.eup %13135 }
0x3f73   : > { %v8347_v59 = vmul.f32 2.0, %v13136_v47  ;;  %v8349_v41 = vmul.f32 %v13136_v47, %v15976_v43  ;;  %v16141_v43 = vld [vmem:[%s16900_s4 + $0x20] sm:$0x1] }
0x3f75   : > { %v11564_v21 = vadd.f32 -1.0, %v8347_v59 }
0x3f77   : > { %8351 = vrot.lane.b32.xlu1 %v11564_v21, %s13367_s16 }
0x3fe9   : > { %v8352_v62 = vpop.permute.xlu1 %8351 }
0x3fea   : > { %v8354_v6 = vmul.f32 %v13136_v47, %v8352_v62 }
0x3fec   : > { %8356 = vrot.lane.b32.xlu1 %v8354_v6, %s13368_s17 }
0x405e   : > { %v8357_v44 = vpop.permute.xlu1 %8356 }
0x405f   : > { %v16121_v20 = vadd.f32 %v8357_v44, %v8349_v41 }
0x4061   : > { %13137 = vtanh.f32 %v16121_v20 }
0x406b   : > { %v13138_v18 = vpop.eup %13137 }
0x406c   : > { %8362 = vrot.lane.b32.xlu1 %v13138_v18, %s13367_s16 }
0x40de   : > { %v8363_v35 = vpop.permute.xlu1 %8362 }
0x40df   : > { %v16125_v7 = vmul.f32 %v13136_v47, %v8363_v35 }
0x40e1   : > { %8367 = vrot.lane.b32.xlu1 %v16125_v7, %s13368_s17 }
0x4153   : > { %v8368_v50 = vpop.permute.xlu1 %8367 }
0x4154   : > { %v8370_v58 = vsel %vm1575_vm12, %v8368_v50, %v16121_v20 }
0x4155   : > { %12233 = vmatmul.mubr.msk.f32.vlgmr.msra.gmra.mrb[30].mxu0 %vm17248_vm14, %v8370_v58 }
0x4156   : > { %12614 = vmatpush3.bf16.msra.mxu0 %v15663_v33  ;;  %12277 = vmatprep.mubr.msk.f32.mxu0 %vm13363_vm0, %v17152_v63 }
0x4157   : > { %12615 = vmatprep.subr.bf16.mxu0 %v17151_v24 }
0x415a   : > { %12617 = vmatpush3.bf16.msra.mxu0 %v15671_v13 }
0x415b   : > { %12275 = vmatprep.subr.mxu0 %v17152_v63 }
0x415e   : > { %12276 = vmatpush3.msk.msra.mxu0 %vm17247_vm11, %v16141_v43 }
0x415f   : > { %12618 = vmatprep.subr.bf16.mxu0 %v17151_v24 }
0x4228   : > { %v8440_v56 = vpop.f32.mrb[30].mxu0 }
0x4229   : > { %v8441_v55 = vadd.f32 %v8440_v56, %v15478_v53  ;;  %v12234_v25 = vpop.f32.mrb[31].mxu0 }
0x422b   : > { %v8445_v31 = vcombine.high %v8441_v55, %v8441_v55  ;;  %v8452_v46 = vrot.slane %v8441_v55, %v17134_v12 }
0x422d   : > { %v8459_v48 = vrot.slane %v8445_v31, %v17134_v12  ;;  %v8460_v52 = vcombine.high %v8452_v46, %v8452_v46  ;;  %v8468_v22 = vrot.slane %v8452_v46, %v17134_v12 }
0x422f   : > { %v8461_v5 = vcombine.high %v8459_v48, %v8459_v48  ;;  %v8475_v61 = vrot.slane %v8459_v48, %v17134_v12  ;;  %v8482_v17 = vrot.slane %v8460_v52, %v17134_v12  ;;  %v8490_v30 = vcombine.high %v8468_v22, %v8468_v22 }
0x4230   : > { %v8497_v2 = vrot.slane %v8468_v22, %v17136_v29 }
0x4231   : > { %v8489_v28 = vrot.slane %v8461_v5, %v17134_v12  ;;  %v8491_v36 = vcombine.high %v8475_v61, %v8475_v61  ;;  %v8492_v47 = vcombine.high %v8482_v17, %v8482_v17  ;;  %v8501_v59 = vrot.slane %v8482_v17, %v17136_v29 }
0x4232   : > { %v8505_v21 = vrot.slane %v8490_v30, %v17136_v29  ;;  %v8513_v62 = vrot.slane %v8475_v61, %v17136_v29  ;;  %v8534_v6 = vadd.f32 %v8497_v2, %v15490_v23 }
0x4233   : > { %v8493_v41 = vcombine.high %v8489_v28, %v8489_v28  ;;  %v8509_v44 = vrot.slane %v8492_v47, %v17136_v29  ;;  %v8517_v18 = vrot.slane %v8489_v28, %v17136_v29  ;;  %v8521_v35 = vrot.slane %v8491_v36, %v17136_v29 }
0x4234   : > { %v8535_v50 = vadd.f32 %v15487_v51, %v8501_v59  ;;  %v8536_v58 = vadd.f32 %v8505_v21, %v15499_v27  ;;  %v8538_v56 = vadd.f32 %v8513_v62, %v15507_v37  ;;  %13139 = vtanh.f32 %v8534_v6 }
0x4235   : > { %v8525_v55 = vrot.slane %v8493_v41, %v17136_v29  ;;  %v8537_v25 = vadd.f32 %v15497_v45, %v8509_v44  ;;  %v8539_v31 = vadd.f32 %v15505_v4, %v8517_v18  ;;  %v8540_v46 = vadd.f32 %v8521_v35, %v15524_v54 }
0x4236   : > { %13141 = vtanh.f32 %v8535_v50 }
0x4237   : > { %v8541_v48 = vadd.f32 %v15522_v42, %v8525_v55  ;;  %13143 = vtanh.f32 %v8536_v58 }
0x4238   : > { %13145 = vtanh.f32 %v8538_v56 }
0x4239   : > { %13147 = vtanh.f32 %v8537_v25 }
0x423a   : > { %13149 = vtanh.f32 %v8539_v31 }
0x423b   : > { %13151 = vtanh.f32 %v8540_v46 }
0x423c   : > { %13153 = vtanh.f32 %v8541_v48 }
0x423e   : > { %v13140_v52 = vpop.eup %13139 }
0x423f   : > { %v8550_v22 = vmul.f32 %v13140_v52, %v15517_v40 }
0x4240   : > { %v13142_v5 = vpop.eup %13141 }
0x4241   : > { %v13144_v61 = vpop.eup %13143  ;;  %v8558_v17 = vsel %vm1200_vm9, %v8550_v22, 0.0  ;;  %v8551_v30 = vmul.f32 %v13142_v5, %v15517_v40 }
0x4242   : > { %8559 = vadd.xlane.f32.xlu1 %v8558_v17  ;;  %v8552_v28 = vmul.f32 %v13144_v61, %v15517_v40  ;;  %v13146_v36 = vpop.eup %13145 }
0x4243   : > { %v8561_v2 = vsel %vm1200_vm9, %v8551_v30, 0.0  ;;  %v8554_v59 = vmul.f32 %v13146_v36, %v15517_v40  ;;  %v13148_v21 = vpop.eup %13147 }
0x4244   : > { %8562 = vadd.xlane.f32.xlu0 %v8561_v2  ;;  %v8564_v47 = vsel %vm1200_vm9, %v8552_v28, 0.0  ;;  %v8553_v6 = vmul.f32 %v13148_v21, %v15517_v40  ;;  %v13150_v41 = vpop.eup %13149 }
0x4245   : > { %v8570_v62 = vsel %vm1200_vm9, %v8554_v59, 0.0  ;;  %v8555_v18 = vmul.f32 %v13150_v41, %v15517_v40  ;;  %v13152_v35 = vpop.eup %13151 }
0x4246   : > { %v8567_v44 = vsel %vm1200_vm9, %v8553_v6, 0.0  ;;  %v8556_v58 = vmul.f32 %v13152_v35, %v15517_v40  ;;  %v13154_v56 = vpop.eup %13153 }
0x4247   : > { %v8573_v50 = vsel %vm1200_vm9, %v8555_v18, 0.0  ;;  %v8557_v25 = vmul.f32 %v13154_v56, %v15517_v40 }
0x4248   : > { %8565 = vadd.xlane.f32.xlu0 %v8564_v47  ;;  %v8576_v55 = vsel %vm1200_vm9, %v8556_v58, 0.0 }
0x4249   : > { %v8579_v31 = vsel %vm1200_vm9, %v8557_v25, 0.0 }
0x424c   : > { %8571 = vadd.xlane.f32.xlu0 %v8570_v62 }
0x4250   : > { %8568 = vadd.xlane.f32.xlu0 %v8567_v44 }
0x4254   : > { %8574 = vadd.xlane.f32.xlu0 %v8573_v50 }
0x4258   : > { %8577 = vadd.xlane.f32.xlu0 %v8576_v55 }
0x425c   : > { %8580 = vadd.xlane.f32.xlu0 %v8579_v31 }
0x42cf   : > { %v8560_v52 = vpop.xlane.xlu1 %8559 }
0x42d0   : > { %v8582_v22 = vadd.f32 %v8560_v52, %v15544_v49 }
0x42d1   : > { %v8563_v46 = vpop.xlane.xlu0 %8562 }
0x42d2   : > { %v8583_v61 = vadd.f32 %v8563_v46, %v15544_v49  ;;  %v8590_v30 = vmul.f32 1.442695, %v8582_v22 }
0x42d4   : > { %v8592_v28 = vmul.f32 1.442695, %v8583_v61  ;;  %13155 = vpow2.f32 %v8590_v30 }
0x42d5   : > { %v8566_v48 = vpop.xlane.xlu0 %8565 }
0x42d6   : > { %v8584_v17 = vadd.f32 %v8566_v48, %v15544_v49  ;;  %13157 = vpow2.f32 %v8592_v28 }
0x42d8   : > { %v8594_v47 = vmul.f32 1.442695, %v8584_v17 }
0x42d9   : > { %v8572_v5 = vpop.xlane.xlu0 %8571 }
0x42da   : > { %v8586_v21 = vadd.f32 %v8572_v5, %v15544_v49  ;;  %13159 = vpow2.f32 %v8594_v47 }
0x42dc   : > { %v8598_v44 = vmul.f32 1.442695, %v8586_v21 }
0x42dd   : > { %v8569_v2 = vpop.xlane.xlu0 %8568 }
0x42de   : > { %v8585_v36 = vadd.f32 %v8569_v2, %v15544_v49  ;;  %v13156_v55 = vpop.eup %13155 }
0x42df   : > { %v8617_v5 = vrot.slane %v13156_v55, %v17145_v57 }
0x42e0   : > { %v8596_v59 = vmul.f32 1.442695, %v8585_v36  ;;  %v13158_v25 = vpop.eup %13157 }
0x42e1   : > { %v8575_v62 = vpop.xlane.xlu0 %8574  ;;  %v8621_v52 = vrot.slane %v13158_v25, %v17145_v57 }
0x42e2   : > { %v8587_v6 = vadd.f32 %v8575_v62, %v15544_v49  ;;  %13161 = vpow2.f32 %v8596_v59 }
0x42e3   : > { %v8646_v2 = vsel %vm1185_vm2, %v8621_v52, %v8617_v5 }
0x42e4   : > { %v8600_v41 = vmul.f32 1.442695, %v8587_v6  ;;  %v13160_v46 = vpop.eup %13159 }
0x42e5   : > { %v8578_v18 = vpop.xlane.xlu0 %8577  ;;  %v8625_v22 = vrot.slane %v13160_v46, %v17145_v57 }
0x42e6   : > { %v8588_v35 = vadd.f32 %v8578_v18, %v15544_v49  ;;  %13163 = vpow2.f32 %v8600_v41 }
0x42e7   : > { %13165 = vpow2.f32 %v8598_v44  ;;  %v8647_v36 = vsel %vm1187_vm3, %v8625_v22, %v8646_v2 }
0x42e8   : > { %v8602_v50 = vmul.f32 1.442695, %v8588_v35 }
0x42e9   : > { %v8581_v58 = vpop.xlane.xlu0 %8580 }
0x42ea   : > { %13167 = vpow2.f32 %v8602_v50  ;;  %v8589_v56 = vadd.f32 %v8581_v58, %v15544_v49 }
0x42ec   : > { %v8604_v31 = vmul.f32 1.442695, %v8589_v56  ;;  %v13162_v48 = vpop.eup %13161 }
0x42ed   : > { %v8629_v61 = vrot.slane %v13162_v48, %v17145_v57 }
0x42ee   : > { %13169 = vpow2.f32 %v8604_v31 }
0x42ef   : > { %v8648_v59 = vsel %vm1189_vm4, %v8629_v61, %v8647_v36 }
0x42f0   : > { %v13164_v17 = vpop.eup %13163 }
0x42f1   : > { %v13166_v30 = vpop.eup %13165  ;;  %v8637_v47 = vrot.slane %v13164_v17, %v17145_v57 }
0x42f2   : > { %v8633_v21 = vrot.slane %v13166_v30, %v17145_v57 }
0x42f4   : > { %v13168_v28 = vpop.eup %13167  ;;  %v8649_v41 = vsel %vm1191_vm5, %v8633_v21, %v8648_v59 }
0x42f5   : > { %v8641_v62 = vrot.slane %v13168_v28, %v17145_v57  ;;  %v8650_v18 = vsel %vm1193_vm6, %v8637_v47, %v8649_v41 }
0x42f7   : > { %v8651_v35 = vsel %vm1195_vm7, %v8641_v62, %v8650_v18 }
0x42f8   : > { %v13170_v6 = vpop.eup %13169 }
0x42f9   : > { %v8645_v44 = vrot.slane %v13170_v6, %v17145_v57 }
0x42fb   : > { %v8652_v50 = vsel %vm1197_vm8, %v8645_v44, %v8651_v35 }
0x42fc   : > { %v8654_v58 = vsel %vm6805_vm10, %v8652_v50, 0.0 }
0x42fd   : > { %8655 = vadd.xlane.f32.xlu0 %v8654_v58 }
0x438a   : > { %v8656_v56 = vpop.xlane.xlu0 %8655 }
0x438b   : > { %13171 = vrcp.f32 %v8656_v56 }
0x4395   : > { %v13172_v31 = vpop.eup %13171 }
0x4396   : > { %v8670_v52 = vrot.slane %v13172_v31, %v17203_v38  ;;  %v8666_v22 = vrot.slane %v13172_v31, %v17147_v34  ;;  %v8678_v2 = vrot.slane %v13172_v31, %v17148_v39  ;;  %v8662_v36 = vrot.slane %v13172_v31, %v17136_v29 }
0x4397   : > { %v8686_v21 = vrot.slane %v13172_v31, %v17137_v3  ;;  %v8674_v62 = vrot.slane %v13172_v31, %v17150_v26  ;;  %v8682_v18 = vrot.slane %v13172_v31, %v13683_v0 }
0x4398   : > { %v8701_v5 = vmul.f32 %v13160_v46, %v8670_v52  ;;  %v8700_v61 = vmul.f32 %v13158_v25, %v8666_v22  ;;  %v8703_v47 = vmul.f32 %v13166_v30, %v8678_v2  ;;  %v8699_v59 = vmul.f32 %v13156_v55, %v8662_v36 }
0x4399   : > { %v8705_v41 = vmul.f32 %v13168_v28, %v8686_v21  ;;  %v8702_v44 = vmul.f32 %v13162_v48, %v8674_v62  ;;  %v8704_v25 = vmul.f32 %v13164_v17, %v8682_v18  ;;  %v8690_v46 = vrot.slane %v13172_v31, %v13769_v15  ;;  %v17265_v17 = vld [vmem:[#allocation22_spill] sm:$0xff] }
0x439a   : > { %8719 = vperm.xlu0 %12698, %v8701_v5   ;;  %8714 = vperm.xlu1 %12697, %v8700_v61   ;;  %v17266_v31 = vld [vmem:[#allocation14_spill] sm:$0xff] }
0x439b   : > { %v8706_v35 = vmul.f32 %v13170_v6, %v8690_v46 }
0x439e   : > { %8729 = vperm.xlu0 %12698, %v8703_v47   ;;  %8709 = vperm.xlu1 %12697, %v8699_v59  }
0x43a2   : > { %8739 = vperm.xlu0 %12698, %v8705_v41   ;;  %8724 = vperm.xlu1 %12697, %v8702_v44  }
0x43a6   : > { %8734 = vperm.xlu1 %12697, %v8704_v25  }
0x43aa   : > { %8744 = vperm.xlu1 %12697, %v8706_v35   ;;  %v17267_v35 = vld [vmem:[#allocation17_spill] sm:$0xff] }
0x4419   : > { %v8720_v30 = vpop.permute.xlu0 %8719  ;;  %v8715_v55 = vpop.permute.xlu1 %8714 }
0x441a   : > { %v8749_v50 = vmul.f32 %v8720_v30, %v15393_v19  ;;  %v8748_v58 = vmul.f32 %v8715_v55, %v17254_v8 }
0x441c   : > { %v8769_v56 = vsel %vm6907_vm13, %v8749_v50, 0.0  ;;  %v8762_v48 = vsel %vm6907_vm13, %v8748_v58, 0.0 }
0x441d   : > { %v8770_v28 = vrot.slane %v8769_v56, 4  ;;  %v8763_v52 = vrot.slane %v8762_v48, 4  ;;  %v8730_v22 = vpop.permute.xlu0 %8729  ;;  %v8710_v5 = vpop.permute.xlu1 %8709 }
0x441e   : > { %v8751_v61 = vmul.f32 %v8730_v22, %v17265_v17  ;;  %v8747_v2 = vmul.f32 %v8710_v5, %v17266_v31  ;;  %v17268_v31 = vld [vmem:[#allocation34_spill] sm:$0xff] }
0x441f   : > { %v8771_v6 = vadd.f32 %v8770_v28, %v8769_v56  ;;  %v8764_v36 = vadd.f32 %v8763_v52, %v8762_v48 }
0x4420   : > { %v8783_v47 = vsel %vm6907_vm13, %v8751_v61, 0.0  ;;  %v8755_v59 = vsel %vm6907_vm13, %v8747_v2, 0.0 }
0x4421   : > { %v8772_v21 = vrot.slane %v8771_v6, 2  ;;  %v8765_v62 = vrot.slane %v8764_v36, 2  ;;  %v8784_v41 = vrot.slane %v8783_v47, 4  ;;  %v8756_v44 = vrot.slane %v8755_v59, 4  ;;  %v8740_v18 = vpop.permute.xlu0 %8739  ;;  %v8725_v25 = vpop.permute.xlu1 %8724 }
0x4422   : > { %v8753_v46 = vmul.f32 %v8740_v18, %v17259_v14  ;;  %v8750_v30 = vmul.f32 %v8725_v25, %v17267_v35 }
0x4423   : > { %v8773_v55 = vadd.f32 %v8772_v21, %v8771_v6  ;;  %v8766_v50 = vadd.f32 %v8765_v62, %v8764_v36  ;;  %v8785_v58 = vadd.f32 %v8784_v41, %v8783_v47  ;;  %v8757_v22 = vadd.f32 %v8756_v44, %v8755_v59 }
0x4424   : > { %v8797_v56 = vsel %vm6907_vm13, %v8753_v46, 0.0  ;;  %v8776_v48 = vsel %vm6907_vm13, %v8750_v30, 0.0  ;;  %v17269_v46 = vld [vmem:[#allocation30_spill] sm:$0xff] }
0x4425   : > { %v8767_v28 = vrot.slane %v8766_v50, 1  ;;  %v8786_v52 = vrot.slane %v8785_v58, 2  ;;  %v8758_v5 = vrot.slane %v8757_v22, 2  ;;  %v8735_v61 = vpop.permute.xlu1 %8734  ;;  %v8798_v2 = vrot.slane %v8797_v56, 4 }
0x4426   : > { %v8777_v17 = vrot.slane %v8776_v48, 4  ;;  %v8752_v8 = vmul.f32 %v8735_v61, %v17268_v31  ;;  %v8774_v19 = vrot.slane %v8773_v55, 1 }
0x4427   : > { %v8768_v18 = vadd.f32 %v8767_v28, %v8766_v50  ;;  %v8787_v14 = vadd.f32 %v8786_v52, %v8785_v58  ;;  %v8759_v25 = vadd.f32 %v8758_v5, %v8757_v22  ;;  %v8799_v6 = vadd.f32 %v8798_v2, %v8797_v56 }
0x4428   : > { %v8778_v36 = vadd.f32 %v8777_v17, %v8776_v48  ;;  %v8790_v47 = vsel %vm6907_vm13, %v8752_v8, 0.0  ;;  %v8775_v35 = vadd.f32 %v8774_v19, %v8773_v55 }
0x4429   : > { %v8760_v59 = vrot.slane %v8759_v25, 1  ;;  %v8745_v21 = vpop.permute.xlu1 %8744  ;;  %v8800_v62 = vrot.slane %v8799_v6, 2  ;;  %v8791_v44 = vrot.slane %v8790_v47, 4  ;;  %v8812_v3 = vmul.f32 %v8768_v18, %v17253_v1 }
0x442a   : > { %v8779_v41 = vrot.slane %v8778_v36, 2  ;;  %v8754_v30 = vmul.f32 %v8745_v21, %v17269_v46  ;;  %v8788_v15 = vrot.slane %v8787_v14, 1  ;;  %v8813_v52 = vmul.f32 %v8775_v35, %v17253_v1 }
0x442b   : > { %v8761_v61 = vadd.f32 %v8760_v59, %v8759_v25  ;;  %v8801_v31 = vadd.f32 %v8800_v62, %v8799_v6  ;;  %v8792_v58 = vadd.f32 %v8791_v44, %v8790_v47  ;;  %v8827_v19 = vrot.slane %v8812_v3, 7 }
0x442c   : > { %v8780_v50 = vadd.f32 %v8779_v41, %v8778_v36  ;;  %v8804_v22 = vsel %vm6907_vm13, %v8754_v30, 0.0  ;;  %v8789_v5 = vadd.f32 %v8788_v15, %v8787_v14  ;;  %v8829_v59 = vrot.slane %v8813_v52, 6 }
0x442d   : > { %v8805_v17 = vrot.slane %v8804_v22, 4  ;;  %v8811_v8 = vmul.f32 %v8761_v61, %v17253_v1  ;;  %v8802_v56 = vrot.slane %v8801_v31, 1  ;;  %v8793_v28 = vrot.slane %v8792_v58, 2 }
0x442e   : > { %v8781_v48 = vrot.slane %v8780_v50, 1  ;;  %v8815_v62 = vmul.f32 %v8789_v5, %v17253_v1  ;;  %v17270_v5 = vld [vmem:[#allocation2_spill] sm:$0xff] }
0x442f   : > { %v8806_v2 = vadd.f32 %v8805_v17, %v8804_v22  ;;  %v8794_v18 = vadd.f32 %v8793_v28, %v8792_v58  ;;  %v8828_v25 = vsel %vm1185_vm2, %v8827_v19, %v8811_v8  ;;  %v8803_v6 = vadd.f32 %v8802_v56, %v8801_v31 }
0x4430   : > { %v8782_v55 = vadd.f32 %v8781_v48, %v8780_v50  ;;  %v8830_v15 = vsel %vm1187_vm3, %v8829_v59, %v8828_v25  ;;  %v8833_v50 = vrot.slane %v8815_v62, 4 }
0x4431   : > { %v8807_v21 = vrot.slane %v8806_v2, 2  ;;  %v8795_v47 = vrot.slane %v8794_v18, 1  ;;  %v8817_v14 = vmul.f32 %v8803_v6, %v17253_v1 }
0x4432   : > { %v8814_v36 = vmul.f32 %v8782_v55, %v17253_v1 }
0x4433   : > { %v8808_v41 = vadd.f32 %v8807_v21, %v8806_v2  ;;  %v8796_v30 = vadd.f32 %v8795_v47, %v8794_v18  ;;  %v8837_v56 = vrot.slane %v8817_v14, 2 }
0x4434   : > { %v8831_v44 = vrot.slane %v8814_v36, 5 }
0x4435   : > { %v8809_v61 = vrot.slane %v8808_v41, 1  ;;  %v8816_v3 = vmul.f32 %v8796_v30, %v17253_v1 }
0x4436   : > { %v8832_v35 = vsel %vm1189_vm4, %v8831_v44, %v8830_v15 }
0x4437   : > { %v8810_v31 = vadd.f32 %v8809_v61, %v8808_v41  ;;  %v8835_v58 = vrot.slane %v8816_v3, 3  ;;  %v8834_v17 = vsel %vm1191_vm5, %v8833_v50, %v8832_v35 }
0x4439   : > { %v8818_v22 = vmul.f32 %v8810_v31, %v17253_v1  ;;  %v8836_v8 = vsel %vm1193_vm6, %v8835_v58, %v8834_v17 }
0x443a   : > { %v8838_v28 = vsel %vm1195_vm7, %v8837_v56, %v8836_v8 }
0x443b   : > { %v8839_v48 = vrot.slane %v8818_v22, 1 }
0x443d   : > { %v8840_v52 = vsel %vm1197_vm8, %v8839_v48, %v8838_v28 }
0x443e   : > { %8841 = vrot.lane.b32.xlu0 %v8840_v52, %s13368_s17 }
0x4442   : > { %8861 = vrot.lane.b32.xlu0 %v17270_v5, %s13370_s30 }
0x4446   : > { %8866 = vrot.lane.b32.xlu0 %v16125_v7, %s13373_s28 }
0x44b0   : > { %v8842_v2 = vpop.permute.xlu0 %8841 }
0x44b1   : > { %v8844_v19 = vsel %vm1575_vm12, %v8842_v2, 0.0 }
0x44b2   : > { %8845 = vadd.xlane.f32.xlu1 %v8844_v19 }
0x44b4   : > { %v8862_v55 = vpop.permute.xlu0 %8861 }
0x44b8   : > { %v8867_v6 = vpop.permute.xlu0 %8866 }
0x453f   : > { %v8846_v18 = vpop.xlane.xlu1 %8845 }
0x4540   : > { %v8864_v21 = vadd.f32 %v8862_v55, %v8846_v18 }
0x4542   : > { %v8865_v25 = vadd.f32 %v8864_v21, %v15810_v32 }
0x4544   : > { %v8869_v36 = vsel %vm7054_vm15, %v8865_v25, %v8867_v6 }
0x4545   : > { %12246 = vmatmul.mubr.msk.f32.vlgmr.msra.gmra.mrb[22].mxu1 %vm7060_vm1, %v8869_v36 }
0x4546   : > { %12602 = vmatpush3.bf16.msra.mxu1 %v17261_v10  ;;  %12264 = vmatprep.mubr.msk.f32.mxu1 %vm13363_vm0, %v17152_v63 }
0x4547   : > { %12603 = vmatprep.subr.bf16.mxu1 %v17151_v24 }
0x454a   : > { %12605 = vmatpush3.bf16.msra.mxu1 %v17262_v11 }
0x454b   : > { %12606 = vmatprep.subr.bf16.mxu1 %v17151_v24 }
0x454e   : > { %12608 = vmatpush3.bf16.msra.mxu1 %v17263_v60 }
0x454f   : > { %12609 = vmatprep.subr.bf16.mxu1 %v17151_v24 }
0x4552   : > { %12611 = vmatpush3.bf16.msra.mxu1 %v17264_v9 }
0x4553   : > { %12630 = vmatprep.subr.bf16.mxu1 %v17151_v24 }
0x4618   : > { %v8939_v7 = vpop.f32.mrb[22].mxu1 }
0x4619   : > { %v8940_v47 = vadd.f32 %v8939_v7, %v15826_v16  ;;  %v12247_v59 = vpop.f32.mrb[23].mxu1 }
0x461b   : > { %v11568_v62 = vmul.f32 -1.442695, %v8940_v47 }
0x461d   : > { %13173 = vpow2.f32 %v11568_v62 }
0x4627   : > { %v13174_v41 = vpop.eup %13173 }
0x4628   : > { %v8946_v44 = vadd.f32 1.0, %v13174_v41 }
0x462a   : > { %13175 = vrcp.f32 %v8946_v44 }
0x4634   : > { %v13176_v30 = vpop.eup %13175 }
0x4635   : > { %v8949_v61 = vmul.f32 2.0, %v13176_v30  ;;  %v8951_v35 = vmul.f32 %v13176_v30, %v16121_v20 }
0x4637   : > { %v11569_v15 = vadd.f32 -1.0, %v8949_v61 }
0x4639   : > { %8953 = vrot.lane.b32.xlu0 %v11569_v15, %s13367_s16 }
0x46ab   : > { %v8954_v3 = vpop.permute.xlu0 %8953 }
0x46ac   : > { %v8956_v14 = vmul.f32 %v13176_v30, %v8954_v3 }
0x46ae   : > { %8958 = vrot.lane.b32.xlu0 %v8956_v14, %s13368_s17 }
0x4720   : > { %v8959_v50 = vpop.permute.xlu0 %8958 }
0x4721   : > { %v16271_v31 = vadd.f32 %v8959_v50, %v8951_v35 }
0x4723   : > { %13177 = vtanh.f32 %v16271_v31 }
0x472d   : > { %v13178_v58 = vpop.eup %13177 }
0x472e   : > { %8964 = vrot.lane.b32.xlu0 %v13178_v58, %s13367_s16 }
0x47a0   : > { %v8965_v22 = vpop.permute.xlu0 %8964 }
0x47a1   : > { %v16275_v17 = vmul.f32 %v13176_v30, %v8965_v22 }
0x47a3   : > { %8969 = vrot.lane.b32.xlu0 %v16275_v17, %s13368_s17 }
0x4815   : > { %v8970_v8 = vpop.permute.xlu0 %8969 }
0x4816   : > { %v8972_v56 = vsel %vm1575_vm12, %v8970_v8, %v16271_v31 }
0x4817   : > { %12265 = vmatmul.mubr.msk.f32.vlgmr.msra.gmra.mrb[24].mxu1 %vm17248_vm14, %v8972_v56 }
0x4818   : > { %12632 = vmatpush3.bf16.msra.mxu1 %v15663_v33  ;;  %12309 = vmatprep.mubr.msk.f32.mxu1 %vm13363_vm0, %v17152_v63 }
0x4819   : > { %12633 = vmatprep.subr.bf16.mxu1 %v17151_v24 }
0x481c   : > { %12635 = vmatpush3.bf16.msra.mxu1 %v15671_v13 }
0x481d   : > { %12307 = vmatprep.subr.mxu1 %v17152_v63 }
0x4820   : > { %12308 = vmatpush3.msk.msra.mxu1 %vm17247_vm11, %v16141_v43 }
0x4821   : > { %12636 = vmatprep.subr.bf16.mxu1 %v17151_v24 }
0x48ea   : > { %v9042_v20 = vpop.f32.mrb[24].mxu1 }
0x48eb   : > { %v9043_v48 = vadd.f32 %v9042_v20, %v15478_v53  ;;  %v12266_v28 = vpop.f32.mrb[25].mxu1 }
0x48ed   : > { %v9047_v52 = vcombine.high %v9043_v48, %v9043_v48  ;;  %v9054_v5 = vrot.slane %v9043_v48, %v17134_v12 }
0x48ef   : > { %v9061_v2 = vrot.slane %v9047_v52, %v17134_v12  ;;  %v9062_v19 = vcombine.high %v9054_v5, %v9054_v5  ;;  %v9070_v55 = vrot.slane %v9054_v5, %v17134_v12 }
0x48f1   : > { %v9063_v18 = vcombine.high %v9061_v2, %v9061_v2  ;;  %v9077_v21 = vrot.slane %v9061_v2, %v17134_v12  ;;  %v9084_v25 = vrot.slane %v9062_v19, %v17134_v12  ;;  %v9092_v43 = vcombine.high %v9070_v55, %v9070_v55 }
0x48f2   : > { %v9099_v6 = vrot.slane %v9070_v55, %v17136_v29 }
0x48f3   : > { %v9091_v36 = vrot.slane %v9063_v18, %v17134_v12  ;;  %v9093_v7 = vcombine.high %v9077_v21, %v9077_v21  ;;  %v9094_v47 = vcombine.high %v9084_v25, %v9084_v25  ;;  %v9103_v59 = vrot.slane %v9084_v25, %v17136_v29 }
0x48f4   : > { %v9107_v62 = vrot.slane %v9092_v43, %v17136_v29  ;;  %v9115_v41 = vrot.slane %v9077_v21, %v17136_v29  ;;  %v9136_v44 = vadd.f32 %v9099_v6, %v15490_v23 }
0x48f5   : > { %v9095_v30 = vcombine.high %v9091_v36, %v9091_v36  ;;  %v9111_v61 = vrot.slane %v9094_v47, %v17136_v29  ;;  %v9119_v15 = vrot.slane %v9091_v36, %v17136_v29  ;;  %v9123_v3 = vrot.slane %v9093_v7, %v17136_v29 }
0x48f6   : > { %v9137_v14 = vadd.f32 %v15487_v51, %v9103_v59  ;;  %v9138_v35 = vadd.f32 %v9107_v62, %v15499_v27  ;;  %v9140_v50 = vadd.f32 %v9115_v41, %v15507_v37  ;;  %13179 = vtanh.f32 %v9136_v44 }
0x48f7   : > { %v9127_v58 = vrot.slane %v9095_v30, %v17136_v29  ;;  %v9139_v22 = vadd.f32 %v15497_v45, %v9111_v61  ;;  %v9141_v8 = vadd.f32 %v15505_v4, %v9119_v15  ;;  %v9142_v56 = vadd.f32 %v9123_v3, %v15524_v54 }
0x48f8   : > { %13181 = vtanh.f32 %v9137_v14 }
0x48f9   : > { %v9143_v20 = vadd.f32 %v15522_v42, %v9127_v58  ;;  %13183 = vtanh.f32 %v9138_v35 }
0x48fa   : > { %13185 = vtanh.f32 %v9140_v50 }
0x48fb   : > { %13187 = vtanh.f32 %v9143_v20 }
0x48fc   : > { %13189 = vtanh.f32 %v9139_v22 }
0x48fd   : > { %13191 = vtanh.f32 %v9141_v8 }
0x48fe   : > { %13193 = vtanh.f32 %v9142_v56 }
0x4900   : > { %v13180_v48 = vpop.eup %13179 }
0x4901   : > { %v9152_v28 = vmul.f32 %v13180_v48, %v15517_v40 }
0x4902   : > { %v13182_v52 = vpop.eup %13181 }
0x4903   : > { %v13184_v5 = vpop.eup %13183  ;;  %v9160_v2 = vsel %vm1200_vm9, %v9152_v28, 0.0  ;;  %v9153_v19 = vmul.f32 %v13182_v52, %v15517_v40 }
0x4904   : > { %9161 = vadd.xlane.f32.xlu0 %v9160_v2  ;;  %v9154_v18 = vmul.f32 %v13184_v5, %v15517_v40  ;;  %v13186_v21 = vpop.eup %13185 }
0x4905   : > { %v9163_v55 = vsel %vm1200_vm9, %v9153_v19, 0.0  ;;  %v13188_v25 = vpop.eup %13187  ;;  %v9156_v36 = vmul.f32 %v13186_v21, %v15517_v40 }
0x4906   : > { %9164 = vadd.xlane.f32.xlu1 %v9163_v55  ;;  %v9166_v43 = vsel %vm1200_vm9, %v9154_v18, 0.0  ;;  %v9159_v6 = vmul.f32 %v13188_v25, %v15517_v40  ;;  %v13190_v7 = vpop.eup %13189 }
0x4907   : > { %v9172_v59 = vsel %vm1200_vm9, %v9156_v36, 0.0  ;;  %v9155_v62 = vmul.f32 %v13190_v7, %v15517_v40  ;;  %v13192_v41 = vpop.eup %13191 }
0x4908   : > { %v9181_v47 = vsel %vm1200_vm9, %v9159_v6, 0.0  ;;  %v9157_v30 = vmul.f32 %v13192_v41, %v15517_v40  ;;  %v13194_v61 = vpop.eup %13193 }
0x4909   : > { %9182 = vadd.xlane.f32.xlu0 %v9181_v47  ;;  %v9169_v44 = vsel %vm1200_vm9, %v9155_v62, 0.0  ;;  %v9158_v3 = vmul.f32 %v13194_v61, %v15517_v40 }
0x490a   : > { %9167 = vadd.xlane.f32.xlu1 %v9166_v43  ;;  %v9175_v15 = vsel %vm1200_vm9, %v9157_v30, 0.0 }
0x490b   : > { %v9178_v14 = vsel %vm1200_vm9, %v9158_v3, 0.0 }
0x490e   : > { %9173 = vadd.xlane.f32.xlu1 %v9172_v59 }
0x4912   : > { %9170 = vadd.xlane.f32.xlu1 %v9169_v44 }
0x4916   : > { %9176 = vadd.xlane.f32.xlu1 %v9175_v15 }
0x491a   : > { %9179 = vadd.xlane.f32.xlu1 %v9178_v14 }
0x4991   : > { %v9162_v58 = vpop.xlane.xlu0 %9161 }
0x4992   : > { %v9184_v56 = vadd.f32 %v9162_v58, %v15544_v49 }
0x4993   : > { %v9165_v35 = vpop.xlane.xlu1 %9164 }
0x4994   : > { %v9185_v22 = vadd.f32 %v9165_v35, %v15544_v49  ;;  %v9192_v52 = vmul.f32 1.442695, %v9184_v56 }
0x4996   : > { %v9194_v48 = vmul.f32 1.442695, %v9185_v22  ;;  %v9183_v19 = vpop.xlane.xlu0 %9182 }
0x4997   : > { %v9168_v50 = vpop.xlane.xlu1 %9167  ;;  %v9191_v21 = vadd.f32 %v9183_v19, %v15544_v49 }
0x4998   : > { %v9186_v8 = vadd.f32 %v9168_v50, %v15544_v49  ;;  %13195 = vpow2.f32 %v9194_v48 }
0x4999   : > { %v9206_v7 = vmul.f32 1.442695, %v9191_v21 }
0x499a   : > { %v9196_v28 = vmul.f32 1.442695, %v9186_v8 }
0x499b   : > { %v9174_v20 = vpop.xlane.xlu1 %9173 }
0x499c   : > { %v9188_v5 = vadd.f32 %v9174_v20, %v15544_v49  ;;  %13197 = vpow2.f32 %v9196_v28 }
0x499d   : > { %13199 = vpow2.f32 %v9192_v52 }
0x499e   : > { %v9200_v25 = vmul.f32 1.442695, %v9188_v5 }
0x499f   : > { %v9171_v2 = vpop.xlane.xlu1 %9170 }
0x49a0   : > { %v9187_v55 = vadd.f32 %v9171_v2, %v15544_v49 }
0x49a2   : > { %v9198_v18 = vmul.f32 1.442695, %v9187_v55  ;;  %v13196_v41 = vpop.eup %13195 }
0x49a3   : > { %v9177_v43 = vpop.xlane.xlu1 %9176  ;;  %v9223_v15 = vrot.slane %v13196_v41, %v17145_v57 }
0x49a4   : > { %13201 = vpow2.f32 %v9198_v18  ;;  %v9189_v6 = vadd.f32 %v9177_v43, %v15544_v49 }
0x49a5   : > { %13203 = vpow2.f32 %v9200_v25 }
0x49a6   : > { %v9202_v36 = vmul.f32 1.442695, %v9189_v6  ;;  %v13198_v44 = vpop.eup %13197 }
0x49a7   : > { %v9180_v47 = vpop.xlane.xlu1 %9179  ;;  %v13200_v30 = vpop.eup %13199  ;;  %v9227_v3 = vrot.slane %v13198_v44, %v17145_v57 }
0x49a8   : > { %13205 = vpow2.f32 %v9202_v36  ;;  %v9190_v59 = vadd.f32 %v9180_v47, %v15544_v49  ;;  %v9219_v14 = vrot.slane %v13200_v30, %v17145_v57 }
0x49a9   : > { %13207 = vpow2.f32 %v9206_v7 }
0x49aa   : > { %v9204_v62 = vmul.f32 1.442695, %v9190_v59  ;;  %v9248_v22 = vsel %vm1185_vm2, %v9223_v15, %v9219_v14 }
0x49ab   : > { %v9249_v8 = vsel %vm1187_vm3, %v9227_v3, %v9248_v22 }
0x49ac   : > { %13209 = vpow2.f32 %v9204_v62 }
0x49ae   : > { %v13202_v61 = vpop.eup %13201 }
0x49af   : > { %v9231_v35 = vrot.slane %v13202_v61, %v17145_v57  ;;  %v13204_v50 = vpop.eup %13203 }
0x49b0   : > { %v9235_v28 = vrot.slane %v13204_v50, %v17145_v57 }
0x49b1   : > { %v9250_v20 = vsel %vm1189_vm4, %v9231_v35, %v9249_v8 }
0x49b2   : > { %v13206_v58 = vpop.eup %13205  ;;  %v9251_v2 = vsel %vm1191_vm5, %v9235_v28, %v9250_v20  ;;  %v17271_v20 = vld [vmem:[#allocation63_spill] sm:$0xff] }
0x49b3   : > { %v9239_v56 = vrot.slane %v13206_v58, %v17145_v57  ;;  %v13208_v48 = vpop.eup %13207 }
0x49b4   : > { %v9247_v19 = vrot.slane %v13208_v48, %v17145_v57 }
0x49b5   : > { %v9252_v55 = vsel %vm1193_vm6, %v9239_v56, %v9251_v2 }
0x49b6   : > { %v13210_v52 = vpop.eup %13209 }
0x49b7   : > { %v9243_v5 = vrot.slane %v13210_v52, %v17145_v57 }
0x49b9   : > { %v9253_v18 = vsel %vm1195_vm7, %v9243_v5, %v9252_v55 }
0x49ba   : > { %v9254_v21 = vsel %vm1197_vm8, %v9247_v19, %v9253_v18  ;;  %v17273_v19 = vld [vmem:[#allocation21_spill] sm:$0xff] }
0x49bb   : > { %v9256_v25 = vsel %vm6805_vm10, %v9254_v21, 0.0  ;;  %v17274_v18 = vld [vmem:[#allocation9_spill] sm:$0xff] }
0x49bc   : > { %9257 = vadd.xlane.f32.xlu1 %v9256_v25 }
0x4a49   : > { %v9258_v43 = vpop.xlane.xlu1 %9257 }
0x4a4a   : > { %13211 = vrcp.f32 %v9258_v43 }
0x4a54   : > { %v13212_v6 = vpop.eup %13211 }
0x4a55   : > { %v9272_v36 = vrot.slane %v13212_v6, %v17203_v38  ;;  %v9268_v7 = vrot.slane %v13212_v6, %v17147_v34  ;;  %v9276_v62 = vrot.slane %v13212_v6, %v17150_v26  ;;  %v9264_v15 = vrot.slane %v13212_v6, %v17136_v29 }
0x4a56   : > { %v9284_v35 = vrot.slane %v13212_v6, %v13683_v0  ;;  %v9280_v22 = vrot.slane %v13212_v6, %v17148_v39  ;;  %v9292_v28 = vrot.slane %v13212_v6, %v17271_v20 }
0x4a57   : > { %v9303_v47 = vmul.f32 %v13198_v44, %v9272_v36  ;;  %v9302_v59 = vmul.f32 %v13196_v41, %v9268_v7  ;;  %v9304_v3 = vmul.f32 %v13202_v61, %v9276_v62  ;;  %v9301_v14 = vmul.f32 %v13200_v30, %v9264_v15  ;;  %v17272_v44 = vld [vmem:[#allocation54_spill] sm:$0xff]  ;;  %v17275_v7 = vld [vmem:[#allocation17_spill] sm:$0xff] }
0x4a58   : > { %v9306_v8 = vmul.f32 %v13206_v58, %v9284_v35  ;;  %v9305_v56 = vmul.f32 %v13204_v50, %v9280_v22  ;;  %v9288_v41 = vrot.slane %v13212_v6, %v17272_v44  ;;  %v9308_v5 = vmul.f32 %v13208_v48, %v9292_v28  ;;  %v17276_v48 = vld [vmem:[#allocation14_spill] sm:$0xff] }
0x4a59   : > { %9321 = vperm.xlu1 %12697, %v9303_v47   ;;  %9316 = vperm.xlu0 %12698, %v9302_v59  }
0x4a5a   : > { %v9307_v2 = vmul.f32 %v13210_v52, %v9288_v41  ;;  %v17277_v41 = vld [vmem:[#allocation34_spill] sm:$0xff] }
0x4a5d   : > { %9326 = vperm.xlu0 %12698, %v9304_v3   ;;  %9311 = vperm.xlu1 %12697, %v9301_v14  }
0x4a61   : > { %9336 = vperm.xlu0 %12698, %v9306_v8   ;;  %9331 = vperm.xlu1 %12697, %v9305_v56  }
0x4a65   : > { %9346 = vperm.xlu0 %12698, %v9308_v5   ;;  %9341 = vperm.xlu1 %12697, %v9307_v2   ;;  %v17278_v2 = vld [vmem:[#allocation22_spill] sm:$0xff] }
0x4ad8   : > { %v9322_v61 = vpop.permute.xlu1 %9321  ;;  %v9317_v30 = vpop.permute.xlu0 %9316 }
0x4ad9   : > { %v9351_v55 = vmul.f32 %v9322_v61, %v17273_v19  ;;  %v9350_v21 = vmul.f32 %v9317_v30, %v17274_v18 }
0x4adb   : > { %v9371_v25 = vsel %vm6907_vm13, %v9351_v55, 0.0  ;;  %v9364_v50 = vsel %vm6907_vm13, %v9350_v21, 0.0 }
0x4adc   : > { %v9372_v58 = vrot.slane %v9371_v25, 4  ;;  %v9365_v43 = vrot.slane %v9364_v50, 4  ;;  %v9327_v36 = vpop.permute.xlu0 %9326  ;;  %v9312_v6 = vpop.permute.xlu1 %9311 }
0x4add   : > { %v9352_v47 = vmul.f32 %v9327_v36, %v17275_v7  ;;  %v9349_v52 = vmul.f32 %v9312_v6, %v17276_v48 }
0x4ade   : > { %v9373_v59 = vadd.f32 %v9372_v58, %v9371_v25  ;;  %v9366_v62 = vadd.f32 %v9365_v43, %v9364_v50 }
0x4adf   : > { %v9378_v15 = vsel %vm6907_vm13, %v9352_v47, 0.0  ;;  %v9357_v3 = vsel %vm6907_vm13, %v9349_v52, 0.0 }
0x4ae0   : > { %v9374_v14 = vrot.slane %v9373_v59, 2  ;;  %v9367_v35 = vrot.slane %v9366_v62, 2  ;;  %v9379_v22 = vrot.slane %v9378_v15, 4  ;;  %v9358_v8 = vrot.slane %v9357_v3, 4  ;;  %v9337_v56 = vpop.permute.xlu0 %9336  ;;  %v9332_v28 = vpop.permute.xlu1 %9331 }
0x4ae1   : > { %v9354_v5 = vmul.f32 %v9337_v56, %v17277_v41  ;;  %v9353_v61 = vmul.f32 %v9332_v28, %v17278_v2  ;;  %v17279_v41 = vld [vmem:[#allocation6_spill] sm:$0xff] }
0x4ae2   : > { %v9375_v30 = vadd.f32 %v9374_v14, %v9373_v59  ;;  %v9368_v55 = vadd.f32 %v9367_v35, %v9366_v62  ;;  %v9380_v21 = vadd.f32 %v9379_v22, %v9378_v15  ;;  %v9359_v36 = vadd.f32 %v9358_v8, %v9357_v3 }
0x4ae3   : > { %v9392_v25 = vsel %vm6907_vm13, %v9354_v5, 0.0  ;;  %v9385_v50 = vsel %vm6907_vm13, %v9353_v61, 0.0 }
0x4ae4   : > { %v9376_v58 = vrot.slane %v9375_v30, 1  ;;  %v9369_v43 = vrot.slane %v9368_v55, 1  ;;  %v9381_v6 = vrot.slane %v9380_v21, 2  ;;  %v9360_v47 = vrot.slane %v9359_v36, 2  ;;  %v9347_v52 = vpop.permute.xlu0 %9346  ;;  %v9342_v7 = vpop.permute.xlu1 %9341 }
0x4ae5   : > { %v9393_v48 = vrot.slane %v9392_v25, 4  ;;  %v9386_v18 = vrot.slane %v9385_v50, 4  ;;  %v9356_v56 = vmul.f32 %v9347_v52, %v17269_v46  ;;  %v9355_v28 = vmul.f32 %v9342_v7, %v17279_v41 }
0x4ae6   : > { %v9377_v59 = vadd.f32 %v9376_v58, %v9375_v30  ;;  %v9370_v62 = vadd.f32 %v9369_v43, %v9368_v55  ;;  %v9382_v15 = vadd.f32 %v9381_v6, %v9380_v21  ;;  %v9361_v3 = vadd.f32 %v9360_v47, %v9359_v36 }
0x4ae7   : > { %v9394_v14 = vadd.f32 %v9393_v48, %v9392_v25  ;;  %v9387_v35 = vadd.f32 %v9386_v18, %v9385_v50  ;;  %v9406_v22 = vsel %vm6907_vm13, %v9356_v56, 0.0  ;;  %v9399_v8 = vsel %vm6907_vm13, %v9355_v28, 0.0 }
0x4ae8   : > { %v9414_v5 = vmul.f32 %v9370_v62, %v17253_v1  ;;  %v9383_v61 = vrot.slane %v9382_v15, 1  ;;  %v9362_v2 = vrot.slane %v9361_v3, 1  ;;  %v9407_v0 = vrot.slane %v9406_v22, 4 }
0x4ae9   : > { %v9395_v19 = vrot.slane %v9394_v14, 2  ;;  %v9388_v20 = vrot.slane %v9387_v35, 2  ;;  %v9400_v52 = vrot.slane %v9399_v8, 4  ;;  %v9415_v7 = vmul.f32 %v9377_v59, %v17253_v1 }
0x4aea   : > { %v9384_v30 = vadd.f32 %v9383_v61, %v9382_v15  ;;  %v9363_v55 = vadd.f32 %v9362_v2, %v9361_v3  ;;  %v9408_v48 = vadd.f32 %v9407_v0, %v9406_v22  ;;  %v9429_v25 = vrot.slane %v9414_v5, 7 }
0x4aeb   : > { %v9396_v21 = vadd.f32 %v9395_v19, %v9394_v14  ;;  %v9389_v36 = vadd.f32 %v9388_v20, %v9387_v35  ;;  %v9401_v18 = vadd.f32 %v9400_v52, %v9399_v8  ;;  %v9431_v28 = vrot.slane %v9415_v7, 6 }
0x4aec   : > { %v9416_v50 = vmul.f32 %v9384_v30, %v17253_v1  ;;  %v9413_v58 = vmul.f32 %v9363_v55, %v17253_v1  ;;  %v9409_v47 = vrot.slane %v9408_v48, 2 }
0x4aed   : > { %v9397_v43 = vrot.slane %v9396_v21, 1  ;;  %v9390_v6 = vrot.slane %v9389_v36, 1  ;;  %v9402_v56 = vrot.slane %v9401_v18, 2 }
0x4aee   : > { %v9430_v62 = vsel %vm1185_vm2, %v9429_v25, %v9413_v58  ;;  %v9410_v15 = vadd.f32 %v9409_v47, %v9408_v48  ;;  %v9433_v19 = vrot.slane %v9416_v50, 5  ;;  %v17280_v25 = vld [vmem:[#allocation3_spill] sm:$0xff] }
0x4aef   : > { %v9398_v46 = vadd.f32 %v9397_v43, %v9396_v21  ;;  %v9391_v59 = vadd.f32 %v9390_v6, %v9389_v36  ;;  %v9403_v2 = vadd.f32 %v9402_v56, %v9401_v18  ;;  %v9432_v0 = vsel %vm1187_vm3, %v9431_v28, %v9430_v62 }
0x4af0   : > { %v9411_v14 = vrot.slane %v9410_v15, 1  ;;  %v9434_v52 = vsel %vm1189_vm4, %v9433_v19, %v9432_v0 }
0x4af1   : > { %v9418_v20 = vmul.f32 %v9398_v46, %v17253_v1  ;;  %v9417_v3 = vmul.f32 %v9391_v59, %v17253_v1  ;;  %v9404_v35 = vrot.slane %v9403_v2, 1 }
0x4af2   : > { %v9412_v8 = vadd.f32 %v9411_v14, %v9410_v15 }
0x4af3   : > { %v9435_v22 = vrot.slane %v9417_v3, 4  ;;  %v9405_v5 = vadd.f32 %v9404_v35, %v9403_v2  ;;  %v9437_v61 = vrot.slane %v9418_v20, 3 }
0x4af4   : > { %v9420_v30 = vmul.f32 %v9412_v8, %v17253_v1 }
0x4af5   : > { %v9419_v7 = vmul.f32 %v9405_v5, %v17253_v1  ;;  %v9436_v55 = vsel %vm1191_vm5, %v9435_v22, %v9434_v52 }
0x4af6   : > { %v9441_v36 = vrot.slane %v9420_v30, 1  ;;  %v9438_v46 = vsel %vm1193_vm6, %v9437_v61, %v9436_v55 }
0x4af7   : > { %v9439_v21 = vrot.slane %v9419_v7, 2 }
0x4af9   : > { %v9440_v48 = vsel %vm1195_vm7, %v9439_v21, %v9438_v46 }
0x4afa   : > { %v9442_v18 = vsel %vm1197_vm8, %v9441_v36, %v9440_v48 }
0x4afb   : > { %9443 = vrot.lane.b32.xlu1 %v9442_v18, %s13368_s17 }
0x4aff   : > { %9463 = vrot.lane.b32.xlu1 %v17280_v25, %s13370_s30 }
0x4b03   : > { %9468 = vrot.lane.b32.xlu1 %v16275_v17, %s13373_s28 }
0x4b6d   : > { %v9444_v50 = vpop.permute.xlu1 %9443 }
0x4b6e   : > { %v9446_v58 = vsel %vm1575_vm12, %v9444_v50, 0.0 }
0x4b6f   : > { %9447 = vadd.xlane.f32.xlu0 %v9446_v58 }
0x4b71   : > { %v9464_v43 = vpop.permute.xlu1 %9463 }
0x4b75   : > { %v9469_v28 = vpop.permute.xlu1 %9468 }
0x4bfc   : > { %v9448_v6 = vpop.xlane.xlu0 %9447 }
0x4bfd   : > { %v9466_v47 = vadd.f32 %v9464_v43, %v9448_v6 }
0x4bff   : > { %v9467_v56 = vadd.f32 %v9466_v47, %v15810_v32 }
0x4c01   : > { %v9471_v62 = vsel %vm7054_vm15, %v9467_v56, %v9469_v28 }
0x4c02   : > { %12278 = vmatmul.mubr.msk.f32.vlgmr.msra.gmra.mrb[32].mxu0 %vm7060_vm1, %v9471_v62 }
0x4c03   : > { %12620 = vmatpush3.bf16.msra.mxu0 %v17261_v10  ;;  %12296 = vmatprep.mubr.msk.f32.mxu0 %vm13363_vm0, %v17152_v63 }
0x4c04   : > { %12621 = vmatprep.subr.bf16.mxu0 %v17151_v24 }
0x4c07   : > { %12623 = vmatpush3.bf16.msra.mxu0 %v17262_v11 }
0x4c08   : > { %12624 = vmatprep.subr.bf16.mxu0 %v17151_v24 }
0x4c0b   : > { %12626 = vmatpush3.bf16.msra.mxu0 %v17263_v60 }
0x4c0c   : > { %12627 = vmatprep.subr.bf16.mxu0 %v17151_v24 }
0x4c0f   : > { %12629 = vmatpush3.bf16.msra.mxu0 %v17264_v9 }
0x4c10   : > { %12648 = vmatprep.subr.bf16.mxu0 %v17151_v24 }
0x4cd5   : > { %v9541_v17 = vpop.f32.mrb[32].mxu0 }
0x4cd6   : > { %v9542_v59 = vadd.f32 %v9541_v17, %v15826_v16  ;;  %v12279_v15 = vpop.f32.mrb[33].mxu0 }
0x4cd8   : > { %v11573_v2 = vmul.f32 -1.442695, %v9542_v59 }
0x4cda   : > { %13213 = vpow2.f32 %v11573_v2 }
0x4ce4   : > { %v13214_v19 = vpop.eup %13213 }
0x4ce5   : > { %v9548_v0 = vadd.f32 1.0, %v13214_v19 }
0x4ce7   : > { %13215 = vrcp.f32 %v9548_v0 }
0x4cf1   : > { %v13216_v20 = vpop.eup %13215 }
0x4cf2   : > { %v9551_v3 = vmul.f32 2.0, %v13216_v20  ;;  %v9553_v8 = vmul.f32 %v13216_v20, %v16271_v31  ;;  %v16436_v31 = vld [vmem:[%s16900_s4 + $0x20] sm:$0x1] }
0x4cf4   : > { %v11574_v14 = vadd.f32 -1.0, %v9551_v3 }
0x4cf6   : > { %9555 = vrot.lane.b32.xlu1 %v11574_v14, %s13367_s16 }
0x4d68   : > { %v9556_v35 = vpop.permute.xlu1 %9555 }
0x4d69   : > { %v9558_v22 = vmul.f32 %v13216_v20, %v9556_v35 }
0x4d6b   : > { %9560 = vrot.lane.b32.xlu1 %v9558_v22, %s13368_s17 }
0x4ddd   : > { %v9561_v5 = vpop.permute.xlu1 %9560 }
0x4dde   : > { %v16416_v61 = vadd.f32 %v9561_v5, %v9553_v8 }
0x4de0   : > { %13217 = vtanh.f32 %v16416_v61 }
0x4dea   : > { %v13218_v52 = vpop.eup %13217 }
0x4deb   : > { %9566 = vrot.lane.b32.xlu1 %v13218_v52, %s13367_s16 }
0x4e5d   : > { %v9567_v7 = vpop.permute.xlu1 %9566 }
0x4e5e   : > { %v16420_v30 = vmul.f32 %v13216_v20, %v9567_v7 }
0x4e60   : > { %9571 = vrot.lane.b32.xlu1 %v16420_v30, %s13368_s17 }
0x4ed2   : > { %v9572_v55 = vpop.permute.xlu1 %9571 }
0x4ed3   : > { %v9574_v21 = vsel %vm1575_vm12, %v9572_v55, %v16416_v61 }
0x4ed4   : > { %12297 = vmatmul.mubr.msk.f32.vlgmr.msra.gmra.mrb[34].mxu0 %vm17248_vm14, %v9574_v21 }
0x4ed5   : > { %12650 = vmatpush3.bf16.msra.mxu0 %v15663_v33  ;;  %12341 = vmatprep.mubr.msk.f32.mxu0 %vm13363_vm0, %v17152_v63 }
0x4ed6   : > { %12651 = vmatprep.subr.bf16.mxu0 %v17151_v24 }
0x4ed9   : > { %12653 = vmatpush3.bf16.msra.mxu0 %v15671_v13 }
0x4eda   : > { %12339 = vmatprep.subr.mxu0 %v17152_v63 }
0x4edd   : > { %12340 = vmatpush3.msk.msra.mxu0 %vm17247_vm11, %v16436_v31 }
0x4ede   : > { %12654 = vmatprep.subr.bf16.mxu0 %v17151_v24 }
0x4fa7   : > { %v9644_v36 = vpop.f32.mrb[34].mxu0 }
0x4fa8   : > { %v9645_v46 = vadd.f32 %v9644_v36, %v15478_v53  ;;  %v12298_v48 = vpop.f32.mrb[35].mxu0 }
0x4faa   : > { %v9649_v18 = vcombine.high %v9645_v46, %v9645_v46  ;;  %v9656_v25 = vrot.slane %v9645_v46, %v17134_v12 }
0x4fac   : > { %v9663_v50 = vrot.slane %v9649_v18, %v17134_v12  ;;  %v9664_v58 = vcombine.high %v9656_v25, %v9656_v25  ;;  %v9672_v43 = vrot.slane %v9656_v25, %v17134_v12 }
0x4fae   : > { %v9665_v6 = vcombine.high %v9663_v50, %v9663_v50  ;;  %v9679_v47 = vrot.slane %v9663_v50, %v17134_v12  ;;  %v9686_v56 = vrot.slane %v9664_v58, %v17134_v12  ;;  %v9694_v28 = vcombine.high %v9672_v43, %v9672_v43 }
0x4faf   : > { %v9701_v62 = vrot.slane %v9672_v43, %v17136_v29 }
0x4fb0   : > { %v9693_v17 = vrot.slane %v9665_v6, %v17134_v12  ;;  %v9695_v59 = vcombine.high %v9679_v47, %v9679_v47  ;;  %v9696_v15 = vcombine.high %v9686_v56, %v9686_v56  ;;  %v9705_v2 = vrot.slane %v9686_v56, %v17136_v29 }
0x4fb1   : > { %v9709_v19 = vrot.slane %v9694_v28, %v17136_v29  ;;  %v9717_v0 = vrot.slane %v9679_v47, %v17136_v29  ;;  %v9738_v20 = vadd.f32 %v9701_v62, %v15490_v23 }
0x4fb2   : > { %v9697_v3 = vcombine.high %v9693_v17, %v9693_v17  ;;  %v9713_v14 = vrot.slane %v9696_v15, %v17136_v29  ;;  %v9721_v35 = vrot.slane %v9693_v17, %v17136_v29  ;;  %v9725_v22 = vrot.slane %v9695_v59, %v17136_v29 }
0x4fb3   : > { %v9739_v8 = vadd.f32 %v15487_v51, %v9705_v2  ;;  %v9740_v5 = vadd.f32 %v9709_v19, %v15499_v27  ;;  %v9742_v52 = vadd.f32 %v9717_v0, %v15507_v37  ;;  %13219 = vtanh.f32 %v9738_v20 }
0x4fb4   : > { %v9729_v7 = vrot.slane %v9697_v3, %v17136_v29  ;;  %v9741_v55 = vadd.f32 %v15497_v45, %v9713_v14  ;;  %v9743_v21 = vadd.f32 %v15505_v4, %v9721_v35  ;;  %v9744_v36 = vadd.f32 %v9725_v22, %v15524_v54 }
0x4fb5   : > { %13221 = vtanh.f32 %v9739_v8 }
0x4fb6   : > { %v9745_v46 = vadd.f32 %v15522_v42, %v9729_v7  ;;  %13223 = vtanh.f32 %v9740_v5 }
0x4fb7   : > { %13225 = vtanh.f32 %v9742_v52 }
0x4fb8   : > { %13227 = vtanh.f32 %v9741_v55 }
0x4fb9   : > { %13229 = vtanh.f32 %v9743_v21 }
0x4fba   : > { %13231 = vtanh.f32 %v9744_v36 }
0x4fbb   : > { %13233 = vtanh.f32 %v9745_v46 }
0x4fbd   : > { %v13220_v48 = vpop.eup %13219 }
0x4fbe   : > { %v9754_v18 = vmul.f32 %v13220_v48, %v15517_v40 }
0x4fbf   : > { %v13222_v25 = vpop.eup %13221 }
0x4fc0   : > { %v13224_v50 = vpop.eup %13223  ;;  %v9762_v58 = vsel %vm1200_vm9, %v9754_v18, 0.0  ;;  %v9755_v43 = vmul.f32 %v13222_v25, %v15517_v40 }
0x4fc1   : > { %9763 = vadd.xlane.f32.xlu1 %v9762_v58  ;;  %v9756_v47 = vmul.f32 %v13224_v50, %v15517_v40  ;;  %v13226_v56 = vpop.eup %13225 }
0x4fc2   : > { %v9765_v6 = vsel %vm1200_vm9, %v9755_v43, 0.0  ;;  %v9758_v62 = vmul.f32 %v13226_v56, %v15517_v40  ;;  %v13228_v17 = vpop.eup %13227 }
0x4fc3   : > { %9766 = vadd.xlane.f32.xlu0 %v9765_v6  ;;  %v9768_v28 = vsel %vm1200_vm9, %v9756_v47, 0.0  ;;  %v9757_v15 = vmul.f32 %v13228_v17, %v15517_v40  ;;  %v13230_v2 = vpop.eup %13229 }
0x4fc4   : > { %v9774_v59 = vsel %vm1200_vm9, %v9758_v62, 0.0  ;;  %v9759_v0 = vmul.f32 %v13230_v2, %v15517_v40  ;;  %v13232_v20 = vpop.eup %13231 }
0x4fc5   : > { %v9771_v19 = vsel %vm1200_vm9, %v9757_v15, 0.0  ;;  %v9760_v14 = vmul.f32 %v13232_v20, %v15517_v40  ;;  %v13234_v35 = vpop.eup %13233 }
0x4fc6   : > { %v9777_v3 = vsel %vm1200_vm9, %v9759_v0, 0.0  ;;  %v9761_v8 = vmul.f32 %v13234_v35, %v15517_v40 }
0x4fc7   : > { %9769 = vadd.xlane.f32.xlu0 %v9768_v28  ;;  %v9780_v22 = vsel %vm1200_vm9, %v9760_v14, 0.0 }
0x4fc8   : > { %v9783_v5 = vsel %vm1200_vm9, %v9761_v8, 0.0 }
0x4fcb   : > { %9775 = vadd.xlane.f32.xlu0 %v9774_v59 }
0x4fcf   : > { %9772 = vadd.xlane.f32.xlu0 %v9771_v19 }
0x4fd3   : > { %9778 = vadd.xlane.f32.xlu0 %v9777_v3 }
0x4fd7   : > { %9781 = vadd.xlane.f32.xlu0 %v9780_v22 }
0x4fdb   : > { %9784 = vadd.xlane.f32.xlu0 %v9783_v5 }
0x504e   : > { %v9764_v55 = vpop.xlane.xlu1 %9763 }
0x504f   : > { %v9786_v21 = vadd.f32 %v9764_v55, %v15544_v49 }
0x5050   : > { %v9767_v52 = vpop.xlane.xlu0 %9766 }
0x5051   : > { %v9787_v46 = vadd.f32 %v9767_v52, %v15544_v49  ;;  %v9794_v18 = vmul.f32 1.442695, %v9786_v21 }
0x5053   : > { %v9796_v50 = vmul.f32 1.442695, %v9787_v46  ;;  %13235 = vpow2.f32 %v9794_v18 }
0x5054   : > { %v9770_v7 = vpop.xlane.xlu0 %9769 }
0x5055   : > { %v9788_v48 = vadd.f32 %v9770_v7, %v15544_v49  ;;  %13237 = vpow2.f32 %v9796_v50 }
0x5057   : > { %v9798_v43 = vmul.f32 1.442695, %v9788_v48 }
0x5058   : > { %v9776_v36 = vpop.xlane.xlu0 %9775 }
0x5059   : > { %v9790_v47 = vadd.f32 %v9776_v36, %v15544_v49  ;;  %13239 = vpow2.f32 %v9798_v43 }
0x505b   : > { %v9802_v17 = vmul.f32 1.442695, %v9790_v47 }
0x505c   : > { %v9773_v25 = vpop.xlane.xlu0 %9772 }
0x505d   : > { %v9789_v58 = vadd.f32 %v9773_v25, %v15544_v49  ;;  %v13236_v20 = vpop.eup %13235 }
0x505e   : > { %v9821_v52 = vrot.slane %v13236_v20, %v17145_v57 }
0x505f   : > { %v9800_v6 = vmul.f32 1.442695, %v9789_v58  ;;  %v13238_v3 = vpop.eup %13237 }
0x5060   : > { %v9779_v56 = vpop.xlane.xlu0 %9778  ;;  %v9825_v8 = vrot.slane %v13238_v3, %v17145_v57 }
0x5061   : > { %v9791_v28 = vadd.f32 %v9779_v56, %v15544_v49  ;;  %13241 = vpow2.f32 %v9800_v6 }
0x5062   : > { %v9850_v36 = vsel %vm1185_vm2, %v9825_v8, %v9821_v52 }
0x5063   : > { %v9804_v62 = vmul.f32 1.442695, %v9791_v28  ;;  %v13240_v35 = vpop.eup %13239 }
0x5064   : > { %v9782_v59 = vpop.xlane.xlu0 %9781  ;;  %v9829_v5 = vrot.slane %v13240_v35, %v17145_v57 }
0x5065   : > { %v9792_v15 = vadd.f32 %v9782_v59, %v15544_v49  ;;  %13243 = vpow2.f32 %v9804_v62 }
0x5066   : > { %13245 = vpow2.f32 %v9802_v17  ;;  %v9851_v48 = vsel %vm1187_vm3, %v9829_v5, %v9850_v36 }
0x5067   : > { %v9806_v2 = vmul.f32 1.442695, %v9792_v15 }
0x5068   : > { %v9785_v19 = vpop.xlane.xlu0 %9784 }
0x5069   : > { %13247 = vpow2.f32 %v9806_v2  ;;  %v9793_v0 = vadd.f32 %v9785_v19, %v15544_v49 }
0x506b   : > { %v9808_v14 = vmul.f32 1.442695, %v9793_v0  ;;  %v13242_v22 = vpop.eup %13241 }
0x506c   : > { %v9833_v7 = vrot.slane %v13242_v22, %v17145_v57 }
0x506d   : > { %13249 = vpow2.f32 %v9808_v14 }
0x506e   : > { %v9852_v25 = vsel %vm1189_vm4, %v9833_v7, %v9851_v48 }
0x506f   : > { %v13244_v55 = vpop.eup %13243 }
0x5070   : > { %v13246_v21 = vpop.eup %13245  ;;  %v9841_v18 = vrot.slane %v13244_v55, %v17145_v57 }
0x5071   : > { %v9837_v50 = vrot.slane %v13246_v21, %v17145_v57 }
0x5073   : > { %v13248_v46 = vpop.eup %13247  ;;  %v9853_v6 = vsel %vm1191_vm5, %v9837_v50, %v9852_v25  ;;  %v17281_v50 = vld [vmem:[#allocation45_spill] sm:$0xff] }
0x5074   : > { %v9845_v58 = vrot.slane %v13248_v46, %v17145_v57  ;;  %v9854_v56 = vsel %vm1193_vm6, %v9841_v18, %v9853_v6 }
0x5076   : > { %v9855_v28 = vsel %vm1195_vm7, %v9845_v58, %v9854_v56  ;;  %v17283_v56 = vld [vmem:[#allocation21_spill] sm:$0xff] }
0x5077   : > { %v13250_v43 = vpop.eup %13249 }
0x5078   : > { %v9849_v47 = vrot.slane %v13250_v43, %v17145_v57 }
0x507a   : > { %v9856_v62 = vsel %vm1197_vm8, %v9849_v47, %v9855_v28 }
0x507b   : > { %v9858_v17 = vsel %vm6805_vm10, %v9856_v62, 0.0  ;;  %v17284_v62 = vld [vmem:[#allocation9_spill] sm:$0xff] }
0x507c   : > { %9859 = vadd.xlane.f32.xlu0 %v9858_v17 }
0x5109   : > { %v9860_v59 = vpop.xlane.xlu0 %9859 }
0x510a   : > { %13251 = vrcp.f32 %v9860_v59 }
0x5114   : > { %v13252_v15 = vpop.eup %13251 }
0x5115   : > { %v9874_v2 = vrot.slane %v13252_v15, %v17203_v38  ;;  %v9870_v19 = vrot.slane %v13252_v15, %v17147_v34  ;;  %v9882_v8 = vrot.slane %v13252_v15, %v17148_v39  ;;  %v9866_v5 = vrot.slane %v13252_v15, %v17136_v29 }
0x5116   : > { %v9890_v36 = vrot.slane %v13252_v15, %v17272_v44  ;;  %v9878_v48 = vrot.slane %v13252_v15, %v17150_v26  ;;  %v9886_v58 = vrot.slane %v13252_v15, %v17281_v50 }
0x5117   : > { %v9905_v0 = vmul.f32 %v13240_v35, %v9874_v2  ;;  %v9904_v14 = vmul.f32 %v13238_v3, %v9870_v19  ;;  %v9907_v52 = vmul.f32 %v13246_v21, %v9882_v8  ;;  %v9903_v7 = vmul.f32 %v13236_v20, %v9866_v5  ;;  %v17282_v35 = vld [vmem:[#allocation63_spill] sm:$0xff] }
0x5118   : > { %v9909_v18 = vmul.f32 %v13248_v46, %v9890_v36  ;;  %v9906_v25 = vmul.f32 %v13242_v22, %v9878_v48  ;;  %v9908_v3 = vmul.f32 %v13244_v55, %v9886_v58  ;;  %v9894_v6 = vrot.slane %v13252_v15, %v17282_v35  ;;  %v17285_v55 = vld [vmem:[#allocation22_spill] sm:$0xff] }
0x5119   : > { %9923 = vperm.xlu0 %12698, %v9905_v0   ;;  %9918 = vperm.xlu1 %12697, %v9904_v14   ;;  %v17286_v15 = vld [vmem:[#allocation14_spill] sm:$0xff] }
0x511a   : > { %v9910_v47 = vmul.f32 %v13250_v43, %v9894_v6 }
0x511d   : > { %9933 = vperm.xlu0 %12698, %v9907_v52   ;;  %9913 = vperm.xlu1 %12697, %v9903_v7  }
0x5121   : > { %9943 = vperm.xlu0 %12698, %v9909_v18   ;;  %9928 = vperm.xlu1 %12697, %v9906_v25  }
0x5125   : > { %9938 = vperm.xlu1 %12697, %v9908_v3  }
0x5129   : > { %9948 = vperm.xlu1 %12697, %v9910_v47   ;;  %v17287_v47 = vld [vmem:[#allocation17_spill] sm:$0xff] }
0x5198   : > { %v9924_v21 = vpop.permute.xlu0 %9923  ;;  %v9919_v20 = vpop.permute.xlu1 %9918 }
0x5199   : > { %v9953_v28 = vmul.f32 %v9924_v21, %v17283_v56  ;;  %v9952_v17 = vmul.f32 %v9919_v20, %v17284_v62 }
0x519b   : > { %v9973_v59 = vsel %vm6907_vm13, %v9953_v28, 0.0  ;;  %v9966_v22 = vsel %vm6907_vm13, %v9952_v17, 0.0 }
0x519c   : > { %v9974_v46 = vrot.slane %v9973_v59, 4  ;;  %v9967_v2 = vrot.slane %v9966_v22, 4  ;;  %v9934_v19 = vpop.permute.xlu0 %9933  ;;  %v9914_v0 = vpop.permute.xlu1 %9913 }
0x519d   : > { %v9955_v14 = vmul.f32 %v9934_v19, %v17285_v55  ;;  %v9951_v8 = vmul.f32 %v9914_v0, %v17286_v15  ;;  %v17288_v15 = vld [vmem:[#allocation34_spill] sm:$0xff] }
0x519e   : > { %v9975_v43 = vadd.f32 %v9974_v46, %v9973_v59  ;;  %v9968_v5 = vadd.f32 %v9967_v2, %v9966_v22 }
0x519f   : > { %v9987_v52 = vsel %vm6907_vm13, %v9955_v14, 0.0  ;;  %v9959_v7 = vsel %vm6907_vm13, %v9951_v8, 0.0 }
0x51a0   : > { %v9976_v36 = vrot.slane %v9975_v43, 2  ;;  %v9969_v48 = vrot.slane %v9968_v5, 2  ;;  %v9988_v18 = vrot.slane %v9987_v52, 4  ;;  %v9960_v25 = vrot.slane %v9959_v7, 4  ;;  %v9944_v58 = vpop.permute.xlu0 %9943  ;;  %v9929_v3 = vpop.permute.xlu1 %9928 }
0x51a1   : > { %v9957_v6 = vmul.f32 %v9944_v58, %v17279_v41  ;;  %v9954_v21 = vmul.f32 %v9929_v3, %v17287_v47 }
0x51a2   : > { %v9977_v20 = vadd.f32 %v9976_v36, %v9975_v43  ;;  %v9970_v28 = vadd.f32 %v9969_v48, %v9968_v5  ;;  %v9989_v17 = vadd.f32 %v9988_v18, %v9987_v52  ;;  %v9961_v19 = vadd.f32 %v9960_v25, %v9959_v7 }
0x51a3   : > { %v10001_v59 = vsel %vm6907_vm13, %v9957_v6, 0.0  ;;  %v9980_v22 = vsel %vm6907_vm13, %v9954_v21, 0.0  ;;  %v17289_v6 = vld [vmem:[#allocation30_spill] sm:$0xff] }
0x51a4   : > { %v9971_v46 = vrot.slane %v9970_v28, 1  ;;  %v9990_v2 = vrot.slane %v9989_v17, 2  ;;  %v9962_v0 = vrot.slane %v9961_v19, 2  ;;  %v9939_v14 = vpop.permute.xlu1 %9938  ;;  %v10002_v8 = vrot.slane %v10001_v59, 4 }
0x51a5   : > { %v9981_v55 = vrot.slane %v9980_v22, 4  ;;  %v9956_v62 = vmul.f32 %v9939_v14, %v17288_v15  ;;  %v9978_v56 = vrot.slane %v9977_v20, 1 }
0x51a6   : > { %v9972_v58 = vadd.f32 %v9971_v46, %v9970_v28  ;;  %v9991_v41 = vadd.f32 %v9990_v2, %v9989_v17  ;;  %v9963_v3 = vadd.f32 %v9962_v0, %v9961_v19  ;;  %v10003_v43 = vadd.f32 %v10002_v8, %v10001_v59 }
0x51a7   : > { %v9982_v5 = vadd.f32 %v9981_v55, %v9980_v22  ;;  %v9994_v52 = vsel %vm6907_vm13, %v9956_v62, 0.0  ;;  %v9979_v47 = vadd.f32 %v9978_v56, %v9977_v20 }
0x51a8   : > { %v9964_v7 = vrot.slane %v9963_v3, 1  ;;  %v9949_v36 = vpop.permute.xlu1 %9948  ;;  %v10004_v48 = vrot.slane %v10003_v43, 2  ;;  %v9995_v25 = vrot.slane %v9994_v52, 4  ;;  %v10016_v44 = vmul.f32 %v9972_v58, %v17253_v1 }
0x51a9   : > { %v9983_v18 = vrot.slane %v9982_v5, 2  ;;  %v9958_v21 = vmul.f32 %v9949_v36, %v17289_v6  ;;  %v9992_v35 = vrot.slane %v9991_v41, 1  ;;  %v10017_v2 = vmul.f32 %v9979_v47, %v17253_v1 }
0x51aa   : > { %v9965_v14 = vadd.f32 %v9964_v7, %v9963_v3  ;;  %v10005_v15 = vadd.f32 %v10004_v48, %v10003_v43  ;;  %v9996_v17 = vadd.f32 %v9995_v25, %v9994_v52  ;;  %v10031_v56 = vrot.slane %v10016_v44, 7 }
0x51ab   : > { %v9984_v28 = vadd.f32 %v9983_v18, %v9982_v5  ;;  %v10008_v19 = vsel %vm6907_vm13, %v9958_v21, 0.0  ;;  %v9993_v0 = vadd.f32 %v9992_v35, %v9991_v41  ;;  %v10033_v7 = vrot.slane %v10017_v2, 6 }
0x51ac   : > { %v10009_v55 = vrot.slane %v10008_v19, 4  ;;  %v10015_v62 = vmul.f32 %v9965_v14, %v17253_v1  ;;  %v10006_v59 = vrot.slane %v10005_v15, 1  ;;  %v9997_v46 = vrot.slane %v9996_v17, 2 }
0x51ad   : > { %v9985_v22 = vrot.slane %v9984_v28, 1  ;;  %v10019_v48 = vmul.f32 %v9993_v0, %v17253_v1  ;;  %v17290_v0 = vld [vmem:[#allocation7_spill] sm:$0xff] }
0x51ae   : > { %v10010_v8 = vadd.f32 %v10009_v55, %v10008_v19  ;;  %v9998_v58 = vadd.f32 %v9997_v46, %v9996_v17  ;;  %v10032_v3 = vsel %vm1185_vm2, %v10031_v56, %v10015_v62  ;;  %v10007_v43 = vadd.f32 %v10006_v59, %v10005_v15 }
0x51af   : > { %v9986_v20 = vadd.f32 %v9985_v22, %v9984_v28  ;;  %v10034_v41 = vsel %vm1187_vm3, %v10033_v7, %v10032_v3  ;;  %v10037_v28 = vrot.slane %v10019_v48, 4 }
0x51b0   : > { %v10011_v36 = vrot.slane %v10010_v8, 2  ;;  %v9999_v52 = vrot.slane %v9998_v58, 1  ;;  %v10021_v44 = vmul.f32 %v10007_v43, %v17253_v1 }
0x51b1   : > { %v10018_v5 = vmul.f32 %v9986_v20, %v17253_v1 }
0x51b2   : > { %v10012_v18 = vadd.f32 %v10011_v36, %v10010_v8  ;;  %v10000_v21 = vadd.f32 %v9999_v52, %v9998_v58  ;;  %v10041_v62 = vrot.slane %v10021_v44, 2 }
0x51b3   : > { %v10035_v25 = vrot.slane %v10018_v5, 5 }
0x51b4   : > { %v10013_v14 = vrot.slane %v10012_v18, 1  ;;  %v10020_v35 = vmul.f32 %v10000_v21, %v17253_v1 }
0x51b5   : > { %v10036_v47 = vsel %vm1189_vm4, %v10035_v25, %v10034_v41 }
0x51b6   : > { %v10014_v15 = vadd.f32 %v10013_v14, %v10012_v18  ;;  %v10039_v17 = vrot.slane %v10020_v35, 3  ;;  %v10038_v55 = vsel %vm1191_vm5, %v10037_v28, %v10036_v47 }
0x51b8   : > { %v10022_v19 = vmul.f32 %v10014_v15, %v17253_v1  ;;  %v10040_v59 = vsel %vm1193_vm6, %v10039_v17, %v10038_v55 }
0x51b9   : > { %v10042_v46 = vsel %vm1195_vm7, %v10041_v62, %v10040_v59 }
0x51ba   : > { %v10043_v22 = vrot.slane %v10022_v19, 1 }
0x51bc   : > { %v10044_v2 = vsel %vm1197_vm8, %v10043_v22, %v10042_v46 }
0x51bd   : > { %10045 = vrot.lane.b32.xlu0 %v10044_v2, %s13368_s17 }
0x51c1   : > { %10065 = vrot.lane.b32.xlu0 %v17290_v0, %s13370_s30 }
0x51c5   : > { %10070 = vrot.lane.b32.xlu0 %v16420_v30, %s13373_s28 }
0x522f   : > { %v10046_v8 = vpop.permute.xlu0 %10045 }
0x5230   : > { %v10048_v56 = vsel %vm1575_vm12, %v10046_v8, 0.0 }
0x5231   : > { %10049 = vadd.xlane.f32.xlu1 %v10048_v56 }
0x5233   : > { %v10066_v20 = vpop.permute.xlu0 %10065 }
0x5237   : > { %v10071_v43 = vpop.permute.xlu0 %10070 }
0x52be   : > { %v10050_v58 = vpop.xlane.xlu1 %10049 }
0x52bf   : > { %v10068_v36 = vadd.f32 %v10066_v20, %v10050_v58 }
0x52c1   : > { %v10069_v3 = vadd.f32 %v10068_v36, %v15810_v32 }
0x52c3   : > { %v10073_v5 = vsel %vm7054_vm15, %v10069_v3, %v10071_v43 }
0x52c4   : > { %12310 = vmatmul.mubr.msk.f32.vlgmr.msra.gmra.mrb[26].mxu1 %vm7060_vm1, %v10073_v5 }
0x52c5   : > { %12638 = vmatpush3.bf16.msra.mxu1 %v17261_v10  ;;  %12328 = vmatprep.mubr.msk.f32.mxu1 %vm13363_vm0, %v17152_v63 }
0x52c6   : > { %12639 = vmatprep.subr.bf16.mxu1 %v17151_v24 }
0x52c9   : > { %12641 = vmatpush3.bf16.msra.mxu1 %v17262_v11 }
0x52ca   : > { %12642 = vmatprep.subr.bf16.mxu1 %v17151_v24 }
0x52cd   : > { %12644 = vmatpush3.bf16.msra.mxu1 %v17263_v60 }
0x52ce   : > { %12645 = vmatprep.subr.bf16.mxu1 %v17151_v24 }
0x52d1   : > { %12647 = vmatpush3.bf16.msra.mxu1 %v17264_v9 }
0x52d2   : > { %12666 = vmatprep.subr.bf16.mxu1 %v17151_v24 }
0x5397   : > { %v10143_v30 = vpop.f32.mrb[26].mxu1 }
0x5398   : > { %v10144_v52 = vadd.f32 %v10143_v30, %v15826_v16  ;;  %v12311_v7 = vpop.f32.mrb[27].mxu1 }
0x539a   : > { %v11578_v48 = vmul.f32 -1.442695, %v10144_v52 }
0x539c   : > { %13253 = vpow2.f32 %v11578_v48 }
0x53a6   : > { %v13254_v18 = vpop.eup %13253 }
0x53a7   : > { %v10150_v25 = vadd.f32 1.0, %v13254_v18 }
0x53a9   : > { %13255 = vrcp.f32 %v10150_v25 }
0x53b3   : > { %v13256_v21 = vpop.eup %13255 }
0x53b4   : > { %v10153_v14 = vmul.f32 2.0, %v13256_v21  ;;  %v10155_v47 = vmul.f32 %v13256_v21, %v16416_v61 }
0x53b6   : > { %v11579_v41 = vadd.f32 -1.0, %v10153_v14 }
0x53b8   : > { %10157 = vrot.lane.b32.xlu0 %v11579_v41, %s13367_s16 }
0x542a   : > { %v10158_v44 = vpop.permute.xlu0 %10157 }
0x542b   : > { %v10160_v35 = vmul.f32 %v13256_v21, %v10158_v44 }
0x542d   : > { %10162 = vrot.lane.b32.xlu0 %v10160_v35, %s13368_s17 }
0x549f   : > { %v10163_v28 = vpop.permute.xlu0 %10162 }
0x54a0   : > { %v16566_v15 = vadd.f32 %v10163_v28, %v10155_v47 }
0x54a2   : > { %13257 = vtanh.f32 %v16566_v15 }
0x54ac   : > { %v13258_v17 = vpop.eup %13257 }
0x54ad   : > { %10168 = vrot.lane.b32.xlu0 %v13258_v17, %s13367_s16 }
0x551f   : > { %v10169_v19 = vpop.permute.xlu0 %10168 }
0x5520   : > { %v16570_v55 = vmul.f32 %v13256_v21, %v10169_v19 }
0x5522   : > { %10173 = vrot.lane.b32.xlu0 %v16570_v55, %s13368_s17 }
0x5594   : > { %v10174_v62 = vpop.permute.xlu0 %10173 }
0x5595   : > { %v10176_v59 = vsel %vm1575_vm12, %v10174_v62, %v16566_v15 }
0x5596   : > { %12329 = vmatmul.mubr.msk.f32.vlgmr.msra.gmra.mrb[28].mxu1 %vm17248_vm14, %v10176_v59 }
0x5597   : > { %12668 = vmatpush3.bf16.msra.mxu1 %v15663_v33  ;;  %12373 = vmatprep.mubr.msk.f32.mxu1 %vm13363_vm0, %v17152_v63 }
0x5598   : > { %12669 = vmatprep.subr.bf16.mxu1 %v17151_v24 }
0x559b   : > { %12671 = vmatpush3.bf16.msra.mxu1 %v15671_v13 }
0x559c   : > { %12371 = vmatprep.subr.mxu1 %v17152_v63 }
0x559f   : > { %12372 = vmatpush3.msk.msra.mxu1 %vm17247_vm11, %v16436_v31 }
0x5669   : > { %v10246_v61 = vpop.f32.mrb[28].mxu1 }
0x566a   : > { %v10247_v22 = vadd.f32 %v10246_v61, %v15478_v53  ;;  %v12330_v46 = vpop.f32.mrb[29].mxu1 }
0x566c   : > { %v10251_v2 = vcombine.high %v10247_v22, %v10247_v22  ;;  %v10258_v0 = vrot.slane %v10247_v22, %v17134_v12 }
0x566e   : > { %v10265_v33 = vrot.slane %v10251_v2, %v17134_v12  ;;  %v10266_v8 = vcombine.high %v10258_v0, %v10258_v0  ;;  %v10274_v56 = vrot.slane %v10258_v0, %v17134_v12 }
0x5670   : > { %v10267_v20 = vcombine.high %v10265_v33, %v10265_v33  ;;  %v10281_v13 = vrot.slane %v10265_v33, %v17134_v12  ;;  %v10288_v58 = vrot.slane %v10266_v8, %v17134_v12  ;;  %v10296_v36 = vcombine.high %v10274_v56, %v10274_v56 }
0x5671   : > { %v10303_v31 = vrot.slane %v10274_v56, %v17136_v29 }
0x5672   : > { %v10295_v3 = vrot.slane %v10267_v20, %v17134_v12  ;;  %v10297_v43 = vcombine.high %v10281_v13, %v10281_v13  ;;  %v10298_v5 = vcombine.high %v10288_v58, %v10288_v58  ;;  %v10307_v30 = vrot.slane %v10288_v58, %v17136_v29 }
0x5673   : > { %v10311_v52 = vrot.slane %v10296_v36, %v17136_v29  ;;  %v10319_v7 = vrot.slane %v10281_v13, %v17136_v29  ;;  %v10340_v48 = vadd.f32 %v10303_v31, %v15490_v23 }
0x5674   : > { %v10299_v18 = vcombine.high %v10295_v3, %v10295_v3  ;;  %v10315_v25 = vrot.slane %v10298_v5, %v17136_v29  ;;  %v10323_v21 = vrot.slane %v10295_v3, %v17136_v29  ;;  %v10327_v14 = vrot.slane %v10297_v43, %v17136_v29 }
0x5675   : > { %v10341_v41 = vadd.f32 %v15487_v51, %v10307_v30  ;;  %v10342_v44 = vadd.f32 %v10311_v52, %v15499_v27  ;;  %v10344_v35 = vadd.f32 %v10319_v7, %v15507_v37  ;;  %13259 = vtanh.f32 %v10340_v48 }
0x5676   : > { %v10331_v47 = vrot.slane %v10299_v18, %v17136_v29  ;;  %v10343_v28 = vadd.f32 %v15497_v45, %v10315_v25  ;;  %v10345_v17 = vadd.f32 %v15505_v4, %v10323_v21  ;;  %v10346_v19 = vadd.f32 %v10327_v14, %v15524_v54 }
0x5677   : > { %13261 = vtanh.f32 %v10341_v41 }
0x5678   : > { %v10347_v62 = vadd.f32 %v15522_v42, %v10331_v47  ;;  %13263 = vtanh.f32 %v10342_v44 }
0x5679   : > { %13265 = vtanh.f32 %v10344_v35 }
0x567a   : > { %13267 = vtanh.f32 %v10347_v62 }
0x567b   : > { %13269 = vtanh.f32 %v10343_v28 }
0x567c   : > { %13271 = vtanh.f32 %v10345_v17 }
0x567d   : > { %13273 = vtanh.f32 %v10346_v19 }
0x567f   : > { %v13260_v59 = vpop.eup %13259 }
0x5680   : > { %v10356_v61 = vmul.f32 %v13260_v59, %v15517_v40 }
0x5681   : > { %v13262_v22 = vpop.eup %13261 }
0x5682   : > { %v13264_v46 = vpop.eup %13263  ;;  %v10364_v2 = vsel %vm1200_vm9, %v10356_v61, 0.0  ;;  %v10357_v0 = vmul.f32 %v13262_v22, %v15517_v40 }
0x5683   : > { %10365 = vadd.xlane.f32.xlu0 %v10364_v2  ;;  %v10358_v8 = vmul.f32 %v13264_v46, %v15517_v40  ;;  %v13266_v56 = vpop.eup %13265 }
0x5684   : > { %v10367_v33 = vsel %vm1200_vm9, %v10357_v0, 0.0  ;;  %v13268_v20 = vpop.eup %13267  ;;  %v10360_v36 = vmul.f32 %v13266_v56, %v15517_v40 }
0x5685   : > { %10368 = vadd.xlane.f32.xlu1 %v10367_v33  ;;  %v10370_v13 = vsel %vm1200_vm9, %v10358_v8, 0.0  ;;  %v10363_v58 = vmul.f32 %v13268_v20, %v15517_v40  ;;  %v13270_v31 = vpop.eup %13269 }
0x5686   : > { %v10376_v43 = vsel %vm1200_vm9, %v10360_v36, 0.0  ;;  %v10359_v5 = vmul.f32 %v13270_v31, %v15517_v40  ;;  %v13272_v30 = vpop.eup %13271 }
0x5687   : > { %v10385_v3 = vsel %vm1200_vm9, %v10363_v58, 0.0  ;;  %v10361_v7 = vmul.f32 %v13272_v30, %v15517_v40  ;;  %v13274_v48 = vpop.eup %13273 }
0x5688   : > { %10386 = vadd.xlane.f32.xlu0 %v10385_v3  ;;  %v10373_v52 = vsel %vm1200_vm9, %v10359_v5, 0.0  ;;  %v10362_v25 = vmul.f32 %v13274_v48, %v15517_v40 }
0x5689   : > { %10371 = vadd.xlane.f32.xlu1 %v10370_v13  ;;  %v10379_v18 = vsel %vm1200_vm9, %v10361_v7, 0.0 }
0x568a   : > { %v10382_v21 = vsel %vm1200_vm9, %v10362_v25, 0.0 }
0x568d   : > { %10377 = vadd.xlane.f32.xlu1 %v10376_v43 }
0x5691   : > { %10374 = vadd.xlane.f32.xlu1 %v10373_v52 }
0x5695   : > { %10380 = vadd.xlane.f32.xlu1 %v10379_v18 }
0x5699   : > { %10383 = vadd.xlane.f32.xlu1 %v10382_v21 }
0x5710   : > { %v10366_v44 = vpop.xlane.xlu0 %10365 }
0x5711   : > { %v10388_v28 = vadd.f32 %v10366_v44, %v15544_v49 }
0x5712   : > { %v10369_v14 = vpop.xlane.xlu1 %10368 }
0x5713   : > { %v10389_v35 = vadd.f32 %v10369_v14, %v15544_v49  ;;  %v10396_v59 = vmul.f32 1.442695, %v10388_v28 }
0x5715   : > { %v10398_v19 = vmul.f32 1.442695, %v10389_v35  ;;  %v10387_v46 = vpop.xlane.xlu0 %10386 }
0x5716   : > { %v10372_v41 = vpop.xlane.xlu1 %10371  ;;  %v10395_v33 = vadd.f32 %v10387_v46, %v15544_v49 }
0x5717   : > { %v10390_v47 = vadd.f32 %v10372_v41, %v15544_v49  ;;  %13275 = vpow2.f32 %v10398_v19 }
0x5718   : > { %v10410_v58 = vmul.f32 1.442695, %v10395_v33 }
0x5719   : > { %v10400_v62 = vmul.f32 1.442695, %v10390_v47 }
0x571a   : > { %v10378_v17 = vpop.xlane.xlu1 %10377 }
0x571b   : > { %v10392_v61 = vadd.f32 %v10378_v17, %v15544_v49  ;;  %13277 = vpow2.f32 %v10400_v62 }
0x571c   : > { %13279 = vpow2.f32 %v10396_v59 }
0x571d   : > { %v10404_v8 = vmul.f32 1.442695, %v10392_v61 }
0x571e   : > { %v10375_v22 = vpop.xlane.xlu1 %10374 }
0x571f   : > { %v10391_v2 = vadd.f32 %v10375_v22, %v15544_v49 }
0x5721   : > { %v10402_v0 = vmul.f32 1.442695, %v10391_v2  ;;  %v13276_v43 = vpop.eup %13275 }
0x5722   : > { %v10381_v56 = vpop.xlane.xlu1 %10380  ;;  %v10427_v7 = vrot.slane %v13276_v43, %v17145_v57 }
0x5723   : > { %13281 = vpow2.f32 %v10402_v0  ;;  %v10393_v20 = vadd.f32 %v10381_v56, %v15544_v49 }
0x5724   : > { %13283 = vpow2.f32 %v10404_v8 }
0x5725   : > { %v10406_v13 = vmul.f32 1.442695, %v10393_v20  ;;  %v13278_v5 = vpop.eup %13277 }
0x5726   : > { %v10384_v36 = vpop.xlane.xlu1 %10383  ;;  %v13280_v30 = vpop.eup %13279  ;;  %v10431_v48 = vrot.slane %v13278_v5, %v17145_v57 }
0x5727   : > { %13285 = vpow2.f32 %v10406_v13  ;;  %v10394_v31 = vadd.f32 %v10384_v36, %v15544_v49  ;;  %v10423_v18 = vrot.slane %v13280_v30, %v17145_v57 }
0x5728   : > { %13287 = vpow2.f32 %v10410_v58 }
0x5729   : > { %v10408_v3 = vmul.f32 1.442695, %v10394_v31  ;;  %v10452_v41 = vsel %vm1185_vm2, %v10427_v7, %v10423_v18 }
0x572a   : > { %v10453_v44 = vsel %vm1187_vm3, %v10431_v48, %v10452_v41 }
0x572b   : > { %13289 = vpow2.f32 %v10408_v3 }
0x572d   : > { %v13282_v52 = vpop.eup %13281 }
0x572e   : > { %v10435_v25 = vrot.slane %v13282_v52, %v17145_v57  ;;  %v13284_v21 = vpop.eup %13283 }
0x572f   : > { %v10439_v17 = vrot.slane %v13284_v21, %v17145_v57 }
0x5730   : > { %v10454_v47 = vsel %vm1189_vm4, %v10435_v25, %v10453_v44  ;;  %v17291_v44 = vld [vmem:[#allocation63_spill] sm:$0xff] }
0x5731   : > { %v13286_v14 = vpop.eup %13285  ;;  %v10455_v59 = vsel %vm1191_vm5, %v10439_v17, %v10454_v47 }
0x5732   : > { %v10443_v35 = vrot.slane %v13286_v14, %v17145_v57  ;;  %v13288_v28 = vpop.eup %13287 }
0x5733   : > { %v10451_v61 = vrot.slane %v13288_v28, %v17145_v57 }
0x5734   : > { %v10456_v22 = vsel %vm1193_vm6, %v10443_v35, %v10455_v59 }
0x5735   : > { %v13290_v19 = vpop.eup %13289 }
0x5736   : > { %v10447_v62 = vrot.slane %v13290_v19, %v17145_v57 }
0x5738   : > { %v10457_v46 = vsel %vm1195_vm7, %v10447_v62, %v10456_v22  ;;  %v17293_v62 = vld [vmem:[#allocation21_spill] sm:$0xff] }
0x5739   : > { %v10458_v2 = vsel %vm1197_vm8, %v10451_v61, %v10457_v46  ;;  %v17294_v61 = vld [vmem:[#allocation9_spill] sm:$0xff] }
0x573a   : > { %v10460_v0 = vsel %vm6805_vm10, %v10458_v2, 0.0 }
0x573b   : > { %10461 = vadd.xlane.f32.xlu1 %v10460_v0 }
0x57c8   : > { %v10462_v33 = vpop.xlane.xlu1 %10461 }
0x57c9   : > { %13291 = vrcp.f32 %v10462_v33 }
0x57d3   : > { %v13292_v8 = vpop.eup %13291 }
0x57d4   : > { %v10476_v56 = vrot.slane %v13292_v8, %v17203_v38  ;;  %v10472_v20 = vrot.slane %v13292_v8, %v17147_v34  ;;  %v10480_v36 = vrot.slane %v13292_v8, %v17150_v26  ;;  %v10468_v31 = vrot.slane %v13292_v8, %v17136_v29 }
0x57d5   : > { %v10488_v48 = vrot.slane %v13292_v8, %v17281_v50  ;;  %v10484_v18 = vrot.slane %v13292_v8, %v17148_v39  ;;  %v10496_v35 = vrot.slane %v13292_v8, %v17291_v44 }
0x57d6   : > { %v10507_v13 = vmul.f32 %v13278_v5, %v10476_v56  ;;  %v10506_v58 = vmul.f32 %v13276_v43, %v10472_v20  ;;  %v10508_v3 = vmul.f32 %v13282_v52, %v10480_v36  ;;  %v10505_v7 = vmul.f32 %v13280_v30, %v10468_v31  ;;  %v17292_v5 = vld [vmem:[#allocation54_spill] sm:$0xff] }
0x57d7   : > { %v10510_v25 = vmul.f32 %v13286_v14, %v10488_v48  ;;  %v10509_v41 = vmul.f32 %v13284_v21, %v10484_v18  ;;  %v10492_v43 = vrot.slane %v13292_v8, %v17292_v5  ;;  %v10512_v47 = vmul.f32 %v13288_v28, %v10496_v35  ;;  %v17295_v8 = vld [vmem:[#allocation17_spill] sm:$0xff]  ;;  %v17296_v28 = vld [vmem:[#allocation14_spill] sm:$0xff] }
0x57d8   : > { %10525 = vperm.xlu1 %12697, %v10507_v13   ;;  %10520 = vperm.xlu0 %12698, %v10506_v58  }
0x57d9   : > { %v10511_v17 = vmul.f32 %v13290_v19, %v10492_v43  ;;  %v17298_v43 = vld [vmem:[#allocation22_spill] sm:$0xff] }
0x57dc   : > { %10530 = vperm.xlu0 %12698, %v10508_v3   ;;  %10515 = vperm.xlu1 %12697, %v10505_v7  }
0x57e0   : > { %10540 = vperm.xlu0 %12698, %v10510_v25   ;;  %10535 = vperm.xlu1 %12697, %v10509_v41   ;;  %v17297_v41 = vld [vmem:[#allocation34_spill] sm:$0xff] }
0x57e4   : > { %10550 = vperm.xlu0 %12698, %v10512_v47   ;;  %10545 = vperm.xlu1 %12697, %v10511_v17  }
0x5857   : > { %v10526_v52 = vpop.permute.xlu1 %10525  ;;  %v10521_v30 = vpop.permute.xlu0 %10520 }
0x5858   : > { %v10555_v59 = vmul.f32 %v10526_v52, %v17293_v62  ;;  %v10554_v22 = vmul.f32 %v10521_v30, %v17294_v61 }
0x585a   : > { %v10575_v46 = vsel %vm6907_vm13, %v10555_v59, 0.0  ;;  %v10568_v21 = vsel %vm6907_vm13, %v10554_v22, 0.0 }
0x585b   : > { %v10576_v14 = vrot.slane %v10575_v46, 4  ;;  %v10569_v2 = vrot.slane %v10568_v21, 4  ;;  %v10531_v0 = vpop.permute.xlu0 %10530  ;;  %v10516_v33 = vpop.permute.xlu1 %10515 }
0x585c   : > { %v10556_v56 = vmul.f32 %v10531_v0, %v17295_v8  ;;  %v10553_v19 = vmul.f32 %v10516_v33, %v17296_v28 }
0x585d   : > { %v10577_v20 = vadd.f32 %v10576_v14, %v10575_v46  ;;  %v10570_v13 = vadd.f32 %v10569_v2, %v10568_v21 }
0x585e   : > { %v10582_v58 = vsel %vm6907_vm13, %v10556_v56, 0.0  ;;  %v10561_v36 = vsel %vm6907_vm13, %v10553_v19, 0.0 }
0x585f   : > { %v10578_v31 = vrot.slane %v10577_v20, 2  ;;  %v10571_v3 = vrot.slane %v10570_v13, 2  ;;  %v10583_v7 = vrot.slane %v10582_v58, 4  ;;  %v10562_v48 = vrot.slane %v10561_v36, 4  ;;  %v10541_v18 = vpop.permute.xlu0 %10540  ;;  %v10536_v25 = vpop.permute.xlu1 %10535 }
0x5860   : > { %v10558_v35 = vmul.f32 %v10541_v18, %v17297_v41  ;;  %v10557_v47 = vmul.f32 %v10536_v25, %v17298_v43  ;;  %v17299_v41 = vld [vmem:[#allocation6_spill] sm:$0xff] }
0x5861   : > { %v10579_v17 = vadd.f32 %v10578_v31, %v10577_v20  ;;  %v10572_v52 = vadd.f32 %v10571_v3, %v10570_v13  ;;  %v10584_v30 = vadd.f32 %v10583_v7, %v10582_v58  ;;  %v10563_v59 = vadd.f32 %v10562_v48, %v10561_v36 }
0x5862   : > { %v10596_v22 = vsel %vm6907_vm13, %v10558_v35, 0.0  ;;  %v10589_v46 = vsel %vm6907_vm13, %v10557_v47, 0.0 }
0x5863   : > { %v10580_v21 = vrot.slane %v10579_v17, 1  ;;  %v10573_v14 = vrot.slane %v10572_v52, 1  ;;  %v10585_v2 = vrot.slane %v10584_v30, 2  ;;  %v10564_v0 = vrot.slane %v10563_v59, 2  ;;  %v10551_v33 = vpop.permute.xlu0 %10550  ;;  %v10546_v56 = vpop.permute.xlu1 %10545 }
0x5864   : > { %v10597_v19 = vrot.slane %v10596_v22, 4  ;;  %v10590_v8 = vrot.slane %v10589_v46, 4  ;;  %v10560_v18 = vmul.f32 %v10551_v33, %v17289_v6  ;;  %v10559_v25 = vmul.f32 %v10546_v56, %v17299_v41 }
0x5865   : > { %v10581_v20 = vadd.f32 %v10580_v21, %v10579_v17  ;;  %v10574_v13 = vadd.f32 %v10573_v14, %v10572_v52  ;;  %v10586_v58 = vadd.f32 %v10585_v2, %v10584_v30  ;;  %v10565_v36 = vadd.f32 %v10564_v0, %v10563_v59 }
0x5866   : > { %v10598_v31 = vadd.f32 %v10597_v19, %v10596_v22  ;;  %v10591_v3 = vadd.f32 %v10590_v8, %v10589_v46  ;;  %v10610_v7 = vsel %vm6907_vm13, %v10560_v18, 0.0  ;;  %v10603_v48 = vsel %vm6907_vm13, %v10559_v25, 0.0 }
0x5867   : > { %v10618_v35 = vmul.f32 %v10574_v13, %v17253_v1  ;;  %v10587_v47 = vrot.slane %v10586_v58, 1  ;;  %v10566_v28 = vrot.slane %v10565_v36, 1  ;;  %v10611_v62 = vrot.slane %v10610_v7, 4 }
0x5868   : > { %v10599_v43 = vrot.slane %v10598_v31, 2  ;;  %v10592_v61 = vrot.slane %v10591_v3, 2  ;;  %v10604_v33 = vrot.slane %v10603_v48, 4  ;;  %v10619_v56 = vmul.f32 %v10581_v20, %v17253_v1 }
0x5869   : > { %v10588_v17 = vadd.f32 %v10587_v47, %v10586_v58  ;;  %v10567_v52 = vadd.f32 %v10566_v28, %v10565_v36  ;;  %v10612_v22 = vadd.f32 %v10611_v62, %v10610_v7  ;;  %v10633_v46 = vrot.slane %v10618_v35, 7 }
0x586a   : > { %v10600_v30 = vadd.f32 %v10599_v43, %v10598_v31  ;;  %v10593_v59 = vadd.f32 %v10592_v61, %v10591_v3  ;;  %v10605_v8 = vadd.f32 %v10604_v33, %v10603_v48  ;;  %v10635_v25 = vrot.slane %v10619_v56, 6 }
0x586b   : > { %v10620_v21 = vmul.f32 %v10588_v17, %v17253_v1  ;;  %v10617_v14 = vmul.f32 %v10567_v52, %v17253_v1  ;;  %v10613_v19 = vrot.slane %v10612_v22, 2 }
0x586c   : > { %v10601_v2 = vrot.slane %v10600_v30, 1  ;;  %v10594_v0 = vrot.slane %v10593_v59, 1  ;;  %v10606_v18 = vrot.slane %v10605_v8, 2 }
0x586d   : > { %v10634_v13 = vsel %vm1185_vm2, %v10633_v46, %v10617_v14  ;;  %v10614_v58 = vadd.f32 %v10613_v19, %v10612_v22  ;;  %v10637_v43 = vrot.slane %v10620_v21, 5  ;;  %v17300_v46 = vld [vmem:[#allocation12_spill] sm:$0xff] }
0x586e   : > { %v10602_v6 = vadd.f32 %v10601_v2, %v10600_v30  ;;  %v10595_v20 = vadd.f32 %v10594_v0, %v10593_v59  ;;  %v10607_v28 = vadd.f32 %v10606_v18, %v10605_v8  ;;  %v10636_v62 = vsel %vm1187_vm3, %v10635_v25, %v10634_v13 }
0x586f   : > { %v10615_v31 = vrot.slane %v10614_v58, 1  ;;  %v10638_v33 = vsel %vm1189_vm4, %v10637_v43, %v10636_v62 }
0x5870   : > { %v10622_v61 = vmul.f32 %v10602_v6, %v17253_v1  ;;  %v10621_v36 = vmul.f32 %v10595_v20, %v17253_v1  ;;  %v10608_v3 = vrot.slane %v10607_v28, 1 }
0x5871   : > { %v10616_v48 = vadd.f32 %v10615_v31, %v10614_v58 }
0x5872   : > { %v10639_v7 = vrot.slane %v10621_v36, 4  ;;  %v10609_v35 = vadd.f32 %v10608_v3, %v10607_v28  ;;  %v10641_v47 = vrot.slane %v10622_v61, 3 }
0x5873   : > { %v10624_v17 = vmul.f32 %v10616_v48, %v17253_v1 }
0x5874   : > { %v10623_v56 = vmul.f32 %v10609_v35, %v17253_v1  ;;  %v10640_v52 = vsel %vm1191_vm5, %v10639_v7, %v10638_v33 }
0x5875   : > { %v10645_v59 = vrot.slane %v10624_v17, 1  ;;  %v10642_v6 = vsel %vm1193_vm6, %v10641_v47, %v10640_v52 }
0x5876   : > { %v10643_v30 = vrot.slane %v10623_v56, 2 }
0x5878   : > { %v10644_v22 = vsel %vm1195_vm7, %v10643_v30, %v10642_v6 }
0x5879   : > { %v10646_v8 = vsel %vm1197_vm8, %v10645_v59, %v10644_v22 }
0x587a   : > { %10647 = vrot.lane.b32.xlu1 %v10646_v8, %s13368_s17 }
0x587e   : > { %10667 = vrot.lane.b32.xlu1 %v17300_v46, %s13370_s30 }
0x5882   : > { %10672 = vrot.lane.b32.xlu1 %v16570_v55, %s13373_s28 }
0x58ec   : > { %v10648_v21 = vpop.permute.xlu1 %10647 }
0x58ed   : > { %v10650_v14 = vsel %vm1575_vm12, %v10648_v21, 0.0 }
0x58ee   : > { %10651 = vadd.xlane.f32.xlu0 %v10650_v14 }
0x58f0   : > { %v10668_v2 = vpop.permute.xlu1 %10667 }
0x58f4   : > { %v10673_v25 = vpop.permute.xlu1 %10672 }
0x597b   : > { %v10652_v0 = vpop.xlane.xlu0 %10651 }
0x597c   : > { %v10670_v19 = vadd.f32 %v10668_v2, %v10652_v0 }
0x597e   : > { %v10671_v18 = vadd.f32 %v10670_v19, %v15810_v32 }
0x5980   : > { %v10675_v13 = vsel %vm7054_vm15, %v10671_v18, %v10673_v25 }
0x5981   : > { %12342 = vmatmul.mubr.msk.f32.vlgmr.msra.gmra.mrb[36].mxu0 %vm7060_vm1, %v10675_v13 }
0x5982   : > { %12656 = vmatpush3.bf16.msra.mxu0 %v17261_v10  ;;  %12360 = vmatprep.mubr.msk.f32.mxu0 %vm13363_vm0, %v17152_v63  ;;  %vm17301_vm0 = vmmov %vm17248_vm14 }
0x5983   : > { %12657 = vmatprep.subr.bf16.mxu0 %v17151_v24 }
0x5986   : > { %12659 = vmatpush3.bf16.msra.mxu0 %v17262_v11 }
0x5987   : > { %12660 = vmatprep.subr.bf16.mxu0 %v17151_v24 }
0x598a   : > { %12662 = vmatpush3.bf16.msra.mxu0 %v17263_v60 }
0x598b   : > { %12663 = vmatprep.subr.bf16.mxu0 %v17151_v24 }
0x598e   : > { %12665 = vmatpush3.bf16.msra.mxu0 %v17264_v9 }
0x5a54   : > { %v10745_v55 = vpop.f32.mrb[36].mxu0 }
0x5a55   : > { %v10746_v20 = vadd.f32 %v10745_v55, %v15826_v16  ;;  %v12343_v58 = vpop.f32.mrb[37].mxu0 }
0x5a57   : > { %v11583_v10 = vmul.f32 -1.442695, %v10746_v20 }
0x5a59   : > { %13293 = vpow2.f32 %v11583_v10 }
0x5a63   : > { %v13294_v28 = vpop.eup %13293 }
0x5a64   : > { %v10752_v63 = vadd.f32 1.0, %v13294_v28 }
0x5a66   : > { %13295 = vrcp.f32 %v10752_v63 }
0x5a70   : > { %v13296_v43 = vpop.eup %13295 }
0x5a71   : > { %v10755_v62 = vmul.f32 2.0, %v13296_v43  ;;  %v10757_v24 = vmul.f32 %v13296_v43, %v16566_v15 }
0x5a73   : > { %v11584_v11 = vadd.f32 -1.0, %v10755_v62 }
0x5a75   : > { %10759 = vrot.lane.b32.xlu1 %v11584_v11, %s13367_s16 }
0x5ae7   : > { %v10760_v61 = vpop.permute.xlu1 %10759 }
0x5ae8   : > { %v10762_v60 = vmul.f32 %v13296_v43, %v10760_v61 }
0x5aea   : > { %10764 = vrot.lane.b32.xlu1 %v10762_v60, %s13368_s17 }
0x5b5c   : > { %v10765_v9 = vpop.permute.xlu1 %10764 }
0x5b5d   : > { %v16709_v36 = vadd.f32 %v10765_v9, %v10757_v24 }
0x5b5f   : > { %13297 = vtanh.f32 %v16709_v36 }
0x5b69   : > { %v13298_v31 = vpop.eup %13297 }
0x5b6a   : > { %10770 = vrot.lane.b32.xlu1 %v13298_v31, %s13367_s16 }
0x5bdc   : > { %v10771_v3 = vpop.permute.xlu1 %10770 }
0x5bdd   : > { %v16713_v7 = vmul.f32 %v13296_v43, %v10771_v3 }
0x5bdf   : > { %10775 = vrot.lane.b32.xlu1 %v16713_v7, %s13368_s17 }
0x5c51   : > { %v10776_v48 = vpop.permute.xlu1 %10775 }
0x5c52   : > { %v10778_v35 = vsel %vm1575_vm12, %v10776_v48, %v16709_v36 }
0x5c53   : > { %12361 = vmatmul.mubr.msk.f32.vlgmr.msra.gmra.mrb[38].mxu0 %vm17301_vm0, %v10778_v35 }
0x5d26   : > { %v10848_v15 = vpop.f32.mrb[38].mxu0 }
0x5d27   : > { %v10849_v47 = vadd.f32 %v10848_v15, %v15478_v53  ;;  %v12362_v33 = vpop.f32.mrb[39].mxu0 }
0x5d29   : > { %v10853_v56 = vcombine.high %v10849_v47, %v10849_v47  ;;  %v10860_v17 = vrot.slane %v10849_v47, %v17134_v12 }
0x5d2b   : > { %v10867_v52 = vrot.slane %v10853_v56, %v17134_v12  ;;  %v10868_v30 = vcombine.high %v10860_v17, %v10860_v17  ;;  %v10876_v59 = vrot.slane %v10860_v17, %v17134_v12 }
0x5d2d   : > { %v10869_v6 = vcombine.high %v10867_v52, %v10867_v52  ;;  %v10883_v22 = vrot.slane %v10867_v52, %v17134_v12  ;;  %v10890_v8 = vrot.slane %v10868_v30, %v17134_v12  ;;  %v10898_v46 = vcombine.high %v10876_v59, %v10876_v59 }
0x5d2e   : > { %v10905_v21 = vrot.slane %v10876_v59, %v17136_v29 }
0x5d2f   : > { %v10897_v14 = vrot.slane %v10869_v6, %v17134_v12  ;;  %v10899_v53 = vcombine.high %v10883_v22, %v10883_v22  ;;  %v10900_v2 = vcombine.high %v10890_v8, %v10890_v8  ;;  %v10909_v0 = vrot.slane %v10890_v8, %v17136_v29 }
0x5d30   : > { %v10913_v19 = vrot.slane %v10898_v46, %v17136_v29  ;;  %v10921_v18 = vrot.slane %v10883_v22, %v17136_v29  ;;  %v10942_v25 = vadd.f32 %v10905_v21, %v15490_v23 }
0x5d31   : > { %v10901_v13 = vcombine.high %v10897_v14, %v10897_v14  ;;  %v10917_v55 = vrot.slane %v10900_v2, %v17136_v29  ;;  %v10925_v20 = vrot.slane %v10897_v14, %v17136_v29  ;;  %v10929_v58 = vrot.slane %v10899_v53, %v17136_v29 }
0x5d32   : > { %v10943_v10 = vadd.f32 %v15487_v51, %v10909_v0  ;;  %v10944_v12 = vadd.f32 %v10913_v19, %v15499_v27  ;;  %v10946_v28 = vadd.f32 %v10921_v18, %v15507_v37  ;;  %13299 = vtanh.f32 %v10942_v25 }
0x5d33   : > { %v10933_v63 = vrot.slane %v10901_v13, %v17136_v29  ;;  %v10945_v43 = vadd.f32 %v15497_v45, %v10917_v55  ;;  %v10947_v23 = vadd.f32 %v15505_v4, %v10925_v20  ;;  %v10948_v62 = vadd.f32 %v10929_v58, %v15524_v54 }
0x5d34   : > { %13301 = vtanh.f32 %v10943_v10 }
0x5d35   : > { %v10949_v11 = vadd.f32 %v15522_v42, %v10933_v63  ;;  %13303 = vtanh.f32 %v10944_v12 }
0x5d36   : > { %13305 = vtanh.f32 %v10946_v28 }
0x5d37   : > { %13307 = vtanh.f32 %v10945_v43 }
0x5d38   : > { %13309 = vtanh.f32 %v10947_v23 }
0x5d39   : > { %13311 = vtanh.f32 %v10948_v62 }
0x5d3a   : > { %13313 = vtanh.f32 %v10949_v11 }
0x5d3c   : > { %v13300_v61 = vpop.eup %13299 }
0x5d3d   : > { %v10958_v51 = vmul.f32 %v13300_v61, %v15517_v40 }
0x5d3e   : > { %v13302_v27 = vpop.eup %13301 }
0x5d3f   : > { %v13304_v37 = vpop.eup %13303  ;;  %v10966_v60 = vsel %vm1200_vm9, %v10958_v51, 0.0  ;;  %v10959_v24 = vmul.f32 %v13302_v27, %v15517_v40 }
0x5d40   : > { %10967 = vadd.xlane.f32.xlu1 %v10966_v60  ;;  %v10960_v4 = vmul.f32 %v13304_v37, %v15517_v40  ;;  %v13306_v54 = vpop.eup %13305 }
0x5d41   : > { %v10969_v45 = vsel %vm1200_vm9, %v10959_v24, 0.0  ;;  %v10962_v9 = vmul.f32 %v13306_v54, %v15517_v40  ;;  %v13308_v31 = vpop.eup %13307 }
0x5d42   : > { %10970 = vadd.xlane.f32.xlu0 %v10969_v45  ;;  %v10972_v42 = vsel %vm1200_vm9, %v10960_v4, 0.0  ;;  %v10961_v48 = vmul.f32 %v13308_v31, %v15517_v40  ;;  %v13310_v35 = vpop.eup %13309 }
0x5d43   : > { %v10978_v3 = vsel %vm1200_vm9, %v10962_v9, 0.0  ;;  %v10963_v47 = vmul.f32 %v13310_v35, %v15517_v40  ;;  %v13312_v33 = vpop.eup %13311 }
0x5d44   : > { %v10975_v15 = vsel %vm1200_vm9, %v10961_v48, 0.0  ;;  %v10964_v17 = vmul.f32 %v13312_v33, %v15517_v40  ;;  %v13314_v52 = vpop.eup %13313 }
0x5d45   : > { %v10981_v56 = vsel %vm1200_vm9, %v10963_v47, 0.0  ;;  %v10965_v59 = vmul.f32 %v13314_v52, %v15517_v40 }
0x5d46   : > { %10973 = vadd.xlane.f32.xlu0 %v10972_v42  ;;  %v10984_v30 = vsel %vm1200_vm9, %v10964_v17, 0.0 }
0x5d47   : > { %v10987_v6 = vsel %vm1200_vm9, %v10965_v59, 0.0 }
0x5d4a   : > { %10979 = vadd.xlane.f32.xlu0 %v10978_v3 }
0x5d4e   : > { %10976 = vadd.xlane.f32.xlu0 %v10975_v15 }
0x5d52   : > { %10982 = vadd.xlane.f32.xlu0 %v10981_v56 }
0x5d56   : > { %10985 = vadd.xlane.f32.xlu0 %v10984_v30 }
0x5d5a   : > { %10988 = vadd.xlane.f32.xlu0 %v10987_v6 }
0x5dcd   : > { %v10968_v46 = vpop.xlane.xlu1 %10967 }
0x5dce   : > { %v10990_v21 = vadd.f32 %v10968_v46, %v15544_v49 }
0x5dcf   : > { %v10971_v22 = vpop.xlane.xlu0 %10970 }
0x5dd0   : > { %v10991_v53 = vadd.f32 %v10971_v22, %v15544_v49  ;;  %v10998_v0 = vmul.f32 1.442695, %v10990_v21 }
0x5dd2   : > { %v11000_v18 = vmul.f32 1.442695, %v10991_v53  ;;  %13315 = vpow2.f32 %v10998_v0 }
0x5dd3   : > { %v10974_v8 = vpop.xlane.xlu0 %10973 }
0x5dd4   : > { %v10992_v2 = vadd.f32 %v10974_v8, %v15544_v49  ;;  %13317 = vpow2.f32 %v11000_v18 }
0x5dd6   : > { %v11002_v40 = vmul.f32 1.442695, %v10992_v2 }
0x5dd7   : > { %v10980_v14 = vpop.xlane.xlu0 %10979 }
0x5dd8   : > { %v10994_v55 = vadd.f32 %v10980_v14, %v15544_v49  ;;  %13319 = vpow2.f32 %v11002_v40 }
0x5dda   : > { %v11006_v12 = vmul.f32 1.442695, %v10994_v55 }
0x5ddb   : > { %v10977_v19 = vpop.xlane.xlu0 %10976 }
0x5ddc   : > { %v10993_v25 = vadd.f32 %v10977_v19, %v15544_v49  ;;  %v13316_v11 = vpop.eup %13315 }
0x5ddd   : > { %v11025_v45 = vrot.slane %v13316_v11, %v17145_v57 }
0x5dde   : > { %v11004_v13 = vmul.f32 1.442695, %v10993_v25  ;;  %v13318_v61 = vpop.eup %13317 }
0x5ddf   : > { %v10983_v20 = vpop.xlane.xlu0 %10982  ;;  %v11029_v60 = vrot.slane %v13318_v61, %v17145_v57 }
0x5de0   : > { %v10995_v58 = vadd.f32 %v10983_v20, %v15544_v49  ;;  %13321 = vpow2.f32 %v11004_v13 }
0x5de1   : > { %v11054_v9 = vsel %vm1185_vm2, %v11029_v60, %v11025_v45 }
0x5de2   : > { %v11008_v10 = vmul.f32 1.442695, %v10995_v58  ;;  %v13320_v27 = vpop.eup %13319  ;;  %v17302_v58 = vld [vmem:[#allocation21_spill] sm:$0xff] }
0x5de3   : > { %v10986_v28 = vpop.xlane.xlu0 %10985  ;;  %v11033_v24 = vrot.slane %v13320_v27, %v17145_v57 }
0x5de4   : > { %v10996_v63 = vadd.f32 %v10986_v28, %v15544_v49  ;;  %13323 = vpow2.f32 %v11008_v10  ;;  %v17303_v10 = vld [vmem:[#allocation9_spill] sm:$0xff] }
0x5de5   : > { %13325 = vpow2.f32 %v11006_v12 }
0x5de6   : > { %v11010_v43 = vmul.f32 1.442695, %v10996_v63 }
0x5de7   : > { %v10989_v23 = vpop.xlane.xlu0 %10988 }
0x5de8   : > { %13327 = vpow2.f32 %v11010_v43  ;;  %v10997_v62 = vadd.f32 %v10989_v23, %v15544_v49  ;;  %v11055_v49 = vsel %vm1187_vm3, %v11033_v24, %v11054_v9 }
0x5dea   : > { %v11012_v51 = vmul.f32 1.442695, %v10997_v62  ;;  %v13322_v37 = vpop.eup %13321 }
0x5deb   : > { %v11037_v4 = vrot.slane %v13322_v37, %v17145_v57 }
0x5dec   : > { %13329 = vpow2.f32 %v11012_v51 }
0x5ded   : > { %v11056_v48 = vsel %vm1189_vm4, %v11037_v4, %v11055_v49 }
0x5dee   : > { %v13324_v54 = vpop.eup %13323 }
0x5def   : > { %v13326_v42 = vpop.eup %13325  ;;  %v11045_v3 = vrot.slane %v13324_v54, %v17145_v57 }
0x5df0   : > { %v11041_v35 = vrot.slane %v13326_v42, %v17145_v57 }
0x5df2   : > { %v13328_v31 = vpop.eup %13327  ;;  %v11057_v33 = vsel %vm1191_vm5, %v11041_v35, %v11056_v48 }
0x5df3   : > { %v11049_v15 = vrot.slane %v13328_v31, %v17145_v57  ;;  %v11058_v17 = vsel %vm1193_vm6, %v11045_v3, %v11057_v33  ;;  %v17306_v3 = vld [vmem:[#allocation17_spill] sm:$0xff] }
0x5df5   : > { %v11059_v52 = vsel %vm1195_vm7, %v11049_v15, %v11058_v17 }
0x5df6   : > { %v13330_v47 = vpop.eup %13329 }
0x5df7   : > { %v11053_v56 = vrot.slane %v13330_v47, %v17145_v57 }
0x5df9   : > { %v11060_v30 = vsel %vm1197_vm8, %v11053_v56, %v11059_v52 }
0x5dfa   : > { %v11062_v59 = vsel %vm6805_vm10, %v11060_v30, 0.0 }
0x5dfb   : > { %11063 = vadd.xlane.f32.xlu0 %v11062_v59 }
0x5e88   : > { %v11064_v6 = vpop.xlane.xlu0 %11063 }
0x5e89   : > { %13331 = vrcp.f32 %v11064_v6 }
0x5e93   : > { %v13332_v22 = vpop.eup %13331 }
0x5e94   : > { %v11078_v8 = vrot.slane %v13332_v22, %v17203_v38  ;;  %v11074_v46 = vrot.slane %v13332_v22, %v17147_v34  ;;  %v11086_v57 = vrot.slane %v13332_v22, %v17148_v39  ;;  %v11070_v53 = vrot.slane %v13332_v22, %v17136_v29 }
0x5e95   : > { %v11094_v19 = vrot.slane %v13332_v22, %v17292_v5  ;;  %v11082_v18 = vrot.slane %v13332_v22, %v17150_v26  ;;  %v11090_v34 = vrot.slane %v13332_v22, %v17281_v50  ;;  %v11098_v13 = vrot.slane %v13332_v22, %v17291_v44  ;;  %v17305_v44 = vld [vmem:[#allocation14_spill] sm:$0xff] }
0x5e96   : > { %v11109_v21 = vmul.f32 %v13320_v27, %v11078_v8  ;;  %v11108_v14 = vmul.f32 %v13318_v61, %v11074_v46  ;;  %v11111_v2 = vmul.f32 %v13326_v42, %v11086_v57  ;;  %v11107_v0 = vmul.f32 %v13316_v11, %v11070_v53  ;;  %v17304_v11 = vld [vmem:[#allocation22_spill] sm:$0xff] }
0x5e97   : > { %v11113_v25 = vmul.f32 %v13328_v31, %v11094_v19  ;;  %v11110_v38 = vmul.f32 %v13322_v37, %v11082_v18  ;;  %v11112_v40 = vmul.f32 %v13324_v54, %v11090_v34  ;;  %v11114_v29 = vmul.f32 %v13330_v47, %v11098_v13  ;;  %v17307_v46 = vld [vmem:[#allocation34_spill] sm:$0xff] }
0x5e98   : > { %11127 = vperm.xlu0 %12698, %v11109_v21   ;;  %11122 = vperm.xlu1 %12697, %v11108_v14   ;;  %v17308_v13 = vld [vmem:[#allocation30_spill] sm:$0xff] }
0x5e9c   : > { %11137 = vperm.xlu0 %12698, %v11111_v2   ;;  %11117 = vperm.xlu1 %12697, %v11107_v0  }
0x5ea0   : > { %11147 = vperm.xlu0 %12698, %v11113_v25   ;;  %11132 = vperm.xlu1 %12697, %v11110_v38  }
0x5ea4   : > { %11142 = vperm.xlu1 %12697, %v11112_v40  }
0x5ea8   : > { %11152 = vperm.xlu1 %12697, %v11114_v29  }
0x5f17   : > { %v11128_v55 = vpop.permute.xlu0 %11127  ;;  %v11123_v20 = vpop.permute.xlu1 %11122 }
0x5f18   : > { %v11157_v5 = vmul.f32 %v11128_v55, %v17302_v58  ;;  %v11156_v12 = vmul.f32 %v11123_v20, %v17303_v10 }
0x5f1a   : > { %v11177_v28 = vsel %vm6907_vm13, %v11157_v5, 0.0  ;;  %v11170_v63 = vsel %vm6907_vm13, %v11156_v12, 0.0 }
0x5f1b   : > { %v11178_v43 = vrot.slane %v11177_v28, 4  ;;  %v11171_v50 = vrot.slane %v11170_v63, 4  ;;  %v11138_v23 = vpop.permute.xlu0 %11137  ;;  %v11118_v62 = vpop.permute.xlu1 %11117 }
0x5f1c   : > { %v11159_v61 = vmul.f32 %v11138_v23, %v17304_v11  ;;  %v11155_v51 = vmul.f32 %v11118_v62, %v17305_v44 }
0x5f1d   : > { %v11179_v27 = vadd.f32 %v11178_v43, %v11177_v28  ;;  %v11172_v37 = vadd.f32 %v11171_v50, %v11170_v63 }
0x5f1e   : > { %v11191_v60 = vsel %vm6907_vm13, %v11159_v61, 0.0  ;;  %v11163_v24 = vsel %vm6907_vm13, %v11155_v51, 0.0 }
0x5f1f   : > { %v11180_v45 = vrot.slane %v11179_v27, 2  ;;  %v11173_v4 = vrot.slane %v11172_v37, 2  ;;  %v11192_v54 = vrot.slane %v11191_v60, 4  ;;  %v11164_v42 = vrot.slane %v11163_v24, 4  ;;  %v11148_v9 = vpop.permute.xlu0 %11147  ;;  %v11133_v31 = vpop.permute.xlu1 %11132 }
0x5f20   : > { %v11161_v49 = vmul.f32 %v11148_v9, %v17299_v41  ;;  %v11158_v48 = vmul.f32 %v11133_v31, %v17306_v3 }
0x5f21   : > { %v11181_v35 = vadd.f32 %v11180_v45, %v11179_v27  ;;  %v11174_v15 = vadd.f32 %v11173_v4, %v11172_v37  ;;  %v11193_v47 = vadd.f32 %v11192_v54, %v11191_v60  ;;  %v11165_v33 = vadd.f32 %v11164_v42, %v11163_v24 }
0x5f22   : > { %v11205_v56 = vsel %vm6907_vm13, %v11161_v49, 0.0  ;;  %v11184_v17 = vsel %vm6907_vm13, %v11158_v48, 0.0 }
0x5f23   : > { %v11175_v52 = vrot.slane %v11174_v15, 1  ;;  %v11194_v30 = vrot.slane %v11193_v47, 2  ;;  %v11166_v59 = vrot.slane %v11165_v33, 2  ;;  %v11143_v6 = vpop.permute.xlu1 %11142  ;;  %v11206_v22 = vrot.slane %v11205_v56, 4 }
0x5f24   : > { %v11185_v8 = vrot.slane %v11184_v17, 4  ;;  %v11160_v21 = vmul.f32 %v11143_v6, %v17307_v46  ;;  %v11182_v14 = vrot.slane %v11181_v35, 1 }
0x5f25   : > { %v16804_v41 = vadd.f32 %v11175_v52, %v11174_v15  ;;  %v11195_v57 = vadd.f32 %v11194_v30, %v11193_v47  ;;  %v11167_v53 = vadd.f32 %v11166_v59, %v11165_v33  ;;  %v11207_v2 = vadd.f32 %v11206_v22, %v11205_v56 }
0x5f26   : > { %v11186_v0 = vadd.f32 %v11185_v8, %v11184_v17  ;;  %v11198_v19 = vsel %vm6907_vm13, %v11160_v21, 0.0  ;;  %v16808_v55 = vadd.f32 %v11182_v14, %v11181_v35 }
0x5f27   : > { %v11168_v18 = vrot.slane %v11167_v53, 1  ;;  %v11153_v25 = vpop.permute.xlu1 %11152  ;;  %v11208_v38 = vrot.slane %v11207_v2, 2  ;;  %v11199_v40 = vrot.slane %v11198_v19, 4  ;;  %v11220_v20 = vmul.f32 %v16804_v41, %v17253_v1 }
0x5f28   : > { %v11187_v34 = vrot.slane %v11186_v0, 2  ;;  %v11162_v29 = vmul.f32 %v11153_v25, %v17308_v13  ;;  %v11196_v58 = vrot.slane %v11195_v57, 1  ;;  %v11221_v61 = vmul.f32 %v16808_v55, %v17253_v1 }
0x5f29   : > { %v16812_v5 = vadd.f32 %v11168_v18, %v11167_v53  ;;  %v11209_v10 = vadd.f32 %v11208_v38, %v11207_v2  ;;  %v11200_v28 = vadd.f32 %v11199_v40, %v11198_v19  ;;  %v11235_v27 = vrot.slane %v11220_v20, 7 }
0x5f2a   : > { %v11188_v12 = vadd.f32 %v11187_v34, %v11186_v0  ;;  %v11212_v63 = vsel %vm6907_vm13, %v11162_v29, 0.0  ;;  %v16819_v44 = vadd.f32 %v11196_v58, %v11195_v57  ;;  %v11237_v9 = vrot.slane %v11221_v61, 6  ;;  %v17309_v57 = vld [vmem:[#allocation10_spill] sm:$0xff] }
0x5f2b   : > { %v11213_v43 = vrot.slane %v11212_v63, 4  ;;  %v11219_v50 = vmul.f32 %v16812_v5, %v17253_v1  ;;  %v11210_v23 = vrot.slane %v11209_v10, 1  ;;  %v11201_v11 = vrot.slane %v11200_v28, 2 }
0x5f2c   : > { %v11189_v62 = vrot.slane %v11188_v12, 1  ;;  %v11223_v31 = vmul.f32 %v16819_v44, %v17253_v1 }
0x5f2d   : > { %v11214_v51 = vadd.f32 %v11213_v43, %v11212_v63  ;;  %v11202_v60 = vadd.f32 %v11201_v11, %v11200_v28  ;;  %v11236_v45 = vsel %vm1185_vm2, %v11235_v27, %v11219_v50  ;;  %v16824_v4 = vadd.f32 %v11210_v23, %v11209_v10  ;;  %v13353_v63 = vld [vmem:[%s16901_s5] sm:$0xff] }
0x5f2e   : > { %v16821_v37 = vadd.f32 %v11189_v62, %v11188_v12  ;;  %v11238_v15 = vsel %vm1187_vm3, %v11237_v9, %v11236_v45  ;;  %v11241_v17 = vrot.slane %v11223_v31, 4  ;;  %v11379_v11 = vrot.slane %v13353_v63, %v17150_v26 }
0x5f2f   : > { %v11215_v24 = vrot.slane %v11214_v51, 2  ;;  %v11203_v42 = vrot.slane %v11202_v60, 1  ;;  %v11225_v47 = vmul.f32 %v16824_v4, %v17253_v1 }
0x5f30   : > { %v11222_v54 = vmul.f32 %v16821_v37, %v17253_v1 }
0x5f31   : > { %v11216_v49 = vadd.f32 %v11215_v24, %v11214_v51  ;;  %v16830_v48 = vadd.f32 %v11203_v42, %v11202_v60  ;;  %v11245_v22 = vrot.slane %v11225_v47, 2 }
0x5f32   : > { %v11239_v3 = vrot.slane %v11222_v54, 5 }
0x5f33   : > { %v11217_v35 = vrot.slane %v11216_v49, 1  ;;  %v11224_v33 = vmul.f32 %v16830_v48, %v17253_v1 }
0x5f34   : > { %v11240_v56 = vsel %vm1189_vm4, %v11239_v3, %v11238_v15 }
0x5f35   : > { %v16838_v52 = vadd.f32 %v11217_v35, %v11216_v49  ;;  %v11243_v30 = vrot.slane %v11224_v33, 3  ;;  %v11242_v6 = vsel %vm1191_vm5, %v11241_v17, %v11240_v56 }
0x5f37   : > { %v11226_v59 = vmul.f32 %v16838_v52, %v17253_v1  ;;  %v11244_v8 = vsel %vm1193_vm6, %v11243_v30, %v11242_v6 }
0x5f38   : > { %v11246_v21 = vsel %vm1195_vm7, %v11245_v22, %v11244_v8 }
0x5f39   : > { %v11247_v46 = vrot.slane %v11226_v59, 1 }
0x5f3b   : > { %v11248_v14 = vsel %vm1197_vm8, %v11247_v46, %v11246_v21  ;;  %v17310_v46 = vld [vmem:[#allocation5_spill] sm:$0xff] }
0x5f3c   : > { %11249 = vrot.lane.b32.xlu0 %v11248_v14, %s13368_s17 }
0x5f40   : > { %11269 = vrot.lane.b32.xlu0 %v17309_v57, %s13370_s30 }
0x5f44   : > { %11274 = vrot.lane.b32.xlu0 %v16713_v7, %s13373_s28 }
0x5fae   : > { %v11250_v53 = vpop.permute.xlu0 %11249 }
0x5faf   : > { %v11252_v1 = vsel %vm1575_vm12, %v11250_v53, 0.0 }
0x5fb0   : > { %11253 = vadd.xlane.f32.xlu1 %v11252_v1 }
0x5fb2   : > { %v11270_v2 = vpop.permute.xlu0 %11269 }
0x5fb6   : > { %v11275_v25 = vpop.permute.xlu0 %11274 }
0x603d   : > { %v11254_v0 = vpop.xlane.xlu1 %11253 }
0x603e   : > { %v11272_v19 = vadd.f32 %v11270_v2, %v11254_v0 }
0x6040   : > { %v11273_v18 = vadd.f32 %v11272_v19, %v15810_v32 }
0x6042   : > { %v11277_v38 = vsel %vm7054_vm15, %v11273_v18, %v11275_v25 }
0x6043   : > { %12374 = vmatmul.mubr.msk.f32.vlgmr.msra.gmra.mrb[30].mxu1 %vm7060_vm1, %v11277_v38 }
0x6116   : > { %v11347_v34 = vpop.f32.mrb[30].mxu1 }
0x6117   : > { %v11348_v40 = vadd.f32 %v11347_v34, %v15826_v16  ;;  %v12375_v13 = vpop.f32.mrb[31].mxu1  ;;  %v11395_v16 = vrot.slane %v13353_v63, %v17148_v39 }
0x6119   : > { %v11588_v29 = vmul.f32 -1.442695, %v11348_v40 }
0x611b   : > { %13333 = vpow2.f32 %v11588_v29 }
0x6125   : > { %v13334_v7 = vpop.eup %13333 }
0x6126   : > { %v11354_v20 = vadd.f32 1.0, %v13334_v7 }
0x6128   : > { %13335 = vrcp.f32 %v11354_v20 }
0x6132   : > { %v13336_v58 = vpop.eup %13335 }
0x6133   : > { %v11357_v10 = vmul.f32 2.0, %v13336_v58  ;;  %v11359_v43 = vmul.f32 %v13336_v58, %v16709_v36 }
0x6135   : > { %v11589_v12 = vadd.f32 -1.0, %v11357_v10 }
0x6137   : > { %11361 = vrot.lane.b32.xlu0 %v11589_v12, %s13367_s16 }
0x61a9   : > { %v11362_v32 = vpop.permute.xlu0 %11361 }
0x61aa   : > { %v11364_v28 = vmul.f32 %v13336_v58, %v11362_v32 }
0x61ac   : > { %11366 = vrot.lane.b32.xlu0 %v11364_v28, %s13368_s17 }
0x61b0   : > { %11397 = vrot.lane.b32.xlu0 %v11395_v16, %s13371_s12 }
0x621e   : > { %v11367_v50 = vpop.permute.xlu0 %11366 }
0x621f   : > { %v11369_v23 = vadd.f32 %v11367_v50, %v11359_v43 }
0x6221   : > { %13337 = vtanh.f32 %v11369_v23 }
0x6222   : > { %v11398_v61 = vpop.permute.xlu0 %11397 }
0x6223   : > { %v11401_v51 = vmul.f32 %v11398_v61, %v16804_v41  ;;  %v11402_v27 = vmul.f32 %v11398_v61, %v16808_v55  ;;  %v11400_v60 = vmul.f32 %v11398_v61, %v16812_v5  ;;  %v11403_v36 = vmul.f32 %v11398_v61, %v16821_v37 }
0x6224   : > { %v11404_v54 = vmul.f32 %v11398_v61, %v16819_v44  ;;  %v11405_v9 = vmul.f32 %v11398_v61, %v16830_v48  ;;  %v11406_v55 = vmul.f32 %v11398_v61, %v16824_v4  ;;  %v11407_v15 = vmul.f32 %v11398_v61, %v16838_v52 }
0x6225   : > { %v11416_v39 = vrot.slane %v11401_v51, 7  ;;  %v11418_v24 = vrot.slane %v11402_v27, 6  ;;  %v11420_v26 = vrot.slane %v11403_v36, 5 }
0x6226   : > { %v11422_v41 = vrot.slane %v11404_v54, 4  ;;  %v11424_v3 = vrot.slane %v11405_v9, 3  ;;  %v11426_v33 = vrot.slane %v11406_v55, 2  ;;  %v11428_v56 = vrot.slane %v11407_v15, 1 }
0x6227   : > { %v11417_v45 = vsel %vm1185_vm2, %v11416_v39, %v11400_v60 }
0x6228   : > { %v11419_v42 = vsel %vm1187_vm3, %v11418_v24, %v11417_v45 }
0x6229   : > { %v11421_v31 = vsel %vm1189_vm4, %v11420_v26, %v11419_v42 }
0x622a   : > { %v11423_v5 = vsel %vm1191_vm5, %v11422_v41, %v11421_v31 }
0x622b   : > { %v13338_v62 = vpop.eup %13337  ;;  %v11425_v44 = vsel %vm1193_vm6, %v11424_v3, %v11423_v5 }
0x622c   : > { %11372 = vrot.lane.b32.xlu0 %v13338_v62, %s13367_s16  ;;  %v11427_v48 = vsel %vm1195_vm7, %v11426_v33, %v11425_v44  ;;  %s13374_s16 = smov 124  }
0x622d   : > { %v11429_v4 = vsel %vm1197_vm8, %v11428_v56, %v11427_v48 }
0x6230   : > { %11381 = vrot.lane.b32.xlu0 %v11379_v11, %s13371_s12 }
0x629e   : > { %v11373_v49 = vpop.permute.xlu0 %11372 }
0x629f   : > { %v11375_v35 = vmul.f32 %v13336_v58, %v11373_v49 }
0x62a2   : > { %v11382_v37 = vpop.permute.xlu0 %11381 }
0x62a3   : > { %v11384_v47 = vmul.f32 %v11382_v37, %v11375_v35 }
0x62a5   : > { %11386 = vrot.lane.b32.xlu0 %v11384_v47, %s13368_s17 }
0x62a9   : > { %11430 = vrot.lane.b32.xlu0 %v11429_v4, %s13368_s17 }
0x6317   : > { %v11387_v17 = vpop.permute.xlu0 %11386 }
0x6318   : > { %v11389_v30 = vsel %vm1575_vm12, %v11387_v17, 0.0 }
0x6319   : > { %11390 = vadd.xlane.f32.xlu1 %v11389_v30 }
0x631b   : > { %v11431_v52 = vpop.permute.xlu0 %11430 }
0x631c   : > { %v11433_v59 = vsel %vm1575_vm12, %v11431_v52, 0.0 }
0x631d   : > { %11434 = vadd.xlane.f32.xlu0 %v11433_v59 }
0x63a6   : > { %v11391_v6 = vpop.xlane.xlu1 %11390 }
0x63aa   : > { %v11435_v22 = vpop.xlane.xlu0 %11434 }
0x63ab   : > { %v11436_v8 = vadd.f32 %v11435_v22, %v11391_v6 }
0x63ad   : > { %v11437_v21 = vadd.f32 %v11436_v8, %v17310_v46 }
0x63af   : > { %11439 = vrot.lane.b32.xlu1 %v11437_v21, %s13374_s16 }
0x6421   : > { %v11440_v14 = vpop.permute.xlu1 %11439 }
0x6422   : > { %11442 = vst.msk [vmem:[%s251_s13] sm:$0xff] %vm7054_vm15, %v11440_v14 }
0x6423 PF: > { %s16_s21 = sadd.s32 1, %s13360_s21  }
0x6424   : > { %p13_p5 = scmp.ge.s32.totalorder %s16_s21, 4  }
0x6426   :  { %15 = sbr.rel (!%p13_p5) target bundleno = 1 (0x1), region = 74 }

</bundles_post_ra>
